<compile_context>
chip_gen: v6e
topology: v6e:2x2x1
jax: 0.10.0
libtpu: 0.0.40
codegen_flags: <defaults>
</compile_context>

<pallas_src>
import jax
import jax.numpy as jnp
from jax.experimental import pallas as pl
from jax.experimental.pallas import tpu as pltpu


_DIMS = [(224, 1024), (1024, 1024), (1024, 256), (256, 64), (64, 16), (16, 2)]
_K_PAD = 256  # first-layer input features padded 224 -> 256 (multiple of 128)


def _mlp_kernel(x_ref,
                w1_ref, b1_ref, w2_ref, b2_ref, w3_ref, b3_ref,
                w4_ref, b4_ref, w5_ref, b5_ref, w6_ref, b6_ref,
                o_ref):
    """Full Net25 forward on one (TB, 256) batch tile; weights are VMEM-resident."""

    def dense(h, w_ref, b_ref, relu=True):
        # Cast activations to the weight dtype (bf16) -> native MXU bf16 path,
        # f32 accumulation, f32 bias add.
        y = jnp.dot(h.astype(w_ref.dtype), w_ref[...],
                    preferred_element_type=jnp.float32) + b_ref[...]
        # Dropout(p=0.4) is identity at inference time.
        return jnp.maximum(y, 0.0) if relu else y

    h = x_ref[...]
    h = dense(h, w1_ref, b1_ref)   # (TB, 1024)
    h = dense(h, w2_ref, b2_ref)   # (TB, 1024)
    h = dense(h, w3_ref, b3_ref)   # (TB, 256)
    h = dense(h, w4_ref, b4_ref)   # (TB, 64)
    h = dense(h, w5_ref, b5_ref)   # (TB, 16)
    o_ref[...] = dense(h, w6_ref, b6_ref, relu=False).astype(o_ref.dtype)


def net25_forward(x, params, *, tb=128):
    """x: (B, 224) float32. params: list of 6 (W, b) with W (in, out), b (1, out) or (out,)."""
    B, F = x.shape
    assert F == 224, F
    assert len(params) == 6

    # Pad batch to a multiple of the MXU-friendly tile and features 224 -> 256.
    pad_b = (-B) % tb
    xp = jnp.pad(x.astype(jnp.float32), ((0, pad_b), (0, _K_PAD - F)))
    Bp = B + pad_b

    flat = [xp]
    in_specs = [pl.BlockSpec((tb, _K_PAD), lambda i: (i, 0))]
    for li, (w, b) in enumerate(params):
        w = w.astype(jnp.bfloat16)
        if li == 0:
            # Zero-pad W1 rows 224 -> 256 (matches the zero-padded input features).
            w = jnp.pad(w, ((0, _K_PAD - w.shape[0]), (0, 0)))
        b = b.reshape(1, -1).astype(jnp.float32)
        flat += [w, b]
        # Constant block index -> weights/biases stay resident in VMEM across grid steps.
        in_specs += [pl.BlockSpec(w.shape, lambda i: (0, 0)),
                     pl.BlockSpec(b.shape, lambda i: (0, 0))]

    # Advisory cost for XLA scheduling.
    flops = 2 * Bp * sum(ki * ko for ki, ko in [(_K_PAD, 1024)] + _DIMS[1:])
    bytes_accessed = int(sum(a.size * a.dtype.itemsize for a in flat[1:])
                         + xp.size * 4 + Bp * 2 * 4)

    out = pl.pallas_call(
        _mlp_kernel,
        grid=(Bp // tb,),
        out_shape=jax.ShapeDtypeStruct((Bp, 2), jnp.float32),
        in_specs=in_specs,
        out_specs=pl.BlockSpec((tb, 2), lambda i: (i, 0)),
        compiler_params=pltpu.CompilerParams(
            dimension_semantics=("parallel",),
            vmem_limit_bytes=32 << 20),
        cost_estimate=pl.CostEstimate(
            flops=flops, transcendentals=0, bytes_accessed=bytes_accessed),
    )(*flat)
    return out[:B]


def _init_linear(key, fan_in, fan_out):
    """Deterministic init mimicking nn.Linear defaults (uniform(-1/sqrt(in), 1/sqrt(in)))."""
    kw, kb = jax.random.split(key)
    bound = 1.0 / jnp.sqrt(jnp.float32(fan_in))
    # Stored as (in, out) so the kernel does x @ W.
    w = jax.random.uniform(kw, (fan_in, fan_out), jnp.float32, -bound, bound)
    b = jax.random.uniform(kb, (1, fan_out), jnp.float32, -bound, bound)
    return w, b


def _reference_forward(x, params):
    """Pure-JAX reference mirroring the kernel's bf16-weight / f32-accumulate math."""
    h = jnp.pad(x.astype(jnp.float32), ((0, 0), (0, _K_PAD - x.shape[1])))
    for i, (w, b) in enumerate(params):
        w = w.astype(jnp.bfloat16)
        if i == 0:
            w = jnp.pad(w, ((0, _K_PAD - w.shape[0]), (0, 0)))
        y = jnp.dot(h.astype(jnp.bfloat16), w,
                    preferred_element_type=jnp.float32) + b.reshape(1, -1)
        h = jnp.maximum(y, 0.0) if i < len(params) - 1 else y
    return h


if __name__ == "__main__":
    key = jax.random.PRNGKey(0)
    k_x, k1, k2, k3, k4, k5, k6 = jax.random.split(key, 7)

    layer_keys = [k1, k2, k3, k4, k5, k6]
    params = [_init_linear(k, fi, fo) for k, (fi, fo) in zip(layer_keys, _DIMS)]

    B = 8
    x = jax.random.normal(k_x, (B, 224), jnp.float32)

    out = net25_forward(x, params)
    out = jax.block_until_ready(out)

    ref = _reference_forward(x, params)
    assert out.shape == (B, 2), out.shape
    assert jnp.allclose(out, ref, atol=1e-2, rtol=1e-2), "mismatch vs reference"

    print("KERNEL_OK")
</pallas_src>

<mosaic_0001>
module attributes {stable_mosaic.version = 11 : i64} {
  func.func @_mlp_kernel(%arg0: i32, %arg1: memref<128x256xf32, #tpu.memory_space<vmem>>, %arg2: memref<256x1024xbf16, #tpu.memory_space<vmem>>, %arg3: memref<1x1024xf32, #tpu.memory_space<vmem>>, %arg4: memref<1024x1024xbf16, #tpu.memory_space<vmem>>, %arg5: memref<1x1024xf32, #tpu.memory_space<vmem>>, %arg6: memref<1024x256xbf16, #tpu.memory_space<vmem>>, %arg7: memref<1x256xf32, #tpu.memory_space<vmem>>, %arg8: memref<256x64xbf16, #tpu.memory_space<vmem>>, %arg9: memref<1x64xf32, #tpu.memory_space<vmem>>, %arg10: memref<64x16xbf16, #tpu.memory_space<vmem>>, %arg11: memref<1x16xf32, #tpu.memory_space<vmem>>, %arg12: memref<16x2xbf16, #tpu.memory_space<vmem>>, %arg13: memref<1x2xf32, #tpu.memory_space<vmem>>, %arg14: memref<128x2xf32, #tpu.memory_space<vmem>>) attributes {dimension_semantics = [#tpu.dimension_semantics<parallel>], iteration_bounds = array<i64: 1>, scalar_prefetch = 0 : i64, scratch_operands = 0 : i64, tpu.core_type = #tpu.core_type<tc>, window_params = [{transform_indices = @transform_0, window_bounds = array<i64: 128, 256>}, {pipeline_mode = #tpu.pipeline_mode<synchronous>, transform_indices = @transform_1, window_bounds = array<i64: 256, 1024>}, {pipeline_mode = #tpu.pipeline_mode<synchronous>, transform_indices = @transform_2, window_bounds = array<i64: 1, 1024>}, {pipeline_mode = #tpu.pipeline_mode<synchronous>, transform_indices = @transform_3, window_bounds = array<i64: 1024, 1024>}, {pipeline_mode = #tpu.pipeline_mode<synchronous>, transform_indices = @transform_4, window_bounds = array<i64: 1, 1024>}, {pipeline_mode = #tpu.pipeline_mode<synchronous>, transform_indices = @transform_5, window_bounds = array<i64: 1024, 256>}, {pipeline_mode = #tpu.pipeline_mode<synchronous>, transform_indices = @transform_6, window_bounds = array<i64: 1, 256>}, {pipeline_mode = #tpu.pipeline_mode<synchronous>, transform_indices = @transform_7, window_bounds = array<i64: 256, 64>}, {pipeline_mode = #tpu.pipeline_mode<synchronous>, transform_indices = @transform_8, window_bounds = array<i64: 1, 64>}, {pipeline_mode = #tpu.pipeline_mode<synchronous>, transform_indices = @transform_9, window_bounds = array<i64: 64, 16>}, {pipeline_mode = #tpu.pipeline_mode<synchronous>, transform_indices = @transform_10, window_bounds = array<i64: 1, 16>}, {pipeline_mode = #tpu.pipeline_mode<synchronous>, transform_indices = @transform_11, window_bounds = array<i64: 16, 2>}, {pipeline_mode = #tpu.pipeline_mode<synchronous>, transform_indices = @transform_12, window_bounds = array<i64: 1, 2>}, {transform_indices = @transform_13, window_bounds = array<i64: 128, 2>}]} {
    %c0 = arith.constant 0 : index
    %c0_0 = arith.constant 0 : index
    %0 = vector.load %arg1[%c0, %c0_0] : memref<128x256xf32, #tpu.memory_space<vmem>>, vector<128x256xf32>
    %1 = arith.truncf %0 : vector<128x256xf32> to vector<128x256xbf16>
    %c0_1 = arith.constant 0 : index
    %c0_2 = arith.constant 0 : index
    %2 = vector.load %arg2[%c0_1, %c0_2] : memref<256x1024xbf16, #tpu.memory_space<vmem>>, vector<256x1024xbf16>
    %cst = arith.constant dense<0.000000e+00> : vector<128x1024xf32>
    %3 = tpu.matmul %1, %2, %cst {dimension_numbers = #tpu.dot_dimension_numbers<[1], [0], [0], [1], [0, 0, 1, 1], [], []>} : vector<128x256xbf16>, vector<256x1024xbf16>, vector<128x1024xf32> -> vector<128x1024xf32>
    %c0_3 = arith.constant 0 : index
    %c0_4 = arith.constant 0 : index
    %4 = vector.load %arg3[%c0_3, %c0_4] : memref<1x1024xf32, #tpu.memory_space<vmem>>, vector<1x1024xf32>
    %5 = vector.broadcast %4 : vector<1x1024xf32> to vector<128x1024xf32>
    %6 = arith.addf %3, %5 : vector<128x1024xf32>
    %cst_5 = arith.constant 0.000000e+00 : f32
    %7 = vector.broadcast %cst_5 : f32 to vector<128x1024xf32>
    %8 = arith.maximumf %6, %7 : vector<128x1024xf32>
    %9 = arith.truncf %8 : vector<128x1024xf32> to vector<128x1024xbf16>
    %c0_6 = arith.constant 0 : index
    %c0_7 = arith.constant 0 : index
    %10 = vector.load %arg4[%c0_6, %c0_7] : memref<1024x1024xbf16, #tpu.memory_space<vmem>>, vector<1024x1024xbf16>
    %cst_8 = arith.constant dense<0.000000e+00> : vector<128x1024xf32>
    %11 = tpu.matmul %9, %10, %cst_8 {dimension_numbers = #tpu.dot_dimension_numbers<[1], [0], [0], [1], [0, 0, 1, 1], [], []>} : vector<128x1024xbf16>, vector<1024x1024xbf16>, vector<128x1024xf32> -> vector<128x1024xf32>
    %c0_9 = arith.constant 0 : index
    %c0_10 = arith.constant 0 : index
    %12 = vector.load %arg5[%c0_9, %c0_10] : memref<1x1024xf32, #tpu.memory_space<vmem>>, vector<1x1024xf32>
    %13 = vector.broadcast %12 : vector<1x1024xf32> to vector<128x1024xf32>
    %14 = arith.addf %11, %13 : vector<128x1024xf32>
    %cst_11 = arith.constant 0.000000e+00 : f32
    %15 = vector.broadcast %cst_11 : f32 to vector<128x1024xf32>
    %16 = arith.maximumf %14, %15 : vector<128x1024xf32>
    %17 = arith.truncf %16 : vector<128x1024xf32> to vector<128x1024xbf16>
    %c0_12 = arith.constant 0 : index
    %c0_13 = arith.constant 0 : index
    %18 = vector.load %arg6[%c0_12, %c0_13] : memref<1024x256xbf16, #tpu.memory_space<vmem>>, vector<1024x256xbf16>
    %cst_14 = arith.constant dense<0.000000e+00> : vector<128x256xf32>
    %19 = tpu.matmul %17, %18, %cst_14 {dimension_numbers = #tpu.dot_dimension_numbers<[1], [0], [0], [1], [0, 0, 1, 1], [], []>} : vector<128x1024xbf16>, vector<1024x256xbf16>, vector<128x256xf32> -> vector<128x256xf32>
    %c0_15 = arith.constant 0 : index
    %c0_16 = arith.constant 0 : index
    %20 = vector.load %arg7[%c0_15, %c0_16] : memref<1x256xf32, #tpu.memory_space<vmem>>, vector<1x256xf32>
    %21 = vector.broadcast %20 : vector<1x256xf32> to vector<128x256xf32>
    %22 = arith.addf %19, %21 : vector<128x256xf32>
    %cst_17 = arith.constant 0.000000e+00 : f32
    %23 = vector.broadcast %cst_17 : f32 to vector<128x256xf32>
    %24 = arith.maximumf %22, %23 : vector<128x256xf32>
    %25 = arith.truncf %24 : vector<128x256xf32> to vector<128x256xbf16>
    %c0_18 = arith.constant 0 : index
    %c0_19 = arith.constant 0 : index
    %26 = vector.load %arg8[%c0_18, %c0_19] : memref<256x64xbf16, #tpu.memory_space<vmem>>, vector<256x64xbf16>
    %cst_20 = arith.constant dense<0.000000e+00> : vector<128x64xf32>
    %27 = tpu.matmul %25, %26, %cst_20 {dimension_numbers = #tpu.dot_dimension_numbers<[1], [0], [0], [1], [0, 0, 1, 1], [], []>} : vector<128x256xbf16>, vector<256x64xbf16>, vector<128x64xf32> -> vector<128x64xf32>
    %c0_21 = arith.constant 0 : index
    %c0_22 = arith.constant 0 : index
    %28 = vector.load %arg9[%c0_21, %c0_22] : memref<1x64xf32, #tpu.memory_space<vmem>>, vector<1x64xf32>
    %29 = vector.broadcast %28 : vector<1x64xf32> to vector<128x64xf32>
    %30 = arith.addf %27, %29 : vector<128x64xf32>
    %cst_23 = arith.constant 0.000000e+00 : f32
    %31 = vector.broadcast %cst_23 : f32 to vector<128x64xf32>
    %32 = arith.maximumf %30, %31 : vector<128x64xf32>
    %33 = arith.truncf %32 : vector<128x64xf32> to vector<128x64xbf16>
    %c0_24 = arith.constant 0 : index
    %c0_25 = arith.constant 0 : index
    %34 = vector.load %arg10[%c0_24, %c0_25] : memref<64x16xbf16, #tpu.memory_space<vmem>>, vector<64x16xbf16>
    %cst_26 = arith.constant dense<0.000000e+00> : vector<128x16xf32>
    %35 = tpu.matmul %33, %34, %cst_26 {dimension_numbers = #tpu.dot_dimension_numbers<[1], [0], [0], [1], [0, 0, 1, 1], [], []>} : vector<128x64xbf16>, vector<64x16xbf16>, vector<128x16xf32> -> vector<128x16xf32>
    %c0_27 = arith.constant 0 : index
    %c0_28 = arith.constant 0 : index
    %36 = vector.load %arg11[%c0_27, %c0_28] : memref<1x16xf32, #tpu.memory_space<vmem>>, vector<1x16xf32>
    %37 = vector.broadcast %36 : vector<1x16xf32> to vector<128x16xf32>
    %38 = arith.addf %35, %37 : vector<128x16xf32>
    %cst_29 = arith.constant 0.000000e+00 : f32
    %39 = vector.broadcast %cst_29 : f32 to vector<128x16xf32>
    %40 = arith.maximumf %38, %39 : vector<128x16xf32>
    %41 = arith.truncf %40 : vector<128x16xf32> to vector<128x16xbf16>
    %c0_30 = arith.constant 0 : index
    %c0_31 = arith.constant 0 : index
    %42 = vector.load %arg12[%c0_30, %c0_31] : memref<16x2xbf16, #tpu.memory_space<vmem>>, vector<16x2xbf16>
    %cst_32 = arith.constant dense<0.000000e+00> : vector<128x2xf32>
    %43 = tpu.matmul %41, %42, %cst_32 {dimension_numbers = #tpu.dot_dimension_numbers<[1], [0], [0], [1], [0, 0, 1, 1], [], []>} : vector<128x16xbf16>, vector<16x2xbf16>, vector<128x2xf32> -> vector<128x2xf32>
    %c0_33 = arith.constant 0 : index
    %c0_34 = arith.constant 0 : index
    %44 = vector.load %arg13[%c0_33, %c0_34] : memref<1x2xf32, #tpu.memory_space<vmem>>, vector<1x2xf32>
    %45 = vector.broadcast %44 : vector<1x2xf32> to vector<128x2xf32>
    %46 = arith.addf %43, %45 : vector<128x2xf32>
    %c0_35 = arith.constant 0 : index
    %c0_36 = arith.constant 0 : index
    %47 = vector.load %arg14[%c0_35, %c0_36] : memref<128x2xf32, #tpu.memory_space<vmem>>, vector<128x2xf32>
    tpu.vector_store %arg14[%c0_35, %c0_36], %46 {strides = array<i32>} : memref<128x2xf32, #tpu.memory_space<vmem>>, vector<128x2xf32>,
    return
  }
  func.func @transform_0(%arg0: i32) -> (i32, i32) {
    %c0_i32 = arith.constant 0 : i32
    %c0_i32_0 = arith.constant 0 : i32
    return %arg0, %c0_i32 : i32, i32
  }
  func.func @transform_1(%arg0: i32) -> (i32, i32) {
    %c0_i32 = arith.constant 0 : i32
    %c0_i32_0 = arith.constant 0 : i32
    %c0_i32_1 = arith.constant 0 : i32
    return %c0_i32, %c0_i32_0 : i32, i32
  }
  func.func @transform_2(%arg0: i32) -> (i32, i32) {
    %c0_i32 = arith.constant 0 : i32
    %c0_i32_0 = arith.constant 0 : i32
    %c0_i32_1 = arith.constant 0 : i32
    return %c0_i32, %c0_i32_0 : i32, i32
  }
  func.func @transform_3(%arg0: i32) -> (i32, i32) {
    %c0_i32 = arith.constant 0 : i32
    %c0_i32_0 = arith.constant 0 : i32
    %c0_i32_1 = arith.constant 0 : i32
    return %c0_i32, %c0_i32_0 : i32, i32
  }
  func.func @transform_4(%arg0: i32) -> (i32, i32) {
    %c0_i32 = arith.constant 0 : i32
    %c0_i32_0 = arith.constant 0 : i32
    %c0_i32_1 = arith.constant 0 : i32
    return %c0_i32, %c0_i32_0 : i32, i32
  }
  func.func @transform_5(%arg0: i32) -> (i32, i32) {
    %c0_i32 = arith.constant 0 : i32
    %c0_i32_0 = arith.constant 0 : i32
    %c0_i32_1 = arith.constant 0 : i32
    return %c0_i32, %c0_i32_0 : i32, i32
  }
  func.func @transform_6(%arg0: i32) -> (i32, i32) {
    %c0_i32 = arith.constant 0 : i32
    %c0_i32_0 = arith.constant 0 : i32
    %c0_i32_1 = arith.constant 0 : i32
    return %c0_i32, %c0_i32_0 : i32, i32
  }
  func.func @transform_7(%arg0: i32) -> (i32, i32) {
    %c0_i32 = arith.constant 0 : i32
    %c0_i32_0 = arith.constant 0 : i32
    %c0_i32_1 = arith.constant 0 : i32
    return %c0_i32, %c0_i32_0 : i32, i32
  }
  func.func @transform_8(%arg0: i32) -> (i32, i32) {
    %c0_i32 = arith.constant 0 : i32
    %c0_i32_0 = arith.constant 0 : i32
    %c0_i32_1 = arith.constant 0 : i32
    return %c0_i32, %c0_i32_0 : i32, i32
  }
  func.func @transform_9(%arg0: i32) -> (i32, i32) {
    %c0_i32 = arith.constant 0 : i32
    %c0_i32_0 = arith.constant 0 : i32
    %c0_i32_1 = arith.constant 0 : i32
    return %c0_i32, %c0_i32_0 : i32, i32
  }
  func.func @transform_10(%arg0: i32) -> (i32, i32) {
    %c0_i32 = arith.constant 0 : i32
    %c0_i32_0 = arith.constant 0 : i32
    %c0_i32_1 = arith.constant 0 : i32
    return %c0_i32, %c0_i32_0 : i32, i32
  }
  func.func @transform_11(%arg0: i32) -> (i32, i32) {
    %c0_i32 = arith.constant 0 : i32
    %c0_i32_0 = arith.constant 0 : i32
    %c0_i32_1 = arith.constant 0 : i32
    return %c0_i32, %c0_i32_0 : i32, i32
  }
  func.func @transform_12(%arg0: i32) -> (i32, i32) {
    %c0_i32 = arith.constant 0 : i32
    %c0_i32_0 = arith.constant 0 : i32
    %c0_i32_1 = arith.constant 0 : i32
    return %c0_i32, %c0_i32_0 : i32, i32
  }
  func.func @transform_13(%arg0: i32) -> (i32, i32) {
    %c0_i32 = arith.constant 0 : i32
    %c0_i32_0 = arith.constant 0 : i32
    return %arg0, %c0_i32 : i32, i32
  }
}

</mosaic_0001>

<bundles_post_ra>
// kernel: tpu_custom_call.1
= control target key start
LH: loop header
LB: loop body
LE: loop exit
PB: predicated region body
PF: predicated region fallthrough
CT: control target
= control target key end

     0   :  { %18 = vsyncpa [#allocation3], 0  ;;  %s12575_s0 = inlined_call_operand.hbm [shape: f32[128,256], index: 0, kind: input, shape index: {}]   ;;  %s12576_s1 = inlined_call_operand.hbm [shape: bf16[256,1024], index: 1, kind: input, shape index: {}]   ;;  %s12577_s2 = inlined_call_operand.hbm [shape: f32[1,1024], index: 2, kind: input, shape index: {}]   ;;  %s12578_s3 = inlined_call_operand.hbm [shape: bf16[1024,1024], index: 3, kind: input, shape index: {}]   ;;  %s12579_s4 = inlined_call_operand.hbm [shape: f32[1,1024], index: 4, kind: input, shape index: {}]   ;;  %s12580_s5 = inlined_call_operand.hbm [shape: bf16[1024,256], index: 5, kind: input, shape index: {}]   ;;  %s12581_s6 = inlined_call_operand.hbm [shape: f32[1,256], index: 6, kind: input, shape index: {}]   ;;  %s12582_s7 = inlined_call_operand.vmem [shape: bf16[256,64], index: 7, kind: input, shape index: {}]   ;;  %s12583_s8 = inlined_call_operand.hbm [shape: f32[1,64], index: 8, kind: input, shape index: {}]   ;;  %s12584_s9 = inlined_call_operand.vmem [shape: bf16[64,16], index: 9, kind: input, shape index: {}]   ;;  %s12585_s10 = inlined_call_operand.hbm [shape: f32[1,16], index: 10, kind: input, shape index: {}]   ;;  %s12586_s11 = inlined_call_operand.vmem [shape: bf16[16,2], index: 11, kind: input, shape index: {}]   ;;  %s12587_s12 = inlined_call_operand.hbm [shape: f32[1,2], index: 12, kind: input, shape index: {}]   ;;  %s12588_s13 = inlined_call_operand.vmem [shape: f32[128,2], index: 13, kind: output, shape index: {}]  }
   0x1   :  { %19 = vsyncpa [#allocation5], 0 }
   0x2   :  { %20 = vsyncpa [#allocation8], 0 }
   0x3   :  { %21 = vsyncpa [#allocation11], 0 }
   0x4   :  { %22 = vsyncpa [#allocation14], 0 }
   0x5   :  { %23 = vsyncpa [#allocation17], 0  ;;  %s10049_s25 = smov [#allocation4]  }
   0x6   :  { %s41_s26 = sshll.u32 %s10049_s25, 4  ;;  %s42_s26 = int_to_ptr.vmem [resolvable:$true] %s41_s26 }
   0x7   :  { %s9845_s27 = scalar_lea.vmem %s42_s26, 16384  ;;  %p9850_p1 = scmp.lt.s32.totalorder %s42_s26, %s42_s26 }
   0x8   :  { %p9846_p0 = scmp.ne.s32.totalorder %s42_s26, %s9845_s27  ;;  %p9851_p2 = scmp.lt.s32.totalorder %s9845_s27, %s9845_s27 }
   0xa   :  { %p9852_p3 = por %p9851_p2, %p9850_p1 }
   0xc   :  { %p9853_p4 = pnand %p9852_p3, %p9846_p0 }
   0xe   :  { %9856 = shalt.err (!%p9853_p4)
}
   0xf   :  { %s10050_s28 = smov 512   ;;  %s10051_s29 = smov 32  }
  0x10   :  { %47 = dma.hbm_to_vmem [thread:$0]  %s12576_s1, 16384, %s42_s26, [#allocation5], %s10050_s28, %s10050_s28, %s10051_s29  }
  0x11   :  { %s10052_s15 = smov [#allocation7]   ;;  %s10053_s17 = smov [#allocation10]  }
  0x12   :  { %s63_s16 = sshll.u32 %s10052_s15, 4  ;;  %s85_s18 = sshll.u32 %s10053_s17, 4  ;;  %s64_s16 = int_to_ptr.vmem [resolvable:$true] %s63_s16  ;;  %s86_s18 = int_to_ptr.vmem [resolvable:$true] %s85_s18 }
  0x13   :  { %s9865_s19 = scalar_lea.vmem %s64_s16, 65536  ;;  %p9870_p6 = scmp.lt.s32.totalorder %s64_s16, %s64_s16 }
  0x14   :  { %p9866_p5 = scmp.ne.s32.totalorder %s64_s16, %s9865_s19  ;;  %p9871_p7 = scmp.lt.s32.totalorder %s9865_s19, %s9865_s19 }
  0x16   :  { %p9872_p8 = por %p9871_p7, %p9870_p6 }
  0x18   :  { %p9873_p9 = pnand %p9872_p8, %p9866_p5 }
  0x1a   :  { %9876 = shalt.err (!%p9873_p9)
}
  0x1b   :  { %69 = dma.hbm_to_vmem [thread:$0]  %s12578_s3, 65536, %s64_s16, [#allocation8], %s10050_s28, %s10050_s28, %s10051_s29  }
  0x1c   :  { %s9885_s22 = scalar_lea.vmem %s86_s18, 16384  ;;  %p9890_p11 = scmp.lt.s32.totalorder %s86_s18, %s86_s18 }
  0x1d   :  { %p9886_p10 = scmp.ne.s32.totalorder %s86_s18, %s9885_s22  ;;  %p9891_p12 = scmp.lt.s32.totalorder %s9885_s22, %s9885_s22 }
  0x1f   :  { %p9892_p13 = por %p9891_p12, %p9890_p11 }
  0x21   :  { %p9893_p0 = pnand %p9892_p13, %p9886_p10 }
  0x23   :  { %9896 = shalt.err (!%p9893_p0)
}
  0x24   :  { %s10054_s1 = smov 128   ;;  %s10055_s23 = smov 8  }
  0x25   :  { %91 = dma.hbm_to_vmem [thread:$0]  %s12580_s5, 16384, %s86_s18, [#allocation11], %s10054_s1, %s10054_s1, %s10055_s23  }
  0x26   :  { %s10056_s26 = smov [#allocation13]   ;;  %s10057_s30 = smov [#allocation2]  }
  0x27   :  { %s110_s27 = sshll.u32 %s10056_s26, 4  ;;  %s29_s14 = sshll.u32 %s10057_s30, 4  ;;  %s111_s27 = int_to_ptr.vmem [resolvable:$true] %s110_s27  ;;  %s30_s14 = int_to_ptr.vmem [resolvable:$true] %s29_s14 }
  0x28   :  { %s9905_s3 = scalar_lea.vmem %s111_s27, 16  ;;  %s9909_s28 = scalar_lea.vmem %s111_s27, 32 }
  0x29   :  { %p9906_p1 = scmp.ne.s32.totalorder %s111_s27, %s9905_s3  ;;  %p9910_p2 = scmp.lt.s32.totalorder %s111_s27, %s111_s27 }
  0x2a   :  { %p9911_p3 = scmp.lt.s32.totalorder %s9909_s28, %s9905_s3 }
  0x2c   :  { %p9912_p4 = por %p9911_p3, %p9910_p2 }
  0x2e   :  { %p9913_p5 = pnand %p9912_p4, %p9906_p1 }
  0x30   :  { %9916 = shalt.err (!%p9913_p5)
}
  0x31   :  { %113 = dma.hbm_to_vmem [thread:$0]  %s12583_s8, 16, %s111_s27, [#allocation14]  }
  0x32   :  { %s9925_s16 = scalar_lea.vmem %s30_s14, 4096  ;;  %p9930_p7 = scmp.lt.s32.totalorder %s30_s14, %s30_s14 }
  0x33   :  { %p9926_p6 = scmp.ne.s32.totalorder %s30_s14, %s9925_s16  ;;  %p9931_p8 = scmp.lt.s32.totalorder %s9925_s16, %s9925_s16 }
  0x35   :  { %p9932_p9 = por %p9931_p8, %p9930_p7 }
  0x37   :  { %p9933_p10 = pnand %p9932_p9, %p9926_p6 }
  0x39   :  { %9936 = shalt.err (!%p9933_p10)
}
  0x3a   :  { %s10058_s5 = smov 256   ;;  %s10059_s17 = smov 16  }
  0x3b   :  { %35 = dma.hbm_to_vmem [thread:$0]  %s12575_s0, 4096, %s30_s14, [#allocation3], %s10058_s5, %s10058_s5, %s10059_s17  }
  0x3c   :  { %s10060_s20 = smov [#allocation6]   ;;  %s10061_s22 = smov [#allocation9]  }
  0x3d   :  { %s54_s21 = sshll.u32 %s10060_s20, 4  ;;  %s76_s1 = sshll.u32 %s10061_s22, 4  ;;  %s55_s21 = int_to_ptr.vmem [resolvable:$true] %s54_s21  ;;  %s77_s1 = int_to_ptr.vmem [resolvable:$true] %s76_s1 }
  0x3e   :  { %s9945_s8 = scalar_lea.vmem %s55_s21, 128  ;;  %p9950_p12 = scmp.lt.s32.totalorder %s55_s21, %s55_s21 }
  0x3f   :  { %p9946_p11 = scmp.ne.s32.totalorder %s55_s21, %s9945_s8  ;;  %p9951_p13 = scmp.lt.s32.totalorder %s9945_s8, %s9945_s8 }
  0x41   :  { %p9952_p0 = por %p9951_p13, %p9950_p12 }
  0x43   :  { %p9953_p1 = pnand %p9952_p0, %p9946_p11 }
  0x45   :  { %9956 = shalt.err (!%p9953_p1)
}
  0x46   :  { %57 = dma.hbm_to_vmem [thread:$0]  %s12577_s2, 128, %s55_s21, [#allocation5]  }
  0x47   :  { %s9965_s25 = scalar_lea.vmem %s77_s1, 128  ;;  %p9970_p3 = scmp.lt.s32.totalorder %s77_s1, %s77_s1 }
  0x48   :  { %p9966_p2 = scmp.ne.s32.totalorder %s77_s1, %s9965_s25  ;;  %p9971_p4 = scmp.lt.s32.totalorder %s9965_s25, %s9965_s25 }
  0x4a   :  { %p9972_p5 = por %p9971_p4, %p9970_p3 }
  0x4c   :  { %p9973_p6 = pnand %p9972_p5, %p9966_p2 }
  0x4e   :  { %9976 = shalt.err (!%p9973_p6)
}
  0x4f   :  { %79 = dma.hbm_to_vmem [thread:$0]  %s12579_s4, 128, %s77_s1, [#allocation8]  }
  0x50   :  { %s10062_s27 = smov [#allocation12]   ;;  %s10063_s14 = smov [#allocation15]  }
  0x51   :  { %s98_s30 = sshll.u32 %s10062_s27, 4  ;;  %s122_s3 = sshll.u32 %s10063_s14, 4  ;;  %s99_s30 = int_to_ptr.vmem [resolvable:$true] %s98_s30  ;;  %s123_s3 = int_to_ptr.vmem [resolvable:$true] %s122_s3 }
  0x52   :  { %s9985_s28 = scalar_lea.vmem %s99_s30, 32  ;;  %p9990_p8 = scmp.lt.s32.totalorder %s99_s30, %s99_s30 }
  0x53   :  { %p9986_p7 = scmp.ne.s32.totalorder %s99_s30, %s9985_s28  ;;  %p9991_p9 = scmp.lt.s32.totalorder %s9985_s28, %s9985_s28 }
  0x55   :  { %p9992_p10 = por %p9991_p9, %p9990_p8 }
  0x57   :  { %p9993_p11 = pnand %p9992_p10, %p9986_p7 }
  0x59   :  { %9996 = shalt.err (!%p9993_p11)
}
  0x5a   :  { %101 = dma.hbm_to_vmem [thread:$0]  %s12581_s6, 32, %s99_s30, [#allocation11]  }
  0x5b   :  { %s10005_s15 = scalar_lea.vmem %s123_s3, 16  ;;  %s10009_s4 = scalar_lea.vmem %s123_s3, 32 }
  0x5c   :  { %p10006_p12 = scmp.ne.s32.totalorder %s123_s3, %s10005_s15  ;;  %p10010_p13 = scmp.lt.s32.totalorder %s123_s3, %s123_s3 }
  0x5d   :  { %p10011_p0 = scmp.lt.s32.totalorder %s10009_s4, %s10005_s15 }
  0x5f   :  { %p10012_p1 = por %p10011_p0, %p10010_p13 }
  0x61   :  { %p10013_p2 = pnand %p10012_p1, %p10006_p12 }
  0x63   :  { %10016 = shalt.err (!%p10013_p2)
}
  0x64   :  { %125 = dma.hbm_to_vmem [thread:$0]  %s12585_s10, 16, %s123_s3, [#allocation14]  }
  0x65   :  { %s10064_s17 = smov [#allocation16]  }
  0x66   :  { %s134_s18 = sshll.u32 %s10064_s17, 4  ;;  %s135_s18 = int_to_ptr.vmem [resolvable:$true] %s134_s18 }
  0x67   :  { %s10025_s19 = scalar_lea.vmem %s135_s18, 16  ;;  %s10029_s20 = scalar_lea.vmem %s135_s18, 32 }
  0x68   :  { %p10026_p3 = scmp.ne.s32.totalorder %s135_s18, %s10025_s19  ;;  %p10030_p4 = scmp.lt.s32.totalorder %s135_s18, %s135_s18 }
  0x69   :  { %p10031_p5 = scmp.lt.s32.totalorder %s10029_s20, %s10025_s19 }
  0x6b   :  { %p10032_p6 = por %p10031_p5, %p10030_p4 }
  0x6d   :  { %p10033_p7 = pnand %p10032_p6, %p10026_p3 }
  0x6f   :  { %10036 = shalt.err (!%p10033_p7)
}
  0x70   :  { %137 = dma.hbm_to_vmem [thread:$0]  %s12587_s12, 16, %s135_s18, [#allocation17]  }
  0x71   :  { %10037 = dma.done.wait [#allocation3], 4096  }
  0x72   :  { %10038 = vsyncadd [#allocation3], 4294963200 }
  0x73   :  { %10039 = dma.done.wait [#allocation5], 16512  }
  0x74   :  { %10040 = vsyncadd [#allocation5], 4294950784 }
  0x75   :  { %10041 = dma.done.wait [#allocation8], 65664  }
  0x76   :  { %10042 = vsyncadd [#allocation8], 4294901632 }
  0x77   :  { %10043 = dma.done.wait [#allocation11], 16416  }
  0x78   :  { %10044 = vsyncadd [#allocation11], 4294950880 }
  0x79   :  { %10045 = dma.done.wait [#allocation14], 32  }
  0x7a   :  { %10046 = vsyncadd [#allocation14], 4294967264 }
  0x7b   :  { %10047 = dma.done.wait [#allocation17], 16  }
  0x7c   :  { %10048 = vsyncadd [#allocation17], 4294967280  ;;  %v273_v0 = vld [vmem:[#allocation4 + $0x1c0] sm:$0xff]  ;;  %v274_v2 = vld [vmem:[#allocation4 + $0x1c8] sm:$0xff]  ;;  %vm8360_vm0 = vcmask 523264   ;;  %vm8521_vm1 = vcmask 130048  }
  0x7d   :  { %v277_v1 = vld [vmem:[#allocation4 + $0x1e0] sm:$0xff]  ;;  %v278_v4 = vld [vmem:[#allocation4 + $0x1e8] sm:$0xff]  ;;  %v172_v54 = vld [vmem:[#allocation2 + $0x18] sm:$0xff]  ;;  %vm8643_vm2 = vcmask 15360  }
  0x7e   :  { %v8727_v3 = vcombine.high %v273_v0, %v277_v1  ;;  %v8726_v5 = vcombine.low %v273_v0, %v277_v1  ;;  %v265_v6 = vld [vmem:[#allocation4 + $0x180] sm:$0xff]  ;;  %v8729_v8 = vcombine.high %v274_v2, %v278_v4  ;;  %v8728_v9 = vcombine.low %v274_v2, %v278_v4  ;;  %v266_v11 = vld [vmem:[#allocation4 + $0x188] sm:$0xff] }
  0x7f   :  { %v269_v7 = vld [vmem:[#allocation4 + $0x1a0] sm:$0xff]  ;;  %v270_v12 = vld [vmem:[#allocation4 + $0x1a8] sm:$0xff] }
  0x80   :  { %v8719_v10 = vcombine.high %v265_v6, %v269_v7  ;;  %v257_v13 = vld [vmem:[#allocation4 + $0x140] sm:$0xff]  ;;  %1027 = vmatprep.subr.bf16.mxu0 %v8727_v3  ;;  %v8721_v14 = vcombine.high %v266_v11, %v270_v12  ;;  %v258_v16 = vld [vmem:[#allocation4 + $0x148] sm:$0xff]  ;;  %1140 = vmatprep.subr.bf16.mxu1 %v8729_v8  ;;  %v8718_v18 = vcombine.low %v265_v6, %v269_v7 }
  0x81   :  { %v261_v15 = vld [vmem:[#allocation4 + $0x160] sm:$0xff]  ;;  %v262_v17 = vld [vmem:[#allocation4 + $0x168] sm:$0xff]  ;;  %1028 = vmatpush1.bf16.msra.mxu0 %v8726_v5  ;;  %1141 = vmatpush1.bf16.msra.mxu1 %v8728_v9  ;;  %v8720_v19 = vcombine.low %v266_v11, %v270_v12 }
  0x82   :  { %1029 = vmatprep.subr.bf16.mxu0 %v8719_v10  ;;  %v8711_v20 = vcombine.high %v257_v13, %v261_v15  ;;  %1142 = vmatprep.subr.bf16.mxu1 %v8721_v14  ;;  %v8713_v21 = vcombine.high %v258_v16, %v262_v17  ;;  %v249_v22 = vld [vmem:[#allocation4 + $0x100] sm:$0xff]  ;;  %v250_v24 = vld [vmem:[#allocation4 + $0x108] sm:$0xff]  ;;  %v8710_v26 = vcombine.low %v257_v13, %v261_v15 }
  0x83   :  { %v253_v23 = vld [vmem:[#allocation4 + $0x120] sm:$0xff]  ;;  %v254_v25 = vld [vmem:[#allocation4 + $0x128] sm:$0xff]  ;;  %v8712_v27 = vcombine.low %v258_v16, %v262_v17 }
  0x84   :  { %v8703_v28 = vcombine.high %v249_v22, %v253_v23  ;;  %v8705_v29 = vcombine.high %v250_v24, %v254_v25  ;;  %v241_v30 = vld [vmem:[#allocation4 + $0xc0] sm:$0xff]  ;;  %v242_v32 = vld [vmem:[#allocation4 + $0xc8] sm:$0xff]  ;;  %v8702_v34 = vcombine.low %v249_v22, %v253_v23  ;;  %v8704_v35 = vcombine.low %v250_v24, %v254_v25 }
  0x85   :  { %1030 = vmatpush1.bf16.msra.mxu0 %v8718_v18  ;;  %1143 = vmatpush1.bf16.msra.mxu1 %v8720_v19  ;;  %v245_v31 = vld [vmem:[#allocation4 + $0xe0] sm:$0xff]  ;;  %v246_v33 = vld [vmem:[#allocation4 + $0xe8] sm:$0xff] }
  0x86   :  { %1031 = vmatprep.subr.bf16.mxu0 %v8711_v20  ;;  %1144 = vmatprep.subr.bf16.mxu1 %v8713_v21  ;;  %v8695_v36 = vcombine.high %v241_v30, %v245_v31  ;;  %v8697_v37 = vcombine.high %v242_v32, %v246_v33  ;;  %v233_v38 = vld [vmem:[#allocation4 + $0x80] sm:$0xff]  ;;  %v234_v40 = vld [vmem:[#allocation4 + $0x88] sm:$0xff]  ;;  %v8694_v42 = vcombine.low %v241_v30, %v245_v31 }
  0x87   :  { %v237_v39 = vld [vmem:[#allocation4 + $0xa0] sm:$0xff]  ;;  %v238_v41 = vld [vmem:[#allocation4 + $0xa8] sm:$0xff]  ;;  %v8696_v43 = vcombine.low %v242_v32, %v246_v33 }
  0x88   :  { %v8687_v44 = vcombine.high %v233_v38, %v237_v39  ;;  %v8689_v45 = vcombine.high %v234_v40, %v238_v41  ;;  %v225_v46 = vld [vmem:[#allocation4 + $0x40] sm:$0xff]  ;;  %v226_v48 = vld [vmem:[#allocation4 + $0x48] sm:$0xff]  ;;  %v8686_v50 = vcombine.low %v233_v38, %v237_v39  ;;  %v8688_v51 = vcombine.low %v234_v40, %v238_v41 }
  0x89   :  { %1032 = vmatpush1.bf16.msra.mxu0 %v8710_v26  ;;  %1145 = vmatpush1.bf16.msra.mxu1 %v8712_v27  ;;  %v229_v47 = vld [vmem:[#allocation4 + $0x60] sm:$0xff]  ;;  %v230_v49 = vld [vmem:[#allocation4 + $0x68] sm:$0xff] }
  0x8a   :  { %1033 = vmatprep.subr.bf16.mxu0 %v8703_v28  ;;  %1146 = vmatprep.subr.bf16.mxu1 %v8705_v29  ;;  %v8679_v52 = vcombine.high %v225_v46, %v229_v47  ;;  %v170_v53 = vld [vmem:[#allocation2 + $0x8] sm:$0xff]  ;;  %v8681_v55 = vcombine.high %v226_v48, %v230_v49  ;;  %v217_v56 = vld [vmem:[#allocation4] sm:$0xff]  ;;  %v8678_v61 = vcombine.low %v225_v46, %v229_v47 }
  0x8b   :  { %v221_v57 = vld [vmem:[#allocation4 + $0x20] sm:$0xff]  ;;  %v10165_v58 = vpack.c.bf16 %v172_v54, %v170_v53  ;;  %v218_v59 = vld [vmem:[#allocation4 + $0x8] sm:$0xff]  ;;  %v8680_v62 = vcombine.low %v226_v48, %v230_v49 }
  0x8c   :  { %v222_v60 = vld [vmem:[#allocation4 + $0x28] sm:$0xff]  ;;  %v8671_v63 = vcombine.high %v217_v56, %v221_v57  ;;  %v337_v1 = vld [vmem:[#allocation4 + $0x3c0] sm:$0xff]  ;;  %v8670_v5 = vcombine.low %v217_v56, %v221_v57 }
  0x8d   :  { %1034 = vmatpush1.bf16.msra.mxu0 %v8702_v34  ;;  %1147 = vmatpush1.bf16.msra.mxu1 %v8704_v35  ;;  %v8673_v0 = vcombine.high %v218_v59, %v222_v60  ;;  %v341_v2 = vld [vmem:[#allocation4 + $0x3e0] sm:$0xff]  ;;  %v338_v3 = vld [vmem:[#allocation4 + $0x3c8] sm:$0xff]  ;;  %v8672_v6 = vcombine.low %v218_v59, %v222_v60 }
  0x8e   :  { %1035 = vmatprep.subr.bf16.mxu0 %v8695_v36  ;;  %1148 = vmatprep.subr.bf16.mxu1 %v8697_v37  ;;  %v342_v4 = vld [vmem:[#allocation4 + $0x3e8] sm:$0xff]  ;;  %v8791_v7 = vcombine.high %v337_v1, %v341_v2  ;;  %v329_v9 = vld [vmem:[#allocation4 + $0x380] sm:$0xff]  ;;  %v8790_v13 = vcombine.low %v337_v1, %v341_v2 }
  0x8f   :  { %1059 = vmatprep.mubr.bf16.mxu0 %v10165_v58  ;;  %1172 = vmatprep.mubr.bf16.mxu1 %v10165_v58  ;;  %v8793_v8 = vcombine.high %v338_v3, %v342_v4  ;;  %v333_v10 = vld [vmem:[#allocation4 + $0x3a0] sm:$0xff]  ;;  %v330_v11 = vld [vmem:[#allocation4 + $0x388] sm:$0xff]  ;;  %v8792_v14 = vcombine.low %v338_v3, %v342_v4  ;;  %v276_v3 = vld [vmem:[#allocation4 + $0x1d8] sm:$0xff] }
  0x90   :  { %v334_v12 = vld [vmem:[#allocation4 + $0x3a8] sm:$0xff]  ;;  %v8783_v15 = vcombine.high %v329_v9, %v333_v10  ;;  %v321_v17 = vld [vmem:[#allocation4 + $0x340] sm:$0xff]  ;;  %v8782_v21 = vcombine.low %v329_v9, %v333_v10  ;;  %v280_v4 = vld [vmem:[#allocation4 + $0x1f8] sm:$0xff] }
  0x91   :  { %1036 = vmatpush1.bf16.msra.mxu0 %v8694_v42  ;;  %1149 = vmatpush1.bf16.msra.mxu1 %v8696_v43  ;;  %v8785_v16 = vcombine.high %v330_v11, %v334_v12  ;;  %v325_v18 = vld [vmem:[#allocation4 + $0x360] sm:$0xff]  ;;  %v322_v19 = vld [vmem:[#allocation4 + $0x348] sm:$0xff]  ;;  %v8784_v22 = vcombine.low %v330_v11, %v334_v12  ;;  %v8733_v11 = vcombine.high %v276_v3, %v280_v4  ;;  %v267_v12 = vld [vmem:[#allocation4 + $0x190] sm:$0xff] }
  0x92   :  { %1037 = vmatprep.subr.bf16.mxu0 %v8687_v44  ;;  %1150 = vmatprep.subr.bf16.mxu1 %v8689_v45  ;;  %v326_v20 = vld [vmem:[#allocation4 + $0x368] sm:$0xff]  ;;  %v8775_v23 = vcombine.high %v321_v17, %v325_v18  ;;  %v313_v25 = vld [vmem:[#allocation4 + $0x300] sm:$0xff]  ;;  %v8774_v29 = vcombine.low %v321_v17, %v325_v18  ;;  %v176_v18 = vld [vmem:[#allocation2 + $0x38] sm:$0xff] }
  0x93   :  { %v8777_v24 = vcombine.high %v322_v19, %v326_v20  ;;  %v317_v26 = vld [vmem:[#allocation4 + $0x320] sm:$0xff]  ;;  %v314_v27 = vld [vmem:[#allocation4 + $0x308] sm:$0xff]  ;;  %v8776_v30 = vcombine.low %v322_v19, %v326_v20  ;;  %v8732_v20 = vcombine.low %v276_v3, %v280_v4 }
  0x94   :  { %v318_v28 = vld [vmem:[#allocation4 + $0x328] sm:$0xff]  ;;  %v8767_v31 = vcombine.high %v313_v25, %v317_v26  ;;  %v305_v33 = vld [vmem:[#allocation4 + $0x2c0] sm:$0xff]  ;;  %v8766_v37 = vcombine.low %v313_v25, %v317_v26  ;;  %v263_v25 = vld [vmem:[#allocation4 + $0x170] sm:$0xff] }
  0x95   :  { %1038 = vmatpush1.bf16.msra.mxu0 %v8686_v50  ;;  %1151 = vmatpush1.bf16.msra.mxu1 %v8688_v51  ;;  %v8769_v32 = vcombine.high %v314_v27, %v318_v28  ;;  %v309_v34 = vld [vmem:[#allocation4 + $0x2e0] sm:$0xff]  ;;  %v306_v35 = vld [vmem:[#allocation4 + $0x2c8] sm:$0xff]  ;;  %v8768_v38 = vcombine.low %v314_v27, %v318_v28  ;;  %v260_v26 = vld [vmem:[#allocation4 + $0x158] sm:$0xff] }
  0x96   :  { %1039 = vmatprep.subr.bf16.mxu0 %v8679_v52  ;;  %1152 = vmatprep.subr.bf16.mxu1 %v8681_v55  ;;  %v310_v36 = vld [vmem:[#allocation4 + $0x2e8] sm:$0xff]  ;;  %v8759_v39 = vcombine.high %v305_v33, %v309_v34  ;;  %v297_v41 = vld [vmem:[#allocation4 + $0x280] sm:$0xff]  ;;  %v8758_v45 = vcombine.low %v305_v33, %v309_v34  ;;  %v264_v27 = vld [vmem:[#allocation4 + $0x178] sm:$0xff] }
  0x97   :  { %v8761_v40 = vcombine.high %v306_v35, %v310_v36  ;;  %v301_v42 = vld [vmem:[#allocation4 + $0x2a0] sm:$0xff]  ;;  %v298_v43 = vld [vmem:[#allocation4 + $0x288] sm:$0xff]  ;;  %v8760_v46 = vcombine.low %v306_v35, %v310_v36  ;;  %v8717_v33 = vcombine.high %v260_v26, %v264_v27  ;;  %v251_v34 = vld [vmem:[#allocation4 + $0x110] sm:$0xff] }
  0x98   :  { %v302_v44 = vld [vmem:[#allocation4 + $0x2a8] sm:$0xff]  ;;  %v8751_v47 = vcombine.high %v297_v41, %v301_v42  ;;  %v289_v49 = vld [vmem:[#allocation4 + $0x240] sm:$0xff]  ;;  %v8750_v53 = vcombine.low %v297_v41, %v301_v42  ;;  %v255_v35 = vld [vmem:[#allocation4 + $0x130] sm:$0xff]  ;;  %v8716_v42 = vcombine.low %v260_v26, %v264_v27 }
  0x99   :  { %1040 = vmatpush1.bf16.msra.mxu0 %v8678_v61  ;;  %1153 = vmatpush1.bf16.msra.mxu1 %v8680_v62  ;;  %v8753_v48 = vcombine.high %v298_v43, %v302_v44  ;;  %v293_v50 = vld [vmem:[#allocation4 + $0x260] sm:$0xff]  ;;  %v290_v51 = vld [vmem:[#allocation4 + $0x248] sm:$0xff]  ;;  %v8752_v56 = vcombine.low %v298_v43, %v302_v44  ;;  %v252_v36 = vld [vmem:[#allocation4 + $0x118] sm:$0xff]  ;;  %v8707_v43 = vcombine.high %v251_v34, %v255_v35 }
  0x9a   :  { %1041 = vmatprep.subr.bf16.mxu0 %v8671_v63  ;;  %1154 = vmatprep.subr.bf16.mxu1 %v8673_v0  ;;  %v294_v52 = vld [vmem:[#allocation4 + $0x268] sm:$0xff]  ;;  %v281_v54 = vld [vmem:[#allocation4 + $0x200] sm:$0xff]  ;;  %v8743_v57 = vcombine.high %v289_v49, %v293_v50  ;;  %v8742_v62 = vcombine.low %v289_v49, %v293_v50  ;;  %v275_v63 = vld [vmem:[#allocation4 + $0x1d0] sm:$0xff] }
  0x9b   :  { %v285_v55 = vld [vmem:[#allocation4 + $0x220] sm:$0xff]  ;;  %v282_v59 = vld [vmem:[#allocation4 + $0x208] sm:$0xff]  ;;  %v8745_v61 = vcombine.high %v290_v51, %v294_v52  ;;  %v279_v0 = vld [vmem:[#allocation4 + $0x1f0] sm:$0xff]  ;;  %v8744_v1 = vcombine.low %v290_v51, %v294_v52  ;;  %v8706_v51 = vcombine.low %v251_v34, %v255_v35 }
  0x9c   :  { %v286_v60 = vld [vmem:[#allocation4 + $0x228] sm:$0xff]  ;;  %v8735_v2 = vcombine.high %v281_v54, %v285_v55  ;;  %v8731_v10 = vcombine.high %v275_v63, %v279_v0  ;;  %v8730_v19 = vcombine.low %v275_v63, %v279_v0  ;;  %v244_v49 = vld [vmem:[#allocation4 + $0xd8] sm:$0xff]  ;;  %v179_v52 = vld [vmem:[#allocation2 + $0x50] sm:$0xff] }
  0x9d   :  { %1042 = vmatpush1.bf16.msra.mxu0 %v8670_v5  ;;  %1155 = vmatpush1.bf16.msra.mxu1 %v8672_v6  ;;  %v8737_v5 = vcombine.high %v282_v59, %v286_v60  ;;  %v8734_v6 = vcombine.low %v281_v54, %v285_v55  ;;  %v8736_v9 = vcombine.low %v282_v59, %v286_v60  ;;  %v174_v17 = vld [vmem:[#allocation2 + $0x28] sm:$0xff]  ;;  %v248_v50 = vld [vmem:[#allocation4 + $0xf8] sm:$0xff]  ;;  %v239_v54 = vld [vmem:[#allocation4 + $0xb0] sm:$0xff] }
  0x9e   :  { %1043 = vmatprep.subr.bf16.mxu0 %v8791_v7  ;;  %1156 = vmatprep.subr.bf16.mxu1 %v8793_v8  ;;  %v169_v7 = vld [vmem:[#allocation2] sm:$0xff]  ;;  %v171_v8 = vld [vmem:[#allocation2 + $0x10] sm:$0xff]  ;;  %v240_v59 = vld [vmem:[#allocation4 + $0xb8] sm:$0xff]  ;;  %v8700_v3 = vcombine.low %v244_v49, %v248_v50 }
  0x9f   :  { %v182_v60 = vld [vmem:[#allocation2 + $0x68] sm:$0xff]  ;;  %v343_v26 = vld [vmem:[#allocation4 + $0x3f0] sm:$0xff] }
  0xa0   :  { %v187_v34 = vld [vmem:[#allocation2 + $0x90] sm:$0xff] }
  0xa1   :  { %1044 = vmatpush2.bf16.msra.mxu0 %v8790_v13  ;;  %1157 = vmatpush2.bf16.msra.mxu1 %v8792_v14  ;;  %v271_v13 = vld [vmem:[#allocation4 + $0x1b0] sm:$0xff]  ;;  %v268_v14 = vld [vmem:[#allocation4 + $0x198] sm:$0xff] }
  0xa2   :  { %1045 = vmatprep.subr.bf16.mxu0 %v8783_v15  ;;  %1158 = vmatprep.subr.bf16.mxu1 %v8785_v16  ;;  %v10169_v15 = vpack.c.bf16 %v171_v8, %v169_v7  ;;  %v272_v16 = vld [vmem:[#allocation4 + $0x1b8] sm:$0xff]  ;;  %v8722_v28 = vcombine.low %v267_v12, %v271_v13 }
  0xa5   :  { %1046 = vmatpush2.bf16.msra.mxu0 %v8782_v21  ;;  %1159 = vmatpush2.bf16.msra.mxu1 %v8784_v22  ;;  %v8723_v21 = vcombine.high %v267_v12, %v271_v13  ;;  %v8725_v22 = vcombine.high %v268_v14, %v272_v16  ;;  %v219_v12 = vld [vmem:[#allocation4 + $0x10] sm:$0xff] }
  0xa6   :  { %1047 = vmatprep.subr.bf16.mxu0 %v8775_v23  ;;  %1160 = vmatprep.subr.bf16.mxu1 %v8777_v24  ;;  %v10171_v23 = vpack.c.bf16 %v176_v18, %v174_v17  ;;  %v259_v24 = vld [vmem:[#allocation4 + $0x150] sm:$0xff]  ;;  %v220_v17 = vld [vmem:[#allocation4 + $0x18] sm:$0xff] }
  0xa7   :  { %v8714_v41 = vcombine.low %v259_v24, %v263_v25  ;;  %v223_v13 = vld [vmem:[#allocation4 + $0x30] sm:$0xff]  ;;  %v224_v18 = vld [vmem:[#allocation4 + $0x38] sm:$0xff] }
  0xa8   :  { %v8674_v35 = vcombine.low %v219_v12, %v223_v13 }
  0xa9   :  { %1048 = vmatpush2.bf16.msra.mxu0 %v8774_v29  ;;  %1161 = vmatpush2.bf16.msra.mxu1 %v8776_v30  ;;  %v173_v29 = vld [vmem:[#allocation2 + $0x20] sm:$0xff]  ;;  %v175_v30 = vld [vmem:[#allocation2 + $0x30] sm:$0xff] }
  0xaa   :  { %1049 = vmatprep.subr.bf16.mxu0 %v8767_v31  ;;  %1162 = vmatprep.subr.bf16.mxu1 %v8769_v32  ;;  %v8724_v31 = vcombine.low %v268_v14, %v272_v16  ;;  %v8715_v32 = vcombine.high %v259_v24, %v263_v25  ;;  %v339_v25 = vld [vmem:[#allocation4 + $0x3d0] sm:$0xff] }
  0xad   :  { %1050 = vmatpush2.bf16.msra.mxu0 %v8766_v37  ;;  %1163 = vmatpush2.bf16.msra.mxu1 %v8768_v38  ;;  %v10177_v37 = vpack.c.bf16 %v175_v30, %v173_v29  ;;  %v256_v38 = vld [vmem:[#allocation4 + $0x138] sm:$0xff] }
  0xae   :  { %1051 = vmatprep.subr.bf16.mxu0 %v8759_v39  ;;  %1164 = vmatprep.subr.bf16.mxu1 %v8761_v40  ;;  %v178_v39 = vld [vmem:[#allocation2 + $0x48] sm:$0xff]  ;;  %v180_v40 = vld [vmem:[#allocation2 + $0x58] sm:$0xff]  ;;  %v8709_v44 = vcombine.high %v252_v36, %v256_v38  ;;  %v8708_v55 = vcombine.low %v252_v36, %v256_v38  ;;  %v331_v36 = vld [vmem:[#allocation4 + $0x390] sm:$0xff] }
  0xaf   :  { %v340_v29 = vld [vmem:[#allocation4 + $0x3d8] sm:$0xff]  ;;  %v335_v38 = vld [vmem:[#allocation4 + $0x3b0] sm:$0xff] }
  0xb0   :  { %v344_v30 = vld [vmem:[#allocation4 + $0x3f8] sm:$0xff] }
  0xb1   :  { %1052 = vmatpush2.bf16.msra.mxu0 %v8758_v45  ;;  %1165 = vmatpush2.bf16.msra.mxu1 %v8760_v46  ;;  %v10179_v45 = vpack.c.bf16 %v180_v40, %v178_v39  ;;  %v243_v46 = vld [vmem:[#allocation4 + $0xd0] sm:$0xff]  ;;  %v8676_v39 = vcombine.low %v220_v17, %v224_v18  ;;  %v8795_v40 = vcombine.high %v339_v25, %v343_v26 }
  0xb2   :  { %1053 = vmatprep.subr.bf16.mxu0 %v8751_v47  ;;  %1166 = vmatprep.subr.bf16.mxu1 %v8753_v48  ;;  %v247_v47 = vld [vmem:[#allocation4 + $0xf0] sm:$0xff]  ;;  %v177_v48 = vld [vmem:[#allocation2 + $0x40] sm:$0xff] }
  0xb3   :  { %v10185_v63 = vpack.c.bf16 %v179_v52, %v177_v48  ;;  %v8698_v0 = vcombine.low %v243_v46, %v247_v47  ;;  %v8794_v48 = vcombine.low %v339_v25, %v343_v26  ;;  %v8787_v52 = vcombine.high %v331_v36, %v335_v38  ;;  %v303_v25 = vld [vmem:[#allocation4 + $0x2b0] sm:$0xff] }
  0xb5   :  { %1054 = vmatpush2.bf16.msra.mxu0 %v8750_v53  ;;  %1167 = vmatpush2.bf16.msra.mxu1 %v8752_v56  ;;  %v235_v53 = vld [vmem:[#allocation4 + $0x90] sm:$0xff]  ;;  %v8699_v56 = vcombine.high %v243_v46, %v247_v47  ;;  %v8797_v46 = vcombine.high %v340_v29, %v344_v30 }
  0xb6   :  { %1055 = vmatprep.subr.bf16.mxu0 %v8743_v57  ;;  %1168 = vmatprep.subr.bf16.mxu1 %v8745_v61  ;;  %v236_v57 = vld [vmem:[#allocation4 + $0x98] sm:$0xff]  ;;  %v8691_v4 = vcombine.high %v235_v53, %v239_v54 }
  0xb7   :  { %v184_v61 = vld [vmem:[#allocation2 + $0x78] sm:$0xff]  ;;  %v8693_v7 = vcombine.high %v236_v57, %v240_v59  ;;  %v8692_v14 = vcombine.low %v236_v57, %v240_v59  ;;  %v189_v57 = vld [vmem:[#allocation2 + $0xa0] sm:$0xff]  ;;  %v191_v59 = vld [vmem:[#allocation2 + $0xb0] sm:$0xff] }
  0xb8   :  { %v10187_v8 = vpack.c.bf16 %v184_v61, %v182_v60  ;;  %v8786_v60 = vcombine.low %v331_v36, %v335_v38  ;;  %v315_v61 = vld [vmem:[#allocation4 + $0x310] sm:$0xff] }
  0xb9   :  { %1056 = vmatpush2.bf16.msra.mxu0 %v8742_v62  ;;  %1169 = vmatpush2.bf16.msra.mxu1 %v8744_v1  ;;  %v8701_v62 = vcombine.high %v244_v49, %v248_v50  ;;  %v227_v1 = vld [vmem:[#allocation4 + $0x50] sm:$0xff] }
  0xba   :  { %1057 = vmatprep.subr.bf16.mxu0 %v8735_v2  ;;  %1170 = vmatprep.subr.bf16.mxu1 %v8737_v5  ;;  %v231_v2 = vld [vmem:[#allocation4 + $0x70] sm:$0xff]  ;;  %v228_v5 = vld [vmem:[#allocation4 + $0x58] sm:$0xff] }
  0xbb   :  { %v8683_v16 = vcombine.high %v227_v1, %v231_v2  ;;  %v8682_v24 = vcombine.low %v227_v1, %v231_v2  ;;  %v323_v49 = vld [vmem:[#allocation4 + $0x350] sm:$0xff]  ;;  %v316_v2 = vld [vmem:[#allocation4 + $0x318] sm:$0xff] }
  0xbc   :  { %v327_v50 = vld [vmem:[#allocation4 + $0x370] sm:$0xff] }
  0xbd   :  { %1058 = vmatpush2.bf16.msra.mxu0 %v8734_v6  ;;  %1171 = vmatpush2.bf16.msra.mxu1 %v8736_v9  ;;  %v232_v6 = vld [vmem:[#allocation4 + $0x78] sm:$0xff]  ;;  %v181_v9 = vld [vmem:[#allocation2 + $0x60] sm:$0xff]  ;;  %v8779_v1 = vcombine.high %v323_v49, %v327_v50  ;;  %v291_v36 = vld [vmem:[#allocation4 + $0x250] sm:$0xff] }
  0xbe   :  { %1253 = vmatprep.subr.bf16.mxu0 %v8731_v10  ;;  %1366 = vmatprep.subr.bf16.mxu1 %v8733_v11  ;;  %v183_v10 = vld [vmem:[#allocation2 + $0x70] sm:$0xff]  ;;  %v8690_v11 = vcombine.low %v235_v53, %v239_v54  ;;  %v8684_v27 = vcombine.low %v228_v5, %v232_v6  ;;  %v324_v53 = vld [vmem:[#allocation4 + $0x358] sm:$0xff] }
  0xbf   :  { %v328_v54 = vld [vmem:[#allocation4 + $0x378] sm:$0xff]  ;;  %v295_v38 = vld [vmem:[#allocation4 + $0x270] sm:$0xff] }
  0xc0   :  { %1060 = vmatmul.mubr.bf16.vlgmr.msra.gmra.mxu0 %v10169_v15  ;;  %1173 = vmatmul.mubr.bf16.vlgmr.msra.gmra.mxu1 %v10169_v15 }
  0xc1   :  { %1254 = vmatpush1.bf16.msra.mxu0 %v8730_v19  ;;  %1367 = vmatpush1.bf16.msra.mxu1 %v8732_v20  ;;  %v186_v19 = vld [vmem:[#allocation2 + $0x88] sm:$0xff]  ;;  %v188_v20 = vld [vmem:[#allocation2 + $0x98] sm:$0xff] }
  0xc2   :  { %1255 = vmatprep.subr.bf16.mxu0 %v8723_v21  ;;  %1368 = vmatprep.subr.bf16.mxu1 %v8725_v22  ;;  %v8685_v21 = vcombine.high %v228_v5, %v232_v6  ;;  %v10193_v22 = vpack.c.bf16 %v183_v10, %v181_v9  ;;  %v196_v5 = vld [vmem:[#allocation2 + $0xd8] sm:$0xff]  ;;  %v8781_v6 = vcombine.high %v324_v53, %v328_v54  ;;  %v307_v10 = vld [vmem:[#allocation4 + $0x2d0] sm:$0xff] }
  0xc3   :  { %1069 = vmatprep.mubr.bf16.mxu0 %v10171_v23  ;;  %1182 = vmatprep.mubr.bf16.mxu1 %v10171_v23  ;;  %v8778_v9 = vcombine.low %v323_v49, %v327_v50  ;;  %v283_v50 = vld [vmem:[#allocation4 + $0x210] sm:$0xff] }
  0xc5   :  { %1256 = vmatpush1.bf16.msra.mxu0 %v8722_v28  ;;  %1369 = vmatpush1.bf16.msra.mxu1 %v8724_v31  ;;  %v8675_v28 = vcombine.high %v219_v12, %v223_v13  ;;  %v8677_v31 = vcombine.high %v220_v17, %v224_v18  ;;  %v8780_v12 = vcombine.low %v324_v53, %v328_v54  ;;  %v284_v54 = vld [vmem:[#allocation4 + $0x218] sm:$0xff] }
  0xc6   :  { %1257 = vmatprep.subr.bf16.mxu0 %v8715_v32  ;;  %1370 = vmatprep.subr.bf16.mxu1 %v8717_v33  ;;  %v10195_v32 = vpack.c.bf16 %v188_v20, %v186_v19  ;;  %v185_v33 = vld [vmem:[#allocation2 + $0x80] sm:$0xff]  ;;  %v195_v20 = vld [vmem:[#allocation2 + $0xd0] sm:$0xff]  ;;  %v8747_v53 = vcombine.high %v291_v36, %v295_v38 }
  0xc7   :  { %v10201_v47 = vpack.c.bf16 %v187_v34, %v185_v33  ;;  %v193_v19 = vld [vmem:[#allocation2 + $0xc0] sm:$0xff] }
  0xc8   :  { %1070 = vmatmul.mubr.bf16.gmra.mxu0 %v10177_v37  ;;  %1183 = vmatmul.mubr.bf16.gmra.mxu1 %v10177_v37  ;;  %v10217_v34 = vpack.c.bf16 %v195_v20, %v193_v19 }
  0xc9   :  { %1258 = vmatpush1.bf16.msra.mxu0 %v8714_v41  ;;  %1371 = vmatpush1.bf16.msra.mxu1 %v8716_v42  ;;  %v332_v41 = vld [vmem:[#allocation4 + $0x398] sm:$0xff] }
  0xca   :  { %1259 = vmatprep.subr.bf16.mxu0 %v8707_v43  ;;  %1372 = vmatprep.subr.bf16.mxu1 %v8709_v44  ;;  %v336_v42 = vld [vmem:[#allocation4 + $0x3b8] sm:$0xff]  ;;  %v190_v43 = vld [vmem:[#allocation2 + $0xa8] sm:$0xff] }
  0xcb   :  { %1079 = vmatprep.mubr.bf16.mxu0 %v10179_v45  ;;  %1192 = vmatprep.mubr.bf16.mxu1 %v10179_v45  ;;  %v192_v44 = vld [vmem:[#allocation2 + $0xb8] sm:$0xff] }
  0xcd   :  { %1260 = vmatpush1.bf16.msra.mxu0 %v8706_v51  ;;  %1373 = vmatpush1.bf16.msra.mxu1 %v8708_v55  ;;  %v8796_v51 = vcombine.low %v340_v29, %v344_v30  ;;  %v8789_v55 = vcombine.high %v332_v41, %v336_v42  ;;  %v304_v29 = vld [vmem:[#allocation4 + $0x2b8] sm:$0xff]  ;;  %v198_v30 = vld [vmem:[#allocation2 + $0xe8] sm:$0xff] }
  0xce   :  { %1261 = vmatprep.subr.bf16.mxu0 %v8699_v56  ;;  %1374 = vmatprep.subr.bf16.mxu1 %v8701_v62  ;;  %v10203_v56 = vpack.c.bf16 %v192_v44, %v190_v43  ;;  %v319_v62 = vld [vmem:[#allocation4 + $0x330] sm:$0xff] }
  0xcf   :  { %v8771_v13 = vcombine.high %v315_v61, %v319_v62 }
  0xd0   :  { %1080 = vmatmul.mubr.bf16.gmra.mxu0 %v10185_v63  ;;  %1193 = vmatmul.mubr.bf16.gmra.mxu1 %v10185_v63 }
  0xd1   :  { %1262 = vmatpush1.bf16.msra.mxu0 %v8698_v0  ;;  %1375 = vmatpush1.bf16.msra.mxu1 %v8700_v3  ;;  %v8788_v0 = vcombine.low %v332_v41, %v336_v42  ;;  %v320_v3 = vld [vmem:[#allocation4 + $0x338] sm:$0xff] }
  0xd2   :  { %1263 = vmatprep.subr.bf16.mxu0 %v8691_v4  ;;  %1376 = vmatprep.subr.bf16.mxu1 %v8693_v7  ;;  %v194_v4 = vld [vmem:[#allocation2 + $0xc8] sm:$0xff]  ;;  %v10209_v7 = vpack.c.bf16 %v191_v59, %v189_v57  ;;  %v8773_v17 = vcombine.high %v316_v2, %v320_v3  ;;  %v8772_v26 = vcombine.low %v316_v2, %v320_v3  ;;  %v292_v41 = vld [vmem:[#allocation4 + $0x258] sm:$0xff] }
  0xd3   :  { %1089 = vmatprep.mubr.bf16.mxu0 %v10187_v8  ;;  %1202 = vmatprep.mubr.bf16.mxu1 %v10187_v8  ;;  %v10211_v18 = vpack.c.bf16 %v196_v5, %v194_v4  ;;  %v296_v42 = vld [vmem:[#allocation4 + $0x278] sm:$0xff]  ;;  %v1855_v2 = vld [vmem:[#allocation7 + $0x5c0] sm:$0xff] }
  0xd4   :  { %v8749_v57 = vcombine.high %v292_v41, %v296_v42  ;;  %v1859_v3 = vld [vmem:[#allocation7 + $0x5e0] sm:$0xff] }
  0xd5   :  { %1264 = vmatpush1.bf16.msra.mxu0 %v8690_v11  ;;  %1377 = vmatpush1.bf16.msra.mxu1 %v8692_v14  ;;  %v311_v11 = vld [vmem:[#allocation4 + $0x2f0] sm:$0xff]  ;;  %v308_v14 = vld [vmem:[#allocation4 + $0x2d8] sm:$0xff] }
  0xd6   :  { %1265 = vmatprep.subr.bf16.mxu0 %v8683_v16  ;;  %1378 = vmatprep.subr.bf16.mxu1 %v8685_v21  ;;  %v312_v16 = vld [vmem:[#allocation4 + $0x2f8] sm:$0xff]  ;;  %v8770_v21 = vcombine.low %v315_v61, %v319_v62  ;;  %v1727_v61 = vld [vmem:[#allocation7 + $0x1c0] sm:$0xff] }
  0xd7   :  { %v8765_v33 = vcombine.high %v308_v14, %v312_v16  ;;  %v1731_v62 = vld [vmem:[#allocation7 + $0x1e0] sm:$0xff] }
  0xd8   :  { %1090 = vmatmul.mubr.bf16.gmra.mxu0 %v10193_v22  ;;  %1203 = vmatmul.mubr.bf16.gmra.mxu1 %v10193_v22 }
  0xd9   :  { %1266 = vmatpush1.bf16.msra.mxu0 %v8682_v24  ;;  %1379 = vmatpush1.bf16.msra.mxu1 %v8684_v27  ;;  %v299_v24 = vld [vmem:[#allocation4 + $0x290] sm:$0xff]  ;;  %v8763_v27 = vcombine.high %v307_v10, %v311_v11 }
  0xda   :  { %1267 = vmatprep.subr.bf16.mxu0 %v8675_v28  ;;  %1380 = vmatprep.subr.bf16.mxu1 %v8677_v31  ;;  %v300_v28 = vld [vmem:[#allocation4 + $0x298] sm:$0xff]  ;;  %v8754_v49 = vcombine.low %v299_v24, %v303_v25 }
  0xdb   :  { %1099 = vmatprep.mubr.bf16.mxu0 %v10195_v32  ;;  %1212 = vmatprep.mubr.bf16.mxu1 %v10195_v32  ;;  %v200_v31 = vld [vmem:[#allocation2 + $0xf8] sm:$0xff]  ;;  %v8757_v43 = vcombine.high %v300_v28, %v304_v29 }
  0xdc   :  { %v10219_v44 = vpack.c.bf16 %v200_v31, %v198_v30  ;;  %v1703_v30 = vld [vmem:[#allocation7 + $0x100] sm:$0xff] }
  0xdd   :  { %1268 = vmatpush1.bf16.msra.mxu0 %v8674_v35  ;;  %1381 = vmatpush1.bf16.msra.mxu1 %v8676_v39  ;;  %v8762_v35 = vcombine.low %v307_v10, %v311_v11  ;;  %v8764_v39 = vcombine.low %v308_v14, %v312_v16  ;;  %v1719_v10 = vld [vmem:[#allocation7 + $0x180] sm:$0xff]  ;;  %v8983_v11 = vcombine.high %v1855_v2, %v1859_v3 }
  0xde   :  { %1269 = vmatprep.subr.bf16.mxu0 %v8795_v40  ;;  %1382 = vmatprep.subr.bf16.mxu1 %v8797_v46  ;;  %v8755_v40 = vcombine.high %v299_v24, %v303_v25  ;;  %v197_v46 = vld [vmem:[#allocation2 + $0xe0] sm:$0xff]  ;;  %v1851_v14 = vld [vmem:[#allocation7 + $0x5a0] sm:$0xff]  ;;  %v8854_v16 = vcombine.low %v1727_v61, %v1731_v62 }
  0xdf   :  { %v1715_v24 = vld [vmem:[#allocation7 + $0x160] sm:$0xff] }
  0xe0   :  { %1100 = vmatmul.mubr.bf16.gmra.mxu0 %v10201_v47  ;;  %1213 = vmatmul.mubr.bf16.gmra.mxu1 %v10201_v47  ;;  %v1843_v25 = vld [vmem:[#allocation7 + $0x560] sm:$0xff] }
  0xe1   :  { %1270 = vmatpush2.bf16.msra.mxu0 %v8794_v48  ;;  %1383 = vmatpush2.bf16.msra.mxu1 %v8796_v51  ;;  %v199_v48 = vld [vmem:[#allocation2 + $0xf0] sm:$0xff]  ;;  %v1707_v31 = vld [vmem:[#allocation7 + $0x120] sm:$0xff] }
  0xe2   :  { %1271 = vmatprep.subr.bf16.mxu0 %v8787_v52  ;;  %1384 = vmatprep.subr.bf16.mxu1 %v8789_v55  ;;  %v287_v51 = vld [vmem:[#allocation4 + $0x230] sm:$0xff]  ;;  %v8756_v52 = vcombine.low %v300_v28, %v304_v29  ;;  %v288_v55 = vld [vmem:[#allocation4 + $0x238] sm:$0xff]  ;;  %v10225_v59 = vpack.c.bf16 %v199_v48, %v197_v46 }
  0xe3   :  { %1109 = vmatprep.mubr.bf16.mxu0 %v10203_v56  ;;  %1222 = vmatprep.mubr.bf16.mxu1 %v10203_v56  ;;  %v8741_v4 = vcombine.high %v284_v54, %v288_v55  ;;  %v8738_v5 = vcombine.low %v283_v50, %v287_v51 }
  0xe5   :  { %1272 = vmatpush2.bf16.msra.mxu0 %v8786_v60  ;;  %1385 = vmatpush2.bf16.msra.mxu1 %v8788_v0  ;;  %v8746_v60 = vcombine.low %v291_v36, %v295_v38  ;;  %v8748_v0 = vcombine.low %v292_v41, %v296_v42  ;;  %v8831_v38 = vcombine.high %v1703_v30, %v1707_v31  ;;  %v1823_v41 = vld [vmem:[#allocation7 + $0x4c0] sm:$0xff] }
  0xe6   :  { %1273 = vmatprep.subr.bf16.mxu0 %v8779_v1  ;;  %1386 = vmatprep.subr.bf16.mxu1 %v8781_v6  ;;  %v8739_v1 = vcombine.high %v283_v50, %v287_v51  ;;  %v8740_v6 = vcombine.low %v284_v54, %v288_v55  ;;  %v1827_v42 = vld [vmem:[#allocation7 + $0x4e0] sm:$0xff] }
  0xe7   :  { %v1691_v50 = vld [vmem:[#allocation7 + $0xa0] sm:$0xff]  ;;  %v8951_v51 = vcombine.high %v1823_v41, %v1827_v42 }
  0xe8   :  { %1110 = vmatmul.mubr.bf16.gmra.mxu0 %v10209_v7  ;;  %1223 = vmatmul.mubr.bf16.gmra.mxu1 %v10209_v7  ;;  %v1815_v54 = vld [vmem:[#allocation7 + $0x480] sm:$0xff] }
  0xe9   :  { %1274 = vmatpush2.bf16.msra.mxu0 %v8778_v9  ;;  %1387 = vmatpush2.bf16.msra.mxu1 %v8780_v12  ;;  %v8855_v9 = vcombine.high %v1727_v61, %v1731_v62  ;;  %v1723_v12 = vld [vmem:[#allocation7 + $0x1a0] sm:$0xff]  ;;  %v8950_v62 = vcombine.low %v1823_v41, %v1827_v42 }
  0xea   :  { %1275 = vmatprep.subr.bf16.mxu0 %v8771_v13  ;;  %1388 = vmatprep.subr.bf16.mxu1 %v8773_v17  ;;  %v1847_v13 = vld [vmem:[#allocation7 + $0x580] sm:$0xff]  ;;  %v8982_v17 = vcombine.low %v1855_v2, %v1859_v3  ;;  %v8847_v19 = vcombine.high %v1719_v10, %v1723_v12 }
  0xeb   :  { %1119 = vmatprep.mubr.bf16.mxu0 %v10211_v18  ;;  %1232 = vmatprep.mubr.bf16.mxu1 %v10211_v18  ;;  %v8975_v20 = vcombine.high %v1847_v13, %v1851_v14  ;;  %v1819_v55 = vld [vmem:[#allocation7 + $0x4a0] sm:$0xff] }
  0xec   :  { %v1679_v2 = vld [vmem:[#allocation7 + $0x40] sm:$0xff] }
  0xed   :  { %1276 = vmatpush2.bf16.msra.mxu0 %v8770_v21  ;;  %1389 = vmatpush2.bf16.msra.mxu1 %v8772_v26  ;;  %v1711_v21 = vld [vmem:[#allocation7 + $0x140] sm:$0xff]  ;;  %v8846_v26 = vcombine.low %v1719_v10, %v1723_v12 }
  0xee   :  { %1277 = vmatprep.subr.bf16.mxu0 %v8763_v27  ;;  %1390 = vmatprep.subr.bf16.mxu1 %v8765_v33  ;;  %v8974_v27 = vcombine.low %v1847_v13, %v1851_v14  ;;  %v8839_v28 = vcombine.high %v1711_v21, %v1715_v24  ;;  %v1831_v33 = vld [vmem:[#allocation7 + $0x500] sm:$0xff] }
  0xef   :  { %v1683_v3 = vld [vmem:[#allocation7 + $0x60] sm:$0xff] }
  0xf0   :  { %1120 = vmatmul.mubr.bf16.gmra.mxu0 %v10217_v34  ;;  %1233 = vmatmul.mubr.bf16.gmra.mxu1 %v10217_v34  ;;  %v8807_v10 = vcombine.high %v1679_v2, %v1683_v3  ;;  %v1671_v12 = vld [vmem:[#allocation7] sm:$0xff] }
  0xf1   :  { %1278 = vmatpush2.bf16.msra.mxu0 %v8762_v35  ;;  %1391 = vmatpush2.bf16.msra.mxu1 %v8764_v39  ;;  %v1835_v35 = vld [vmem:[#allocation7 + $0x520] sm:$0xff] }
  0xf2   :  { %1279 = vmatprep.subr.bf16.mxu0 %v8755_v40  ;;  %1392 = vmatprep.subr.bf16.mxu1 %v8757_v43  ;;  %v1695_v39 = vld [vmem:[#allocation7 + $0xc0] sm:$0xff]  ;;  %v8830_v43 = vcombine.low %v1703_v30, %v1707_v31  ;;  %v8958_v46 = vcombine.low %v1831_v33, %v1835_v35 }
  0xf3   :  { %1129 = vmatprep.mubr.bf16.mxu0 %v10219_v44  ;;  %1242 = vmatprep.mubr.bf16.mxu1 %v10219_v44  ;;  %v1699_v40 = vld [vmem:[#allocation7 + $0xe0] sm:$0xff] }
  0xf4   :  { %v8823_v48 = vcombine.high %v1695_v39, %v1699_v40  ;;  %v1675_v13 = vld [vmem:[#allocation7 + $0x20] sm:$0xff] }
  0xf5   :  { %1280 = vmatpush2.bf16.msra.mxu0 %v8754_v49  ;;  %1393 = vmatpush2.bf16.msra.mxu1 %v8756_v52  ;;  %v1687_v49 = vld [vmem:[#allocation7 + $0x80] sm:$0xff] }
  0xf6   :  { %1281 = vmatprep.subr.bf16.mxu0 %v8747_v53  ;;  %1394 = vmatprep.subr.bf16.mxu1 %v8749_v57  ;;  %v10239_v52 = vld [vmem:[#allocation7 + $0x9c0] sm:$0xff] }
  0xf7   :  { %v10241_v53 = vld [vmem:[#allocation7 + $0x9e0] sm:$0xff] }
  0xf8   :  { %1130 = vmatmul.mubr.bf16.gmra.mxu0 %v10225_v59  ;;  %1243 = vmatmul.mubr.bf16.gmra.mxu1 %v10225_v59  ;;  %v10245_v57 = vld [vmem:[#allocation7 + $0xde0] sm:$0xff] }
  0xf9   :  { %1282 = vmatpush2.bf16.msra.mxu0 %v8746_v60  ;;  %1395 = vmatpush2.bf16.msra.mxu1 %v8748_v0  ;;  %v9110_v60 = vcombine.low %v10239_v52, %v10241_v53  ;;  %v8815_v0 = vcombine.high %v1687_v49, %v1691_v50  ;;  %v1799_v14 = vld [vmem:[#allocation7 + $0x400] sm:$0xff] }
  0xfa   :  { %1283 = vmatprep.subr.bf16.mxu0 %v8739_v1  ;;  %1396 = vmatprep.subr.bf16.mxu1 %v8741_v4  ;;  %v8943_v1 = vcombine.high %v1815_v54, %v1819_v55  ;;  %v1807_v4 = vld [vmem:[#allocation7 + $0x440] sm:$0xff] }
  0xfb   :  { %1285 = vmatprep.mubr.bf16.mxu0 %v10165_v58  ;;  %1398 = vmatprep.mubr.bf16.mxu1 %v10165_v58  ;;  %v1839_v58 = vld [vmem:[#allocation7 + $0x540] sm:$0xff] }
  0xfc   :  { %v8967_v29 = vcombine.high %v1839_v58, %v1843_v25  ;;  %v8966_v36 = vcombine.low %v1839_v58, %v1843_v25  ;;  %v1923_v58 = vld [vmem:[#allocation7 + $0x7e0] sm:$0xff]  ;;  %v8798_v25 = vcombine.low %v1671_v12, %v1675_v13 }
  0xfd   :  { %1284 = vmatpush2.bf16.msra.mxu0 %v8738_v5  ;;  %1397 = vmatpush2.bf16.msra.mxu1 %v8740_v6  ;;  %v1811_v5 = vld [vmem:[#allocation7 + $0x460] sm:$0xff]  ;;  %v8814_v6 = vcombine.low %v1687_v49, %v1691_v50 }
  0xfe   :  { %4785 = vmatprep.subr.bf16.mxu0 %v8855_v9  ;;  %4898 = vmatprep.subr.bf16.mxu1 %v8983_v11  ;;  %v8942_v9 = vcombine.low %v1815_v54, %v1819_v55  ;;  %v8935_v11 = vcombine.high %v1807_v4, %v1811_v5  ;;  %v1787_v30 = vld [vmem:[#allocation7 + $0x3a0] sm:$0xff] }
  0xff   :  { %v1911_v31 = vld [vmem:[#allocation7 + $0x780] sm:$0xff] }
 0x100   :  { %1286 = vmatmul.mubr.bf16.vlgmr.msra.gmra.mxu0 %v10169_v15  ;;  %1399 = vmatmul.mubr.bf16.vlgmr.msra.gmra.mxu1 %v10169_v15  ;;  %v8838_v15 = vcombine.low %v1711_v21, %v1715_v24  ;;  %v1795_v21 = vld [vmem:[#allocation7 + $0x3e0] sm:$0xff] }
 0x101   :  { %1295 = vmatprep.mubr.bf16.mxu0 %v10171_v23  ;;  %1408 = vmatprep.mubr.bf16.mxu1 %v10171_v23  ;;  %v8959_v23 = vcombine.high %v1831_v33, %v1835_v35  ;;  %v1919_v24 = vld [vmem:[#allocation7 + $0x7c0] sm:$0xff] }
 0x102   :  { %4786 = vmatpush1.bf16.msra.mxu0 %v8854_v16  ;;  %4899 = vmatpush1.bf16.msra.mxu1 %v8982_v17  ;;  %v1803_v16 = vld [vmem:[#allocation7 + $0x420] sm:$0xff]  ;;  %v8934_v17 = vcombine.low %v1807_v4, %v1811_v5  ;;  %v9046_v35 = vcombine.low %v1919_v24, %v1923_v58 }
 0x103   :  { %4787 = vmatprep.subr.bf16.mxu0 %v8847_v19  ;;  %4900 = vmatprep.subr.bf16.mxu1 %v8975_v20  ;;  %v8799_v19 = vcombine.high %v1671_v12, %v1675_v13  ;;  %v1791_v20 = vld [vmem:[#allocation7 + $0x3c0] sm:$0xff] }
 0x104   :  { %v1915_v33 = vld [vmem:[#allocation7 + $0x7a0] sm:$0xff] }
 0x105   :  { %v9038_v41 = vcombine.low %v1911_v31, %v1915_v33  ;;  %v1895_v49 = vld [vmem:[#allocation7 + $0x700] sm:$0xff] }
 0x106   :  { %4788 = vmatpush1.bf16.msra.mxu0 %v8846_v26  ;;  %4901 = vmatpush1.bf16.msra.mxu1 %v8974_v27  ;;  %v8926_v26 = vcombine.low %v1799_v14, %v1803_v16  ;;  %v8919_v27 = vcombine.high %v1791_v20, %v1795_v21  ;;  %v1899_v50 = vld [vmem:[#allocation7 + $0x720] sm:$0xff] }
 0x107   :  { %4789 = vmatprep.subr.bf16.mxu0 %v8839_v28  ;;  %4902 = vmatprep.subr.bf16.mxu1 %v8967_v29  ;;  %v9047_v28 = vcombine.high %v1919_v24, %v1923_v58  ;;  %v1783_v29 = vld [vmem:[#allocation7 + $0x380] sm:$0xff] }
 0x108   :  { %1296 = vmatmul.mubr.bf16.gmra.mxu0 %v10177_v37  ;;  %1409 = vmatmul.mubr.bf16.gmra.mxu1 %v10177_v37  ;;  %v10243_v37 = vld [vmem:[#allocation7 + $0xdc0] sm:$0xff] }
 0x109   :  { %1305 = vmatprep.mubr.bf16.mxu0 %v10179_v45  ;;  %1418 = vmatprep.mubr.bf16.mxu1 %v10179_v45  ;;  %v8822_v45 = vcombine.low %v1695_v39, %v1699_v40  ;;  %v9238_v61 = vcombine.low %v10243_v37, %v10245_v57  ;;  %v1907_v39 = vld [vmem:[#allocation7 + $0x760] sm:$0xff]  ;;  %v8910_v40 = vcombine.low %v1783_v29, %v1787_v30 }
 0x10a   :  { %4790 = vmatpush1.bf16.msra.mxu0 %v8838_v15  ;;  %4903 = vmatpush1.bf16.msra.mxu1 %v8966_v36  ;;  %v8911_v15 = vcombine.high %v1783_v29, %v1787_v30  ;;  %v1775_v36 = vld [vmem:[#allocation7 + $0x340] sm:$0xff]  ;;  %v9111_v30 = vcombine.high %v10239_v52, %v10241_v53 }
 0x10b   :  { %4791 = vmatprep.subr.bf16.mxu0 %v8831_v38  ;;  %4904 = vmatprep.subr.bf16.mxu1 %v8959_v23  ;;  %v1779_v38 = vld [vmem:[#allocation7 + $0x360] sm:$0xff] }
 0x10c   :  { %v1903_v23 = vld [vmem:[#allocation7 + $0x740] sm:$0xff]  ;;  %v8903_v42 = vcombine.high %v1775_v36, %v1779_v38 }
 0x10d   :  { %v1759_v55 = vld [vmem:[#allocation7 + $0x2c0] sm:$0xff] }
 0x10e   :  { %4792 = vmatpush1.bf16.msra.mxu0 %v8830_v43  ;;  %4905 = vmatpush1.bf16.msra.mxu1 %v8958_v46  ;;  %v9031_v43 = vcombine.high %v1903_v23, %v1907_v39  ;;  %v1767_v46 = vld [vmem:[#allocation7 + $0x300] sm:$0xff] }
 0x10f   :  { %4793 = vmatprep.subr.bf16.mxu0 %v8823_v48  ;;  %4906 = vmatprep.subr.bf16.mxu1 %v8951_v51  ;;  %v1771_v48 = vld [vmem:[#allocation7 + $0x320] sm:$0xff]  ;;  %v9030_v51 = vcombine.low %v1903_v23, %v1907_v39 }
 0x110   :  { %1306 = vmatmul.mubr.bf16.gmra.mxu0 %v10185_v63  ;;  %1419 = vmatmul.mubr.bf16.gmra.mxu1 %v10185_v63  ;;  %v8806_v63 = vcombine.low %v1679_v2, %v1683_v3  ;;  %v8895_v54 = vcombine.high %v1767_v46, %v1771_v48  ;;  %v9022_v2 = vcombine.low %v1895_v49, %v1899_v50  ;;  %v1751_v5 = vld [vmem:[#allocation7 + $0x280] sm:$0xff] }
 0x111   :  { %1315 = vmatprep.mubr.bf16.mxu0 %v10187_v8  ;;  %1428 = vmatprep.mubr.bf16.mxu1 %v10187_v8  ;;  %v8927_v8 = vcombine.high %v1799_v14, %v1803_v16  ;;  %v1743_v13 = vld [vmem:[#allocation7 + $0x240] sm:$0xff] }
 0x112   :  { %4794 = vmatpush1.bf16.msra.mxu0 %v8822_v45  ;;  %4907 = vmatpush1.bf16.msra.mxu1 %v8950_v62  ;;  %v1763_v45 = vld [vmem:[#allocation7 + $0x2e0] sm:$0xff] }
 0x113   :  { %4795 = vmatprep.subr.bf16.mxu0 %v8815_v0  ;;  %4908 = vmatprep.subr.bf16.mxu1 %v8943_v1  ;;  %v1887_v62 = vld [vmem:[#allocation7 + $0x6c0] sm:$0xff]  ;;  %v8894_v1 = vcombine.low %v1767_v46, %v1771_v48  ;;  %v8887_v3 = vcombine.high %v1759_v55, %v1763_v45 }
 0x114   :  { %v1891_v0 = vld [vmem:[#allocation7 + $0x6e0] sm:$0xff] }
 0x115   :  { %v9015_v4 = vcombine.high %v1887_v62, %v1891_v0  ;;  %v1747_v14 = vld [vmem:[#allocation7 + $0x260] sm:$0xff] }
 0x116   :  { %4796 = vmatpush1.bf16.msra.mxu0 %v8814_v6  ;;  %4909 = vmatpush1.bf16.msra.mxu1 %v8942_v9  ;;  %v1755_v6 = vld [vmem:[#allocation7 + $0x2a0] sm:$0xff] }
 0x117   :  { %4797 = vmatprep.subr.bf16.mxu0 %v8807_v10  ;;  %4910 = vmatprep.subr.bf16.mxu1 %v8935_v11  ;;  %v1879_v9 = vld [vmem:[#allocation7 + $0x680] sm:$0xff]  ;;  %v9014_v11 = vcombine.low %v1887_v62, %v1891_v0  ;;  %v8879_v12 = vcombine.high %v1751_v5, %v1755_v6 }
 0x118   :  { %1316 = vmatmul.mubr.bf16.gmra.mxu0 %v10193_v22  ;;  %1429 = vmatmul.mubr.bf16.gmra.mxu1 %v10193_v22  ;;  %v8918_v22 = vcombine.low %v1791_v20, %v1795_v21  ;;  %v1883_v10 = vld [vmem:[#allocation7 + $0x6a0] sm:$0xff] }
 0x119   :  { %1325 = vmatprep.mubr.bf16.mxu0 %v10195_v32  ;;  %1438 = vmatprep.mubr.bf16.mxu1 %v10195_v32  ;;  %v9039_v32 = vcombine.high %v1911_v31, %v1915_v33  ;;  %v1871_v16 = vld [vmem:[#allocation7 + $0x640] sm:$0xff]  ;;  %v9239_v31 = vcombine.high %v10243_v37, %v10245_v57  ;;  %v347_v33 = vlaneseq }
 0x11a   :  { %4798 = vmatpush1.bf16.msra.mxu0 %v8806_v63  ;;  %4911 = vmatpush1.bf16.msra.mxu1 %v8934_v17  ;;  %v1875_v63 = vld [vmem:[#allocation7 + $0x660] sm:$0xff]  ;;  %v8878_v17 = vcombine.low %v1751_v5, %v1755_v6 }
 0x11b   :  { %4799 = vmatprep.subr.bf16.mxu0 %v8799_v19  ;;  %4912 = vmatprep.subr.bf16.mxu1 %v8927_v8  ;;  %v9006_v19 = vcombine.low %v1879_v9, %v1883_v10  ;;  %v8871_v8 = vcombine.high %v1743_v13, %v1747_v14  ;;  %v8999_v20 = vcombine.high %v1871_v16, %v1875_v63  ;;  %v1735_v21 = vld [vmem:[#allocation7 + $0x200] sm:$0xff] }
 0x11c   :  { %v1739_v24 = vld [vmem:[#allocation7 + $0x220] sm:$0xff] }
 0x11d   :  { %v1863_v58 = vld [vmem:[#allocation7 + $0x600] sm:$0xff] }
 0x11e   :  { %4800 = vmatpush1.bf16.msra.mxu0 %v8798_v25  ;;  %4913 = vmatpush1.bf16.msra.mxu1 %v8926_v26  ;;  %v1867_v25 = vld [vmem:[#allocation7 + $0x620] sm:$0xff]  ;;  %v8998_v26 = vcombine.low %v1871_v16, %v1875_v63 }
 0x11f   :  { %4801 = vmatprep.subr.bf16.mxu0 %v8919_v27  ;;  %4914 = vmatprep.subr.bf16.mxu1 %v9047_v28  ;;  %v8863_v27 = vcombine.high %v1735_v21, %v1739_v24  ;;  %v8862_v28 = vcombine.low %v1735_v21, %v1739_v24  ;;  %v8990_v29 = vcombine.low %v1863_v58, %v1867_v25  ;;  %v10314_v62 = vld [vmem:[#allocation7 + $0x9a0] sm:$0xff] }
 0x120   :  { %1326 = vmatmul.mubr.bf16.gmra.mxu0 %v10201_v47  ;;  %1439 = vmatmul.mubr.bf16.gmra.mxu1 %v10201_v47  ;;  %v8902_v47 = vcombine.low %v1775_v36, %v1779_v38  ;;  %v10319_v6 = vld [vmem:[#allocation7 + $0xd80] sm:$0xff] }
 0x121   :  { %1335 = vmatprep.mubr.bf16.mxu0 %v10203_v56  ;;  %1448 = vmatprep.mubr.bf16.mxu1 %v10203_v56  ;;  %v9023_v56 = vcombine.high %v1895_v49, %v1899_v50  ;;  %v10333_v21 = vld [vmem:[#allocation7 + $0xd60] sm:$0xff] }
 0x122   :  { %4802 = vmatpush2.bf16.msra.mxu0 %v8918_v22  ;;  %4915 = vmatpush2.bf16.msra.mxu1 %v9046_v35  ;;  %v10277_v22 = vshrl.u32 %v347_v33, 7  ;;  %v10385_v52 = vld [vmem:[#allocation7 + $0x8c0] sm:$0xff] }
 0x123   :  { %4803 = vmatprep.subr.bf16.mxu0 %v8911_v15  ;;  %4916 = vmatprep.subr.bf16.mxu1 %v9039_v32  ;;  %v10286_v32 = vld [vmem:[#allocation6] sm:$0xff]  ;;  %v10387_v53 = vld [vmem:[#allocation7 + $0x8e0] sm:$0xff] }
 0x124   :  { %12703 = vst [vmem:[#allocation24_spill] sm:$0xff] %v10277_v22  ;;  %v10283_v35 = vsub.s32 0, %v10277_v22  ;;  %v12589_v15 = vsub.s32 3, %v10277_v22  ;;  %v12590_v36 = vsub.s32 2, %v10277_v22  ;;  %v10391_v57 = vld [vmem:[#allocation7 + $0xcc0] sm:$0xff] }
 0x126   :  { %4804 = vmatpush2.bf16.msra.mxu0 %v8910_v40  ;;  %4917 = vmatpush2.bf16.msra.mxu1 %v9038_v41  ;;  %12705 = vst [vmem:[#allocation26_spill] sm:$0xff] %v10283_v35  ;;  %v10295_v40 = vrot.slane %v10286_v32, %v10283_v35 }
 0x127   :  { %4805 = vmatprep.subr.bf16.mxu0 %v8903_v42  ;;  %4918 = vmatprep.subr.bf16.mxu1 %v9031_v43  ;;  %v10300_v42 = vrot.slane %v10286_v32, %v12589_v15  ;;  %v10305_v43 = vrot.slane %v10286_v32, %v12590_v36 }
 0x128   :  { %1336 = vmatmul.mubr.bf16.gmra.mxu0 %v10209_v7  ;;  %1449 = vmatmul.mubr.bf16.gmra.mxu1 %v10209_v7  ;;  %v8886_v7 = vcombine.low %v1759_v55, %v1763_v45  ;;  %v10312_v45 = vld [vmem:[#allocation7 + $0x980] sm:$0xff] }
 0x129   :  { %1345 = vmatprep.mubr.bf16.mxu0 %v10211_v18  ;;  %1458 = vmatprep.mubr.bf16.mxu1 %v10211_v18  ;;  %v9007_v18 = vcombine.high %v1879_v9, %v1883_v10  ;;  %v10321_v9 = vld [vmem:[#allocation7 + $0xda0] sm:$0xff] }
 0x12a   :  { %4806 = vmatpush2.bf16.msra.mxu0 %v8902_v47  ;;  %4919 = vmatpush2.bf16.msra.mxu1 %v9030_v51 }
 0x12b   :  { %4807 = vmatprep.subr.bf16.mxu0 %v8895_v54  ;;  %4920 = vmatprep.subr.bf16.mxu1 %v9023_v56 }
 0x12e   :  { %4808 = vmatpush2.bf16.msra.mxu0 %v8894_v1  ;;  %4921 = vmatpush2.bf16.msra.mxu1 %v9022_v2 }
 0x12f   :  { %4809 = vmatprep.subr.bf16.mxu0 %v8887_v3  ;;  %4922 = vmatprep.subr.bf16.mxu1 %v9015_v4 }
 0x130   :  { %1346 = vmatmul.mubr.bf16.gmra.mxu0 %v10217_v34  ;;  %1459 = vmatmul.mubr.bf16.gmra.mxu1 %v10217_v34  ;;  %v8870_v34 = vcombine.low %v1743_v13, %v1747_v14  ;;  %v10325_v13 = vld [vmem:[#allocation7 + $0x940] sm:$0xff] }
 0x131   :  { %1355 = vmatprep.mubr.bf16.mxu0 %v10219_v44  ;;  %1468 = vmatprep.mubr.bf16.mxu1 %v10219_v44  ;;  %v8991_v44 = vcombine.high %v1863_v58, %v1867_v25  ;;  %v10327_v14 = vld [vmem:[#allocation7 + $0x960] sm:$0xff] }
 0x132   :  { %4810 = vmatpush2.bf16.msra.mxu0 %v8886_v7  ;;  %4923 = vmatpush2.bf16.msra.mxu1 %v9014_v11 }
 0x133   :  { %4811 = vmatprep.subr.bf16.mxu0 %v8879_v12  ;;  %4924 = vmatprep.subr.bf16.mxu1 %v9007_v18  ;;  %v9103_v18 = vcombine.high %v10312_v45, %v10314_v62 }
 0x136   :  { %4812 = vmatpush2.bf16.msra.mxu0 %v8878_v17  ;;  %4925 = vmatpush2.bf16.msra.mxu1 %v9006_v19 }
 0x137   :  { %4813 = vmatprep.subr.bf16.mxu0 %v8871_v8  ;;  %4926 = vmatprep.subr.bf16.mxu1 %v8999_v20  ;;  %v9102_v8 = vcombine.low %v10312_v45, %v10314_v62  ;;  %v10331_v20 = vld [vmem:[#allocation7 + $0xd40] sm:$0xff] }
 0x138   :  { %1356 = vmatmul.mubr.bf16.gmra.mxu0 %v10225_v59  ;;  %1469 = vmatmul.mubr.bf16.gmra.mxu1 %v10225_v59  ;;  %v10280_v59 = vsub.s32 1, %v10277_v22 }
 0x13a   :  { %4814 = vmatpush2.bf16.msra.mxu0 %v8870_v34  ;;  %4927 = vmatpush2.bf16.msra.mxu1 %v8998_v26  ;;  %12704 = vst [vmem:[#allocation25_spill] sm:$0xff] %v10280_v59  ;;  %v10291_v39 = vrot.slane %v10286_v32, %v10280_v59  ;;  %v9230_v34 = vcombine.low %v10319_v6, %v10321_v9 }
 0x13b   :  { %4815 = vmatprep.subr.bf16.mxu0 %v8863_v27  ;;  %4928 = vmatprep.subr.bf16.mxu1 %v8991_v44  ;;  %v9231_v26 = vcombine.high %v10319_v6, %v10321_v9 }
 0x13e   :  { %4816 = vmatpush2.bf16.msra.mxu0 %v8862_v28  ;;  %4929 = vmatpush2.bf16.msra.mxu1 %v8990_v29  ;;  %v9094_v29 = vcombine.low %v10325_v13, %v10327_v14 }
 0x13f   :  { %5011 = vmatprep.subr.bf16.mxu0 %v9111_v30  ;;  %5124 = vmatprep.subr.bf16.mxu1 %v9239_v31  ;;  %v9095_v30 = vcombine.high %v10325_v13, %v10327_v14  ;;  %v10443_v13 = vld [vmem:[#allocation7 + $0x840] sm:$0xff] }
 0x140   :  { %v10445_v14 = vld [vmem:[#allocation7 + $0x860] sm:$0xff] }
 0x180   :  { %v1061_v38 = vpop.f32.mrf.mxu0  ;;  %v1174_v23 = vpop.f32.mrf.mxu1 }
 0x181   :  { %v1062_v51 = vadd.f32 %v1061_v38, %v10295_v40  ;;  %v1175_v0 = vadd.f32 %v1174_v23, %v10305_v43 }
 0x182   :  { %v1063_v41 = vpop.f32.mrf.mxu0  ;;  %v1176_v46 = vpop.f32.mrf.mxu1 }
 0x183   :  { %v1064_v49 = vadd.f32 %v1063_v41, %v10291_v39  ;;  %v1177_v54 = vadd.f32 %v1176_v46, %v10300_v42  ;;  %v1479_v16 = vmax.f32 %v1062_v51, 0.0  ;;  %v1481_v24 = vmax.f32 %v1175_v0, 0.0  ;;  %v10356_v46 = vld [vmem:[#allocation7 + $0x900] sm:$0xff] }
 0x184   :  { %v1065_v48 = vpop.f32.mrf.mxu0  ;;  %v1178_v47 = vpop.f32.mrf.mxu1  ;;  %v9222_v41 = vcombine.low %v10331_v20, %v10333_v21  ;;  %v9223_v0 = vcombine.high %v10331_v20, %v10333_v21  ;;  %v10449_v21 = vld [vmem:[#allocation7 + $0xc40] sm:$0xff] }
 0x185   :  { %v1066_v50 = vadd.f32 %v1065_v48, %v10295_v40  ;;  %v1179_v56 = vadd.f32 %v1178_v47, %v10305_v43  ;;  %v1480_v10 = vmax.f32 %v1064_v49, 0.0  ;;  %v1482_v63 = vmax.f32 %v1177_v54, 0.0  ;;  %v10358_v48 = vld [vmem:[#allocation7 + $0x920] sm:$0xff] }
 0x186   :  { %v1067_v55 = vpop.f32.mrf.mxu0  ;;  %v1180_v2 = vpop.f32.mrf.mxu1  ;;  %v10365_v54 = vld [vmem:[#allocation7 + $0xd00] sm:$0xff] }
 0x187   :  { %v1068_v1 = vadd.f32 %v1067_v55, %v10291_v39  ;;  %v1487_v3 = vmax.f32 %v1066_v50, 0.0  ;;  %v1181_v4 = vadd.f32 %v1180_v2, %v10300_v42  ;;  %v1489_v7 = vmax.f32 %v1179_v56, 0.0  ;;  %v10367_v56 = vld [vmem:[#allocation7 + $0xd20] sm:$0xff] }
 0x188   :  { %v1071_v5 = vpop.f32.mrf.mxu0  ;;  %v1184_v12 = vpop.f32.mrf.mxu1  ;;  %v9214_v37 = vcombine.low %v10365_v54, %v10367_v56 }
 0x189   :  { %v1488_v11 = vmax.f32 %v1068_v1, 0.0  ;;  %v1490_v17 = vmax.f32 %v1181_v4, 0.0  ;;  %v10341_v27 = vpack.c.bf16 %v1487_v3, %v1479_v16  ;;  %v10349_v31 = vpack.c.bf16 %v1489_v7, %v1481_v24 }
 0x18a   :  { %v1073_v19 = vpop.f32.mrf.mxu0  ;;  %v1186_v25 = vpop.f32.mrf.mxu1  ;;  %v1072_v49 = vadd.f32 %v1071_v5, %v10295_v40  ;;  %v1185_v55 = vadd.f32 %v1184_v12, %v10305_v43  ;;  %v9086_v4 = vcombine.low %v10356_v46, %v10358_v48  ;;  %v9087_v5 = vcombine.high %v10356_v46, %v10358_v48 }
 0x18b   :  { %v10335_v58 = vpack.c.bf16 %v1488_v11, %v1480_v10  ;;  %v10343_v44 = vpack.c.bf16 %v1490_v17, %v1482_v63  ;;  %12708 = vst [vmem:[#allocation29_spill] sm:$0xff] %v10349_v31  ;;  %v1074_v33 = vadd.f32 %v1073_v19, %v10291_v39  ;;  %v1187_v50 = vadd.f32 %v1186_v25, %v10300_v42 }
 0x18c   :  { %v1075_v28 = vpop.f32.mrf.mxu0  ;;  %v1188_v23 = vpop.f32.mrf.mxu1  ;;  %v1495_v7 = vmax.f32 %v1072_v49, 0.0  ;;  %v9215_v16 = vcombine.high %v10365_v54, %v10367_v56  ;;  %v1497_v63 = vmax.f32 %v1185_v55, 0.0  ;;  %v9078_v24 = vcombine.low %v10385_v52, %v10387_v53 }
 0x18d   :  { %12706 = vst [vmem:[#allocation27_spill] sm:$0xff] %v10335_v58  ;;  %12707 = vst [vmem:[#allocation28_spill] sm:$0xff] %v10343_v44  ;;  %v1076_v38 = vadd.f32 %v1075_v28, %v10295_v40  ;;  %4817 = vmatprep.mubr.bf16.mxu0 %v10335_v58  ;;  %v1189_v47 = vadd.f32 %v1188_v23, %v10305_v43  ;;  %4930 = vmatprep.mubr.bf16.mxu1 %v10343_v44  ;;  %v1498_v11 = vmax.f32 %v1187_v50, 0.0 }
 0x18e   :  { %v1077_v51 = vpop.f32.mrf.mxu0  ;;  %4818 = vmatmul.mubr.bf16.vlgmr.msra.gmra.mxu0 %v10341_v27  ;;  %v1190_v62 = vpop.f32.mrf.mxu1  ;;  %4931 = vmatmul.mubr.bf16.vlgmr.msra.gmra.mxu1 %v10349_v31  ;;  %v9079_v25 = vcombine.high %v10385_v52, %v10387_v53  ;;  %v10507_v52 = vld [vmem:[#allocation7 + $0xbc0] sm:$0xff] }
 0x18f   :  { %v1078_v45 = vadd.f32 %v1077_v51, %v10291_v39  ;;  %5012 = vmatpush1.bf16.msra.mxu0 %v9110_v60  ;;  %v1503_v1 = vmax.f32 %v1076_v38, 0.0  ;;  %v1191_v2 = vadd.f32 %v1190_v62, %v10300_v42  ;;  %5125 = vmatpush1.bf16.msra.mxu1 %v9238_v61  ;;  %v1496_v60 = vmax.f32 %v1074_v33, 0.0  ;;  %v10393_v61 = vld [vmem:[#allocation7 + $0xce0] sm:$0xff] }
 0x190   :  { %v1081_v3 = vpop.f32.mrf.mxu0  ;;  %5013 = vmatprep.subr.bf16.mxu0 %v9103_v18  ;;  %v1505_v6 = vmax.f32 %v1189_v47, 0.0  ;;  %v1194_v10 = vpop.f32.mrf.mxu1  ;;  %5126 = vmatprep.subr.bf16.mxu1 %v9231_v26  ;;  %v9206_v38 = vcombine.low %v10391_v57, %v10393_v61  ;;  %v10414_v47 = vld [vmem:[#allocation7 + $0x880] sm:$0xff] }
 0x191   :  { %v1504_v9 = vmax.f32 %v1078_v45, 0.0  ;;  %v1506_v12 = vmax.f32 %v1191_v2, 0.0  ;;  %v10403_v26 = vpack.c.bf16 %v1503_v1, %v1495_v7  ;;  %v10416_v51 = vld [vmem:[#allocation7 + $0x8a0] sm:$0xff] }
 0x192   :  { %v1083_v18 = vpop.f32.mrf.mxu0  ;;  %v1196_v19 = vpop.f32.mrf.mxu1  ;;  %v10409_v23 = vpack.c.bf16 %v1505_v6, %v1497_v63  ;;  %v10423_v62 = vld [vmem:[#allocation7 + $0xc80] sm:$0xff]  ;;  %v9070_v7 = vcombine.low %v10414_v47, %v10416_v51 }
 0x193   :  { %v10397_v17 = vpack.c.bf16 %v1504_v9, %v1496_v60  ;;  %5014 = vmatpush1.bf16.msra.mxu0 %v9102_v8  ;;  %v10405_v28 = vpack.c.bf16 %v1506_v12, %v1498_v11  ;;  %5127 = vmatpush1.bf16.msra.mxu1 %v9230_v34  ;;  %v1084_v8 = vadd.f32 %v1083_v18, %v10291_v39  ;;  %v10425_v1 = vld [vmem:[#allocation7 + $0xca0] sm:$0xff] }
 0x194   :  { %v1085_v33 = vpop.f32.mrf.mxu0  ;;  %5015 = vmatprep.subr.bf16.mxu0 %v9095_v30  ;;  %v1198_v50 = vpop.f32.mrf.mxu1  ;;  %5128 = vmatprep.subr.bf16.mxu1 %v9223_v0  ;;  %v1082_v34 = vadd.f32 %v1081_v3, %v10295_v40  ;;  %v1197_v30 = vadd.f32 %v1196_v19, %v10300_v42  ;;  %v1195_v0 = vadd.f32 %v1194_v10, %v10305_v43  ;;  %v10509_v53 = vld [vmem:[#allocation7 + $0xbe0] sm:$0xff] }
 0x195   :  { %12709 = vst [vmem:[#allocation30_spill] sm:$0xff] %v10397_v17  ;;  %12710 = vst [vmem:[#allocation31_spill] sm:$0xff] %v10405_v28  ;;  %v1086_v49 = vadd.f32 %v1085_v33, %v10295_v40  ;;  %4827 = vmatprep.mubr.bf16.mxu0 %v10397_v17  ;;  %v1199_v55 = vadd.f32 %v1198_v50, %v10305_v43  ;;  %4940 = vmatprep.mubr.bf16.mxu1 %v10405_v28 }
 0x196   :  { %v1087_v45 = vpop.f32.mrf.mxu0  ;;  %4828 = vmatmul.mubr.bf16.gmra.mxu0 %v10403_v26  ;;  %v1200_v60 = vpop.f32.mrf.mxu1  ;;  %4941 = vmatmul.mubr.bf16.gmra.mxu1 %v10409_v23  ;;  %v9207_v3 = vcombine.high %v10391_v57, %v10393_v61  ;;  %v9071_v11 = vcombine.high %v10414_v47, %v10416_v51  ;;  %v9198_v20 = vcombine.low %v10423_v62, %v10425_v1  ;;  %v1514_v19 = vmax.f32 %v1197_v30, 0.0  ;;  %v10513_v61 = vld [vmem:[#allocation7 + $0xfc0] sm:$0xff] }
 0x197   :  { %v1088_v2 = vadd.f32 %v1087_v45, %v10291_v39  ;;  %5016 = vmatpush1.bf16.msra.mxu0 %v9094_v29  ;;  %v1519_v6 = vmax.f32 %v1086_v49, 0.0  ;;  %v1201_v9 = vadd.f32 %v1200_v60, %v10300_v42  ;;  %5129 = vmatpush1.bf16.msra.mxu1 %v9222_v41  ;;  %v1512_v29 = vmax.f32 %v1084_v8, 0.0  ;;  %v10451_v41 = vld [vmem:[#allocation7 + $0xc60] sm:$0xff] }
 0x198   :  { %v1091_v10 = vpop.f32.mrf.mxu0  ;;  %5017 = vmatprep.subr.bf16.mxu0 %v9087_v5  ;;  %v1521_v12 = vmax.f32 %v1199_v55, 0.0  ;;  %v1204_v63 = vpop.f32.mrf.mxu1  ;;  %5130 = vmatprep.subr.bf16.mxu1 %v9215_v16  ;;  %v1511_v5 = vmax.f32 %v1082_v34, 0.0  ;;  %v9199_v50 = vcombine.high %v10423_v62, %v10425_v1  ;;  %v1513_v45 = vmax.f32 %v1195_v0, 0.0 }
 0x199   :  { %v1520_v18 = vmax.f32 %v1088_v2, 0.0  ;;  %v1522_v33 = vmax.f32 %v1201_v9, 0.0  ;;  %v9062_v16 = vcombine.low %v10443_v13, %v10445_v14  ;;  %v9063_v34 = vcombine.high %v10443_v13, %v10445_v14  ;;  %v10571_v13 = vld [vmem:[#allocation7 + $0xb40] sm:$0xff] }
 0x19a   :  { %v1093_v49 = vpop.f32.mrf.mxu0  ;;  %v1206_v55 = vpop.f32.mrf.mxu1  ;;  %v10464_v30 = vpack.c.bf16 %v1519_v6, %v1511_v5  ;;  %v9190_v46 = vcombine.low %v10449_v21, %v10451_v41  ;;  %v10473_v48 = vpack.c.bf16 %v1521_v12, %v1513_v45  ;;  %v10478_v6 = vld [vmem:[#allocation7 + $0x800] sm:$0xff]  ;;  %v1092_v54 = vadd.f32 %v1091_v10, %v10295_v40 }
 0x19b   :  { %v10455_v8 = vpack.c.bf16 %v1520_v18, %v1512_v29  ;;  %5018 = vmatpush1.bf16.msra.mxu0 %v9086_v4  ;;  %v10466_v2 = vpack.c.bf16 %v1522_v33, %v1514_v19  ;;  %5131 = vmatpush1.bf16.msra.mxu1 %v9214_v37  ;;  %v1094_v4 = vadd.f32 %v1093_v49, %v10291_v39  ;;  %v10480_v29 = vld [vmem:[#allocation7 + $0x820] sm:$0xff] }
 0x19c   :  { %v1095_v0 = vpop.f32.mrf.mxu0  ;;  %5019 = vmatprep.subr.bf16.mxu0 %v9079_v25  ;;  %v1208_v9 = vpop.f32.mrf.mxu1  ;;  %5132 = vmatprep.subr.bf16.mxu1 %v9207_v3  ;;  %v1207_v56 = vadd.f32 %v1206_v55, %v10300_v42  ;;  %v10487_v12 = vld [vmem:[#allocation7 + $0xc00] sm:$0xff]  ;;  %v1205_v3 = vadd.f32 %v1204_v63, %v10305_v43  ;;  %v9191_v10 = vcombine.high %v10449_v21, %v10451_v41 }
 0x19d   :  { %v1096_v60 = vadd.f32 %v1095_v0, %v10295_v40  ;;  %4837 = vmatprep.mubr.bf16.mxu0 %v10455_v8  ;;  %v1209_v37 = vadd.f32 %v1208_v9, %v10305_v43  ;;  %4950 = vmatprep.mubr.bf16.mxu1 %v10466_v2  ;;  %v10489_v18 = vld [vmem:[#allocation7 + $0xc20] sm:$0xff]  ;;  %v9055_v55 = vcombine.high %v10478_v6, %v10480_v29 }
 0x19e   :  { %v1097_v25 = vpop.f32.mrf.mxu0  ;;  %4838 = vmatmul.mubr.bf16.gmra.mxu0 %v10464_v30  ;;  %v1210_v19 = vpop.f32.mrf.mxu1  ;;  %4951 = vmatmul.mubr.bf16.gmra.mxu1 %v10473_v48  ;;  %v9183_v36 = vcombine.high %v10487_v12, %v10489_v18  ;;  %v1529_v45 = vmax.f32 %v1205_v3, 0.0  ;;  %v10573_v14 = vld [vmem:[#allocation7 + $0xb60] sm:$0xff] }
 0x19f   :  { %v1098_v5 = vadd.f32 %v1097_v25, %v10291_v39  ;;  %5020 = vmatpush1.bf16.msra.mxu0 %v9078_v24  ;;  %v1535_v33 = vmax.f32 %v1096_v60, 0.0  ;;  %v1211_v49 = vadd.f32 %v1210_v19, %v10300_v42  ;;  %5133 = vmatpush1.bf16.msra.mxu1 %v9206_v38  ;;  %v1528_v24 = vmax.f32 %v1094_v4, 0.0  ;;  %v10515_v38 = vld [vmem:[#allocation7 + $0xfe0] sm:$0xff] }
 0x1a0   :  { %v1101_v63 = vpop.f32.mrf.mxu0  ;;  %5021 = vmatprep.subr.bf16.mxu0 %v9071_v11  ;;  %v1537_v0 = vmax.f32 %v1209_v37, 0.0  ;;  %v1214_v9 = vpop.f32.mrf.mxu1  ;;  %5134 = vmatprep.subr.bf16.mxu1 %v9199_v50  ;;  %v1527_v11 = vmax.f32 %v1092_v54, 0.0  ;;  %v1530_v25 = vmax.f32 %v1207_v56, 0.0  ;;  %v9175_v54 = vcombine.high %v10507_v52, %v10509_v53  ;;  %v10577_v41 = vld [vmem:[#allocation7 + $0xf40] sm:$0xff] }
 0x1a1   :  { %v1536_v60 = vmax.f32 %v1098_v5, 0.0  ;;  %v1538_v19 = vmax.f32 %v1211_v49, 0.0  ;;  %v1102_v62 = vadd.f32 %v1101_v63, %v10295_v40  ;;  %v9303_v63 = vcombine.high %v10513_v61, %v10515_v38 }
 0x1a2   :  { %v1103_v15 = vpop.f32.mrf.mxu0  ;;  %v1216_v37 = vpop.f32.mrf.mxu1  ;;  %v10528_v56 = vpack.c.bf16 %v1535_v33, %v1527_v11  ;;  %v10537_v51 = vpack.c.bf16 %v1537_v0, %v1529_v45  ;;  %v10542_v33 = vld [vmem:[#allocation7 + $0xb80] sm:$0xff] }
 0x1a3   :  { %v10519_v4 = vpack.c.bf16 %v1536_v60, %v1528_v24  ;;  %5022 = vmatpush1.bf16.msra.mxu0 %v9070_v7  ;;  %v10530_v5 = vpack.c.bf16 %v1538_v19, %v1530_v25  ;;  %5135 = vmatpush1.bf16.msra.mxu1 %v9198_v20  ;;  %v1104_v7 = vadd.f32 %v1103_v15, %v10291_v39  ;;  %v10544_v60 = vld [vmem:[#allocation7 + $0xba0] sm:$0xff] }
 0x1a4   :  { %v1105_v3 = vpop.f32.mrf.mxu0  ;;  %5023 = vmatprep.subr.bf16.mxu0 %v9063_v34  ;;  %12711 = vst [vmem:[#allocation32_spill] sm:$0xff] %v10537_v51  ;;  %v1218_v24 = vpop.f32.mrf.mxu1  ;;  %5136 = vmatprep.subr.bf16.mxu1 %v9191_v10  ;;  %v1217_v1 = vadd.f32 %v1216_v37, %v10300_v42  ;;  %v10551_v15 = vld [vmem:[#allocation7 + $0xf80] sm:$0xff]  ;;  %v1215_v10 = vadd.f32 %v1214_v9, %v10305_v43 }
 0x1a5   :  { %v1106_v49 = vadd.f32 %v1105_v3, %v10295_v40  ;;  %4847 = vmatprep.mubr.bf16.mxu0 %v10519_v4  ;;  %v1219_v20 = vadd.f32 %v1218_v24, %v10305_v43  ;;  %4960 = vmatprep.mubr.bf16.mxu1 %v10530_v5  ;;  %v10553_v45 = vld [vmem:[#allocation7 + $0xfa0] sm:$0xff]  ;;  %v9167_v3 = vcombine.high %v10542_v33, %v10544_v60 }
 0x1a6   :  { %v1107_v34 = vpop.f32.mrf.mxu0  ;;  %4848 = vmatmul.mubr.bf16.gmra.mxu0 %v10528_v56  ;;  %v1220_v11 = vpop.f32.mrf.mxu1  ;;  %4961 = vmatmul.mubr.bf16.gmra.mxu1 %v10537_v51  ;;  %v9295_v50 = vcombine.high %v10551_v15, %v10553_v45  ;;  %v1545_v57 = vmax.f32 %v1215_v10, 0.0  ;;  %v12716_v10 = vcombine.low %v10487_v12, %v10489_v18 }
 0x1a7   :  { %v1108_v0 = vadd.f32 %v1107_v34, %v10291_v39  ;;  %5024 = vmatpush1.bf16.msra.mxu0 %v9062_v16  ;;  %v1551_v25 = vmax.f32 %v1106_v49, 0.0  ;;  %v1221_v19 = vadd.f32 %v1220_v11, %v10300_v42  ;;  %5137 = vmatpush1.bf16.msra.mxu1 %v9190_v46  ;;  %v1544_v16 = vmax.f32 %v1104_v7, 0.0  ;;  %v10579_v46 = vld [vmem:[#allocation7 + $0xf60] sm:$0xff] }
 0x1a8   :  { %v1111_v9 = vpop.f32.mrf.mxu0  ;;  %5025 = vmatprep.subr.bf16.mxu0 %v9055_v55  ;;  %v1553_v49 = vmax.f32 %v1219_v20, 0.0  ;;  %v1224_v34 = vpop.f32.mrf.mxu1  ;;  %5138 = vmatprep.subr.bf16.mxu1 %v9183_v36  ;;  %v1543_v55 = vmax.f32 %v1102_v62, 0.0  ;;  %v1546_v11 = vmax.f32 %v1217_v1, 0.0  ;;  %v12713_v36 = vcombine.low %v10478_v6, %v10480_v29 }
 0x1a9   :  { %v1552_v24 = vmax.f32 %v1108_v0, 0.0  ;;  %v1554_v37 = vmax.f32 %v1221_v19, 0.0  ;;  %v9159_v62 = vcombine.high %v10571_v13, %v10573_v14  ;;  %v1112_v12 = vadd.f32 %v1111_v9, %v10295_v40 }
 0x1aa   :  { %v1113_v47 = vpop.f32.mrf.mxu0  ;;  %v1226_v20 = vpop.f32.mrf.mxu1  ;;  %v10592_v1 = vpack.c.bf16 %v1551_v25, %v1543_v55  ;;  %v10601_v29 = vpack.c.bf16 %v1553_v49, %v1545_v57  ;;  %v10606_v25 = vld [vmem:[#allocation7 + $0xb00] sm:$0xff]  ;;  %v12718_v9 = vcombine.low %v10507_v52, %v10509_v53 }
 0x1ab   :  { %v10583_v7 = vpack.c.bf16 %v1552_v24, %v1544_v16  ;;  %5026 = vmatpush1.bf16.msra.mxu0 %v12713_v36  ;;  %v10594_v19 = vpack.c.bf16 %v1554_v37, %v1546_v11  ;;  %5139 = vmatpush1.bf16.msra.mxu1 %v12716_v10  ;;  %v1114_v24 = vadd.f32 %v1113_v47, %v10291_v39  ;;  %v10608_v37 = vld [vmem:[#allocation7 + $0xb20] sm:$0xff] }
 0x1ac   :  { %12714 = vst [vmem:[#allocation34_spill] sm:$0xff] %v10592_v1  ;;  %v1115_v16 = vpop.f32.mrf.mxu0  ;;  %5027 = vmatprep.subr.bf16.mxu0 %v9175_v54  ;;  %12717 = vst [vmem:[#allocation36_spill] sm:$0xff] %v10601_v29  ;;  %v1228_v0 = vpop.f32.mrf.mxu1  ;;  %5140 = vmatprep.subr.bf16.mxu1 %v9303_v63  ;;  %v1227_v18 = vadd.f32 %v1226_v20, %v10300_v42  ;;  %v10615_v47 = vld [vmem:[#allocation7 + $0xf00] sm:$0xff]  ;;  %v1225_v63 = vadd.f32 %v1224_v34, %v10305_v43 }
 0x1ad   :  { %12712 = vst [vmem:[#allocation33_spill] sm:$0xff] %v10583_v7  ;;  %12715 = vst [vmem:[#allocation35_spill] sm:$0xff] %v10594_v19  ;;  %v1116_v36 = vadd.f32 %v1115_v16, %v10295_v40  ;;  %4857 = vmatprep.mubr.bf16.mxu0 %v10583_v7  ;;  %v1229_v54 = vadd.f32 %v1228_v0, %v10305_v43  ;;  %4970 = vmatprep.mubr.bf16.mxu1 %v10594_v19  ;;  %v10617_v49 = vld [vmem:[#allocation7 + $0xf20] sm:$0xff] }
 0x1ae   :  { %v1117_v57 = vpop.f32.mrf.mxu0  ;;  %4858 = vmatmul.mubr.bf16.gmra.mxu0 %v10592_v1  ;;  %v1230_v11 = vpop.f32.mrf.mxu1  ;;  %4971 = vmatmul.mubr.bf16.gmra.mxu1 %v10601_v29  ;;  %v9287_v20 = vcombine.high %v10577_v41, %v10579_v46  ;;  %v12719_v16 = vcombine.low %v10513_v61, %v10515_v38  ;;  %v9151_v6 = vcombine.high %v10606_v25, %v10608_v37  ;;  %v10635_v52 = vld [vmem:[#allocation7 + $0xac0] sm:$0xff]  ;;  %v1561_v1 = vmax.f32 %v1225_v63, 0.0 }
 0x1af   :  { %v1118_v55 = vadd.f32 %v1117_v57, %v10291_v39  ;;  %5028 = vmatpush2.bf16.msra.mxu0 %v12718_v9  ;;  %v1567_v0 = vmax.f32 %v1116_v36, 0.0  ;;  %v1231_v10 = vadd.f32 %v1230_v11, %v10300_v42  ;;  %v10637_v53 = vld [vmem:[#allocation7 + $0xae0] sm:$0xff]  ;;  %v1560_v9 = vmax.f32 %v1114_v24, 0.0 }
 0x1b0   :  { %5141 = vmatpush2.bf16.msra.mxu1 %v12719_v16  ;;  %v1121_v34 = vpop.f32.mrf.mxu0  ;;  %5029 = vmatprep.subr.bf16.mxu0 %v9167_v3  ;;  %v1569_v36 = vmax.f32 %v1229_v54, 0.0  ;;  %v1234_v11 = vpop.f32.mrf.mxu1  ;;  %v10641_v38 = vld [vmem:[#allocation7 + $0xec0] sm:$0xff]  ;;  %v1559_v16 = vmax.f32 %v1112_v12, 0.0  ;;  %v1562_v57 = vmax.f32 %v1227_v18, 0.0  ;;  %v9279_v29 = vcombine.high %v10615_v47, %v10617_v49 }
 0x1b1   :  { %v1568_v21 = vmax.f32 %v1118_v55, 0.0  ;;  %5142 = vmatprep.subr.bf16.mxu1 %v9295_v50  ;;  %v10643_v3 = vld [vmem:[#allocation7 + $0xee0] sm:$0xff]  ;;  %v1570_v59 = vmax.f32 %v1231_v10, 0.0  ;;  %v12721_v50 = vcombine.low %v10542_v33, %v10544_v60  ;;  %v9143_v12 = vcombine.high %v10635_v52, %v10637_v53 }
 0x1b2   :  { %v1123_v35 = vpop.f32.mrf.mxu0  ;;  %v1236_v54 = vpop.f32.mrf.mxu1  ;;  %v10656_v18 = vpack.c.bf16 %v1567_v0, %v1559_v16  ;;  %v12724_v63 = vcombine.low %v10551_v15, %v10553_v45  ;;  %v12599_v60 = vsub.s32 4, %v10277_v22  ;;  %v12727_v55 = vcombine.low %v10577_v41, %v10579_v46  ;;  %v10702_v41 = vld [vmem:[#allocation7 + $0xe80] sm:$0xff] }
 0x1b3   :  { %v10647_v24 = vpack.c.bf16 %v1568_v21, %v1560_v9  ;;  %5030 = vmatpush2.bf16.msra.mxu0 %v12721_v50  ;;  %v10658_v10 = vpack.c.bf16 %v1570_v59, %v1562_v57  ;;  %v10666_v9 = vpack.c.bf16 %v1569_v36, %v1561_v1  ;;  %v1124_v50 = vadd.f32 %v1123_v35, %v10291_v39  ;;  %v10677_v35 = vld [vmem:[#allocation7 + $0xa80] sm:$0xff] }
 0x1b4   :  { %12722 = vst [vmem:[#allocation38_spill] sm:$0xff] %v10656_v18  ;;  %5143 = vmatpush2.bf16.msra.mxu1 %v12724_v63  ;;  %v1125_v21 = vpop.f32.mrf.mxu0  ;;  %5031 = vmatprep.subr.bf16.mxu0 %v9159_v62  ;;  %v1238_v16 = vpop.f32.mrf.mxu1  ;;  %v1122_v59 = vadd.f32 %v1121_v34, %v10295_v40  ;;  %v1237_v15 = vadd.f32 %v1236_v54, %v10300_v42  ;;  %v12602_v1 = vsub.s32 6, %v10277_v22  ;;  %v10679_v57 = vld [vmem:[#allocation7 + $0xaa0] sm:$0xff] }
 0x1b5   :  { %12720 = vst [vmem:[#allocation37_spill] sm:$0xff] %v10647_v24  ;;  %12723 = vst [vmem:[#allocation39_spill] sm:$0xff] %v10658_v10  ;;  %v1126_v0 = vadd.f32 %v1125_v21, %v10295_v40  ;;  %4867 = vmatprep.mubr.bf16.mxu0 %v10647_v24  ;;  %5144 = vmatprep.subr.bf16.mxu1 %v9287_v20  ;;  %v1239_v45 = vadd.f32 %v1238_v16, %v10305_v43  ;;  %v10704_v46 = vld [vmem:[#allocation7 + $0xea0] sm:$0xff] }
 0x1b6   :  { %12725 = vst [vmem:[#allocation40_spill] sm:$0xff] %v10666_v9  ;;  %4980 = vmatprep.mubr.bf16.mxu1 %v10658_v10  ;;  %v1127_v62 = vpop.f32.mrf.mxu0  ;;  %4868 = vmatmul.mubr.bf16.gmra.mxu0 %v10656_v18  ;;  %v1235_v36 = vadd.f32 %v1234_v11, %v10305_v43  ;;  %v1240_v34 = vpop.f32.mrf.mxu1  ;;  %v12726_v54 = vcombine.low %v10571_v13, %v10573_v14  ;;  %v1576_v14 = vmax.f32 %v1124_v50, 0.0 }
 0x1b7   :  { %v1128_v20 = vadd.f32 %v1127_v62, %v10291_v39  ;;  %4981 = vmatmul.mubr.bf16.gmra.mxu1 %v10666_v9  ;;  %v1583_v16 = vmax.f32 %v1126_v0, 0.0  ;;  %v1241_v33 = vadd.f32 %v1240_v34, %v10300_v42  ;;  %v9271_v62 = vcombine.high %v10641_v38, %v10643_v3 }
 0x1b8   :  { %5032 = vmatpush2.bf16.msra.mxu0 %v12726_v54  ;;  %5145 = vmatpush2.bf16.msra.mxu1 %v12727_v55  ;;  %v1131_v11 = vpop.f32.mrf.mxu0  ;;  %v10698_v13 = vrot.slane %v10286_v32, %v12599_v60  ;;  %v1585_v54 = vmax.f32 %v1239_v45, 0.0  ;;  %v1244_v0 = vpop.f32.mrf.mxu1  ;;  %v9135_v34 = vcombine.high %v10677_v35, %v10679_v57  ;;  %v1578_v55 = vmax.f32 %v1237_v15, 0.0 }
 0x1b9   :  { %5033 = vmatprep.subr.bf16.mxu0 %v9151_v6  ;;  %v1584_v61 = vmax.f32 %v1128_v20, 0.0  ;;  %5146 = vmatprep.subr.bf16.mxu1 %v9279_v29  ;;  %v1575_v6 = vmax.f32 %v1122_v59, 0.0  ;;  %v1586_v21 = vmax.f32 %v1241_v33, 0.0  ;;  %v10709_v60 = vrot.slane %v10286_v32, %v12602_v1 }
 0x1ba   :  { %v1133_v63 = vpop.f32.mrf.mxu0  ;;  %v1577_v50 = vmax.f32 %v1235_v36, 0.0  ;;  %v1246_v29 = vpop.f32.mrf.mxu1  ;;  %v12729_v20 = vcombine.low %v10606_v25, %v10608_v37  ;;  %v12730_v9 = vsub.s32 5, %v10277_v22  ;;  %v12731_v33 = vsub.s32 7, %v10277_v22 }
 0x1bb   :  { %v10711_v45 = vpack.c.bf16 %v1584_v61, %v1576_v14  ;;  %v10726_v1 = vpack.c.bf16 %v1583_v16, %v1575_v6  ;;  %v10728_v36 = vpack.c.bf16 %v1586_v21, %v1578_v55  ;;  %v12734_v61 = vcombine.low %v10615_v47, %v10617_v49  ;;  %v10740_v21 = vld [vmem:[#allocation7 + $0xa40] sm:$0xff] }
 0x1bc   :  { %5034 = vmatpush2.bf16.msra.mxu0 %v12729_v20  ;;  %v10719_v59 = vrot.slane %v10286_v32, %v12730_v9  ;;  %v10724_v15 = vrot.slane %v10286_v32, %v12731_v33  ;;  %v1135_v25 = vpop.f32.mrf.mxu0  ;;  %v9263_v37 = vcombine.high %v10702_v41, %v10704_v46  ;;  %v10735_v9 = vpack.c.bf16 %v1585_v54, %v1577_v50  ;;  %v1248_v20 = vpop.f32.mrf.mxu1  ;;  %v10742_v16 = vld [vmem:[#allocation7 + $0xa60] sm:$0xff] }
 0x1bd   :  { %12728 = vst [vmem:[#allocation41_spill] sm:$0xff] %v10711_v45  ;;  %12732 = vst [vmem:[#allocation42_spill] sm:$0xff] %v10726_v1  ;;  %5147 = vmatpush2.bf16.msra.mxu1 %v12734_v61  ;;  %5035 = vmatprep.subr.bf16.mxu0 %v9143_v12  ;;  %v1134_v14 = vadd.f32 %v1133_v63, %v10291_v39  ;;  %v1136_v32 = vadd.f32 %v1135_v25, %v10295_v40  ;;  %v10749_v63 = vld [vmem:[#allocation7 + $0xe40] sm:$0xff] }
 0x1be   :  { %12733 = vst [vmem:[#allocation43_spill] sm:$0xff] %v10728_v36  ;;  %12735 = vst [vmem:[#allocation44_spill] sm:$0xff] %v10735_v9  ;;  %4877 = vmatprep.mubr.bf16.mxu0 %v10711_v45  ;;  %5148 = vmatprep.subr.bf16.mxu1 %v9271_v62  ;;  %v1132_v47 = vadd.f32 %v1131_v11, %v10295_v40  ;;  %v1247_v49 = vadd.f32 %v1246_v29, %v10300_v42  ;;  %v1137_v54 = vpop.f32.mrf.mxu0  ;;  %v10751_v6 = vld [vmem:[#allocation7 + $0xe60] sm:$0xff]  ;;  %v1250_v50 = vpop.f32.mrf.mxu1 }
 0x1bf   :  { %v1249_v12 = vadd.f32 %v1248_v20, %v10305_v43  ;;  %4990 = vmatprep.mubr.bf16.mxu1 %v10728_v36  ;;  %4878 = vmatmul.mubr.bf16.gmra.mxu0 %v10726_v1  ;;  %v1245_v62 = vadd.f32 %v1244_v0, %v10305_v43  ;;  %v1138_v55 = vadd.f32 %v1137_v54, %v10291_v39  ;;  %v1599_v29 = vmax.f32 %v1136_v32, 0.0 }
 0x1c0   :  { %4991 = vmatmul.mubr.bf16.gmra.mxu1 %v10735_v9  ;;  %v12736_v40 = vcombine.low %v10635_v52, %v10637_v53  ;;  %v9134_v11 = vcombine.low %v10677_v35, %v10679_v57  ;;  %v1251_v33 = vadd.f32 %v1250_v50, %v10300_v42  ;;  %v12737_v61 = vcombine.low %v10641_v38, %v10643_v3  ;;  %v1287_v43 = vpop.f32.mrf.mxu0  ;;  %v10769_v52 = vld [vmem:[#allocation7 + $0xa00] sm:$0xff]  ;;  %v1400_v42 = vpop.f32.mrf.mxu1 }
 0x1c1   :  { %v9262_v39 = vcombine.low %v10702_v41, %v10704_v46  ;;  %v9127_v0 = vcombine.high %v10740_v21, %v10742_v16  ;;  %v10771_v53 = vld [vmem:[#allocation7 + $0xa20] sm:$0xff]  ;;  %v1592_v35 = vmax.f32 %v1134_v14, 0.0  ;;  %v1601_v57 = vmax.f32 %v1249_v12, 0.0 }
 0x1c2   :  { %5036 = vmatpush2.bf16.msra.mxu0 %v12736_v40  ;;  %5149 = vmatpush2.bf16.msra.mxu1 %v12737_v61  ;;  %v1600_v25 = vmax.f32 %v1138_v55, 0.0  ;;  %v9255_v38 = vcombine.high %v10749_v63, %v10751_v6  ;;  %v10775_v3 = vld [vmem:[#allocation7 + $0xe00] sm:$0xff]  ;;  %v1591_v41 = vmax.f32 %v1132_v47, 0.0  ;;  %v1594_v46 = vmax.f32 %v1247_v49, 0.0  ;;  %v1289_v20 = vpop.f32.mrf.mxu0  ;;  %v1402_v12 = vpop.f32.mrf.mxu1 }
 0x1c3   :  { %5037 = vmatprep.subr.bf16.mxu0 %v9135_v34  ;;  %5150 = vmatprep.subr.bf16.mxu1 %v9263_v37  ;;  %v10777_v34 = vld [vmem:[#allocation7 + $0xe20] sm:$0xff]  ;;  %v1602_v32 = vmax.f32 %v1251_v33, 0.0  ;;  %v9126_v54 = vcombine.low %v10740_v21, %v10742_v16  ;;  %v1593_v50 = vmax.f32 %v1245_v62, 0.0  ;;  %v9254_v37 = vcombine.low %v10749_v63, %v10751_v6  ;;  %v10798_v6 = vld [vmem:[#allocation7 + $0x1c8] sm:$0xff] }
 0x1c4   :  { %v10781_v14 = vpack.c.bf16 %v1600_v25, %v1592_v35  ;;  %v9119_v55 = vcombine.high %v10769_v52, %v10771_v53  ;;  %v10787_v40 = vpack.c.bf16 %v1599_v29, %v1591_v41  ;;  %v1291_v49 = vpop.f32.mrf.mxu0  ;;  %v9247_v21 = vcombine.high %v10775_v3, %v10777_v34  ;;  %v1404_v63 = vpop.f32.mrf.mxu1  ;;  %v10800_v29 = vld [vmem:[#allocation7 + $0x1e8] sm:$0xff] }
 0x1c5   :  { %v10789_v47 = vpack.c.bf16 %v1602_v32, %v1594_v46  ;;  %v10793_v16 = vpack.c.bf16 %v1601_v57, %v1593_v50  ;;  %v1290_v62 = vadd.f32 %v1289_v20, %v10719_v59  ;;  %v1288_v33 = vadd.f32 %v1287_v43, %v10698_v13  ;;  %v10807_v35 = vld [vmem:[#allocation7 + $0x5c8] sm:$0xff] }
 0x1c6   :  { %12738 = vst [vmem:[#allocation45_spill] sm:$0xff] %v10781_v14  ;;  %5038 = vmatpush2.bf16.msra.mxu0 %v9134_v11  ;;  %12739 = vst [vmem:[#allocation46_spill] sm:$0xff] %v10787_v40  ;;  %5151 = vmatpush2.bf16.msra.mxu1 %v9262_v39  ;;  %v1292_v11 = vadd.f32 %v1291_v49, %v10698_v13  ;;  %v1403_v61 = vadd.f32 %v1402_v12, %v10724_v15  ;;  %v10809_v57 = vld [vmem:[#allocation7 + $0x5e8] sm:$0xff]  ;;  %v1406_v41 = vpop.f32.mrf.mxu1 }
 0x1c7   :  { %12740 = vst [vmem:[#allocation47_spill] sm:$0xff] %v10789_v47  ;;  %5039 = vmatprep.subr.bf16.mxu0 %v9127_v0  ;;  %12741 = vst [vmem:[#allocation48_spill] sm:$0xff] %v10793_v16  ;;  %4887 = vmatprep.mubr.bf16.mxu0 %v10781_v14  ;;  %v1405_v39 = vadd.f32 %v1404_v63, %v10709_v60  ;;  %v1293_v0 = vpop.f32.mrf.mxu0  ;;  %v1401_v25 = vadd.f32 %v1400_v42, %v10709_v60  ;;  %v10821_v12 = vld [vmem:[#allocation7 + $0x188] sm:$0xff] }
 0x1c8   :  { %5152 = vmatprep.subr.bf16.mxu1 %v9255_v38  ;;  %5000 = vmatprep.mubr.bf16.mxu1 %v10789_v47  ;;  %v1294_v38 = vadd.f32 %v1293_v0, %v10719_v59  ;;  %v9118_v43 = vcombine.low %v10769_v52, %v10771_v53  ;;  %v1491_v46 = vmax.f32 %v1292_v11, 0.0  ;;  %v1407_v32 = vadd.f32 %v1406_v41, %v10724_v15  ;;  %v10823_v49 = vld [vmem:[#allocation7 + $0x1a8] sm:$0xff]  ;;  %v1410_v52 = vpop.f32.mrf.mxu1 }
 0x1c9   :  { %4888 = vmatmul.mubr.bf16.gmra.mxu0 %v10787_v40  ;;  %5001 = vmatmul.mubr.bf16.gmra.mxu1 %v10793_v16  ;;  %v1297_v20 = vpop.f32.mrf.mxu0  ;;  %v9246_v50 = vcombine.low %v10775_v3, %v10777_v34  ;;  %v8857_v42 = vcombine.high %v10798_v6, %v10800_v29  ;;  %v1493_v63 = vmax.f32 %v1405_v39, 0.0  ;;  %v8985_v53 = vcombine.high %v10807_v35, %v10809_v57 }
 0x1ca   :  { %5040 = vmatpush2.bf16.msra.mxu0 %v9126_v54  ;;  %5153 = vmatpush2.bf16.msra.mxu1 %v9254_v37  ;;  %v1484_v54 = vmax.f32 %v1290_v62, 0.0  ;;  %v1492_v0 = vmax.f32 %v1294_v38, 0.0  ;;  %v10827_v37 = vld [vmem:[#allocation7 + $0x588] sm:$0xff]  ;;  %v1483_v3 = vmax.f32 %v1288_v33, 0.0  ;;  %v1486_v34 = vmax.f32 %v1403_v61, 0.0  ;;  %v1412_v39 = vpop.f32.mrf.mxu1 }
 0x1cb   :  { %5041 = vmatprep.subr.bf16.mxu0 %v9119_v55  ;;  %5154 = vmatprep.subr.bf16.mxu1 %v9247_v21  ;;  %v10829_v55 = vld [vmem:[#allocation7 + $0x5a8] sm:$0xff]  ;;  %v1494_v11 = vmax.f32 %v1407_v32, 0.0  ;;  %v1299_v41 = vpop.f32.mrf.mxu0  ;;  %v8856_v22 = vcombine.low %v10798_v6, %v10800_v29  ;;  %v1485_v16 = vmax.f32 %v1401_v25, 0.0  ;;  %v8984_v21 = vcombine.low %v10807_v35, %v10809_v57 }
 0x1cc   :  { %v10833_v62 = vpack.c.bf16 %v1492_v0, %v1484_v54  ;;  %v8849_v38 = vcombine.high %v10821_v12, %v10823_v49  ;;  %v10839_v40 = vpack.c.bf16 %v1491_v46, %v1483_v3  ;;  %v8977_v6 = vcombine.high %v10827_v37, %v10829_v55  ;;  %v1414_v35 = vpop.f32.mrf.mxu1  ;;  %v10850_v57 = vld [vmem:[#allocation7 + $0x148] sm:$0xff] }
 0x1cd   :  { %v10841_v33 = vpack.c.bf16 %v1494_v11, %v1486_v34  ;;  %v1301_v61 = vpop.f32.mrf.mxu0  ;;  %v10845_v29 = vpack.c.bf16 %v1493_v63, %v1485_v16  ;;  %v1300_v25 = vadd.f32 %v1299_v41, %v10719_v59  ;;  %v10852_v46 = vld [vmem:[#allocation7 + $0x168] sm:$0xff]  ;;  %v1298_v32 = vadd.f32 %v1297_v20, %v10698_v13 }
 0x1ce   :  { %12742 = vst [vmem:[#allocation49_spill] sm:$0xff] %v10833_v62  ;;  %5042 = vmatpush2.bf16.msra.mxu0 %v9118_v43  ;;  %12743 = vst [vmem:[#allocation50_spill] sm:$0xff] %v10839_v40  ;;  %5155 = vmatpush2.bf16.msra.mxu1 %v9246_v50  ;;  %v1302_v43 = vadd.f32 %v1301_v61, %v10698_v13  ;;  %v1413_v50 = vadd.f32 %v1412_v39, %v10724_v15  ;;  %v10859_v54 = vld [vmem:[#allocation7 + $0x548] sm:$0xff]  ;;  %v1416_v3 = vpop.f32.mrf.mxu1 }
 0x1cf   :  { %12744 = vst [vmem:[#allocation51_spill] sm:$0xff] %v10841_v33  ;;  %5237 = vmatprep.subr.bf16.mxu0 %v8857_v42  ;;  %12745 = vst [vmem:[#allocation52_spill] sm:$0xff] %v10845_v29  ;;  %5043 = vmatprep.mubr.bf16.mxu0 %v10833_v62  ;;  %v1415_v42 = vadd.f32 %v1414_v35, %v10709_v60  ;;  %v1303_v16 = vpop.f32.mrf.mxu0  ;;  %v10861_v63 = vld [vmem:[#allocation7 + $0x568] sm:$0xff]  ;;  %v1411_v0 = vadd.f32 %v1410_v52, %v10709_v60 }
 0x1d0   :  { %5350 = vmatprep.subr.bf16.mxu1 %v8985_v53  ;;  %5156 = vmatprep.mubr.bf16.mxu1 %v10841_v33  ;;  %v1304_v53 = vadd.f32 %v1303_v16, %v10719_v59  ;;  %v8848_v20 = vcombine.low %v10821_v12, %v10823_v49  ;;  %v1507_v34 = vmax.f32 %v1302_v43, 0.0  ;;  %v1417_v11 = vadd.f32 %v1416_v3, %v10724_v15  ;;  %v10873_v61 = vld [vmem:[#allocation7 + $0x108] sm:$0xff]  ;;  %v1420_v12 = vpop.f32.mrf.mxu1 }
 0x1d1   :  { %5044 = vmatmul.mubr.bf16.vlgmr.msra.gmra.mxu0 %v10839_v40  ;;  %5157 = vmatmul.mubr.bf16.vlgmr.msra.gmra.mxu1 %v10845_v29  ;;  %v1307_v41 = vpop.f32.mrf.mxu0  ;;  %v8976_v39 = vcombine.low %v10827_v37, %v10829_v55  ;;  %v8841_v52 = vcombine.high %v10850_v57, %v10852_v46  ;;  %v10875_v35 = vld [vmem:[#allocation7 + $0x128] sm:$0xff]  ;;  %v1509_v16 = vmax.f32 %v1415_v42, 0.0  ;;  %v8969_v49 = vcombine.high %v10859_v54, %v10861_v63 }
 0x1d2   :  { %5238 = vmatpush1.bf16.msra.mxu0 %v8856_v22  ;;  %5351 = vmatpush1.bf16.msra.mxu1 %v8984_v21  ;;  %v1500_v22 = vmax.f32 %v1300_v25, 0.0  ;;  %v1508_v29 = vmax.f32 %v1304_v53, 0.0  ;;  %v10879_v21 = vld [vmem:[#allocation7 + $0x508] sm:$0xff]  ;;  %v1499_v37 = vmax.f32 %v1298_v32, 0.0  ;;  %v1502_v55 = vmax.f32 %v1413_v50, 0.0  ;;  %v1422_v42 = vpop.f32.mrf.mxu1 }
 0x1d3   :  { %5239 = vmatprep.subr.bf16.mxu0 %v8849_v38  ;;  %5352 = vmatprep.subr.bf16.mxu1 %v8977_v6  ;;  %v10881_v38 = vld [vmem:[#allocation7 + $0x528] sm:$0xff]  ;;  %v1510_v43 = vmax.f32 %v1417_v11, 0.0  ;;  %v1309_v3 = vpop.f32.mrf.mxu0  ;;  %v8840_v40 = vcombine.low %v10850_v57, %v10852_v46  ;;  %v1501_v33 = vmax.f32 %v1411_v0, 0.0  ;;  %v8968_v6 = vcombine.low %v10859_v54, %v10861_v63 }
 0x1d4   :  { %v10885_v25 = vpack.c.bf16 %v1508_v29, %v1500_v22  ;;  %v8833_v53 = vcombine.high %v10873_v61, %v10875_v35  ;;  %v10891_v62 = vpack.c.bf16 %v1507_v34, %v1499_v37  ;;  %v8961_v57 = vcombine.high %v10879_v21, %v10881_v38  ;;  %v1424_v54 = vpop.f32.mrf.mxu1  ;;  %v10902_v63 = vld [vmem:[#allocation7 + $0xc8] sm:$0xff] }
 0x1d5   :  { %v10893_v32 = vpack.c.bf16 %v1510_v43, %v1502_v55  ;;  %v1311_v50 = vpop.f32.mrf.mxu0  ;;  %v10897_v29 = vpack.c.bf16 %v1509_v16, %v1501_v33  ;;  %v1310_v46 = vadd.f32 %v1309_v3, %v10719_v59  ;;  %v1308_v34 = vadd.f32 %v1307_v41, %v10698_v13  ;;  %v10913_v22 = vld [vmem:[#allocation7 + $0x4e8] sm:$0xff] }
 0x1d6   :  { %12746 = vst [vmem:[#allocation53_spill] sm:$0xff] %v10885_v25  ;;  %5240 = vmatpush1.bf16.msra.mxu0 %v8848_v20  ;;  %12747 = vst [vmem:[#allocation54_spill] sm:$0xff] %v10891_v62  ;;  %5353 = vmatpush1.bf16.msra.mxu1 %v8976_v39  ;;  %v1312_v0 = vadd.f32 %v1311_v50, %v10698_v13  ;;  %v10904_v20 = vld [vmem:[#allocation7 + $0xe8] sm:$0xff]  ;;  %v1423_v11 = vadd.f32 %v1422_v42, %v10724_v15  ;;  %v1426_v37 = vpop.f32.mrf.mxu1 }
 0x1d7   :  { %12748 = vst [vmem:[#allocation55_spill] sm:$0xff] %v10893_v32  ;;  %5241 = vmatprep.subr.bf16.mxu0 %v8841_v52  ;;  %12749 = vst [vmem:[#allocation56_spill] sm:$0xff] %v10897_v29  ;;  %5053 = vmatprep.mubr.bf16.mxu0 %v10885_v25  ;;  %v1425_v39 = vadd.f32 %v1424_v54, %v10709_v60  ;;  %v1313_v33 = vpop.f32.mrf.mxu0  ;;  %v10911_v52 = vld [vmem:[#allocation7 + $0x4c8] sm:$0xff]  ;;  %v1421_v16 = vadd.f32 %v1420_v12, %v10709_v60 }
 0x1d8   :  { %5354 = vmatprep.subr.bf16.mxu1 %v8969_v49  ;;  %5166 = vmatprep.mubr.bf16.mxu1 %v10893_v32  ;;  %v1314_v49 = vadd.f32 %v1313_v33, %v10719_v59  ;;  %v8832_v41 = vcombine.low %v10873_v61, %v10875_v35  ;;  %v1523_v55 = vmax.f32 %v1312_v0, 0.0  ;;  %v1427_v43 = vadd.f32 %v1426_v37, %v10724_v15  ;;  %v10925_v50 = vld [vmem:[#allocation7 + $0x88] sm:$0xff]  ;;  %v1430_v61 = vpop.f32.mrf.mxu1 }
 0x1d9   :  { %5054 = vmatmul.mubr.bf16.gmra.mxu0 %v10891_v62  ;;  %5167 = vmatmul.mubr.bf16.gmra.mxu1 %v10897_v29  ;;  %v1317_v3 = vpop.f32.mrf.mxu0  ;;  %v8960_v42 = vcombine.low %v10879_v21, %v10881_v38  ;;  %v8825_v12 = vcombine.high %v10902_v63, %v10904_v20  ;;  %v10927_v54 = vld [vmem:[#allocation7 + $0xa8] sm:$0xff]  ;;  %v1525_v33 = vmax.f32 %v1425_v39, 0.0  ;;  %v8953_v35 = vcombine.high %v10911_v52, %v10913_v22 }
 0x1da   :  { %5242 = vmatpush1.bf16.msra.mxu0 %v8840_v40  ;;  %5355 = vmatpush1.bf16.msra.mxu1 %v8968_v6  ;;  %v1516_v40 = vmax.f32 %v1310_v46, 0.0  ;;  %v1524_v29 = vmax.f32 %v1314_v49, 0.0  ;;  %v10931_v6 = vld [vmem:[#allocation7 + $0x488] sm:$0xff]  ;;  %v1515_v21 = vmax.f32 %v1308_v34, 0.0  ;;  %v1518_v38 = vmax.f32 %v1423_v11, 0.0  ;;  %v1432_v39 = vpop.f32.mrf.mxu1 }
 0x1db   :  { %5243 = vmatprep.subr.bf16.mxu0 %v8833_v53  ;;  %5356 = vmatprep.subr.bf16.mxu1 %v8961_v57  ;;  %v10933_v53 = vld [vmem:[#allocation7 + $0x4a8] sm:$0xff]  ;;  %v1526_v0 = vmax.f32 %v1427_v43, 0.0  ;;  %v1319_v37 = vpop.f32.mrf.mxu0  ;;  %v8824_v62 = vcombine.low %v10902_v63, %v10904_v20  ;;  %v1517_v32 = vmax.f32 %v1421_v16, 0.0  ;;  %v8952_v57 = vcombine.low %v10911_v52, %v10913_v22 }
 0x1dc   :  { %v10937_v46 = vpack.c.bf16 %v1524_v29, %v1516_v40  ;;  %v8817_v49 = vcombine.high %v10925_v50, %v10927_v54  ;;  %v10943_v25 = vpack.c.bf16 %v1523_v55, %v1515_v21  ;;  %v8945_v63 = vcombine.high %v10931_v6, %v10933_v53  ;;  %v1434_v52 = vpop.f32.mrf.mxu1  ;;  %v10954_v22 = vld [vmem:[#allocation7 + $0x48] sm:$0xff] }
 0x1dd   :  { %v10945_v34 = vpack.c.bf16 %v1526_v0, %v1518_v38  ;;  %v1321_v11 = vpop.f32.mrf.mxu0  ;;  %v10949_v29 = vpack.c.bf16 %v1525_v33, %v1517_v32  ;;  %v1320_v20 = vadd.f32 %v1319_v37, %v10719_v59  ;;  %v1318_v55 = vadd.f32 %v1317_v3, %v10698_v13  ;;  %v10965_v40 = vld [vmem:[#allocation7 + $0x468] sm:$0xff] }
 0x1de   :  { %12750 = vst [vmem:[#allocation57_spill] sm:$0xff] %v10937_v46  ;;  %5244 = vmatpush1.bf16.msra.mxu0 %v8832_v41  ;;  %12751 = vst [vmem:[#allocation58_spill] sm:$0xff] %v10943_v25  ;;  %5357 = vmatpush1.bf16.msra.mxu1 %v8960_v42  ;;  %v1322_v16 = vadd.f32 %v1321_v11, %v10698_v13  ;;  %v10956_v41 = vld [vmem:[#allocation7 + $0x68] sm:$0xff]  ;;  %v1433_v43 = vadd.f32 %v1432_v39, %v10724_v15  ;;  %v1436_v21 = vpop.f32.mrf.mxu1 }
 0x1df   :  { %12752 = vst [vmem:[#allocation59_spill] sm:$0xff] %v10945_v34  ;;  %5245 = vmatprep.subr.bf16.mxu0 %v8825_v12  ;;  %12753 = vst [vmem:[#allocation60_spill] sm:$0xff] %v10949_v29  ;;  %5063 = vmatprep.mubr.bf16.mxu0 %v10937_v46  ;;  %v1435_v42 = vadd.f32 %v1434_v52, %v10709_v60  ;;  %v1323_v32 = vpop.f32.mrf.mxu0  ;;  %v10963_v12 = vld [vmem:[#allocation7 + $0x448] sm:$0xff]  ;;  %v1431_v33 = vadd.f32 %v1430_v61, %v10709_v60 }
 0x1e0   :  { %5358 = vmatprep.subr.bf16.mxu1 %v8953_v35  ;;  %5176 = vmatprep.mubr.bf16.mxu1 %v10945_v34  ;;  %v1324_v35 = vadd.f32 %v1323_v32, %v10719_v59  ;;  %v8816_v3 = vcombine.low %v10925_v50, %v10927_v54  ;;  %v1539_v38 = vmax.f32 %v1322_v16, 0.0  ;;  %v1437_v0 = vadd.f32 %v1436_v21, %v10724_v15  ;;  %v10977_v11 = vld [vmem:[#allocation7 + $0x8] sm:$0xff]  ;;  %v1440_v50 = vpop.f32.mrf.mxu1 }
 0x1e1   :  { %5064 = vmatmul.mubr.bf16.gmra.mxu0 %v10943_v25  ;;  %5177 = vmatmul.mubr.bf16.gmra.mxu1 %v10949_v29  ;;  %v1327_v37 = vpop.f32.mrf.mxu0  ;;  %v8944_v39 = vcombine.low %v10931_v6, %v10933_v53  ;;  %v8809_v61 = vcombine.high %v10954_v22, %v10956_v41  ;;  %v10979_v52 = vld [vmem:[#allocation7 + $0x28] sm:$0xff]  ;;  %v1541_v32 = vmax.f32 %v1435_v42, 0.0  ;;  %v8937_v54 = vcombine.high %v10963_v12, %v10965_v40 }
 0x1e2   :  { %5246 = vmatpush1.bf16.msra.mxu0 %v8824_v62  ;;  %5359 = vmatpush1.bf16.msra.mxu1 %v8952_v57  ;;  %v1532_v62 = vmax.f32 %v1320_v20, 0.0  ;;  %v1540_v29 = vmax.f32 %v1324_v35, 0.0  ;;  %v10983_v57 = vld [vmem:[#allocation7 + $0x408] sm:$0xff]  ;;  %v1531_v6 = vmax.f32 %v1318_v55, 0.0  ;;  %v1534_v53 = vmax.f32 %v1433_v43, 0.0  ;;  %v1442_v42 = vpop.f32.mrf.mxu1 }
 0x1e3   :  { %5247 = vmatprep.subr.bf16.mxu0 %v8817_v49  ;;  %5360 = vmatprep.subr.bf16.mxu1 %v8945_v63  ;;  %v10985_v49 = vld [vmem:[#allocation7 + $0x428] sm:$0xff]  ;;  %v1542_v16 = vmax.f32 %v1437_v0, 0.0  ;;  %v1329_v21 = vpop.f32.mrf.mxu0  ;;  %v8808_v25 = vcombine.low %v10954_v22, %v10956_v41  ;;  %v1533_v34 = vmax.f32 %v1431_v33, 0.0  ;;  %v8936_v63 = vcombine.low %v10963_v12, %v10965_v40 }
 0x1e4   :  { %v10989_v20 = vpack.c.bf16 %v1540_v29, %v1532_v62  ;;  %v8801_v35 = vcombine.high %v10977_v11, %v10979_v52  ;;  %v10995_v46 = vpack.c.bf16 %v1539_v38, %v1531_v6  ;;  %v8929_v22 = vcombine.high %v10983_v57, %v10985_v49  ;;  %v1444_v12 = vpop.f32.mrf.mxu1  ;;  %v11006_v40 = vld [vmem:[#allocation7 + $0x3c8] sm:$0xff] }
 0x1e5   :  { %v10997_v55 = vpack.c.bf16 %v1542_v16, %v1534_v53  ;;  %v1331_v43 = vpop.f32.mrf.mxu0  ;;  %v11001_v29 = vpack.c.bf16 %v1541_v32, %v1533_v34  ;;  %v1330_v41 = vadd.f32 %v1329_v21, %v10719_v59  ;;  %v1328_v38 = vadd.f32 %v1327_v37, %v10698_v13  ;;  %v11017_v62 = vld [vmem:[#allocation7 + $0x7e8] sm:$0xff] }
 0x1e6   :  { %12754 = vst [vmem:[#allocation61_spill] sm:$0xff] %v10989_v20  ;;  %5248 = vmatpush1.bf16.msra.mxu0 %v8816_v3  ;;  %12755 = vst [vmem:[#allocation62_spill] sm:$0xff] %v10995_v46  ;;  %5361 = vmatpush1.bf16.msra.mxu1 %v8944_v39  ;;  %v1332_v33 = vadd.f32 %v1331_v43, %v10698_v13  ;;  %v11008_v3 = vld [vmem:[#allocation7 + $0x3e8] sm:$0xff]  ;;  %v1443_v0 = vadd.f32 %v1442_v42, %v10724_v15  ;;  %v1446_v6 = vpop.f32.mrf.mxu1 }
 0x1e7   :  { %12756 = vst [vmem:[#allocation63_spill] sm:$0xff] %v10997_v55  ;;  %5249 = vmatprep.subr.bf16.mxu0 %v8809_v61  ;;  %12757 = vst [vmem:[#allocation64_spill] sm:$0xff] %v11001_v29  ;;  %5073 = vmatprep.mubr.bf16.mxu0 %v10989_v20  ;;  %v1445_v39 = vadd.f32 %v1444_v12, %v10709_v60  ;;  %v1333_v34 = vpop.f32.mrf.mxu0  ;;  %v11015_v61 = vld [vmem:[#allocation7 + $0x7c8] sm:$0xff]  ;;  %v1441_v32 = vadd.f32 %v1440_v50, %v10709_v60 }
 0x1e8   :  { %5362 = vmatprep.subr.bf16.mxu1 %v8937_v54  ;;  %5186 = vmatprep.mubr.bf16.mxu1 %v10997_v55  ;;  %v1334_v54 = vadd.f32 %v1333_v34, %v10719_v59  ;;  %v8800_v37 = vcombine.low %v10977_v11, %v10979_v52  ;;  %v1555_v53 = vmax.f32 %v1332_v33, 0.0  ;;  %v1447_v16 = vadd.f32 %v1446_v6, %v10724_v15  ;;  %v11029_v43 = vld [vmem:[#allocation7 + $0x388] sm:$0xff]  ;;  %v1450_v11 = vpop.f32.mrf.mxu1 }
 0x1e9   :  { %5074 = vmatmul.mubr.bf16.gmra.mxu0 %v10995_v46  ;;  %5187 = vmatmul.mubr.bf16.gmra.mxu1 %v11001_v29  ;;  %v1337_v21 = vpop.f32.mrf.mxu0  ;;  %v8928_v42 = vcombine.low %v10983_v57, %v10985_v49  ;;  %v8921_v50 = vcombine.high %v11006_v40, %v11008_v3  ;;  %v11031_v12 = vld [vmem:[#allocation7 + $0x3a8] sm:$0xff]  ;;  %v1557_v34 = vmax.f32 %v1445_v39, 0.0  ;;  %v9049_v52 = vcombine.high %v11015_v61, %v11017_v62 }
 0x1ea   :  { %5250 = vmatpush1.bf16.msra.mxu0 %v8808_v25  ;;  %5363 = vmatpush1.bf16.msra.mxu1 %v8936_v63  ;;  %v1548_v25 = vmax.f32 %v1330_v41, 0.0  ;;  %v1556_v29 = vmax.f32 %v1334_v54, 0.0  ;;  %v11035_v63 = vld [vmem:[#allocation7 + $0x788] sm:$0xff]  ;;  %v1547_v57 = vmax.f32 %v1328_v38, 0.0  ;;  %v1550_v49 = vmax.f32 %v1443_v0, 0.0  ;;  %v1452_v39 = vpop.f32.mrf.mxu1 }
 0x1eb   :  { %5251 = vmatprep.subr.bf16.mxu0 %v8801_v35  ;;  %5364 = vmatprep.subr.bf16.mxu1 %v8929_v22  ;;  %v11037_v35 = vld [vmem:[#allocation7 + $0x7a8] sm:$0xff]  ;;  %v1558_v33 = vmax.f32 %v1447_v16, 0.0  ;;  %v1339_v6 = vpop.f32.mrf.mxu0  ;;  %v8920_v46 = vcombine.low %v11006_v40, %v11008_v3  ;;  %v1549_v55 = vmax.f32 %v1441_v32, 0.0  ;;  %v9048_v22 = vcombine.low %v11015_v61, %v11017_v62 }
 0x1ec   :  { %v11041_v41 = vpack.c.bf16 %v1556_v29, %v1548_v25  ;;  %v8913_v54 = vcombine.high %v11029_v43, %v11031_v12  ;;  %v11047_v20 = vpack.c.bf16 %v1555_v53, %v1547_v57  ;;  %v9041_v40 = vcombine.high %v11035_v63, %v11037_v35  ;;  %v1454_v61 = vpop.f32.mrf.mxu1  ;;  %v11058_v62 = vld [vmem:[#allocation7 + $0x348] sm:$0xff] }
 0x1ed   :  { %v11049_v38 = vpack.c.bf16 %v1558_v33, %v1550_v49  ;;  %v1341_v0 = vpop.f32.mrf.mxu0  ;;  %v11053_v29 = vpack.c.bf16 %v1557_v34, %v1549_v55  ;;  %v1340_v3 = vadd.f32 %v1339_v6, %v10719_v59  ;;  %v1338_v53 = vadd.f32 %v1337_v21, %v10698_v13  ;;  %v11069_v25 = vld [vmem:[#allocation7 + $0x768] sm:$0xff] }
 0x1ee   :  { %12758 = vst [vmem:[#allocation65_spill] sm:$0xff] %v11041_v41  ;;  %5252 = vmatpush1.bf16.msra.mxu0 %v8800_v37  ;;  %12759 = vst [vmem:[#allocation66_spill] sm:$0xff] %v11047_v20  ;;  %5365 = vmatpush1.bf16.msra.mxu1 %v8928_v42  ;;  %v1342_v32 = vadd.f32 %v1341_v0, %v10698_v13  ;;  %v11060_v37 = vld [vmem:[#allocation7 + $0x368] sm:$0xff]  ;;  %v1453_v16 = vadd.f32 %v1452_v39, %v10724_v15  ;;  %v1456_v57 = vpop.f32.mrf.mxu1 }
 0x1ef   :  { %12760 = vst [vmem:[#allocation67_spill] sm:$0xff] %v11049_v38  ;;  %5253 = vmatprep.subr.bf16.mxu0 %v8921_v50  ;;  %12761 = vst [vmem:[#allocation68_spill] sm:$0xff] %v11053_v29  ;;  %5083 = vmatprep.mubr.bf16.mxu0 %v11041_v41  ;;  %v1455_v42 = vadd.f32 %v1454_v61, %v10709_v60  ;;  %v1343_v55 = vpop.f32.mrf.mxu0  ;;  %v11067_v50 = vld [vmem:[#allocation7 + $0x748] sm:$0xff]  ;;  %v1451_v34 = vadd.f32 %v1450_v11, %v10709_v60 }
 0x1f0   :  { %5366 = vmatprep.subr.bf16.mxu1 %v9049_v52  ;;  %5196 = vmatprep.mubr.bf16.mxu1 %v11049_v38  ;;  %v1344_v52 = vadd.f32 %v1343_v55, %v10719_v59  ;;  %v8912_v21 = vcombine.low %v11029_v43, %v11031_v12  ;;  %v1571_v49 = vmax.f32 %v1342_v32, 0.0  ;;  %v1457_v33 = vadd.f32 %v1456_v57, %v10724_v15  ;;  %v11081_v0 = vld [vmem:[#allocation7 + $0x308] sm:$0xff]  ;;  %v1460_v43 = vpop.f32.mrf.mxu1 }
 0x1f1   :  { %5084 = vmatmul.mubr.bf16.gmra.mxu0 %v11047_v20  ;;  %5197 = vmatmul.mubr.bf16.gmra.mxu1 %v11053_v29  ;;  %v1347_v6 = vpop.f32.mrf.mxu0  ;;  %v9040_v39 = vcombine.low %v11035_v63, %v11037_v35  ;;  %v8905_v11 = vcombine.high %v11058_v62, %v11060_v37  ;;  %v11083_v61 = vld [vmem:[#allocation7 + $0x328] sm:$0xff]  ;;  %v1573_v55 = vmax.f32 %v1455_v42, 0.0  ;;  %v9033_v12 = vcombine.high %v11067_v50, %v11069_v25 }
 0x1f2   :  { %5254 = vmatpush2.bf16.msra.mxu0 %v8920_v46  ;;  %5367 = vmatpush2.bf16.msra.mxu1 %v9048_v22  ;;  %v1564_v46 = vmax.f32 %v1340_v3, 0.0  ;;  %v1572_v29 = vmax.f32 %v1344_v52, 0.0  ;;  %v11087_v22 = vld [vmem:[#allocation7 + $0x708] sm:$0xff]  ;;  %v1563_v63 = vmax.f32 %v1338_v53, 0.0  ;;  %v1566_v35 = vmax.f32 %v1453_v16, 0.0  ;;  %v1462_v42 = vpop.f32.mrf.mxu1 }
 0x1f3   :  { %5255 = vmatprep.subr.bf16.mxu0 %v8913_v54  ;;  %5368 = vmatprep.subr.bf16.mxu1 %v9041_v40  ;;  %v11089_v54 = vld [vmem:[#allocation7 + $0x728] sm:$0xff]  ;;  %v1574_v32 = vmax.f32 %v1457_v33, 0.0  ;;  %v1349_v57 = vpop.f32.mrf.mxu0  ;;  %v8904_v20 = vcombine.low %v11058_v62, %v11060_v37  ;;  %v1565_v38 = vmax.f32 %v1451_v34, 0.0  ;;  %v9032_v40 = vcombine.low %v11067_v50, %v11069_v25 }
 0x1f4   :  { %v11093_v3 = vpack.c.bf16 %v1572_v29, %v1564_v46  ;;  %v8897_v52 = vcombine.high %v11081_v0, %v11083_v61  ;;  %v11099_v41 = vpack.c.bf16 %v1571_v49, %v1563_v63  ;;  %v9025_v62 = vcombine.high %v11087_v22, %v11089_v54  ;;  %v1464_v50 = vpop.f32.mrf.mxu1  ;;  %v11110_v25 = vld [vmem:[#allocation7 + $0x2c8] sm:$0xff] }
 0x1f5   :  { %v11101_v53 = vpack.c.bf16 %v1574_v32, %v1566_v35  ;;  %v1351_v16 = vpop.f32.mrf.mxu0  ;;  %v11105_v29 = vpack.c.bf16 %v1573_v55, %v1565_v38  ;;  %v1350_v37 = vadd.f32 %v1349_v57, %v10719_v59  ;;  %v1348_v49 = vadd.f32 %v1347_v6, %v10698_v13  ;;  %v11121_v46 = vld [vmem:[#allocation7 + $0x6e8] sm:$0xff] }
 0x1f6   :  { %12762 = vst [vmem:[#allocation69_spill] sm:$0xff] %v11093_v3  ;;  %5256 = vmatpush2.bf16.msra.mxu0 %v8912_v21  ;;  %12763 = vst [vmem:[#allocation70_spill] sm:$0xff] %v11099_v41  ;;  %5369 = vmatpush2.bf16.msra.mxu1 %v9040_v39  ;;  %v1352_v34 = vadd.f32 %v1351_v16, %v10698_v13  ;;  %v11112_v21 = vld [vmem:[#allocation7 + $0x2e8] sm:$0xff]  ;;  %v1463_v33 = vadd.f32 %v1462_v42, %v10724_v15  ;;  %v1466_v63 = vpop.f32.mrf.mxu1 }
 0x1f7   :  { %12764 = vst [vmem:[#allocation71_spill] sm:$0xff] %v11101_v53  ;;  %5257 = vmatprep.subr.bf16.mxu0 %v8905_v11  ;;  %12765 = vst [vmem:[#allocation72_spill] sm:$0xff] %v11105_v29  ;;  %5093 = vmatprep.mubr.bf16.mxu0 %v11093_v3  ;;  %v1465_v39 = vadd.f32 %v1464_v50, %v10709_v60  ;;  %v1353_v38 = vpop.f32.mrf.mxu0  ;;  %v11119_v11 = vld [vmem:[#allocation7 + $0x6c8] sm:$0xff]  ;;  %v1461_v55 = vadd.f32 %v1460_v43, %v10709_v60 }
 0x1f8   :  { %5370 = vmatprep.subr.bf16.mxu1 %v9033_v12  ;;  %5206 = vmatprep.mubr.bf16.mxu1 %v11101_v53  ;;  %v1354_v12 = vadd.f32 %v1353_v38, %v10719_v59  ;;  %v8896_v6 = vcombine.low %v11081_v0, %v11083_v61  ;;  %v1587_v35 = vmax.f32 %v1352_v34, 0.0  ;;  %v1467_v32 = vadd.f32 %v1466_v63, %v10724_v15  ;;  %v11133_v16 = vld [vmem:[#allocation7 + $0x288] sm:$0xff]  ;;  %v1470_v0 = vpop.f32.mrf.mxu1 }
 0x1f9   :  { %5094 = vmatmul.mubr.bf16.gmra.mxu0 %v11099_v41  ;;  %5207 = vmatmul.mubr.bf16.gmra.mxu1 %v11105_v29  ;;  %v1357_v57 = vpop.f32.mrf.mxu0  ;;  %v9024_v42 = vcombine.low %v11087_v22, %v11089_v54  ;;  %v8889_v43 = vcombine.high %v11110_v25, %v11112_v21  ;;  %v11135_v50 = vld [vmem:[#allocation7 + $0x2a8] sm:$0xff]  ;;  %v1589_v38 = vmax.f32 %v1465_v39, 0.0  ;;  %v9017_v61 = vcombine.high %v11119_v11, %v11121_v46 }
 0x1fa   :  { %5258 = vmatpush2.bf16.msra.mxu0 %v8904_v20  ;;  %5371 = vmatpush2.bf16.msra.mxu1 %v9032_v40  ;;  %v1580_v20 = vmax.f32 %v1350_v37, 0.0  ;;  %v1588_v29 = vmax.f32 %v1354_v12, 0.0  ;;  %v11139_v40 = vld [vmem:[#allocation7 + $0x688] sm:$0xff]  ;;  %v1579_v22 = vmax.f32 %v1348_v49, 0.0  ;;  %v1582_v54 = vmax.f32 %v1463_v33, 0.0  ;;  %v1472_v39 = vpop.f32.mrf.mxu1 }
 0x1fb   :  { %5259 = vmatprep.subr.bf16.mxu0 %v8897_v52  ;;  %5372 = vmatprep.subr.bf16.mxu1 %v9025_v62  ;;  %v11141_v52 = vld [vmem:[#allocation7 + $0x6a8] sm:$0xff]  ;;  %v1590_v34 = vmax.f32 %v1467_v32, 0.0  ;;  %v1359_v63 = vpop.f32.mrf.mxu0  ;;  %v8888_v41 = vcombine.low %v11110_v25, %v11112_v21  ;;  %v1581_v53 = vmax.f32 %v1461_v55, 0.0  ;;  %v9016_v62 = vcombine.low %v11119_v11, %v11121_v46 }
 0x1fc   :  { %v11145_v37 = vpack.c.bf16 %v1588_v29, %v1580_v20  ;;  %v8881_v12 = vcombine.high %v11133_v16, %v11135_v50  ;;  %v11151_v3 = vpack.c.bf16 %v1587_v35, %v1579_v22  ;;  %v9009_v25 = vcombine.high %v11139_v40, %v11141_v52  ;;  %v1474_v11 = vpop.f32.mrf.mxu1  ;;  %v1744_v46 = vld [vmem:[#allocation7 + $0x248] sm:$0xff] }
 0x1fd   :  { %v11153_v49 = vpack.c.bf16 %v1590_v34, %v1582_v54  ;;  %v1361_v33 = vpop.f32.mrf.mxu0  ;;  %v11157_v29 = vpack.c.bf16 %v1589_v38, %v1581_v53  ;;  %v1360_v21 = vadd.f32 %v1359_v63, %v10719_v59  ;;  %v1358_v35 = vadd.f32 %v1357_v57, %v10698_v13  ;;  %v1876_v20 = vld [vmem:[#allocation7 + $0x668] sm:$0xff] }
 0x1fe   :  { %12766 = vst [vmem:[#allocation73_spill] sm:$0xff] %v11145_v37  ;;  %5260 = vmatpush2.bf16.msra.mxu0 %v8896_v6  ;;  %12767 = vst [vmem:[#allocation74_spill] sm:$0xff] %v11151_v3  ;;  %5373 = vmatpush2.bf16.msra.mxu1 %v9024_v42  ;;  %v1362_v55 = vadd.f32 %v1361_v33, %v10698_v13  ;;  %v1748_v6 = vld [vmem:[#allocation7 + $0x268] sm:$0xff]  ;;  %v1473_v32 = vadd.f32 %v1472_v39, %v10724_v15 }
 0x1ff   :  { %12768 = vst [vmem:[#allocation75_spill] sm:$0xff] %v11153_v49  ;;  %5261 = vmatprep.subr.bf16.mxu0 %v8889_v43  ;;  %12769 = vst [vmem:[#allocation76_spill] sm:$0xff] %v11157_v29  ;;  %5103 = vmatprep.mubr.bf16.mxu0 %v11145_v37  ;;  %v1475_v42 = vadd.f32 %v1474_v11, %v10709_v60  ;;  %v1363_v53 = vpop.f32.mrf.mxu0  ;;  %v1872_v43 = vld [vmem:[#allocation7 + $0x648] sm:$0xff]  ;;  %v1471_v38 = vadd.f32 %v1470_v0, %v10709_v60  ;;  %v1596_v39 = vmax.f32 %v1360_v21, 0.0 }
 0x200   :  { %5374 = vmatprep.subr.bf16.mxu1 %v9017_v61  ;;  %5216 = vmatprep.mubr.bf16.mxu1 %v11153_v49  ;;  %v1364_v22 = vadd.f32 %v1363_v53, %v10719_v59  ;;  %v1476_v61 = vpop.f32.mrf.mxu1  ;;  %v8880_v13 = vcombine.low %v11133_v16, %v11135_v50  ;;  %v1603_v57 = vmax.f32 %v1362_v55, 0.0  ;;  %v9008_v34 = vcombine.low %v11139_v40, %v11141_v52  ;;  %v1736_v53 = vld [vmem:[#allocation7 + $0x208] sm:$0xff] }
 0x201   :  { %5104 = vmatmul.mubr.bf16.gmra.mxu0 %v11151_v3  ;;  %5217 = vmatmul.mubr.bf16.gmra.mxu1 %v11157_v29  ;;  %v1477_v54 = vadd.f32 %v1476_v61, %v10724_v15  ;;  %v8873_v63 = vcombine.high %v1744_v46, %v1748_v6  ;;  %v1605_v60 = vmax.f32 %v1475_v42, 0.0  ;;  %v9001_v59 = vcombine.high %v1872_v43, %v1876_v20  ;;  %v1740_v29 = vld [vmem:[#allocation7 + $0x228] sm:$0xff] }
 0x202   :  { %5262 = vmatpush2.bf16.msra.mxu0 %v8888_v41  ;;  %5375 = vmatpush2.bf16.msra.mxu1 %v9016_v62  ;;  %v1604_v0 = vmax.f32 %v1364_v22, 0.0  ;;  %v1595_v33 = vmax.f32 %v1358_v35, 0.0  ;;  %v1598_v11 = vmax.f32 %v1473_v32, 0.0  ;;  %v1597_v16 = vmax.f32 %v1471_v38, 0.0  ;;  %v1864_v62 = vld [vmem:[#allocation7 + $0x608] sm:$0xff] }
 0x203   :  { %5263 = vmatprep.subr.bf16.mxu0 %v8881_v12  ;;  %5376 = vmatprep.subr.bf16.mxu1 %v9009_v25  ;;  %v1606_v41 = vmax.f32 %v1477_v54, 0.0  ;;  %v8872_v15 = vcombine.low %v1744_v46, %v1748_v6  ;;  %v1868_v12 = vld [vmem:[#allocation7 + $0x628] sm:$0xff]  ;;  %v9000_v52 = vcombine.low %v1872_v43, %v1876_v20  ;;  %v8865_v21 = vcombine.high %v1736_v53, %v1740_v29 }
 0x204   :  { %v11175_v50 = vpack.c.bf16 %v1604_v0, %v1596_v39  ;;  %v11177_v55 = vpack.c.bf16 %v1603_v57, %v1595_v33  ;;  %v11181_v25 = vpack.c.bf16 %v1605_v60, %v1597_v16  ;;  %v1984_v35 = vld [vmem:[#allocation7 + $0x9c8] sm:$0xff]  ;;  %v8993_v46 = vcombine.high %v1864_v62, %v1868_v12 }
 0x205   :  { %v11179_v40 = vpack.c.bf16 %v1606_v41, %v1598_v11  ;;  %v1988_v32 = vld [vmem:[#allocation7 + $0x9e8] sm:$0xff]  ;;  %v8864_v38 = vcombine.low %v1736_v53, %v1740_v29  ;;  %v8992_v43 = vcombine.low %v1864_v62, %v1868_v12 }
 0x206   :  { %12770 = vst [vmem:[#allocation77_spill] sm:$0xff] %v11175_v50  ;;  %5264 = vmatpush2.bf16.msra.mxu0 %v8880_v13  ;;  %12771 = vst [vmem:[#allocation78_spill] sm:$0xff] %v11177_v55  ;;  %5377 = vmatpush2.bf16.msra.mxu1 %v9008_v34  ;;  %v2112_v6 = vld [vmem:[#allocation7 + $0xdc8] sm:$0xff]  ;;  %v9113_v20 = vcombine.high %v1984_v35, %v1988_v32  ;;  %v9112_v34 = vcombine.low %v1984_v35, %v1988_v32 }
 0x207   :  { %12772 = vst [vmem:[#allocation79_spill] sm:$0xff] %v11179_v40  ;;  %5265 = vmatprep.subr.bf16.mxu0 %v8873_v63  ;;  %12773 = vst [vmem:[#allocation80_spill] sm:$0xff] %v11181_v25  ;;  %5113 = vmatprep.mubr.bf16.mxu0 %v11175_v50  ;;  %v2116_v42 = vld [vmem:[#allocation7 + $0xde8] sm:$0xff] }
 0x208   :  { %5378 = vmatprep.subr.bf16.mxu1 %v9001_v59  ;;  %5226 = vmatprep.mubr.bf16.mxu1 %v11179_v40  ;;  %v9241_v22 = vcombine.high %v2112_v6, %v2116_v42  ;;  %v1976_v61 = vld [vmem:[#allocation7 + $0x988] sm:$0xff]  ;;  %v9240_v63 = vcombine.low %v2112_v6, %v2116_v42 }
 0x209   :  { %5114 = vmatmul.mubr.bf16.gmra.mxu0 %v11177_v55  ;;  %5227 = vmatmul.mubr.bf16.gmra.mxu1 %v11181_v25  ;;  %v1980_v13 = vld [vmem:[#allocation7 + $0x9a8] sm:$0xff] }
 0x20a   :  { %5266 = vmatpush2.bf16.msra.mxu0 %v8872_v15  ;;  %5269 = vmatprep.mubr.bf16.mxu0 %v10335_v58  ;;  %v2104_v57 = vld [vmem:[#allocation7 + $0xd88] sm:$0xff]  ;;  %v9105_v29 = vcombine.high %v1976_v61, %v1980_v13  ;;  %v9104_v11 = vcombine.low %v1976_v61, %v1980_v13 }
 0x20b   :  { %5379 = vmatpush2.bf16.msra.mxu1 %v9000_v52  ;;  %5382 = vmatprep.mubr.bf16.mxu1 %v10343_v44  ;;  %v2108_v54 = vld [vmem:[#allocation7 + $0xda8] sm:$0xff] }
 0x20c   :  { %5267 = vmatprep.subr.bf16.mxu0 %v8865_v21  ;;  %5380 = vmatprep.subr.bf16.mxu1 %v8993_v46  ;;  %v9233_v39 = vcombine.high %v2104_v57, %v2108_v54  ;;  %v1968_v60 = vld [vmem:[#allocation7 + $0x948] sm:$0xff]  ;;  %v9232_v41 = vcombine.low %v2104_v57, %v2108_v54 }
 0x20d   :  { %v1972_v0 = vld [vmem:[#allocation7 + $0x968] sm:$0xff] }
 0x20e   :  { %5268 = vmatpush2.bf16.msra.mxu0 %v8864_v38  ;;  %v2096_v59 = vld [vmem:[#allocation7 + $0xd48] sm:$0xff]  ;;  %v9097_v53 = vcombine.high %v1968_v60, %v1972_v0  ;;  %v9096_v21 = vcombine.low %v1968_v60, %v1972_v0 }
 0x20f   :  { %5381 = vmatpush2.bf16.msra.mxu1 %v8992_v43  ;;  %5463 = vmatprep.subr.bf16.mxu0 %v9113_v20  ;;  %v2100_v33 = vld [vmem:[#allocation7 + $0xd68] sm:$0xff] }
 0x210   :  { %5576 = vmatprep.subr.bf16.mxu1 %v9241_v22  ;;  %v9225_v16 = vcombine.high %v2096_v59, %v2100_v33  ;;  %v1960_v15 = vld [vmem:[#allocation7 + $0x908] sm:$0xff]  ;;  %v9224_v35 = vcombine.low %v2096_v59, %v2100_v33 }
 0x211   :  { %5270 = vmatmul.mubr.bf16.vlgmr.msra.gmra.mxu0 %v10341_v27  ;;  %v1964_v62 = vld [vmem:[#allocation7 + $0x928] sm:$0xff] }
 0x212   :  { %5383 = vmatmul.mubr.bf16.vlgmr.msra.gmra.mxu1 %v10349_v31  ;;  %5279 = vmatprep.mubr.bf16.mxu0 %v10397_v17  ;;  %v2088_v12 = vld [vmem:[#allocation7 + $0xd08] sm:$0xff]  ;;  %v9089_v32 = vcombine.high %v1960_v15, %v1964_v62  ;;  %v9088_v20 = vcombine.low %v1960_v15, %v1964_v62 }
 0x213   :  { %5392 = vmatprep.mubr.bf16.mxu1 %v10405_v28  ;;  %5464 = vmatpush1.bf16.msra.mxu0 %v9112_v34  ;;  %v2092_v52 = vld [vmem:[#allocation7 + $0xd28] sm:$0xff] }
 0x214   :  { %5577 = vmatpush1.bf16.msra.mxu1 %v9240_v63  ;;  %5465 = vmatprep.subr.bf16.mxu0 %v9105_v29  ;;  %v9217_v46 = vcombine.high %v2088_v12, %v2092_v52  ;;  %v1952_v6 = vld [vmem:[#allocation7 + $0x8c8] sm:$0xff]  ;;  %v9216_v22 = vcombine.low %v2088_v12, %v2092_v52 }
 0x215   :  { %5578 = vmatprep.subr.bf16.mxu1 %v9233_v39  ;;  %v1956_v42 = vld [vmem:[#allocation7 + $0x8e8] sm:$0xff] }
 0x216   :  { %v2080_v38 = vld [vmem:[#allocation7 + $0xcc8] sm:$0xff]  ;;  %v9081_v61 = vcombine.high %v1952_v6, %v1956_v42  ;;  %v9080_v29 = vcombine.low %v1952_v6, %v1956_v42 }
 0x217   :  { %5466 = vmatpush1.bf16.msra.mxu0 %v9104_v11  ;;  %v2084_v43 = vld [vmem:[#allocation7 + $0xce8] sm:$0xff] }
 0x218   :  { %5579 = vmatpush1.bf16.msra.mxu1 %v9232_v41  ;;  %5467 = vmatprep.subr.bf16.mxu0 %v9097_v53  ;;  %v9209_v13 = vcombine.high %v2080_v38, %v2084_v43  ;;  %v1944_v57 = vld [vmem:[#allocation7 + $0x888] sm:$0xff]  ;;  %v9208_v39 = vcombine.low %v2080_v38, %v2084_v43 }
 0x219   :  { %5280 = vmatmul.mubr.bf16.gmra.mxu0 %v10403_v26  ;;  %5580 = vmatprep.subr.bf16.mxu1 %v9225_v16  ;;  %v1948_v54 = vld [vmem:[#allocation7 + $0x8a8] sm:$0xff] }
 0x21a   :  { %5393 = vmatmul.mubr.bf16.gmra.mxu1 %v10409_v23  ;;  %5289 = vmatprep.mubr.bf16.mxu0 %v10455_v8  ;;  %v2072_v34 = vld [vmem:[#allocation7 + $0xc88] sm:$0xff]  ;;  %v9073_v60 = vcombine.high %v1944_v57, %v1948_v54  ;;  %v9072_v53 = vcombine.low %v1944_v57, %v1948_v54 }
 0x21b   :  { %5402 = vmatprep.mubr.bf16.mxu1 %v10466_v2  ;;  %5468 = vmatpush1.bf16.msra.mxu0 %v9096_v21  ;;  %v2076_v63 = vld [vmem:[#allocation7 + $0xca8] sm:$0xff] }
 0x21c   :  { %5581 = vmatpush1.bf16.msra.mxu1 %v9224_v35  ;;  %5469 = vmatprep.subr.bf16.mxu0 %v9089_v32  ;;  %v9201_v0 = vcombine.high %v2072_v34, %v2076_v63  ;;  %v1936_v59 = vld [vmem:[#allocation7 + $0x848] sm:$0xff]  ;;  %v9200_v16 = vcombine.low %v2072_v34, %v2076_v63 }
 0x21d   :  { %5582 = vmatprep.subr.bf16.mxu1 %v9217_v46  ;;  %v1940_v33 = vld [vmem:[#allocation7 + $0x868] sm:$0xff] }
 0x21e   :  { %v2064_v11 = vld [vmem:[#allocation7 + $0xc48] sm:$0xff]  ;;  %v9065_v15 = vcombine.high %v1936_v59, %v1940_v33  ;;  %v9064_v32 = vcombine.low %v1936_v59, %v1940_v33  ;;  %v12774_v33 = vld [vmem:[#allocation34_spill] sm:$0xff] }
 0x21f   :  { %5470 = vmatpush1.bf16.msra.mxu0 %v9088_v20  ;;  %v2068_v41 = vld [vmem:[#allocation7 + $0xc68] sm:$0xff] }
 0x220   :  { %5583 = vmatpush1.bf16.msra.mxu1 %v9216_v22  ;;  %5471 = vmatprep.subr.bf16.mxu0 %v9081_v61  ;;  %v9193_v62 = vcombine.high %v2064_v11, %v2068_v41  ;;  %v1928_v12 = vld [vmem:[#allocation7 + $0x808] sm:$0xff]  ;;  %v9192_v46 = vcombine.low %v2064_v11, %v2068_v41 }
 0x221   :  { %5290 = vmatmul.mubr.bf16.gmra.mxu0 %v10464_v30  ;;  %5584 = vmatprep.subr.bf16.mxu1 %v9209_v13  ;;  %v1932_v52 = vld [vmem:[#allocation7 + $0x828] sm:$0xff] }
 0x222   :  { %5403 = vmatmul.mubr.bf16.gmra.mxu1 %v10473_v48  ;;  %5299 = vmatprep.mubr.bf16.mxu0 %v10519_v4  ;;  %v2056_v21 = vld [vmem:[#allocation7 + $0xc08] sm:$0xff]  ;;  %v9057_v6 = vcombine.high %v1928_v12, %v1932_v52  ;;  %v9056_v61 = vcombine.low %v1928_v12, %v1932_v52 }
 0x223   :  { %5412 = vmatprep.mubr.bf16.mxu1 %v10530_v5  ;;  %5472 = vmatpush1.bf16.msra.mxu0 %v9080_v29  ;;  %v2060_v35 = vld [vmem:[#allocation7 + $0xc28] sm:$0xff] }
 0x224   :  { %5585 = vmatpush1.bf16.msra.mxu1 %v9208_v39  ;;  %5473 = vmatprep.subr.bf16.mxu0 %v9073_v60  ;;  %v9185_v42 = vcombine.high %v2056_v21, %v2060_v35  ;;  %v2048_v38 = vld [vmem:[#allocation7 + $0xbc8] sm:$0xff]  ;;  %v9184_v13 = vcombine.low %v2056_v21, %v2060_v35 }
 0x225   :  { %5586 = vmatprep.subr.bf16.mxu1 %v9201_v0  ;;  %v2052_v43 = vld [vmem:[#allocation7 + $0xbe8] sm:$0xff] }
 0x226   :  { %v2176_v20 = vld [vmem:[#allocation7 + $0xfc8] sm:$0xff]  ;;  %v9177_v57 = vcombine.high %v2048_v38, %v2052_v43  ;;  %v9176_v60 = vcombine.low %v2048_v38, %v2052_v43 }
 0x227   :  { %5474 = vmatpush1.bf16.msra.mxu0 %v9072_v53  ;;  %v2180_v22 = vld [vmem:[#allocation7 + $0xfe8] sm:$0xff] }
 0x228   :  { %5587 = vmatpush1.bf16.msra.mxu1 %v9200_v16  ;;  %5475 = vmatprep.subr.bf16.mxu0 %v9065_v15  ;;  %v9305_v54 = vcombine.high %v2176_v20, %v2180_v22  ;;  %v2040_v34 = vld [vmem:[#allocation7 + $0xb88] sm:$0xff]  ;;  %v9304_v0 = vcombine.low %v2176_v20, %v2180_v22  ;;  %v12775_v16 = vld [vmem:[#allocation36_spill] sm:$0xff] }
 0x229   :  { %5300 = vmatmul.mubr.bf16.gmra.mxu0 %v10528_v56  ;;  %5588 = vmatprep.subr.bf16.mxu1 %v9193_v62  ;;  %v2044_v63 = vld [vmem:[#allocation7 + $0xba8] sm:$0xff] }
 0x22a   :  { %5413 = vmatmul.mubr.bf16.gmra.mxu1 %v10537_v51  ;;  %5309 = vmatprep.mubr.bf16.mxu0 %v10583_v7  ;;  %v2168_v29 = vld [vmem:[#allocation7 + $0xf88] sm:$0xff]  ;;  %v9169_v59 = vcombine.high %v2040_v34, %v2044_v63  ;;  %v9168_v12 = vcombine.low %v2040_v34, %v2044_v63  ;;  %v1789_v7 = vld [vmem:[#allocation7 + $0x3b0] sm:$0xff] }
 0x22b   :  { %5422 = vmatprep.mubr.bf16.mxu1 %v10594_v19  ;;  %5476 = vmatpush1.bf16.msra.mxu0 %v9064_v32  ;;  %v2172_v39 = vld [vmem:[#allocation7 + $0xfa8] sm:$0xff]  ;;  %v1917_v51 = vld [vmem:[#allocation7 + $0x7b0] sm:$0xff] }
 0x22c   :  { %5589 = vmatpush1.bf16.msra.mxu1 %v9192_v46  ;;  %5477 = vmatprep.subr.bf16.mxu0 %v9057_v6  ;;  %v9297_v11 = vcombine.high %v2168_v29, %v2172_v39  ;;  %v2032_v41 = vld [vmem:[#allocation7 + $0xb48] sm:$0xff]  ;;  %v9296_v52 = vcombine.low %v2168_v29, %v2172_v39 }
 0x22d   :  { %5590 = vmatprep.subr.bf16.mxu1 %v9185_v42  ;;  %v2036_v53 = vld [vmem:[#allocation7 + $0xb68] sm:$0xff] }
 0x22e   :  { %v2160_v15 = vld [vmem:[#allocation7 + $0xf48] sm:$0xff]  ;;  %v9161_v21 = vcombine.high %v2032_v41, %v2036_v53  ;;  %v9160_v38 = vcombine.low %v2032_v41, %v2036_v53 }
 0x22f   :  { %5478 = vmatpush1.bf16.msra.mxu0 %v9056_v61  ;;  %v2164_v62 = vld [vmem:[#allocation7 + $0xf68] sm:$0xff] }
 0x230   :  { %5591 = vmatpush1.bf16.msra.mxu1 %v9184_v13  ;;  %5479 = vmatprep.subr.bf16.mxu0 %v9177_v57  ;;  %v9289_v35 = vcombine.high %v2160_v15, %v2164_v62  ;;  %v2024_v32 = vld [vmem:[#allocation7 + $0xb08] sm:$0xff]  ;;  %v9288_v43 = vcombine.low %v2160_v15, %v2164_v62  ;;  %v12776_v57 = vld [vmem:[#allocation40_spill] sm:$0xff] }
 0x231   :  { %5310 = vmatmul.mubr.bf16.gmra.mxu0 %v12774_v33  ;;  %5592 = vmatprep.subr.bf16.mxu1 %v9305_v54  ;;  %v2028_v46 = vld [vmem:[#allocation7 + $0xb28] sm:$0xff]  ;;  %v12796_v33 = vld [vmem:[#allocation64_spill] sm:$0xff] }
 0x232   :  { %5423 = vmatmul.mubr.bf16.gmra.mxu1 %v12775_v16  ;;  %5319 = vmatprep.mubr.bf16.mxu0 %v10647_v24  ;;  %v2152_v6 = vld [vmem:[#allocation7 + $0xf08] sm:$0xff]  ;;  %v9153_v20 = vcombine.high %v2024_v32, %v2028_v46  ;;  %v9152_v63 = vcombine.low %v2024_v32, %v2028_v46  ;;  %v1677_v24 = vld [vmem:[#allocation7 + $0x30] sm:$0xff] }
 0x233   :  { %5432 = vmatprep.mubr.bf16.mxu1 %v10658_v10  ;;  %5480 = vmatpush2.bf16.msra.mxu0 %v9176_v60  ;;  %v2156_v42 = vld [vmem:[#allocation7 + $0xf28] sm:$0xff]  ;;  %v1805_v16 = vld [vmem:[#allocation7 + $0x430] sm:$0xff] }
 0x234   :  { %5593 = vmatpush2.bf16.msra.mxu1 %v9304_v0  ;;  %5481 = vmatprep.subr.bf16.mxu0 %v9169_v59  ;;  %v9281_v22 = vcombine.high %v2152_v6, %v2156_v42  ;;  %v2016_v61 = vld [vmem:[#allocation7 + $0xac8] sm:$0xff]  ;;  %v9280_v29 = vcombine.low %v2152_v6, %v2156_v42 }
 0x235   :  { %5594 = vmatprep.subr.bf16.mxu1 %v9297_v11  ;;  %v2020_v13 = vld [vmem:[#allocation7 + $0xae8] sm:$0xff] }
 0x236   :  { %v2144_v54 = vld [vmem:[#allocation7 + $0xec8] sm:$0xff]  ;;  %v9145_v39 = vcombine.high %v2016_v61, %v2020_v13  ;;  %v9144_v53 = vcombine.low %v2016_v61, %v2020_v13 }
 0x237   :  { %5482 = vmatpush2.bf16.msra.mxu0 %v9168_v12  ;;  %v2148_v34 = vld [vmem:[#allocation7 + $0xee8] sm:$0xff] }
 0x238   :  { %5595 = vmatpush2.bf16.msra.mxu1 %v9296_v52  ;;  %5483 = vmatprep.subr.bf16.mxu0 %v9161_v21  ;;  %v9273_v60 = vcombine.high %v2144_v54, %v2148_v34  ;;  %v2008_v0 = vld [vmem:[#allocation7 + $0xa88] sm:$0xff]  ;;  %v9272_v15 = vcombine.low %v2144_v54, %v2148_v34 }
 0x239   :  { %5320 = vmatmul.mubr.bf16.gmra.mxu0 %v10656_v18  ;;  %5596 = vmatprep.subr.bf16.mxu1 %v9289_v35  ;;  %v2012_v59 = vld [vmem:[#allocation7 + $0xaa8] sm:$0xff]  ;;  %v12792_v18 = vld [vmem:[#allocation60_spill] sm:$0xff] }
 0x23a   :  { %5433 = vmatmul.mubr.bf16.gmra.mxu1 %v12776_v57  ;;  %5329 = vmatprep.mubr.bf16.mxu0 %v10711_v45  ;;  %v2136_v11 = vld [vmem:[#allocation7 + $0xe88] sm:$0xff]  ;;  %v9137_v62 = vcombine.high %v2008_v0, %v2012_v59  ;;  %v9136_v46 = vcombine.low %v2008_v0, %v2012_v59  ;;  %v12778_v0 = vld [vmem:[#allocation48_spill] sm:$0xff]  ;;  %v12779_v59 = vld [vmem:[#allocation49_spill] sm:$0xff] }
 0x23b   :  { %5442 = vmatprep.mubr.bf16.mxu1 %v10728_v36  ;;  %5484 = vmatpush2.bf16.msra.mxu0 %v9160_v38  ;;  %v2140_v41 = vld [vmem:[#allocation7 + $0xea8] sm:$0xff]  ;;  %v1693_v45 = vld [vmem:[#allocation7 + $0xb0] sm:$0xff] }
 0x23c   :  { %5597 = vmatpush2.bf16.msra.mxu1 %v9288_v43  ;;  %5485 = vmatprep.subr.bf16.mxu0 %v9153_v20  ;;  %v9265_v12 = vcombine.high %v2136_v11, %v2140_v41  ;;  %v2000_v52 = vld [vmem:[#allocation7 + $0xa48] sm:$0xff]  ;;  %v9264_v6 = vcombine.low %v2136_v11, %v2140_v41  ;;  %v1857_v11 = vld [vmem:[#allocation7 + $0x5d0] sm:$0xff] }
 0x23d   :  { %5598 = vmatprep.subr.bf16.mxu1 %v9281_v22  ;;  %v2004_v21 = vld [vmem:[#allocation7 + $0xa68] sm:$0xff]  ;;  %v1861_v41 = vld [vmem:[#allocation7 + $0x5f0] sm:$0xff] }
 0x23e   :  { %v2128_v35 = vld [vmem:[#allocation7 + $0xe48] sm:$0xff]  ;;  %v9129_v42 = vcombine.high %v2000_v52, %v2004_v21  ;;  %v9128_v13 = vcombine.low %v2000_v52, %v2004_v21  ;;  %v8987_v21 = vcombine.high %v1857_v11, %v1861_v41  ;;  %v1821_v57 = vld [vmem:[#allocation7 + $0x4b0] sm:$0xff] }
 0x23f   :  { %5486 = vmatpush2.bf16.msra.mxu0 %v9152_v63  ;;  %v2132_v32 = vld [vmem:[#allocation7 + $0xe68] sm:$0xff]  ;;  %v12777_v63 = vld [vmem:[#allocation46_spill] sm:$0xff] }
 0x240   :  { %5599 = vmatpush2.bf16.msra.mxu1 %v9280_v29  ;;  %5487 = vmatprep.subr.bf16.mxu0 %v9145_v39  ;;  %v9257_v38 = vcombine.high %v2128_v35, %v2132_v32  ;;  %v1992_v43 = vld [vmem:[#allocation7 + $0xa08] sm:$0xff]  ;;  %v9256_v54 = vcombine.low %v2128_v35, %v2132_v32  ;;  %v1729_v39 = vld [vmem:[#allocation7 + $0x1d0] sm:$0xff]  ;;  %v12781_v35 = vld [vmem:[#allocation26_spill] sm:$0xff] }
 0x241   :  { %5330 = vmatmul.mubr.bf16.gmra.mxu0 %v10726_v1  ;;  %5600 = vmatprep.subr.bf16.mxu1 %v9273_v60  ;;  %v1996_v20 = vld [vmem:[#allocation7 + $0xa28] sm:$0xff]  ;;  %v1733_v60 = vld [vmem:[#allocation7 + $0x1f0] sm:$0xff] }
 0x242   :  { %5443 = vmatmul.mubr.bf16.gmra.mxu1 %v10735_v9  ;;  %5339 = vmatprep.mubr.bf16.mxu0 %v10781_v14  ;;  %v2120_v22 = vld [vmem:[#allocation7 + $0xe08] sm:$0xff]  ;;  %v9121_v34 = vcombine.high %v1992_v43, %v1996_v20  ;;  %v8859_v52 = vcombine.high %v1729_v39, %v1733_v60  ;;  %v1709_v14 = vld [vmem:[#allocation7 + $0x130] sm:$0xff] }
 0x243   :  { %5452 = vmatprep.mubr.bf16.mxu1 %v10789_v47  ;;  %5488 = vmatpush2.bf16.msra.mxu0 %v9144_v53  ;;  %v2124_v61 = vld [vmem:[#allocation7 + $0xe28] sm:$0xff]  ;;  %v1837_v9 = vld [vmem:[#allocation7 + $0x530] sm:$0xff] }
 0x244   :  { %5601 = vmatpush2.bf16.msra.mxu1 %v9272_v15  ;;  %5489 = vmatprep.subr.bf16.mxu0 %v9137_v62  ;;  %v9249_v29 = vcombine.high %v2120_v22, %v2124_v61  ;;  %v12780_v53 = vld [vmem:[#allocation51_spill] sm:$0xff]  ;;  %v9120_v15 = vcombine.low %v1992_v43, %v1996_v20  ;;  %v2183_v62 = vld [vmem:[#allocation9] sm:$0xff]  ;;  %v12788_v1 = vld [vmem:[#allocation56_spill] sm:$0xff] }
 0x245   :  { %5602 = vmatprep.subr.bf16.mxu1 %v9265_v12  ;;  %v9248_v12 = vcombine.low %v2120_v22, %v2124_v61  ;;  %v11222_v32 = vrot.slane %v2183_v62, %v12781_v35 }
 0x247   :  { %5490 = vmatpush2.bf16.msra.mxu0 %v9136_v46  ;;  %v1721_v46 = vld [vmem:[#allocation7 + $0x190] sm:$0xff] }
 0x248   :  { %5603 = vmatpush2.bf16.msra.mxu1 %v9264_v6  ;;  %5491 = vmatprep.subr.bf16.mxu0 %v9129_v42  ;;  %v1725_v6 = vld [vmem:[#allocation7 + $0x1b0] sm:$0xff] }
 0x249   :  { %5340 = vmatmul.mubr.bf16.gmra.mxu0 %v12777_v63  ;;  %5604 = vmatprep.subr.bf16.mxu1 %v9257_v38  ;;  %v1849_v42 = vld [vmem:[#allocation7 + $0x590] sm:$0xff]  ;;  %v8851_v22 = vcombine.high %v1721_v46, %v1725_v6 }
 0x24a   :  { %5453 = vmatmul.mubr.bf16.gmra.mxu1 %v12778_v0  ;;  %5495 = vmatprep.mubr.bf16.mxu0 %v12779_v59  ;;  %v1853_v38 = vld [vmem:[#allocation7 + $0x5b0] sm:$0xff] }
 0x24b   :  { %5492 = vmatpush2.bf16.msra.mxu0 %v9128_v13  ;;  %5608 = vmatprep.mubr.bf16.mxu1 %v12780_v53  ;;  %v8858_v13 = vcombine.low %v1729_v39, %v1733_v60  ;;  %v12782_v53 = vld [vmem:[#allocation25_spill] sm:$0xff]  ;;  %v8979_v35 = vcombine.high %v1849_v42, %v1853_v38  ;;  %v1713_v59 = vld [vmem:[#allocation7 + $0x150] sm:$0xff] }
 0x24c   :  { %5605 = vmatpush2.bf16.msra.mxu1 %v9256_v54  ;;  %5493 = vmatprep.subr.bf16.mxu0 %v9121_v34  ;;  %v11225_v43 = vrot.slane %v2183_v62, %v12782_v53  ;;  %v8986_v54 = vcombine.low %v1857_v11, %v1861_v41  ;;  %v12784_v0 = vld [vmem:[#allocation52_spill] sm:$0xff]  ;;  %v12786_v11 = vld [vmem:[#allocation55_spill] sm:$0xff] }
 0x24d   :  { %5606 = vmatprep.subr.bf16.mxu1 %v9249_v29  ;;  %v12783_v29 = vld [vmem:[#allocation50_spill] sm:$0xff]  ;;  %v1841_v60 = vld [vmem:[#allocation7 + $0x550] sm:$0xff] }
 0x24e   :  { %v4819_v20 = vpop.f32.mrf.mxu0  ;;  %v4932_v34 = vpop.f32.mrf.mxu1  ;;  %v1845_v62 = vld [vmem:[#allocation7 + $0x570] sm:$0xff] }
 0x24f   :  { %5494 = vmatpush2.bf16.msra.mxu0 %v9120_v15  ;;  %v4820_v61 = vadd.f32 %v4819_v20, %v11222_v32  ;;  %v1717_v15 = vld [vmem:[#allocation7 + $0x170] sm:$0xff]  ;;  %v8850_v20 = vcombine.low %v1721_v46, %v1725_v6 }
 0x250   :  { %5607 = vmatpush2.bf16.msra.mxu1 %v9248_v12  ;;  %5689 = vmatprep.subr.bf16.mxu0 %v8859_v52  ;;  %v12785_v12 = vld [vmem:[#allocation53_spill] sm:$0xff]  ;;  %v4821_v39 = vpop.f32.mrf.mxu0  ;;  %v8843_v63 = vcombine.high %v1713_v59, %v1717_v15 }
 0x251   :  { %5802 = vmatprep.subr.bf16.mxu1 %v8987_v21  ;;  %v11231_v52 = vadd.f32 %v4932_v34, %v4820_v61  ;;  %v4822_v41 = vadd.f32 %v4821_v39, %v11225_v43  ;;  %v4934_v21 = vpop.f32.mrf.mxu1  ;;  %v8971_v61 = vcombine.high %v1841_v60, %v1845_v62  ;;  %v1705_v34 = vld [vmem:[#allocation7 + $0x110] sm:$0xff] }
 0x252   :  { %5496 = vmatmul.mubr.bf16.vlgmr.msra.gmra.mxu0 %v12783_v29  ;;  %v4823_v53 = vpop.f32.mrf.mxu0  ;;  %v8978_v29 = vcombine.low %v1849_v42, %v1853_v38  ;;  %v8842_v42 = vcombine.low %v1713_v59, %v1717_v15 }
 0x253   :  { %5609 = vmatmul.mubr.bf16.vlgmr.msra.gmra.mxu1 %v12784_v0  ;;  %5505 = vmatprep.mubr.bf16.mxu0 %v12785_v12  ;;  %v11235_v0 = vadd.f32 %v4934_v21, %v4822_v41  ;;  %v4824_v12 = vadd.f32 %v4823_v53, %v11222_v32  ;;  %v4936_v47 = vpop.f32.mrf.mxu1  ;;  %v8835_v53 = vcombine.high %v1705_v34, %v1709_v14  ;;  %v12787_v21 = vld [vmem:[#allocation54_spill] sm:$0xff] }
 0x254   :  { %5618 = vmatprep.mubr.bf16.mxu1 %v12786_v11  ;;  %5690 = vmatpush1.bf16.msra.mxu0 %v8858_v13  ;;  %v4825_v11 = vpop.f32.mrf.mxu0  ;;  %v1833_v13 = vld [vmem:[#allocation7 + $0x510] sm:$0xff] }
 0x255   :  { %5803 = vmatpush1.bf16.msra.mxu1 %v8986_v54  ;;  %5691 = vmatprep.subr.bf16.mxu0 %v8851_v22  ;;  %v11238_v39 = vadd.f32 %v4936_v47, %v4824_v12  ;;  %v4826_v46 = vadd.f32 %v4825_v11, %v11225_v43  ;;  %v4938_v6 = vpop.f32.mrf.mxu1  ;;  %v8970_v54 = vcombine.low %v1841_v60, %v1845_v62  ;;  %v1697_v12 = vld [vmem:[#allocation7 + $0xd0] sm:$0xff]  ;;  %v12789_v11 = vld [vmem:[#allocation57_spill] sm:$0xff]  ;;  %v12790_v60 = vld [vmem:[#allocation59_spill] sm:$0xff] }
 0x256   :  { %5804 = vmatprep.subr.bf16.mxu1 %v8979_v35  ;;  %v4829_v38 = vpop.f32.mrf.mxu0  ;;  %v8963_v47 = vcombine.high %v1833_v13, %v1837_v9 }
 0x257   :  { %v11241_v22 = vadd.f32 %v4938_v6, %v4826_v46  ;;  %v4830_v35 = vadd.f32 %v4829_v38, %v11222_v32  ;;  %v4942_v41 = vpop.f32.mrf.mxu1  ;;  %v8834_v6 = vcombine.low %v1705_v34, %v1709_v14  ;;  %v8962_v38 = vcombine.low %v1833_v13, %v1837_v9 }
 0x258   :  { %5692 = vmatpush1.bf16.msra.mxu0 %v8850_v20  ;;  %v1701_v20 = vld [vmem:[#allocation7 + $0xf0] sm:$0xff]  ;;  %v4831_v59 = vpop.f32.mrf.mxu0 }
 0x259   :  { %5805 = vmatpush1.bf16.msra.mxu1 %v8978_v29  ;;  %5693 = vmatprep.subr.bf16.mxu0 %v8843_v63  ;;  %v1825_v29 = vld [vmem:[#allocation7 + $0x4d0] sm:$0xff]  ;;  %v11247_v15 = vadd.f32 %v4942_v41, %v4830_v35  ;;  %v4832_v62 = vadd.f32 %v4831_v59, %v11225_v43  ;;  %v4944_v46 = vpop.f32.mrf.mxu1  ;;  %v8826_v9 = vcombine.low %v1697_v12, %v1701_v20 }
 0x25a   :  { %5506 = vmatmul.mubr.bf16.gmra.mxu0 %v12787_v21  ;;  %5806 = vmatprep.subr.bf16.mxu1 %v8971_v61  ;;  %v1829_v63 = vld [vmem:[#allocation7 + $0x4f0] sm:$0xff]  ;;  %v4833_v61 = vpop.f32.mrf.mxu0  ;;  %v8827_v21 = vcombine.high %v1697_v12, %v1701_v20 }
 0x25b   :  { %5619 = vmatmul.mubr.bf16.gmra.mxu1 %v12788_v1  ;;  %5515 = vmatprep.mubr.bf16.mxu0 %v12789_v11  ;;  %v11251_v1 = vadd.f32 %v4944_v46, %v4832_v62  ;;  %v4834_v11 = vadd.f32 %v4833_v61, %v11222_v32  ;;  %v4946_v36 = vpop.f32.mrf.mxu1  ;;  %v8955_v35 = vcombine.high %v1825_v29, %v1829_v63  ;;  %v1689_v41 = vld [vmem:[#allocation7 + $0x90] sm:$0xff]  ;;  %v12791_v61 = vld [vmem:[#allocation58_spill] sm:$0xff] }
 0x25c   :  { %5628 = vmatprep.mubr.bf16.mxu1 %v12790_v60  ;;  %5694 = vmatpush1.bf16.msra.mxu0 %v8842_v42  ;;  %v4835_v60 = vpop.f32.mrf.mxu0  ;;  %v1817_v42 = vld [vmem:[#allocation7 + $0x490] sm:$0xff] }
 0x25d   :  { %5807 = vmatpush1.bf16.msra.mxu1 %v8970_v54  ;;  %5695 = vmatprep.subr.bf16.mxu0 %v8835_v53  ;;  %v11254_v59 = vadd.f32 %v4946_v36, %v4834_v11  ;;  %v4836_v14 = vadd.f32 %v4835_v60, %v11225_v43  ;;  %v4948_v34 = vpop.f32.mrf.mxu1  ;;  %v8954_v54 = vcombine.low %v1825_v29, %v1829_v63  ;;  %v1681_v11 = vld [vmem:[#allocation7 + $0x50] sm:$0xff]  ;;  %v12793_v60 = vld [vmem:[#allocation61_spill] sm:$0xff]  ;;  %v12794_v63 = vld [vmem:[#allocation63_spill] sm:$0xff] }
 0x25e   :  { %5808 = vmatprep.subr.bf16.mxu1 %v8963_v47  ;;  %v4839_v13 = vpop.f32.mrf.mxu0  ;;  %v8819_v53 = vcombine.high %v1689_v41, %v1693_v45  ;;  %v8947_v36 = vcombine.high %v1817_v42, %v1821_v57  ;;  %v1809_v20 = vld [vmem:[#allocation7 + $0x450] sm:$0xff] }
 0x25f   :  { %v11257_v62 = vadd.f32 %v4948_v34, %v4836_v14  ;;  %v4840_v47 = vadd.f32 %v4839_v13, %v11222_v32  ;;  %v4952_v46 = vpop.f32.mrf.mxu1  ;;  %v8818_v34 = vcombine.low %v1689_v41, %v1693_v45  ;;  %v8946_v13 = vcombine.low %v1817_v42, %v1821_v57 }
 0x260   :  { %5696 = vmatpush1.bf16.msra.mxu0 %v8834_v6  ;;  %v1685_v6 = vld [vmem:[#allocation7 + $0x70] sm:$0xff]  ;;  %v4841_v12 = vpop.f32.mrf.mxu0 }
 0x261   :  { %5809 = vmatpush1.bf16.msra.mxu1 %v8962_v38  ;;  %5697 = vmatprep.subr.bf16.mxu0 %v8827_v21  ;;  %v1813_v21 = vld [vmem:[#allocation7 + $0x470] sm:$0xff]  ;;  %v11263_v29 = vadd.f32 %v4952_v46, %v4840_v47  ;;  %v4842_v38 = vadd.f32 %v4841_v12, %v11225_v43  ;;  %v4954_v14 = vpop.f32.mrf.mxu1  ;;  %v8810_v57 = vcombine.low %v1681_v11, %v1685_v6 }
 0x262   :  { %5516 = vmatmul.mubr.bf16.gmra.mxu0 %v12791_v61  ;;  %5810 = vmatprep.subr.bf16.mxu1 %v8955_v35  ;;  %v4843_v35 = vpop.f32.mrf.mxu0  ;;  %v8811_v61 = vcombine.high %v1681_v11, %v1685_v6  ;;  %v8939_v47 = vcombine.high %v1809_v20, %v1813_v21  ;;  %v1673_v46 = vld [vmem:[#allocation7 + $0x10] sm:$0xff] }
 0x263   :  { %5629 = vmatmul.mubr.bf16.gmra.mxu1 %v12792_v18  ;;  %5525 = vmatprep.mubr.bf16.mxu0 %v12793_v60  ;;  %v11267_v18 = vadd.f32 %v4954_v14, %v4842_v38  ;;  %v4844_v60 = vadd.f32 %v4843_v35, %v11222_v32  ;;  %v4956_v10 = vpop.f32.mrf.mxu1  ;;  %v12795_v35 = vld [vmem:[#allocation62_spill] sm:$0xff]  ;;  %v1921_v6 = vld [vmem:[#allocation7 + $0x7d0] sm:$0xff] }
 0x264   :  { %5638 = vmatprep.mubr.bf16.mxu1 %v12794_v63  ;;  %5698 = vmatpush1.bf16.msra.mxu0 %v8826_v9  ;;  %v4845_v63 = vpop.f32.mrf.mxu0  ;;  %v1801_v9 = vld [vmem:[#allocation7 + $0x410] sm:$0xff] }
 0x265   :  { %5811 = vmatpush1.bf16.msra.mxu1 %v8954_v54  ;;  %5699 = vmatprep.subr.bf16.mxu0 %v8819_v53  ;;  %v11270_v12 = vadd.f32 %v4956_v10, %v4844_v60  ;;  %v4846_v45 = vadd.f32 %v4845_v63, %v11225_v43  ;;  %v4958_v41 = vpop.f32.mrf.mxu1  ;;  %v8938_v54 = vcombine.low %v1809_v20, %v1813_v21  ;;  %v1793_v60 = vld [vmem:[#allocation7 + $0x3d0] sm:$0xff]  ;;  %v12797_v63 = vld [vmem:[#allocation65_spill] sm:$0xff]  ;;  %v12798_v21 = vld [vmem:[#allocation67_spill] sm:$0xff] }
 0x266   :  { %5812 = vmatprep.subr.bf16.mxu1 %v8947_v36  ;;  %v4849_v42 = vpop.f32.mrf.mxu0  ;;  %v8803_v53 = vcombine.high %v1673_v46, %v1677_v24  ;;  %v8931_v10 = vcombine.high %v1801_v9, %v1805_v16 }
 0x267   :  { %v11273_v38 = vadd.f32 %v4958_v41, %v4846_v45  ;;  %v4850_v36 = vadd.f32 %v4849_v42, %v11222_v32  ;;  %v4962_v14 = vpop.f32.mrf.mxu1  ;;  %v8802_v41 = vcombine.low %v1673_v46, %v1677_v24  ;;  %v8930_v42 = vcombine.low %v1801_v9, %v1805_v16 }
 0x268   :  { %5700 = vmatpush1.bf16.msra.mxu0 %v8818_v34  ;;  %v1797_v34 = vld [vmem:[#allocation7 + $0x3f0] sm:$0xff]  ;;  %v4851_v11 = vpop.f32.mrf.mxu0 }
 0x269   :  { %5813 = vmatpush1.bf16.msra.mxu1 %v8946_v13  ;;  %5701 = vmatprep.subr.bf16.mxu0 %v8811_v61  ;;  %v1925_v61 = vld [vmem:[#allocation7 + $0x7f0] sm:$0xff]  ;;  %v11279_v20 = vadd.f32 %v4962_v14, %v4850_v36  ;;  %v4852_v13 = vadd.f32 %v4851_v11, %v11225_v43  ;;  %v4964_v45 = vpop.f32.mrf.mxu1  ;;  %v8922_v16 = vcombine.low %v1793_v60, %v1797_v34 }
 0x26a   :  { %5526 = vmatmul.mubr.bf16.gmra.mxu0 %v12795_v35  ;;  %5814 = vmatprep.subr.bf16.mxu1 %v8939_v47  ;;  %v4853_v47 = vpop.f32.mrf.mxu0  ;;  %v8923_v35 = vcombine.high %v1793_v60, %v1797_v34  ;;  %v9051_v36 = vcombine.high %v1921_v6, %v1925_v61  ;;  %v1785_v14 = vld [vmem:[#allocation7 + $0x390] sm:$0xff] }
 0x26b   :  { %5639 = vmatmul.mubr.bf16.gmra.mxu1 %v12796_v33  ;;  %5535 = vmatprep.mubr.bf16.mxu0 %v12797_v63  ;;  %v11283_v33 = vadd.f32 %v4964_v45, %v4852_v13  ;;  %v4854_v63 = vadd.f32 %v4853_v47, %v11222_v32  ;;  %v4966_v19 = vpop.f32.mrf.mxu1  ;;  %v12802_v47 = vld [vmem:[#allocation66_spill] sm:$0xff]  ;;  %v1905_v34 = vld [vmem:[#allocation7 + $0x750] sm:$0xff] }
 0x26c   :  { %5648 = vmatprep.mubr.bf16.mxu1 %v12798_v21  ;;  %5702 = vmatpush1.bf16.msra.mxu0 %v8810_v57  ;;  %v4855_v21 = vpop.f32.mrf.mxu0  ;;  %v1913_v57 = vld [vmem:[#allocation7 + $0x790] sm:$0xff] }
 0x26d   :  { %5815 = vmatpush1.bf16.msra.mxu1 %v8938_v54  ;;  %5703 = vmatprep.subr.bf16.mxu0 %v8803_v53  ;;  %12799 = vst [vmem:[#allocation81_spill] sm:$0xff] %v11283_v33  ;;  %v11286_v11 = vadd.f32 %v4966_v19, %v4854_v63  ;;  %v4856_v24 = vadd.f32 %v4855_v21, %v11225_v43  ;;  %v4968_v46 = vpop.f32.mrf.mxu1  ;;  %v1777_v63 = vld [vmem:[#allocation7 + $0x350] sm:$0xff]  ;;  %v12804_v21 = vld [vmem:[#allocation69_spill] sm:$0xff] }
 0x26e   :  { %5816 = vmatprep.subr.bf16.mxu1 %v8931_v10  ;;  %v4859_v9 = vpop.f32.mrf.mxu0  ;;  %v9050_v54 = vcombine.low %v1921_v6, %v1925_v61  ;;  %v8915_v53 = vcombine.high %v1785_v14, %v1789_v7  ;;  %v9043_v19 = vcombine.high %v1913_v57, %v1917_v51  ;;  %v12806_v61 = vld [vmem:[#allocation71_spill] sm:$0xff]  ;;  %v1901_v33 = vld [vmem:[#allocation7 + $0x730] sm:$0xff] }
 0x26f   :  { %12800 = vst [vmem:[#allocation82_spill] sm:$0xff] %v11286_v11  ;;  %v11289_v13 = vadd.f32 %v4968_v46, %v4856_v24  ;;  %v4860_v10 = vadd.f32 %v4859_v9, %v11222_v32  ;;  %v4972_v45 = vpop.f32.mrf.mxu1  ;;  %v12803_v11 = vld [vmem:[#allocation68_spill] sm:$0xff]  ;;  %v8914_v46 = vcombine.low %v1785_v14, %v1789_v7  ;;  %v9042_v9 = vcombine.low %v1913_v57, %v1917_v51 }
 0x270   :  { %5704 = vmatpush1.bf16.msra.mxu0 %v8802_v41  ;;  %v1781_v41 = vld [vmem:[#allocation7 + $0x370] sm:$0xff]  ;;  %v4861_v60 = vpop.f32.mrf.mxu0 }
 0x271   :  { %5817 = vmatpush1.bf16.msra.mxu1 %v8930_v42  ;;  %5705 = vmatprep.subr.bf16.mxu0 %v8923_v35  ;;  %12801 = vst [vmem:[#allocation83_spill] sm:$0xff] %v11289_v13  ;;  %v1909_v35 = vld [vmem:[#allocation7 + $0x770] sm:$0xff]  ;;  %v11295_v6 = vadd.f32 %v4972_v45, %v4860_v10  ;;  %v4862_v42 = vadd.f32 %v4861_v60, %v11225_v43  ;;  %v4974_v24 = vpop.f32.mrf.mxu1 }
 0x272   :  { %5536 = vmatmul.mubr.bf16.gmra.mxu0 %v12802_v47  ;;  %5818 = vmatprep.subr.bf16.mxu1 %v9051_v36  ;;  %v4863_v36 = vpop.f32.mrf.mxu0  ;;  %v8907_v47 = vcombine.high %v1777_v63, %v1781_v41  ;;  %v9035_v10 = vcombine.high %v1905_v34, %v1909_v35  ;;  %v1769_v45 = vld [vmem:[#allocation7 + $0x310] sm:$0xff]  ;;  %v8906_v51 = vcombine.low %v1777_v63, %v1781_v41 }
 0x273   :  { %5649 = vmatmul.mubr.bf16.gmra.mxu1 %v12803_v11  ;;  %5545 = vmatprep.mubr.bf16.mxu0 %v12804_v21  ;;  %12805 = vst [vmem:[#allocation84_spill] sm:$0xff] %v11295_v6  ;;  %v11299_v11 = vadd.f32 %v4974_v24, %v4862_v42  ;;  %v4864_v21 = vadd.f32 %v4863_v36, %v11222_v32  ;;  %v4976_v13 = vpop.f32.mrf.mxu1  ;;  %v1773_v6 = vld [vmem:[#allocation7 + $0x330] sm:$0xff]  ;;  %v12808_v36 = vld [vmem:[#allocation70_spill] sm:$0xff] }
 0x274   :  { %5658 = vmatprep.mubr.bf16.mxu1 %v12806_v61  ;;  %5706 = vmatpush2.bf16.msra.mxu0 %v8922_v16  ;;  %v4865_v61 = vpop.f32.mrf.mxu0  ;;  %v1897_v16 = vld [vmem:[#allocation7 + $0x710] sm:$0xff] }
 0x275   :  { %5819 = vmatpush2.bf16.msra.mxu1 %v9050_v54  ;;  %5707 = vmatprep.subr.bf16.mxu0 %v8915_v53  ;;  %v11302_v60 = vadd.f32 %v4976_v13, %v4864_v21  ;;  %v4866_v7 = vadd.f32 %v4865_v61, %v11225_v43  ;;  %v4978_v14 = vpop.f32.mrf.mxu1  ;;  %v9034_v54 = vcombine.low %v1905_v34, %v1909_v35  ;;  %v1761_v21 = vld [vmem:[#allocation7 + $0x2d0] sm:$0xff] }
 0x276   :  { %5820 = vmatprep.subr.bf16.mxu1 %v9043_v19  ;;  %v4869_v57 = vpop.f32.mrf.mxu0  ;;  %v8899_v53 = vcombine.high %v1769_v45, %v1773_v6  ;;  %v9027_v13 = vcombine.high %v1897_v16, %v1901_v33  ;;  %v1889_v41 = vld [vmem:[#allocation7 + $0x6d0] sm:$0xff] }
 0x277   :  { %12807 = vst [vmem:[#allocation85_spill] sm:$0xff] %v11302_v60  ;;  %v11305_v42 = vadd.f32 %v4978_v14, %v4866_v7  ;;  %v4870_v19 = vadd.f32 %v4869_v57, %v11222_v32  ;;  %v4982_v24 = vpop.f32.mrf.mxu1  ;;  %v12809_v60 = vld [vmem:[#allocation72_spill] sm:$0xff]  ;;  %v9026_v7 = vcombine.low %v1897_v16, %v1901_v33 }
 0x278   :  { %5708 = vmatpush2.bf16.msra.mxu0 %v8914_v46  ;;  %v1765_v46 = vld [vmem:[#allocation7 + $0x2f0] sm:$0xff]  ;;  %v4871_v63 = vpop.f32.mrf.mxu0 }
 0x279   :  { %5821 = vmatpush2.bf16.msra.mxu1 %v9042_v9  ;;  %5709 = vmatprep.subr.bf16.mxu0 %v8907_v47  ;;  %v1893_v47 = vld [vmem:[#allocation7 + $0x6f0] sm:$0xff]  ;;  %v11311_v34 = vadd.f32 %v4982_v24, %v4870_v19  ;;  %v4872_v35 = vadd.f32 %v4871_v63, %v11225_v43  ;;  %v4984_v61 = vpop.f32.mrf.mxu1  ;;  %v8898_v9 = vcombine.low %v1769_v45, %v1773_v6 }
 0x27a   :  { %5546 = vmatmul.mubr.bf16.gmra.mxu0 %v12808_v36  ;;  %5822 = vmatprep.subr.bf16.mxu1 %v9035_v10  ;;  %v4873_v10 = vpop.f32.mrf.mxu0  ;;  %v8891_v14 = vcombine.high %v1761_v21, %v1765_v46  ;;  %v9019_v19 = vcombine.high %v1889_v41, %v1893_v47  ;;  %v1753_v24 = vld [vmem:[#allocation7 + $0x290] sm:$0xff]  ;;  %v8890_v33 = vcombine.low %v1761_v21, %v1765_v46 }
 0x27b   :  { %5659 = vmatmul.mubr.bf16.gmra.mxu1 %v12809_v60  ;;  %5555 = vmatprep.mubr.bf16.mxu0 %v11145_v37  ;;  %12810 = vst [vmem:[#allocation86_spill] sm:$0xff] %v11311_v34  ;;  %v11315_v57 = vadd.f32 %v4984_v61, %v4872_v35  ;;  %v4874_v37 = vadd.f32 %v4873_v10, %v11222_v32  ;;  %v4986_v60 = vpop.f32.mrf.mxu1  ;;  %v1757_v36 = vld [vmem:[#allocation7 + $0x2b0] sm:$0xff] }
 0x27c   :  { %5668 = vmatprep.mubr.bf16.mxu1 %v11153_v49  ;;  %5710 = vmatpush2.bf16.msra.mxu0 %v8906_v51  ;;  %v4875_v49 = vpop.f32.mrf.mxu0  ;;  %v1881_v51 = vld [vmem:[#allocation7 + $0x690] sm:$0xff] }
 0x27d   :  { %5823 = vmatpush2.bf16.msra.mxu1 %v9034_v54  ;;  %5711 = vmatprep.subr.bf16.mxu0 %v8899_v53  ;;  %v1885_v34 = vld [vmem:[#allocation7 + $0x6b0] sm:$0xff]  ;;  %v11318_v63 = vadd.f32 %v4986_v60, %v4874_v37  ;;  %v4876_v6 = vadd.f32 %v4875_v49, %v11225_v43  ;;  %v4988_v45 = vpop.f32.mrf.mxu1  ;;  %v9018_v54 = vcombine.low %v1889_v41, %v1893_v47 }
 0x27e   :  { %5824 = vmatprep.subr.bf16.mxu1 %v9027_v13  ;;  %v8883_v53 = vcombine.high %v1753_v24, %v1757_v36  ;;  %v9011_v37 = vcombine.high %v1881_v51, %v1885_v34  ;;  %v1745_v60 = vld [vmem:[#allocation7 + $0x250] sm:$0xff] }
 0x27f   :  { %v4879_v16 = vpop.f32.mrf.mxu0  ;;  %v11321_v35 = vadd.f32 %v4988_v45, %v4876_v6  ;;  %v12811_v10 = vld [vmem:[#allocation76_spill] sm:$0xff]  ;;  %v9010_v6 = vcombine.low %v1881_v51, %v1885_v34 }
 0x280   :  { %5712 = vmatpush2.bf16.msra.mxu0 %v8898_v9  ;;  %v4880_v13 = vadd.f32 %v4879_v16, %v11222_v32  ;;  %v4992_v61 = vpop.f32.mrf.mxu1  ;;  %v1749_v9 = vld [vmem:[#allocation7 + $0x270] sm:$0xff] }
 0x281   :  { %5825 = vmatpush2.bf16.msra.mxu1 %v9026_v7  ;;  %5713 = vmatprep.subr.bf16.mxu0 %v8891_v14  ;;  %v4881_v49 = vpop.f32.mrf.mxu0  ;;  %v1873_v21 = vld [vmem:[#allocation7 + $0x650] sm:$0xff]  ;;  %v8882_v14 = vcombine.low %v1753_v24, %v1757_v36  ;;  %v8875_v45 = vcombine.high %v1745_v60, %v1749_v9  ;;  %v8874_v34 = vcombine.low %v1745_v60, %v1749_v9 }
 0x282   :  { %5556 = vmatmul.mubr.bf16.gmra.mxu0 %v11151_v3  ;;  %5826 = vmatprep.subr.bf16.mxu1 %v9019_v19  ;;  %v1877_v46 = vld [vmem:[#allocation7 + $0x670] sm:$0xff]  ;;  %v11327_v41 = vadd.f32 %v4992_v61, %v4880_v13  ;;  %v4882_v47 = vadd.f32 %v4881_v49, %v11225_v43  ;;  %v4994_v7 = vpop.f32.mrf.mxu1 }
 0x283   :  { %5669 = vmatmul.mubr.bf16.gmra.mxu1 %v12811_v10  ;;  %5565 = vmatprep.mubr.bf16.mxu0 %v11175_v50  ;;  %v4883_v19 = vpop.f32.mrf.mxu0  ;;  %v9003_v13 = vcombine.high %v1873_v21, %v1877_v46  ;;  %v1737_v61 = vld [vmem:[#allocation7 + $0x210] sm:$0xff] }
 0x284   :  { %12812 = vst [vmem:[#allocation87_spill] sm:$0xff] %v11327_v41  ;;  %5678 = vmatprep.mubr.bf16.mxu1 %v11179_v40  ;;  %5714 = vmatpush2.bf16.msra.mxu0 %v8890_v33  ;;  %v11331_v16 = vadd.f32 %v4994_v7, %v4882_v47  ;;  %v4884_v50 = vadd.f32 %v4883_v19, %v11222_v32  ;;  %v4996_v10 = vpop.f32.mrf.mxu1  ;;  %v1741_v3 = vld [vmem:[#allocation7 + $0x230] sm:$0xff] }
 0x285   :  { %5827 = vmatpush2.bf16.msra.mxu1 %v9018_v54  ;;  %5715 = vmatprep.subr.bf16.mxu0 %v8883_v53  ;;  %v4885_v40 = vpop.f32.mrf.mxu0  ;;  %v1865_v33 = vld [vmem:[#allocation7 + $0x610] sm:$0xff]  ;;  %v9002_v54 = vcombine.low %v1873_v21, %v1877_v46  ;;  %v8867_v53 = vcombine.high %v1737_v61, %v1741_v3 }
 0x286   :  { %5828 = vmatprep.subr.bf16.mxu1 %v9011_v37  ;;  %v1869_v41 = vld [vmem:[#allocation7 + $0x630] sm:$0xff]  ;;  %v11334_v49 = vadd.f32 %v4996_v10, %v4884_v50  ;;  %v4886_v36 = vadd.f32 %v4885_v40, %v11225_v43  ;;  %v4998_v24 = vpop.f32.mrf.mxu1 }
 0x287   :  { %v8995_v50 = vcombine.high %v1865_v33, %v1869_v41  ;;  %v1985_v10 = vld [vmem:[#allocation7 + $0x9d0] sm:$0xff] }
 0x288   :  { %5716 = vmatpush2.bf16.msra.mxu0 %v8882_v14  ;;  %v11337_v47 = vadd.f32 %v4998_v24, %v4886_v36  ;;  %v1989_v14 = vld [vmem:[#allocation7 + $0x9f0] sm:$0xff] }
 0x289   :  { %5829 = vmatpush2.bf16.msra.mxu1 %v9010_v6  ;;  %v4889_v51 = vpop.f32.mrf.mxu0  ;;  %5717 = vmatprep.subr.bf16.mxu0 %v8875_v45  ;;  %v5002_v7 = vpop.f32.mrf.mxu1  ;;  %v2113_v60 = vld [vmem:[#allocation7 + $0xdd0] sm:$0xff]  ;;  %v8866_v6 = vcombine.low %v1737_v61, %v1741_v3  ;;  %v9115_v36 = vcombine.high %v1985_v10, %v1989_v14 }
 0x28a   :  { %v4890_v37 = vadd.f32 %v4889_v51, %v11222_v32  ;;  %5566 = vmatmul.mubr.bf16.gmra.mxu0 %v11177_v55  ;;  %5830 = vmatprep.subr.bf16.mxu1 %v9003_v13  ;;  %v2117_v9 = vld [vmem:[#allocation7 + $0xdf0] sm:$0xff]  ;;  %v8994_v13 = vcombine.low %v1865_v33, %v1869_v41  ;;  %v9114_v33 = vcombine.low %v1985_v10, %v1989_v14 }
 0x28b   :  { %5679 = vmatmul.mubr.bf16.gmra.mxu1 %v11181_v25  ;;  %5721 = vmatprep.mubr.bf16.mxu0 %v10335_v58  ;;  %v4891_v40 = vpop.f32.mrf.mxu0  ;;  %v5004_v19 = vpop.f32.mrf.mxu1  ;;  %v1981_v25 = vld [vmem:[#allocation7 + $0x9b0] sm:$0xff] }
 0x28c   :  { %v11343_v21 = vadd.f32 %v5002_v7, %v4890_v37  ;;  %5718 = vmatpush2.bf16.msra.mxu0 %v8874_v34  ;;  %5834 = vmatprep.mubr.bf16.mxu1 %v10343_v44  ;;  %v4892_v46 = vadd.f32 %v4891_v40, %v11225_v43  ;;  %v9243_v37 = vcombine.high %v2113_v60, %v2117_v9  ;;  %v1977_v34 = vld [vmem:[#allocation7 + $0x990] sm:$0xff] }
 0x28d   :  { %5831 = vmatpush2.bf16.msra.mxu1 %v9002_v54  ;;  %v4893_v45 = vpop.f32.mrf.mxu0  ;;  %5719 = vmatprep.subr.bf16.mxu0 %v8867_v53  ;;  %v5006_v58 = vpop.f32.mrf.mxu1  ;;  %v2105_v54 = vld [vmem:[#allocation7 + $0xd90] sm:$0xff] }
 0x28e   :  { %v11347_v24 = vadd.f32 %v5004_v19, %v4892_v46  ;;  %v4894_v51 = vadd.f32 %v4893_v45, %v11222_v32  ;;  %5832 = vmatprep.subr.bf16.mxu1 %v8995_v50  ;;  %v2109_v53 = vld [vmem:[#allocation7 + $0xdb0] sm:$0xff]  ;;  %v9242_v46 = vcombine.low %v2113_v60, %v2117_v9  ;;  %v9107_v19 = vcombine.high %v1977_v34, %v1981_v25 }
 0x28f   :  { %v4895_v7 = vpop.f32.mrf.mxu0  ;;  %v5008_v61 = vpop.f32.mrf.mxu1  ;;  %v1973_v45 = vld [vmem:[#allocation7 + $0x970] sm:$0xff]  ;;  %v9106_v9 = vcombine.low %v1977_v34, %v1981_v25 }
 0x290   :  { %v11350_v44 = vadd.f32 %v5006_v58, %v4894_v51  ;;  %5720 = vmatpush2.bf16.msra.mxu0 %v8866_v6  ;;  %v4896_v3 = vadd.f32 %v4895_v7, %v11225_v43  ;;  %v9235_v6 = vcombine.high %v2105_v54, %v2109_v53  ;;  %v1969_v43 = vld [vmem:[#allocation7 + $0x950] sm:$0xff] }
 0x291   :  { %5833 = vmatpush2.bf16.msra.mxu1 %v8994_v13  ;;  %v5045_v41 = vpop.f32.mrf.mxu0  ;;  %5915 = vmatprep.subr.bf16.mxu0 %v9115_v36  ;;  %v5158_v50 = vpop.f32.mrf.mxu1  ;;  %v2097_v13 = vld [vmem:[#allocation7 + $0xd50] sm:$0xff]  ;;  %v9234_v36 = vcombine.low %v2105_v54, %v2109_v53  ;;  %v9098_v34 = vcombine.low %v1969_v43, %v1973_v45 }
 0x292   :  { %v11353_v40 = vadd.f32 %v5008_v61, %v4896_v3  ;;  %v5046_v32 = vadd.f32 %v5045_v41, %v11231_v52  ;;  %6028 = vmatprep.subr.bf16.mxu1 %v9243_v37  ;;  %v2101_v52 = vld [vmem:[#allocation7 + $0xd70] sm:$0xff]  ;;  %v9099_v61 = vcombine.high %v1969_v43, %v1973_v45 }
 0x293   :  { %5722 = vmatmul.mubr.bf16.vlgmr.msra.gmra.mxu0 %v10341_v27  ;;  %v5047_v58 = vpop.f32.mrf.mxu0  ;;  %v5160_v14 = vpop.f32.mrf.mxu1  ;;  %v1961_v41 = vld [vmem:[#allocation7 + $0x910] sm:$0xff]  ;;  %v9226_v54 = vcombine.low %v2097_v13, %v2101_v52 }
 0x294   :  { %v5159_v51 = vadd.f32 %v5158_v50, %v5046_v32  ;;  %5835 = vmatmul.mubr.bf16.vlgmr.msra.gmra.mxu1 %v10349_v31  ;;  %5731 = vmatprep.mubr.bf16.mxu0 %v10397_v17  ;;  %v5048_v10 = vadd.f32 %v5047_v58, %v11235_v0  ;;  %v1965_v32 = vld [vmem:[#allocation7 + $0x930] sm:$0xff]  ;;  %v9227_v50 = vcombine.high %v2097_v13, %v2101_v52 }
 0x295   :  { %5844 = vmatprep.mubr.bf16.mxu1 %v10405_v28  ;;  %5916 = vmatpush1.bf16.msra.mxu0 %v9114_v33  ;;  %v5049_v60 = vpop.f32.mrf.mxu0  ;;  %v5162_v3 = vpop.f32.mrf.mxu1  ;;  %v2089_v33 = vld [vmem:[#allocation7 + $0xd10] sm:$0xff]  ;;  %v9091_v53 = vcombine.high %v1961_v41, %v1965_v32 }
 0x296   :  { %6029 = vmatpush1.bf16.msra.mxu1 %v9242_v46  ;;  %v5161_v37 = vadd.f32 %v5160_v14, %v5048_v10  ;;  %v5050_v7 = vadd.f32 %v5049_v60, %v11238_v39  ;;  %5917 = vmatprep.subr.bf16.mxu0 %v9107_v19  ;;  %v2093_v31 = vld [vmem:[#allocation7 + $0xd30] sm:$0xff]  ;;  %v6593_v39 = vmax.f32 %v5159_v51, 0.0 }
 0x297   :  { %6030 = vmatprep.subr.bf16.mxu1 %v9235_v6  ;;  %v5051_v0 = vpop.f32.mrf.mxu0  ;;  %v5164_v28 = vpop.f32.mrf.mxu1  ;;  %v9219_v14 = vcombine.high %v2089_v33, %v2093_v31  ;;  %v11365_v60 = vld [vmem:[#allocation7 + $0x8d0] sm:$0xff] }
 0x298   :  { %v5163_v58 = vadd.f32 %v5162_v3, %v5050_v7  ;;  %v5052_v17 = vadd.f32 %v5051_v0, %v11241_v22  ;;  %v2085_v51 = vld [vmem:[#allocation7 + $0xcf0] sm:$0xff]  ;;  %v6594_v13 = vmax.f32 %v5161_v37, 0.0  ;;  %v9218_v3 = vcombine.low %v2089_v33, %v2093_v31 }
 0x299   :  { %5918 = vmatpush1.bf16.msra.mxu0 %v9106_v9  ;;  %v5055_v25 = vpop.f32.mrf.mxu0  ;;  %v5168_v6 = vpop.f32.mrf.mxu1  ;;  %v1957_v9 = vld [vmem:[#allocation7 + $0x8f0] sm:$0xff] }
 0x29a   :  { %v6601_v46 = vmax.f32 %v5163_v58, 0.0  ;;  %6031 = vmatpush1.bf16.msra.mxu1 %v9234_v36  ;;  %v5165_v19 = vadd.f32 %v5164_v28, %v5052_v17  ;;  %v5056_v10 = vadd.f32 %v5055_v25, %v11247_v15  ;;  %5919 = vmatprep.subr.bf16.mxu0 %v9099_v61  ;;  %v2081_v15 = vld [vmem:[#allocation7 + $0xcd0] sm:$0xff]  ;;  %v9090_v36 = vcombine.low %v1961_v41, %v1965_v32 }
 0x29b   :  { %5732 = vmatmul.mubr.bf16.gmra.mxu0 %v10403_v26  ;;  %6032 = vmatprep.subr.bf16.mxu1 %v9227_v50  ;;  %v5057_v22 = vpop.f32.mrf.mxu0  ;;  %v5170_v28 = vpop.f32.mrf.mxu1  ;;  %v9083_v58 = vcombine.high %v11365_v60, %v1957_v9  ;;  %v1945_v25 = vld [vmem:[#allocation7 + $0x890] sm:$0xff] }
 0x29c   :  { %v11367_v7 = vpack.c.bf16 %v6601_v46, %v6593_v39  ;;  %v6602_v43 = vmax.f32 %v5165_v19, 0.0  ;;  %v5169_v45 = vadd.f32 %v5168_v6, %v5056_v10  ;;  %5845 = vmatmul.mubr.bf16.gmra.mxu1 %v10409_v23  ;;  %5741 = vmatprep.mubr.bf16.mxu0 %v10455_v8  ;;  %v5058_v17 = vadd.f32 %v5057_v22, %v11251_v1  ;;  %v1949_v1 = vld [vmem:[#allocation7 + $0x8b0] sm:$0xff] }
 0x29d   :  { %5854 = vmatprep.mubr.bf16.mxu1 %v10466_v2  ;;  %5920 = vmatpush1.bf16.msra.mxu0 %v9098_v34  ;;  %v5059_v52 = vpop.f32.mrf.mxu0  ;;  %v5172_v50 = vpop.f32.mrf.mxu1  ;;  %v9211_v46 = vcombine.high %v2081_v15, %v2085_v51  ;;  %v2073_v31 = vld [vmem:[#allocation7 + $0xc90] sm:$0xff] }
 0x29e   :  { %12813 = vst [vmem:[#allocation88_spill] sm:$0xff] %v11367_v7  ;;  %6033 = vmatpush1.bf16.msra.mxu1 %v9226_v54  ;;  %v5171_v61 = vadd.f32 %v5170_v28, %v5058_v17  ;;  %v5060_v0 = vadd.f32 %v5059_v52, %v11254_v59  ;;  %5921 = vmatprep.subr.bf16.mxu0 %v9091_v53  ;;  %v2077_v32 = vld [vmem:[#allocation7 + $0xcb0] sm:$0xff]  ;;  %v6609_v10 = vmax.f32 %v5169_v45, 0.0 }
 0x29f   :  { %6034 = vmatprep.subr.bf16.mxu1 %v9219_v14  ;;  %v5061_v39 = vpop.f32.mrf.mxu0  ;;  %v11375_v37 = vpack.c.bf16 %v6602_v43, %v6594_v13  ;;  %v5174_v41 = vpop.f32.mrf.mxu1  ;;  %v9082_v59 = vcombine.low %v11365_v60, %v1957_v9  ;;  %v9210_v54 = vcombine.low %v2081_v15, %v2085_v51  ;;  %v9075_v53 = vcombine.high %v1945_v25, %v1949_v1  ;;  %v11381_v28 = vld [vmem:[#allocation7 + $0x850] sm:$0xff] }
 0x2a0   :  { %v5173_v19 = vadd.f32 %v5172_v50, %v5060_v0  ;;  %v5062_v34 = vadd.f32 %v5061_v39, %v11257_v62  ;;  %v9203_v17 = vcombine.high %v2073_v31, %v2077_v32  ;;  %v1941_v13 = vld [vmem:[#allocation7 + $0x870] sm:$0xff]  ;;  %v9074_v0 = vcombine.low %v1945_v25, %v1949_v1 }
 0x2a1   :  { %12814 = vst [vmem:[#allocation89_spill] sm:$0xff] %v11375_v37  ;;  %5922 = vmatpush1.bf16.msra.mxu0 %v9090_v36  ;;  %v5065_v33 = vpop.f32.mrf.mxu0  ;;  %v5178_v43 = vpop.f32.mrf.mxu1  ;;  %v2065_v15 = vld [vmem:[#allocation7 + $0xc50] sm:$0xff]  ;;  %v6610_v36 = vmax.f32 %v5171_v61, 0.0  ;;  %v9202_v50 = vcombine.low %v2073_v31, %v2077_v32 }
 0x2a2   :  { %v6617_v6 = vmax.f32 %v5173_v19, 0.0  ;;  %6035 = vmatpush1.bf16.msra.mxu1 %v9218_v3  ;;  %v5175_v22 = vadd.f32 %v5174_v41, %v5062_v34  ;;  %v5066_v14 = vadd.f32 %v5065_v33, %v11263_v29  ;;  %5923 = vmatprep.subr.bf16.mxu0 %v9083_v58  ;;  %v2069_v51 = vld [vmem:[#allocation7 + $0xc70] sm:$0xff]  ;;  %v9067_v19 = vcombine.high %v11381_v28, %v1941_v13 }
 0x2a3   :  { %5742 = vmatmul.mubr.bf16.gmra.mxu0 %v10464_v30  ;;  %6036 = vmatprep.subr.bf16.mxu1 %v9211_v46  ;;  %v5067_v62 = vpop.f32.mrf.mxu0  ;;  %v5180_v45 = vpop.f32.mrf.mxu1  ;;  %v1929_v34 = vld [vmem:[#allocation7 + $0x810] sm:$0xff]  ;;  %v9195_v33 = vcombine.high %v2065_v15, %v2069_v51 }
 0x2a4   :  { %v11383_v52 = vpack.c.bf16 %v6617_v6, %v6609_v10  ;;  %v6618_v60 = vmax.f32 %v5175_v22, 0.0  ;;  %v5179_v9 = vadd.f32 %v5178_v43, %v5066_v14  ;;  %5855 = vmatmul.mubr.bf16.gmra.mxu1 %v10473_v48  ;;  %5751 = vmatprep.mubr.bf16.mxu0 %v10519_v4  ;;  %v5068_v29 = vadd.f32 %v5067_v62, %v11267_v18  ;;  %v1933_v18 = vld [vmem:[#allocation7 + $0x830] sm:$0xff] }
 0x2a5   :  { %5864 = vmatprep.mubr.bf16.mxu1 %v10530_v5  ;;  %5924 = vmatpush1.bf16.msra.mxu0 %v9082_v59  ;;  %v5069_v3 = vpop.f32.mrf.mxu0  ;;  %v5182_v46 = vpop.f32.mrf.mxu1  ;;  %v2057_v1 = vld [vmem:[#allocation7 + $0xc10] sm:$0xff] }
 0x2a6   :  { %12815 = vst [vmem:[#allocation90_spill] sm:$0xff] %v11383_v52  ;;  %6037 = vmatpush1.bf16.msra.mxu1 %v9210_v54  ;;  %v5181_v58 = vadd.f32 %v5180_v45, %v5068_v29  ;;  %v5070_v39 = vadd.f32 %v5069_v3, %v11270_v12  ;;  %5925 = vmatprep.subr.bf16.mxu0 %v9075_v53  ;;  %v2061_v31 = vld [vmem:[#allocation7 + $0xc30] sm:$0xff]  ;;  %v6625_v6 = vmax.f32 %v5179_v9, 0.0 }
 0x2a7   :  { %6038 = vmatprep.subr.bf16.mxu1 %v9203_v17  ;;  %v5071_v41 = vpop.f32.mrf.mxu0  ;;  %v11391_v61 = vpack.c.bf16 %v6618_v60, %v6610_v36  ;;  %v5184_v25 = vpop.f32.mrf.mxu1  ;;  %v9066_v12 = vcombine.low %v11381_v28, %v1941_v13  ;;  %v9194_v54 = vcombine.low %v2065_v15, %v2069_v51  ;;  %v9059_v53 = vcombine.high %v1929_v34, %v1933_v18  ;;  %v11397_v60 = vld [vmem:[#allocation7 + $0xbd0] sm:$0xff]  ;;  %v12819_v15 = vld [vmem:[#allocation33_spill] sm:$0xff] }
 0x2a8   :  { %v5183_v10 = vadd.f32 %v5182_v46, %v5070_v39  ;;  %v5072_v59 = vadd.f32 %v5071_v41, %v11273_v38  ;;  %v9187_v17 = vcombine.high %v2057_v1, %v2061_v31  ;;  %v2053_v29 = vld [vmem:[#allocation7 + $0xbf0] sm:$0xff]  ;;  %v12820_v51 = vld [vmem:[#allocation81_spill] sm:$0xff]  ;;  %v12821_v39 = vld [vmem:[#allocation35_spill] sm:$0xff]  ;;  %v9186_v41 = vcombine.low %v2057_v1, %v2061_v31 }
 0x2a9   :  { %12816 = vst [vmem:[#allocation91_spill] sm:$0xff] %v11391_v61  ;;  %5926 = vmatpush1.bf16.msra.mxu0 %v9074_v0  ;;  %v5075_v32 = vpop.f32.mrf.mxu0  ;;  %v5188_v62 = vpop.f32.mrf.mxu1  ;;  %v12818_v9 = vld [vmem:[#allocation32_spill] sm:$0xff] }
 0x2aa   :  { %v6633_v22 = vmax.f32 %v5183_v10, 0.0  ;;  %6039 = vmatpush1.bf16.msra.mxu1 %v9202_v50  ;;  %v5185_v14 = vadd.f32 %v5184_v25, %v5072_v59  ;;  %v5076_v43 = vadd.f32 %v5075_v32, %v11279_v20  ;;  %5927 = vmatprep.subr.bf16.mxu0 %v9067_v19  ;;  %v2177_v3 = vld [vmem:[#allocation7 + $0xfd0] sm:$0xff]  ;;  %v6626_v50 = vmax.f32 %v5181_v58, 0.0  ;;  %v12822_v10 = vld [vmem:[#allocation82_spill] sm:$0xff] }
 0x2ab   :  { %5752 = vmatmul.mubr.bf16.gmra.mxu0 %v10528_v56  ;;  %6040 = vmatprep.subr.bf16.mxu1 %v9195_v33  ;;  %v5077_v38 = vpop.f32.mrf.mxu0  ;;  %v5190_v36 = vpop.f32.mrf.mxu1  ;;  %v2181_v0 = vld [vmem:[#allocation7 + $0xff0] sm:$0xff]  ;;  %v9058_v19 = vcombine.low %v1929_v34, %v1933_v18  ;;  %v9179_v32 = vcombine.high %v11397_v60, %v2053_v29 }
 0x2ac   :  { %v11399_v45 = vpack.c.bf16 %v6633_v22, %v6625_v6  ;;  %v6634_v28 = vmax.f32 %v5185_v14, 0.0  ;;  %v5189_v13 = vadd.f32 %v5188_v62, %v5076_v43  ;;  %5865 = vmatmul.mubr.bf16.gmra.mxu1 %v12818_v9  ;;  %5761 = vmatprep.mubr.bf16.mxu0 %v12819_v15  ;;  %v5078_v20 = vadd.f32 %v5077_v38, %v12820_v51  ;;  %v2041_v6 = vld [vmem:[#allocation7 + $0xb90] sm:$0xff] }
 0x2ad   :  { %5874 = vmatprep.mubr.bf16.mxu1 %v12821_v39  ;;  %5928 = vmatpush1.bf16.msra.mxu0 %v9066_v12  ;;  %v5079_v46 = vpop.f32.mrf.mxu0  ;;  %v5192_v25 = vpop.f32.mrf.mxu1  ;;  %v2045_v22 = vld [vmem:[#allocation7 + $0xbb0] sm:$0xff]  ;;  %v9307_v43 = vcombine.high %v2177_v3, %v2181_v0  ;;  %v12824_v12 = vld [vmem:[#allocation83_spill] sm:$0xff] }
 0x2ae   :  { %12817 = vst [vmem:[#allocation92_spill] sm:$0xff] %v11399_v45  ;;  %6041 = vmatpush1.bf16.msra.mxu1 %v9194_v54  ;;  %v5191_v33 = vadd.f32 %v5190_v36, %v5078_v20  ;;  %v5080_v59 = vadd.f32 %v5079_v46, %v12822_v10  ;;  %5929 = vmatprep.subr.bf16.mxu0 %v9059_v53  ;;  %v2169_v18 = vld [vmem:[#allocation7 + $0xf90] sm:$0xff]  ;;  %v6641_v20 = vmax.f32 %v5189_v13, 0.0 }
 0x2af   :  { %6042 = vmatprep.subr.bf16.mxu1 %v9187_v17  ;;  %v5081_v14 = vpop.f32.mrf.mxu0  ;;  %v11407_v58 = vpack.c.bf16 %v6634_v28, %v6626_v50  ;;  %v5194_v34 = vpop.f32.mrf.mxu1  ;;  %v2173_v1 = vld [vmem:[#allocation7 + $0xfb0] sm:$0xff]  ;;  %v9178_v54 = vcombine.low %v11397_v60, %v2053_v29  ;;  %v9306_v53 = vcombine.low %v2177_v3, %v2181_v0  ;;  %v9171_v51 = vcombine.high %v2041_v6, %v2045_v22  ;;  %v12826_v50 = vld [vmem:[#allocation34_spill] sm:$0xff]  ;;  %v12829_v3 = vld [vmem:[#allocation37_spill] sm:$0xff] }
 0x2b0   :  { %v5193_v62 = vadd.f32 %v5192_v25, %v5080_v59  ;;  %v5082_v38 = vadd.f32 %v5081_v14, %v12824_v12  ;;  %v12825_v46 = vld [vmem:[#allocation84_spill] sm:$0xff]  ;;  %v9299_v25 = vcombine.high %v2169_v18, %v2173_v1 }
 0x2b1   :  { %12823 = vst [vmem:[#allocation32_spill] sm:$0xff] %v11407_v58  ;;  %5930 = vmatpush1.bf16.msra.mxu0 %v9058_v19  ;;  %v5085_v31 = vpop.f32.mrf.mxu0  ;;  %v5198_v28 = vpop.f32.mrf.mxu1  ;;  %v11413_v14 = vld [vmem:[#allocation7 + $0xb50] sm:$0xff] }
 0x2b2   :  { %v6649_v36 = vmax.f32 %v5193_v62, 0.0  ;;  %6043 = vmatpush1.bf16.msra.mxu1 %v9186_v41  ;;  %v5195_v17 = vadd.f32 %v5194_v34, %v5082_v38  ;;  %v5086_v10 = vadd.f32 %v5085_v31, %v12825_v46  ;;  %5931 = vmatprep.subr.bf16.mxu0 %v9179_v32  ;;  %v2037_v19 = vld [vmem:[#allocation7 + $0xb70] sm:$0xff]  ;;  %v6642_v38 = vmax.f32 %v5191_v33, 0.0 }
 0x2b3   :  { %5762 = vmatmul.mubr.bf16.gmra.mxu0 %v12826_v50  ;;  %6044 = vmatprep.subr.bf16.mxu1 %v9307_v43  ;;  %v5087_v59 = vpop.f32.mrf.mxu0  ;;  %v12828_v13 = vld [vmem:[#allocation36_spill] sm:$0xff]  ;;  %v5200_v41 = vpop.f32.mrf.mxu1  ;;  %v12830_v43 = vld [vmem:[#allocation39_spill] sm:$0xff]  ;;  %v9170_v31 = vcombine.low %v2041_v6, %v2045_v22  ;;  %v9298_v46 = vcombine.low %v2169_v18, %v2173_v1 }
 0x2b4   :  { %v11415_v12 = vpack.c.bf16 %v6649_v36, %v6641_v20  ;;  %v6650_v60 = vmax.f32 %v5195_v17, 0.0  ;;  %v5199_v29 = vadd.f32 %v5198_v28, %v5086_v10  ;;  %5875 = vmatmul.mubr.bf16.gmra.mxu1 %v12828_v13  ;;  %5771 = vmatprep.mubr.bf16.mxu0 %v12829_v3  ;;  %v5088_v0 = vadd.f32 %v5087_v59, %v11299_v11  ;;  %v2161_v32 = vld [vmem:[#allocation7 + $0xf50] sm:$0xff]  ;;  %v12831_v36 = vld [vmem:[#allocation85_spill] sm:$0xff] }
 0x2b5   :  { %v2165_v62 = vld [vmem:[#allocation7 + $0xf70] sm:$0xff]  ;;  %5884 = vmatprep.mubr.bf16.mxu1 %v12830_v43  ;;  %5932 = vmatpush2.bf16.msra.mxu0 %v9178_v54  ;;  %v5089_v34 = vpop.f32.mrf.mxu0  ;;  %v5202_v10 = vpop.f32.mrf.mxu1  ;;  %v9163_v28 = vcombine.high %v11413_v14, %v2037_v19  ;;  %v1902_v43 = vld [vmem:[#allocation7 + $0x738] sm:$0xff] }
 0x2b6   :  { %12827 = vst [vmem:[#allocation33_spill] sm:$0xff] %v11415_v12  ;;  %6045 = vmatpush2.bf16.msra.mxu1 %v9306_v53  ;;  %v5201_v20 = vadd.f32 %v5200_v41, %v5088_v0  ;;  %v5090_v17 = vadd.f32 %v5089_v34, %v12831_v36  ;;  %5933 = vmatprep.subr.bf16.mxu0 %v9171_v51  ;;  %v2025_v12 = vld [vmem:[#allocation7 + $0xb10] sm:$0xff]  ;;  %v6657_v41 = vmax.f32 %v5199_v29, 0.0  ;;  %v12833_v36 = vld [vmem:[#allocation86_spill] sm:$0xff] }
 0x2b7   :  { %v2029_v11 = vld [vmem:[#allocation7 + $0xb30] sm:$0xff]  ;;  %6046 = vmatprep.subr.bf16.mxu1 %v9299_v25  ;;  %v5091_v59 = vpop.f32.mrf.mxu0  ;;  %v9291_v45 = vcombine.high %v2161_v32, %v2165_v62  ;;  %v11423_v33 = vpack.c.bf16 %v6650_v60, %v6642_v38  ;;  %v5204_v6 = vpop.f32.mrf.mxu1  ;;  %v9162_v53 = vcombine.low %v11413_v14, %v2037_v19  ;;  %v9290_v51 = vcombine.low %v2161_v32, %v2165_v62  ;;  %v12834_v38 = vld [vmem:[#allocation38_spill] sm:$0xff] }
 0x2b8   :  { %v5203_v58 = vadd.f32 %v5202_v10, %v5090_v17  ;;  %v5092_v54 = vadd.f32 %v5091_v59, %v11305_v42  ;;  %v2153_v22 = vld [vmem:[#allocation7 + $0xf10] sm:$0xff]  ;;  %v9155_v0 = vcombine.high %v2025_v12, %v2029_v11 }
 0x2b9   :  { %12832 = vst [vmem:[#allocation81_spill] sm:$0xff] %v11423_v33  ;;  %v2157_v18 = vld [vmem:[#allocation7 + $0xf30] sm:$0xff]  ;;  %5934 = vmatpush2.bf16.msra.mxu0 %v9170_v31  ;;  %v5095_v1 = vpop.f32.mrf.mxu0  ;;  %v5208_v60 = vpop.f32.mrf.mxu1 }
 0x2ba   :  { %v6665_v34 = vmax.f32 %v5203_v58, 0.0  ;;  %6047 = vmatpush2.bf16.msra.mxu1 %v9298_v46  ;;  %v5205_v25 = vadd.f32 %v5204_v6, %v5092_v54  ;;  %v5096_v52 = vadd.f32 %v5095_v1, %v12833_v36  ;;  %5935 = vmatprep.subr.bf16.mxu0 %v9163_v28  ;;  %v9283_v17 = vcombine.high %v2153_v22, %v2157_v18  ;;  %v11429_v10 = vld [vmem:[#allocation7 + $0xad0] sm:$0xff]  ;;  %v12837_v58 = vld [vmem:[#allocation41_spill] sm:$0xff] }
 0x2bb   :  { %5772 = vmatmul.mubr.bf16.gmra.mxu0 %v12834_v38  ;;  %6048 = vmatprep.subr.bf16.mxu1 %v9291_v45  ;;  %v5097_v42 = vpop.f32.mrf.mxu0  ;;  %v2021_v31 = vld [vmem:[#allocation7 + $0xaf0] sm:$0xff]  ;;  %v5210_v62 = vpop.f32.mrf.mxu1  ;;  %v6658_v54 = vmax.f32 %v5201_v20, 0.0  ;;  %v12838_v45 = vld [vmem:[#allocation43_spill] sm:$0xff]  ;;  %v9154_v1 = vcombine.low %v2025_v12, %v2029_v11  ;;  %v9282_v36 = vcombine.low %v2153_v22, %v2157_v18 }
 0x2bc   :  { %v11431_v59 = vpack.c.bf16 %v6665_v34, %v6657_v41  ;;  %v6666_v14 = vmax.f32 %v5205_v25, 0.0  ;;  %v5209_v19 = vadd.f32 %v5208_v60, %v5096_v52  ;;  %v12836_v29 = vld [vmem:[#allocation40_spill] sm:$0xff]  ;;  %5781 = vmatprep.mubr.bf16.mxu0 %v12837_v58  ;;  %v5098_v32 = vadd.f32 %v5097_v42, %v11315_v57 }
 0x2bd   :  { %5885 = vmatmul.mubr.bf16.gmra.mxu1 %v12836_v29  ;;  %v2145_v46 = vld [vmem:[#allocation7 + $0xed0] sm:$0xff]  ;;  %5936 = vmatpush2.bf16.msra.mxu0 %v9162_v53  ;;  %v5099_v6 = vpop.f32.mrf.mxu0  ;;  %v5212_v34 = vpop.f32.mrf.mxu1  ;;  %v9147_v25 = vcombine.high %v11429_v10, %v2021_v31 }
 0x2be   :  { %12835 = vst [vmem:[#allocation35_spill] sm:$0xff] %v11431_v59  ;;  %v2149_v28 = vld [vmem:[#allocation7 + $0xef0] sm:$0xff]  ;;  %5894 = vmatprep.mubr.bf16.mxu1 %v12838_v45  ;;  %6049 = vmatpush2.bf16.msra.mxu1 %v9290_v51  ;;  %v5211_v41 = vadd.f32 %v5210_v62, %v5098_v32  ;;  %v5100_v52 = vadd.f32 %v5099_v6, %v11318_v63  ;;  %v6673_v32 = vmax.f32 %v5209_v19, 0.0  ;;  %v12840_v6 = vld [vmem:[#allocation87_spill] sm:$0xff]  ;;  %v1918_v45 = vld [vmem:[#allocation7 + $0x7b8] sm:$0xff] }
 0x2bf   :  { %5937 = vmatprep.subr.bf16.mxu0 %v9155_v0  ;;  %v2009_v60 = vld [vmem:[#allocation7 + $0xa90] sm:$0xff]  ;;  %6050 = vmatprep.subr.bf16.mxu1 %v9283_v17  ;;  %v5101_v42 = vpop.f32.mrf.mxu0  ;;  %v9275_v59 = vcombine.high %v2145_v46, %v2149_v28  ;;  %v11439_v20 = vpack.c.bf16 %v6666_v14, %v6658_v54  ;;  %v5214_v12 = vpop.f32.mrf.mxu1  ;;  %v9146_v63 = vcombine.low %v11429_v10, %v2021_v31  ;;  %v12841_v54 = vld [vmem:[#allocation42_spill] sm:$0xff] }
 0x2c0   :  { %v2013_v57 = vld [vmem:[#allocation7 + $0xab0] sm:$0xff]  ;;  %v5213_v33 = vadd.f32 %v5212_v34, %v5100_v52  ;;  %v5102_v53 = vadd.f32 %v5101_v42, %v11321_v35  ;;  %v9274_v51 = vcombine.low %v2145_v46, %v2149_v28 }
 0x2c1   :  { %12839 = vst [vmem:[#allocation82_spill] sm:$0xff] %v11439_v20  ;;  %v2137_v11 = vld [vmem:[#allocation7 + $0xe90] sm:$0xff]  ;;  %5938 = vmatpush2.bf16.msra.mxu0 %v9154_v1  ;;  %v5105_v18 = vpop.f32.mrf.mxu0  ;;  %v9139_v0 = vcombine.high %v2009_v60, %v2013_v57  ;;  %v5218_v14 = vpop.f32.mrf.mxu1 }
 0x2c2   :  { %v2141_v22 = vld [vmem:[#allocation7 + $0xeb0] sm:$0xff]  ;;  %v6681_v62 = vmax.f32 %v5213_v33, 0.0  ;;  %6051 = vmatpush2.bf16.msra.mxu1 %v9282_v36  ;;  %v5215_v17 = vadd.f32 %v5214_v12, %v5102_v53  ;;  %v5106_v61 = vadd.f32 %v5105_v18, %v12840_v6  ;;  %5939 = vmatprep.subr.bf16.mxu0 %v9147_v25  ;;  %v12844_v33 = vld [vmem:[#allocation45_spill] sm:$0xff]  ;;  %v6674_v53 = vmax.f32 %v5211_v41, 0.0  ;;  %v12845_v12 = vld [vmem:[#allocation47_spill] sm:$0xff] }
 0x2c3   :  { %5782 = vmatmul.mubr.bf16.gmra.mxu0 %v12841_v54  ;;  %6052 = vmatprep.subr.bf16.mxu1 %v9275_v59  ;;  %v5107_v35 = vpop.f32.mrf.mxu0  ;;  %v9267_v52 = vcombine.high %v2137_v11, %v2141_v22  ;;  %v2001_v34 = vld [vmem:[#allocation7 + $0xa50] sm:$0xff]  ;;  %v5220_v28 = vpop.f32.mrf.mxu1  ;;  %v9138_v18 = vcombine.low %v2009_v60, %v2013_v57  ;;  %v9266_v6 = vcombine.low %v2137_v11, %v2141_v22 }
 0x2c4   :  { %v2005_v1 = vld [vmem:[#allocation7 + $0xa70] sm:$0xff]  ;;  %v11445_v42 = vpack.c.bf16 %v6681_v62, %v6673_v32  ;;  %v6682_v10 = vmax.f32 %v5215_v17, 0.0  ;;  %v5219_v31 = vadd.f32 %v5218_v14, %v5106_v61  ;;  %5791 = vmatprep.mubr.bf16.mxu0 %v12844_v33  ;;  %v5108_v19 = vadd.f32 %v5107_v35, %v11331_v16 }
 0x2c5   :  { %v12843_v46 = vld [vmem:[#allocation44_spill] sm:$0xff]  ;;  %5940 = vmatpush2.bf16.msra.mxu0 %v9146_v63  ;;  %v5109_v59 = vpop.f32.mrf.mxu0  ;;  %v5222_v62 = vpop.f32.mrf.mxu1  ;;  %v9131_v17 = vcombine.high %v2001_v34, %v2005_v1 }
 0x2c6   :  { %12842 = vst [vmem:[#allocation83_spill] sm:$0xff] %v11445_v42  ;;  %5895 = vmatmul.mubr.bf16.gmra.mxu1 %v12843_v46  ;;  %v2129_v36 = vld [vmem:[#allocation7 + $0xe50] sm:$0xff]  ;;  %v5221_v32 = vadd.f32 %v5220_v28, %v5108_v19  ;;  %v5110_v61 = vadd.f32 %v5109_v59, %v11334_v49  ;;  %5941 = vmatprep.subr.bf16.mxu0 %v9139_v0  ;;  %v6689_v28 = vmax.f32 %v5219_v31, 0.0 }
 0x2c7   :  { %v2133_v25 = vld [vmem:[#allocation7 + $0xe70] sm:$0xff]  ;;  %5904 = vmatprep.mubr.bf16.mxu1 %v12845_v12  ;;  %6053 = vmatpush2.bf16.msra.mxu1 %v9274_v51  ;;  %v5111_v35 = vpop.f32.mrf.mxu0  ;;  %v11456_v42 = vpack.c.bf16 %v6682_v10, %v6674_v53  ;;  %v5224_v57 = vpop.f32.mrf.mxu1  ;;  %v9130_v51 = vcombine.low %v2001_v34, %v2005_v1  ;;  %v1806_v12 = vld [vmem:[#allocation7 + $0x438] sm:$0xff] }
 0x2c8   :  { %v11452_v14 = vld [vmem:[#allocation7 + $0xa10] sm:$0xff]  ;;  %6054 = vmatprep.subr.bf16.mxu1 %v9267_v52  ;;  %v9259_v41 = vcombine.high %v2129_v36, %v2133_v25  ;;  %v5223_v63 = vadd.f32 %v5222_v62, %v5110_v61  ;;  %v5112_v60 = vadd.f32 %v5111_v35, %v11337_v47  ;;  %v9258_v0 = vcombine.low %v2129_v36, %v2133_v25  ;;  %v11462_v61 = vld [vmem:[#allocation7 + $0x1d8] sm:$0xff]  ;;  %v12847_v62 = vld [vmem:[#allocation46_spill] sm:$0xff] }
 0x2c9   :  { %v11454_v16 = vld [vmem:[#allocation7 + $0xa30] sm:$0xff]  ;;  %12846 = vst [vmem:[#allocation84_spill] sm:$0xff] %v11456_v42  ;;  %5942 = vmatpush2.bf16.msra.mxu0 %v9138_v18  ;;  %v5115_v49 = vpop.f32.mrf.mxu0  ;;  %v5228_v53 = vpop.f32.mrf.mxu1  ;;  %v11464_v47 = vld [vmem:[#allocation7 + $0x1f8] sm:$0xff] }
 0x2ca   :  { %v2121_v11 = vld [vmem:[#allocation7 + $0xe10] sm:$0xff]  ;;  %v9123_v19 = vcombine.high %v11452_v14, %v11454_v16  ;;  %v6697_v59 = vmax.f32 %v5223_v63, 0.0  ;;  %v5225_v52 = vadd.f32 %v5224_v57, %v5112_v60  ;;  %v5116_v10 = vadd.f32 %v5115_v49, %v11343_v21  ;;  %5943 = vmatprep.subr.bf16.mxu0 %v9131_v17  ;;  %v11472_v35 = vld [vmem:[#allocation7 + $0x5d8] sm:$0xff] }
 0x2cb   :  { %v2125_v22 = vld [vmem:[#allocation7 + $0xe30] sm:$0xff]  ;;  %6055 = vmatpush2.bf16.msra.mxu1 %v9266_v6  ;;  %5792 = vmatmul.mubr.bf16.gmra.mxu0 %v12847_v62  ;;  %v5117_v34 = vpop.f32.mrf.mxu0  ;;  %v12850_v6 = vld [vmem:[#allocation49_spill] sm:$0xff]  ;;  %v5230_v17 = vpop.f32.mrf.mxu1  ;;  %v6690_v60 = vmax.f32 %v5221_v32, 0.0  ;;  %v9122_v49 = vcombine.low %v11452_v14, %v11454_v16  ;;  %v8860_v42 = vcombine.low %v11462_v61, %v11464_v47 }
 0x2cc   :  { %6056 = vmatprep.subr.bf16.mxu1 %v9259_v41  ;;  %v9251_v1 = vcombine.high %v2121_v11, %v2125_v22  ;;  %v11467_v36 = vpack.c.bf16 %v6697_v59, %v6689_v28  ;;  %v6698_v25 = vmax.f32 %v5225_v52, 0.0  ;;  %v5229_v31 = vadd.f32 %v5228_v53, %v5116_v10  ;;  %v12849_v18 = vld [vmem:[#allocation48_spill] sm:$0xff]  ;;  %5947 = vmatprep.mubr.bf16.mxu0 %v12850_v6  ;;  %v11474_v63 = vld [vmem:[#allocation7 + $0x5f8] sm:$0xff]  ;;  %v12851_v41 = vld [vmem:[#allocation51_spill] sm:$0xff] }
 0x2cd   :  { %v5118_v21 = vadd.f32 %v5117_v34, %v11347_v24  ;;  %5944 = vmatpush2.bf16.msra.mxu0 %v9130_v51  ;;  %v5119_v57 = vpop.f32.mrf.mxu0  ;;  %v9250_v28 = vcombine.low %v2121_v11, %v2125_v22  ;;  %v8861_v59 = vcombine.high %v11462_v61, %v11464_v47  ;;  %v5232_v10 = vpop.f32.mrf.mxu1  ;;  %v9834_v53 = vld [vmem:[#allocation9] sm:$0xff]  ;;  %v12852_v34 = vld [vmem:[#allocation24_spill] sm:$0xff]  ;;  %v8989_v14 = vcombine.high %v11472_v35, %v11474_v63  ;;  %v1722_v16 = vld [vmem:[#allocation7 + $0x198] sm:$0xff] }
 0x2ce   :  { %12848 = vst [vmem:[#allocation34_spill] sm:$0xff] %v11467_v36  ;;  %5905 = vmatmul.mubr.bf16.gmra.mxu1 %v12849_v18  ;;  %v5120_v24 = vadd.f32 %v5119_v57, %v11350_v44  ;;  %5945 = vmatprep.subr.bf16.mxu0 %v9123_v19  ;;  %v12853_v32 = vsub.s32 2, %v12852_v34  ;;  %v11488_v11 = vpack.c.bf16 %v6698_v25, %v6690_v60  ;;  %v12855_v44 = vsub.s32 3, %v12852_v34  ;;  %v1850_v57 = vld [vmem:[#allocation7 + $0x598] sm:$0xff]  ;;  %v12857_v47 = vld [vmem:[#allocation50_spill] sm:$0xff]  ;;  %v12867_v6 = vld [vmem:[#allocation60_spill] sm:$0xff] }
 0x2cf   :  { %6060 = vmatprep.mubr.bf16.mxu1 %v12851_v41  ;;  %6057 = vmatpush2.bf16.msra.mxu1 %v9258_v0  ;;  %v5231_v52 = vadd.f32 %v5230_v17, %v5118_v21  ;;  %v5121_v36 = vpop.f32.mrf.mxu0  ;;  %v5234_v21 = vpop.f32.mrf.mxu1  ;;  %v1726_v17 = vld [vmem:[#allocation7 + $0x1b8] sm:$0xff]  ;;  %v6705_v20 = vmax.f32 %v5229_v31, 0.0  ;;  %v12871_v33 = vld [vmem:[#allocation64_spill] sm:$0xff] }
 0x2d0   :  { %v11484_v51 = vrot.slane %v9834_v53, %v12853_v32  ;;  %6058 = vmatprep.subr.bf16.mxu1 %v9251_v1  ;;  %12854 = vst [vmem:[#allocation36_spill] sm:$0xff] %v11488_v11  ;;  %v5233_v22 = vadd.f32 %v5232_v10, %v5120_v24  ;;  %v5122_v0 = vadd.f32 %v5121_v36, %v11353_v40  ;;  %v1854_v32 = vld [vmem:[#allocation7 + $0x5b8] sm:$0xff]  ;;  %v12875_v58 = vld [vmem:[#allocation68_spill] sm:$0xff] }
 0x2d1   :  { %v11493_v19 = vrot.slane %v9834_v53, %v12855_v44  ;;  %5946 = vmatpush2.bf16.msra.mxu0 %v9122_v49  ;;  %v5271_v1 = vpop.f32.mrf.mxu0  ;;  %v6706_v36 = vmax.f32 %v5231_v52, 0.0  ;;  %v8988_v24 = vcombine.low %v11472_v35, %v11474_v63  ;;  %v8853_v53 = vcombine.high %v1722_v16, %v1726_v17  ;;  %v12858_v52 = vld [vmem:[#allocation52_spill] sm:$0xff]  ;;  %v1822_v41 = vld [vmem:[#allocation7 + $0x4b8] sm:$0xff] }
 0x2d2   :  { %v6713_v7 = vmax.f32 %v5233_v22, 0.0  ;;  %v5235_v25 = vadd.f32 %v5234_v21, %v5122_v0  ;;  %v5272_v60 = vadd.f32 %v5271_v1, %v11484_v51  ;;  %v5384_v40 = vpop.f32.mrf.mxu1  ;;  %6141 = vmatprep.subr.bf16.mxu0 %v8861_v59  ;;  %v8981_v49 = vcombine.high %v1850_v57, %v1854_v32  ;;  %v1714_v22 = vld [vmem:[#allocation7 + $0x158] sm:$0xff] }
 0x2d3   :  { %6059 = vmatpush2.bf16.msra.mxu1 %v9250_v28  ;;  %v5273_v10 = vpop.f32.mrf.mxu0  ;;  %v1718_v59 = vld [vmem:[#allocation7 + $0x178] sm:$0xff]  ;;  %v8852_v63 = vcombine.low %v1722_v16, %v1726_v17 }
 0x2d4   :  { %6254 = vmatprep.subr.bf16.mxu1 %v8989_v14  ;;  %v11500_v44 = vpack.c.bf16 %v6713_v7, %v6705_v20  ;;  %v6714_v11 = vmax.f32 %v5235_v25, 0.0  ;;  %v11502_v61 = vadd.f32 %v5384_v40, %v5272_v60  ;;  %5948 = vmatmul.mubr.bf16.vlgmr.msra.gmra.mxu0 %v12857_v47  ;;  %v5274_v31 = vadd.f32 %v5273_v10, %v11493_v19  ;;  %v5386_v28 = vpop.f32.mrf.mxu1  ;;  %v12859_v0 = vld [vmem:[#allocation53_spill] sm:$0xff]  ;;  %v12860_v7 = vld [vmem:[#allocation55_spill] sm:$0xff] }
 0x2d5   :  { %5957 = vmatprep.mubr.bf16.mxu0 %v12859_v0  ;;  %v5275_v35 = vpop.f32.mrf.mxu0  ;;  %v1842_v14 = vld [vmem:[#allocation7 + $0x558] sm:$0xff]  ;;  %6142 = vmatpush1.bf16.msra.mxu0 %v8860_v42  ;;  %v8980_v40 = vcombine.low %v1850_v57, %v1854_v32  ;;  %v8844_v32 = vcombine.low %v1714_v22, %v1718_v59 }
 0x2d6   :  { %12856 = vst [vmem:[#allocation37_spill] sm:$0xff] %v11500_v44  ;;  %6061 = vmatmul.mubr.bf16.vlgmr.msra.gmra.mxu1 %v12858_v52  ;;  %v1846_v21 = vld [vmem:[#allocation7 + $0x578] sm:$0xff]  ;;  %v11509_v20 = vadd.f32 %v5386_v28, %v5274_v31  ;;  %v5276_v1 = vadd.f32 %v5275_v35, %v11484_v51  ;;  %v5388_v25 = vpop.f32.mrf.mxu1  ;;  %v11512_v60 = vpack.c.bf16 %v6714_v11, %v6706_v36  ;;  %v12863_v52 = vld [vmem:[#allocation56_spill] sm:$0xff] }
 0x2d7   :  { %6070 = vmatprep.mubr.bf16.mxu1 %v12860_v7  ;;  %6255 = vmatpush1.bf16.msra.mxu1 %v8988_v24  ;;  %v5277_v10 = vpop.f32.mrf.mxu0  ;;  %v8845_v44 = vcombine.high %v1714_v22, %v1718_v59  ;;  %v8973_v7 = vcombine.high %v1842_v14, %v1846_v21  ;;  %v1706_v42 = vld [vmem:[#allocation7 + $0x118] sm:$0xff]  ;;  %v8972_v24 = vcombine.low %v1842_v14, %v1846_v21  ;;  %v12865_v14 = vld [vmem:[#allocation59_spill] sm:$0xff] }
 0x2d8   :  { %12861 = vst [vmem:[#allocation85_spill] sm:$0xff] %v11512_v60  ;;  %6143 = vmatprep.subr.bf16.mxu0 %v8853_v53  ;;  %v11514_v37 = vadd.f32 %v5388_v25, %v5276_v1  ;;  %6256 = vmatprep.subr.bf16.mxu1 %v8981_v49  ;;  %v5278_v16 = vadd.f32 %v5277_v10, %v11493_v19  ;;  %v5390_v17 = vpop.f32.mrf.mxu1  ;;  %v1710_v31 = vld [vmem:[#allocation7 + $0x138] sm:$0xff]  ;;  %v12862_v25 = vld [vmem:[#allocation54_spill] sm:$0xff] }
 0x2d9   :  { %v5281_v28 = vpop.f32.mrf.mxu0  ;;  %v1834_v0 = vld [vmem:[#allocation7 + $0x518] sm:$0xff]  ;;  %6144 = vmatpush1.bf16.msra.mxu0 %v8852_v63  ;;  %v8837_v49 = vcombine.high %v1706_v42, %v1710_v31 }
 0x2da   :  { %v1838_v35 = vld [vmem:[#allocation7 + $0x538] sm:$0xff]  ;;  %v11517_v11 = vadd.f32 %v5390_v17, %v5278_v16  ;;  %v5282_v36 = vadd.f32 %v5281_v28, %v11484_v51  ;;  %v5394_v57 = vpop.f32.mrf.mxu1  ;;  %6145 = vmatprep.subr.bf16.mxu0 %v8845_v44 }
 0x2db   :  { %6257 = vmatpush1.bf16.msra.mxu1 %v8980_v40  ;;  %v5283_v53 = vpop.f32.mrf.mxu0  ;;  %v8965_v63 = vcombine.high %v1834_v0, %v1838_v35  ;;  %v1698_v16 = vld [vmem:[#allocation7 + $0xd8] sm:$0xff] }
 0x2dc   :  { %v11520_v1 = vadd.f32 %v5394_v57, %v5282_v36  ;;  %5958 = vmatmul.mubr.bf16.gmra.mxu0 %v12862_v25  ;;  %6258 = vmatprep.subr.bf16.mxu1 %v8973_v7  ;;  %v5284_v10 = vadd.f32 %v5283_v53, %v11493_v19  ;;  %v5396_v60 = vpop.f32.mrf.mxu1  ;;  %v1702_v17 = vld [vmem:[#allocation7 + $0xf8] sm:$0xff]  ;;  %v8836_v36 = vcombine.low %v1706_v42, %v1710_v31 }
 0x2dd   :  { %v12864_v28 = vld [vmem:[#allocation57_spill] sm:$0xff]  ;;  %v5285_v22 = vpop.f32.mrf.mxu0  ;;  %6146 = vmatpush1.bf16.msra.mxu0 %v8844_v32  ;;  %v8964_v57 = vcombine.low %v1834_v0, %v1838_v35  ;;  %v8829_v25 = vcombine.high %v1698_v16, %v1702_v17  ;;  %v8828_v31 = vcombine.low %v1698_v16, %v1702_v17 }
 0x2de   :  { %6071 = vmatmul.mubr.bf16.gmra.mxu1 %v12863_v52  ;;  %5967 = vmatprep.mubr.bf16.mxu0 %v12864_v28  ;;  %v1826_v44 = vld [vmem:[#allocation7 + $0x4d8] sm:$0xff]  ;;  %v11527_v21 = vadd.f32 %v5396_v60, %v5284_v10  ;;  %v5286_v7 = vadd.f32 %v5285_v22, %v11484_v51  ;;  %v5398_v40 = vpop.f32.mrf.mxu1 }
 0x2df   :  { %v1830_v59 = vld [vmem:[#allocation7 + $0x4f8] sm:$0xff]  ;;  %6080 = vmatprep.mubr.bf16.mxu1 %v12865_v14  ;;  %6259 = vmatpush1.bf16.msra.mxu1 %v8972_v24  ;;  %v5287_v53 = vpop.f32.mrf.mxu0 }
 0x2e0   :  { %6147 = vmatprep.subr.bf16.mxu0 %v8837_v49  ;;  %v11530_v52 = vadd.f32 %v5398_v40, %v5286_v7  ;;  %6260 = vmatprep.subr.bf16.mxu1 %v8965_v63  ;;  %v5288_v28 = vadd.f32 %v5287_v53, %v11493_v19  ;;  %v5400_v47 = vpop.f32.mrf.mxu1  ;;  %v8957_v34 = vcombine.high %v1826_v44, %v1830_v59  ;;  %v1690_v14 = vld [vmem:[#allocation7 + $0x98] sm:$0xff]  ;;  %v12866_v7 = vld [vmem:[#allocation58_spill] sm:$0xff] }
 0x2e1   :  { %v1694_v32 = vld [vmem:[#allocation7 + $0xb8] sm:$0xff]  ;;  %v5291_v60 = vpop.f32.mrf.mxu0  ;;  %6148 = vmatpush1.bf16.msra.mxu0 %v8836_v36  ;;  %v8956_v35 = vcombine.low %v1826_v44, %v1830_v59  ;;  %v12869_v44 = vld [vmem:[#allocation63_spill] sm:$0xff] }
 0x2e2   :  { %v1818_v10 = vld [vmem:[#allocation7 + $0x498] sm:$0xff]  ;;  %v11533_v22 = vadd.f32 %v5400_v47, %v5288_v28  ;;  %v5292_v42 = vadd.f32 %v5291_v60, %v11484_v51  ;;  %v5404_v0 = vpop.f32.mrf.mxu1  ;;  %6149 = vmatprep.subr.bf16.mxu0 %v8829_v25  ;;  %v8821_v49 = vcombine.high %v1690_v14, %v1694_v32 }
 0x2e3   :  { %6261 = vmatpush1.bf16.msra.mxu1 %v8964_v57  ;;  %v5293_v24 = vpop.f32.mrf.mxu0  ;;  %v8949_v36 = vcombine.high %v1818_v10, %v1822_v41  ;;  %v1682_v47 = vld [vmem:[#allocation7 + $0x58] sm:$0xff] }
 0x2e4   :  { %v11536_v63 = vadd.f32 %v5404_v0, %v5292_v42  ;;  %5968 = vmatmul.mubr.bf16.gmra.mxu0 %v12866_v7  ;;  %6262 = vmatprep.subr.bf16.mxu1 %v8957_v34  ;;  %v5294_v40 = vadd.f32 %v5293_v24, %v11493_v19  ;;  %v5406_v53 = vpop.f32.mrf.mxu1  ;;  %v1686_v28 = vld [vmem:[#allocation7 + $0x78] sm:$0xff]  ;;  %v8820_v42 = vcombine.low %v1690_v14, %v1694_v32 }
 0x2e5   :  { %v12868_v60 = vld [vmem:[#allocation61_spill] sm:$0xff]  ;;  %v5295_v16 = vpop.f32.mrf.mxu0  ;;  %6150 = vmatpush1.bf16.msra.mxu0 %v8828_v31  ;;  %v8948_v0 = vcombine.low %v1818_v10, %v1822_v41  ;;  %v8813_v7 = vcombine.high %v1682_v47, %v1686_v28  ;;  %v8812_v32 = vcombine.low %v1682_v47, %v1686_v28 }
 0x2e6   :  { %6081 = vmatmul.mubr.bf16.gmra.mxu1 %v12867_v6  ;;  %5977 = vmatprep.mubr.bf16.mxu0 %v12868_v60  ;;  %v1810_v25 = vld [vmem:[#allocation7 + $0x458] sm:$0xff]  ;;  %v11543_v59 = vadd.f32 %v5406_v53, %v5294_v40  ;;  %v5296_v34 = vadd.f32 %v5295_v16, %v11484_v51  ;;  %v5408_v57 = vpop.f32.mrf.mxu1 }
 0x2e7   :  { %v1814_v17 = vld [vmem:[#allocation7 + $0x478] sm:$0xff]  ;;  %6090 = vmatprep.mubr.bf16.mxu1 %v12869_v44  ;;  %6263 = vmatpush1.bf16.msra.mxu1 %v8956_v35  ;;  %v5297_v24 = vpop.f32.mrf.mxu0 }
 0x2e8   :  { %6151 = vmatprep.subr.bf16.mxu0 %v8821_v49  ;;  %v11546_v6 = vadd.f32 %v5408_v57, %v5296_v34  ;;  %6264 = vmatprep.subr.bf16.mxu1 %v8949_v36  ;;  %v5298_v60 = vadd.f32 %v5297_v24, %v11493_v19  ;;  %v5410_v18 = vpop.f32.mrf.mxu1  ;;  %v8941_v62 = vcombine.high %v1810_v25, %v1814_v17  ;;  %v1674_v44 = vld [vmem:[#allocation7 + $0x18] sm:$0xff]  ;;  %v12870_v34 = vld [vmem:[#allocation62_spill] sm:$0xff] }
 0x2e9   :  { %v1678_v31 = vld [vmem:[#allocation7 + $0x38] sm:$0xff]  ;;  %v5301_v40 = vpop.f32.mrf.mxu0  ;;  %6152 = vmatpush1.bf16.msra.mxu0 %v8820_v42  ;;  %v8940_v10 = vcombine.low %v1810_v25, %v1814_v17  ;;  %v12873_v25 = vld [vmem:[#allocation67_spill] sm:$0xff] }
 0x2ea   :  { %v1802_v53 = vld [vmem:[#allocation7 + $0x418] sm:$0xff]  ;;  %v11549_v16 = vadd.f32 %v5410_v18, %v5298_v60  ;;  %v5302_v14 = vadd.f32 %v5301_v40, %v11484_v51  ;;  %v5414_v41 = vpop.f32.mrf.mxu1  ;;  %6153 = vmatprep.subr.bf16.mxu0 %v8813_v7  ;;  %v8805_v49 = vcombine.high %v1674_v44, %v1678_v31 }
 0x2eb   :  { %6265 = vmatpush1.bf16.msra.mxu1 %v8948_v0  ;;  %v5303_v35 = vpop.f32.mrf.mxu0  ;;  %v8933_v42 = vcombine.high %v1802_v53, %v1806_v12  ;;  %v1794_v18 = vld [vmem:[#allocation7 + $0x3d8] sm:$0xff] }
 0x2ec   :  { %v11552_v36 = vadd.f32 %v5414_v41, %v5302_v14  ;;  %5978 = vmatmul.mubr.bf16.gmra.mxu0 %v12870_v34  ;;  %6266 = vmatprep.subr.bf16.mxu1 %v8941_v62  ;;  %v5304_v57 = vadd.f32 %v5303_v35, %v11493_v19  ;;  %v5416_v24 = vpop.f32.mrf.mxu1  ;;  %v1798_v60 = vld [vmem:[#allocation7 + $0x3f8] sm:$0xff]  ;;  %v8804_v14 = vcombine.low %v1674_v44, %v1678_v31 }
 0x2ed   :  { %v12872_v40 = vld [vmem:[#allocation65_spill] sm:$0xff]  ;;  %v5305_v47 = vpop.f32.mrf.mxu0  ;;  %6154 = vmatpush1.bf16.msra.mxu0 %v8812_v32  ;;  %v8932_v41 = vcombine.low %v1802_v53, %v1806_v12  ;;  %v8925_v34 = vcombine.high %v1794_v18, %v1798_v60  ;;  %v8924_v31 = vcombine.low %v1794_v18, %v1798_v60 }
 0x2ee   :  { %6091 = vmatmul.mubr.bf16.gmra.mxu1 %v12871_v33  ;;  %5987 = vmatprep.mubr.bf16.mxu0 %v12872_v40  ;;  %v1922_v7 = vld [vmem:[#allocation7 + $0x7d8] sm:$0xff]  ;;  %v11559_v17 = vadd.f32 %v5416_v24, %v5304_v57  ;;  %v5306_v62 = vadd.f32 %v5305_v47, %v11484_v51  ;;  %v5418_v0 = vpop.f32.mrf.mxu1 }
 0x2ef   :  { %v1926_v28 = vld [vmem:[#allocation7 + $0x7f8] sm:$0xff]  ;;  %6100 = vmatprep.mubr.bf16.mxu1 %v12873_v25  ;;  %6267 = vmatpush1.bf16.msra.mxu1 %v8940_v10  ;;  %v5307_v35 = vpop.f32.mrf.mxu0 }
 0x2f0   :  { %6155 = vmatprep.subr.bf16.mxu0 %v8805_v49  ;;  %v11562_v33 = vadd.f32 %v5418_v0, %v5306_v62  ;;  %6268 = vmatprep.subr.bf16.mxu1 %v8933_v42  ;;  %v5308_v40 = vadd.f32 %v5307_v35, %v11493_v19  ;;  %v5420_v46 = vpop.f32.mrf.mxu1  ;;  %v9053_v54 = vcombine.high %v1922_v7, %v1926_v28  ;;  %v1786_v25 = vld [vmem:[#allocation7 + $0x398] sm:$0xff]  ;;  %v12874_v62 = vld [vmem:[#allocation66_spill] sm:$0xff] }
 0x2f1   :  { %v1790_v32 = vld [vmem:[#allocation7 + $0x3b8] sm:$0xff]  ;;  %v5311_v57 = vpop.f32.mrf.mxu0  ;;  %6156 = vmatpush1.bf16.msra.mxu0 %v8804_v14  ;;  %v9052_v53 = vcombine.low %v1922_v7, %v1926_v28  ;;  %v12877_v7 = vld [vmem:[#allocation71_spill] sm:$0xff] }
 0x2f2   :  { %v1914_v24 = vld [vmem:[#allocation7 + $0x798] sm:$0xff]  ;;  %v11565_v47 = vadd.f32 %v5420_v46, %v5308_v40  ;;  %v5312_v44 = vadd.f32 %v5311_v57, %v11484_v51  ;;  %v5424_v12 = vpop.f32.mrf.mxu1  ;;  %6157 = vmatprep.subr.bf16.mxu0 %v8925_v34  ;;  %v8917_v49 = vcombine.high %v1786_v25, %v1790_v32 }
 0x2f3   :  { %6269 = vmatpush1.bf16.msra.mxu1 %v8932_v41  ;;  %v5313_v10 = vpop.f32.mrf.mxu0  ;;  %v9045_v14 = vcombine.high %v1914_v24, %v1918_v45  ;;  %v1778_v46 = vld [vmem:[#allocation7 + $0x358] sm:$0xff] }
 0x2f4   :  { %v11568_v42 = vadd.f32 %v5424_v12, %v5312_v44  ;;  %5988 = vmatmul.mubr.bf16.gmra.mxu0 %v12874_v62  ;;  %6270 = vmatprep.subr.bf16.mxu1 %v9053_v54  ;;  %v5314_v0 = vadd.f32 %v5313_v10, %v11493_v19  ;;  %v5426_v35 = vpop.f32.mrf.mxu1  ;;  %v1782_v40 = vld [vmem:[#allocation7 + $0x378] sm:$0xff]  ;;  %v8916_v44 = vcombine.low %v1786_v25, %v1790_v32 }
 0x2f5   :  { %v12876_v57 = vld [vmem:[#allocation69_spill] sm:$0xff]  ;;  %v5315_v18 = vpop.f32.mrf.mxu0  ;;  %6158 = vmatpush2.bf16.msra.mxu0 %v8924_v31  ;;  %v9044_v12 = vcombine.low %v1914_v24, %v1918_v45  ;;  %v8909_v62 = vcombine.high %v1778_v46, %v1782_v40  ;;  %v8908_v32 = vcombine.low %v1778_v46, %v1782_v40 }
 0x2f6   :  { %6101 = vmatmul.mubr.bf16.gmra.mxu1 %v12875_v58  ;;  %5997 = vmatprep.mubr.bf16.mxu0 %v12876_v57  ;;  %v1906_v34 = vld [vmem:[#allocation7 + $0x758] sm:$0xff]  ;;  %v11575_v28 = vadd.f32 %v5426_v35, %v5314_v0  ;;  %v5316_v54 = vadd.f32 %v5315_v18, %v11484_v51  ;;  %v5428_v41 = vpop.f32.mrf.mxu1 }
 0x2f7   :  { %v1910_v60 = vld [vmem:[#allocation7 + $0x778] sm:$0xff]  ;;  %6110 = vmatprep.mubr.bf16.mxu1 %v12877_v7  ;;  %6271 = vmatpush2.bf16.msra.mxu1 %v9052_v53  ;;  %v5317_v10 = vpop.f32.mrf.mxu0 }
 0x2f8   :  { %6159 = vmatprep.subr.bf16.mxu0 %v8917_v49  ;;  %v11578_v58 = vadd.f32 %v5428_v41, %v5316_v54  ;;  %6272 = vmatprep.subr.bf16.mxu1 %v9045_v14  ;;  %v5318_v57 = vadd.f32 %v5317_v10, %v11493_v19  ;;  %v5430_v29 = vpop.f32.mrf.mxu1  ;;  %v9037_v38 = vcombine.high %v1906_v34, %v1910_v60  ;;  %v1770_v7 = vld [vmem:[#allocation7 + $0x318] sm:$0xff]  ;;  %v12881_v54 = vld [vmem:[#allocation70_spill] sm:$0xff] }
 0x2f9   :  { %v1774_v31 = vld [vmem:[#allocation7 + $0x338] sm:$0xff]  ;;  %v5321_v0 = vpop.f32.mrf.mxu0  ;;  %6160 = vmatpush2.bf16.msra.mxu0 %v8916_v44  ;;  %v9036_v24 = vcombine.low %v1906_v34, %v1910_v60  ;;  %v12884_v34 = vld [vmem:[#allocation75_spill] sm:$0xff] }
 0x2fa   :  { %12878 = vst [vmem:[#allocation86_spill] sm:$0xff] %v11578_v58  ;;  %v1898_v35 = vld [vmem:[#allocation7 + $0x718] sm:$0xff]  ;;  %v11581_v18 = vadd.f32 %v5430_v29, %v5318_v57  ;;  %v5322_v25 = vadd.f32 %v5321_v0, %v11484_v51  ;;  %v5434_v45 = vpop.f32.mrf.mxu1  ;;  %6161 = vmatprep.subr.bf16.mxu0 %v8909_v62  ;;  %v8901_v49 = vcombine.high %v1770_v7, %v1774_v31 }
 0x2fb   :  { %6273 = vmatpush2.bf16.msra.mxu1 %v9044_v12  ;;  %v5323_v53 = vpop.f32.mrf.mxu0  ;;  %v9029_v44 = vcombine.high %v1898_v35, %v1902_v43  ;;  %v1762_v29 = vld [vmem:[#allocation7 + $0x2d8] sm:$0xff] }
 0x2fc   :  { %12879 = vst [vmem:[#allocation87_spill] sm:$0xff] %v11581_v18  ;;  %v11584_v14 = vadd.f32 %v5434_v45, %v5322_v25  ;;  %5998 = vmatmul.mubr.bf16.gmra.mxu0 %v12881_v54  ;;  %6274 = vmatprep.subr.bf16.mxu1 %v9037_v38  ;;  %v5324_v41 = vadd.f32 %v5323_v53, %v11493_v19  ;;  %v5436_v10 = vpop.f32.mrf.mxu1  ;;  %v1766_v57 = vld [vmem:[#allocation7 + $0x2f8] sm:$0xff]  ;;  %v12882_v18 = vld [vmem:[#allocation72_spill] sm:$0xff] }
 0x2fd   :  { %v12883_v0 = vld [vmem:[#allocation73_spill] sm:$0xff]  ;;  %v5325_v46 = vpop.f32.mrf.mxu0  ;;  %6162 = vmatpush2.bf16.msra.mxu0 %v8908_v32  ;;  %v8900_v25 = vcombine.low %v1770_v7, %v1774_v31  ;;  %v9028_v45 = vcombine.low %v1898_v35, %v1902_v43  ;;  %v8893_v54 = vcombine.high %v1762_v29, %v1766_v57  ;;  %v8892_v31 = vcombine.low %v1762_v29, %v1766_v57 }
 0x2fe   :  { %12880 = vst [vmem:[#allocation93_spill] sm:$0xff] %v11584_v14  ;;  %6111 = vmatmul.mubr.bf16.gmra.mxu1 %v12882_v18  ;;  %6007 = vmatprep.mubr.bf16.mxu0 %v12883_v0  ;;  %v1890_v62 = vld [vmem:[#allocation7 + $0x6d8] sm:$0xff]  ;;  %v11591_v60 = vadd.f32 %v5436_v10, %v5324_v41  ;;  %v5326_v38 = vadd.f32 %v5325_v46, %v11484_v51  ;;  %v5438_v12 = vpop.f32.mrf.mxu1 }
 0x2ff   :  { %v1894_v40 = vld [vmem:[#allocation7 + $0x6f8] sm:$0xff]  ;;  %6120 = vmatprep.mubr.bf16.mxu1 %v12884_v34  ;;  %6275 = vmatpush2.bf16.msra.mxu1 %v9036_v24  ;;  %v5327_v53 = vpop.f32.mrf.mxu0 }
 0x300   :  { %12885 = vst [vmem:[#allocation94_spill] sm:$0xff] %v11591_v60  ;;  %6163 = vmatprep.subr.bf16.mxu0 %v8901_v49  ;;  %v11594_v18 = vadd.f32 %v5438_v12, %v5326_v38  ;;  %6276 = vmatprep.subr.bf16.mxu1 %v9029_v44  ;;  %v5328_v0 = vadd.f32 %v5327_v53, %v11493_v19  ;;  %v5440_v14 = vpop.f32.mrf.mxu1  ;;  %v1754_v34 = vld [vmem:[#allocation7 + $0x298] sm:$0xff]  ;;  %v12889_v38 = vld [vmem:[#allocation74_spill] sm:$0xff] }
 0x301   :  { %v9021_v58 = vcombine.high %v1890_v62, %v1894_v40  ;;  %v1758_v32 = vld [vmem:[#allocation7 + $0x2b8] sm:$0xff]  ;;  %v5331_v41 = vpop.f32.mrf.mxu0  ;;  %6164 = vmatpush2.bf16.msra.mxu0 %v8900_v25  ;;  %v9020_v35 = vcombine.low %v1890_v62, %v1894_v40  ;;  %v12892_v62 = vld [vmem:[#allocation79_spill] sm:$0xff] }
 0x302   :  { %12886 = vst [vmem:[#allocation95_spill] sm:$0xff] %v11594_v18  ;;  %v1882_v10 = vld [vmem:[#allocation7 + $0x698] sm:$0xff]  ;;  %v11597_v46 = vadd.f32 %v5440_v14, %v5328_v0  ;;  %v5332_v7 = vadd.f32 %v5331_v41, %v11484_v51  ;;  %v5444_v43 = vpop.f32.mrf.mxu1  ;;  %6165 = vmatprep.subr.bf16.mxu0 %v8893_v54  ;;  %v8885_v49 = vcombine.high %v1754_v34, %v1758_v32 }
 0x303   :  { %v1886_v60 = vld [vmem:[#allocation7 + $0x6b8] sm:$0xff]  ;;  %6277 = vmatpush2.bf16.msra.mxu1 %v9028_v45  ;;  %v5333_v24 = vpop.f32.mrf.mxu0 }
 0x304   :  { %12887 = vst [vmem:[#allocation96_spill] sm:$0xff] %v11597_v46  ;;  %v11600_v44 = vadd.f32 %v5444_v43, %v5332_v7  ;;  %6008 = vmatmul.mubr.bf16.gmra.mxu0 %v12889_v38  ;;  %6278 = vmatprep.subr.bf16.mxu1 %v9021_v58  ;;  %v5334_v12 = vadd.f32 %v5333_v24, %v11493_v19  ;;  %v5446_v53 = vpop.f32.mrf.mxu1  ;;  %v1746_v14 = vld [vmem:[#allocation7 + $0x258] sm:$0xff]  ;;  %v12890_v46 = vld [vmem:[#allocation76_spill] sm:$0xff] }
 0x305   :  { %v9013_v25 = vcombine.high %v1882_v10, %v1886_v60  ;;  %v1750_v0 = vld [vmem:[#allocation7 + $0x278] sm:$0xff]  ;;  %v5335_v29 = vpop.f32.mrf.mxu0  ;;  %6166 = vmatpush2.bf16.msra.mxu0 %v8892_v31  ;;  %v8884_v7 = vcombine.low %v1754_v34, %v1758_v32  ;;  %v9012_v43 = vcombine.low %v1882_v10, %v1886_v60 }
 0x306   :  { %12888 = vst [vmem:[#allocation97_spill] sm:$0xff] %v11600_v44  ;;  %6121 = vmatmul.mubr.bf16.gmra.mxu1 %v12890_v46  ;;  %v12891_v41 = vld [vmem:[#allocation77_spill] sm:$0xff]  ;;  %v11607_v40 = vadd.f32 %v5446_v53, %v5334_v12  ;;  %v5336_v58 = vadd.f32 %v5335_v29, %v11484_v51  ;;  %v5448_v45 = vpop.f32.mrf.mxu1  ;;  %6167 = vmatprep.subr.bf16.mxu0 %v8885_v49 }
 0x307   :  { %6017 = vmatprep.mubr.bf16.mxu0 %v12891_v41  ;;  %v1874_v54 = vld [vmem:[#allocation7 + $0x658] sm:$0xff]  ;;  %6130 = vmatprep.mubr.bf16.mxu1 %v12892_v62  ;;  %v5337_v24 = vpop.f32.mrf.mxu0  ;;  %v8877_v38 = vcombine.high %v1746_v14, %v1750_v0  ;;  %v8876_v32 = vcombine.low %v1746_v14, %v1750_v0 }
 0x308   :  { %v1878_v57 = vld [vmem:[#allocation7 + $0x678] sm:$0xff]  ;;  %12893 = vst [vmem:[#allocation98_spill] sm:$0xff] %v11607_v40  ;;  %6279 = vmatpush2.bf16.msra.mxu1 %v9020_v35  ;;  %v11610_v46 = vadd.f32 %v5448_v45, %v5336_v58  ;;  %v5338_v41 = vadd.f32 %v5337_v24, %v11493_v19  ;;  %v5450_v44 = vpop.f32.mrf.mxu1  ;;  %v12896_v24 = vld [vmem:[#allocation80_spill] sm:$0xff] }
 0x309   :  { %6280 = vmatprep.subr.bf16.mxu1 %v9013_v25  ;;  %v9005_v18 = vcombine.high %v1874_v54, %v1878_v57  ;;  %v1738_v62 = vld [vmem:[#allocation7 + $0x218] sm:$0xff]  ;;  %v5341_v12 = vpop.f32.mrf.mxu0  ;;  %6168 = vmatpush2.bf16.msra.mxu0 %v8884_v7  ;;  %v9004_v10 = vcombine.low %v1874_v54, %v1878_v57  ;;  %v12898_v54 = vld [vmem:[#allocation28_spill] sm:$0xff] }
 0x30a   :  { %v1742_v31 = vld [vmem:[#allocation7 + $0x238] sm:$0xff]  ;;  %v11613_v29 = vadd.f32 %v5450_v44, %v5338_v41  ;;  %v5342_v34 = vadd.f32 %v5341_v12, %v11484_v51  ;;  %v5454_v60 = vpop.f32.mrf.mxu1  ;;  %6169 = vmatprep.subr.bf16.mxu0 %v8877_v38  ;;  %v12897_v12 = vld [vmem:[#allocation27_spill] sm:$0xff] }
 0x30b   :  { %v1866_v53 = vld [vmem:[#allocation7 + $0x618] sm:$0xff]  ;;  %v5343_v35 = vpop.f32.mrf.mxu0  ;;  %v8869_v49 = vcombine.high %v1738_v62, %v1742_v31 }
 0x30c   :  { %v1870_v40 = vld [vmem:[#allocation7 + $0x638] sm:$0xff]  ;;  %12894 = vst [vmem:[#allocation99_spill] sm:$0xff] %v11613_v29  ;;  %6281 = vmatpush2.bf16.msra.mxu1 %v9012_v43  ;;  %v11616_v25 = vadd.f32 %v5454_v60, %v5342_v34  ;;  %6018 = vmatmul.mubr.bf16.gmra.mxu0 %v11177_v55  ;;  %v5344_v58 = vadd.f32 %v5343_v35, %v11493_v19  ;;  %v5456_v45 = vpop.f32.mrf.mxu1 }
 0x30d   :  { %6282 = vmatprep.subr.bf16.mxu1 %v9005_v18  ;;  %v8997_v7 = vcombine.high %v1866_v53, %v1870_v40  ;;  %v1986_v44 = vld [vmem:[#allocation7 + $0x9d8] sm:$0xff]  ;;  %6173 = vmatprep.mubr.bf16.mxu0 %v12897_v12  ;;  %v5345_v14 = vpop.f32.mrf.mxu0  ;;  %v8868_v34 = vcombine.low %v1738_v62, %v1742_v31  ;;  %v8996_v60 = vcombine.low %v1866_v53, %v1870_v40 }
 0x30e   :  { %12895 = vst [vmem:[#allocation100_spill] sm:$0xff] %v11616_v25  ;;  %v1990_v41 = vld [vmem:[#allocation7 + $0x9f8] sm:$0xff]  ;;  %6131 = vmatmul.mubr.bf16.gmra.mxu1 %v12896_v24  ;;  %6170 = vmatpush2.bf16.msra.mxu0 %v8876_v32  ;;  %v11623_v57 = vadd.f32 %v5456_v45, %v5344_v58  ;;  %v5346_v18 = vadd.f32 %v5345_v14, %v11484_v51  ;;  %v5458_v43 = vpop.f32.mrf.mxu1 }
 0x30f   :  { %v2114_v38 = vld [vmem:[#allocation7 + $0xdd8] sm:$0xff]  ;;  %6286 = vmatprep.mubr.bf16.mxu1 %v12898_v54  ;;  %6171 = vmatprep.subr.bf16.mxu0 %v8869_v49  ;;  %v5347_v35 = vpop.f32.mrf.mxu0  ;;  %v9117_v55 = vcombine.high %v1986_v44, %v1990_v41  ;;  %v9116_v53 = vcombine.low %v1986_v44, %v1990_v41  ;;  %v12902_v41 = vld [vmem:[#allocation31_spill] sm:$0xff] }
 0x310   :  { %v2118_v0 = vld [vmem:[#allocation7 + $0xdf8] sm:$0xff]  ;;  %6283 = vmatpush2.bf16.msra.mxu1 %v9004_v10  ;;  %v11626_v24 = vadd.f32 %v5458_v43, %v5346_v18  ;;  %v5348_v12 = vadd.f32 %v5347_v35, %v11493_v19  ;;  %v5460_v25 = vpop.f32.mrf.mxu1 }
 0x311   :  { %6284 = vmatprep.subr.bf16.mxu1 %v8997_v7  ;;  %v9245_v32 = vcombine.high %v2114_v38, %v2118_v0  ;;  %v1978_v29 = vld [vmem:[#allocation7 + $0x998] sm:$0xff]  ;;  %v9244_v10 = vcombine.low %v2114_v38, %v2118_v0 }
 0x312   :  { %v1982_v54 = vld [vmem:[#allocation7 + $0x9b8] sm:$0xff]  ;;  %6172 = vmatpush2.bf16.msra.mxu0 %v8868_v34  ;;  %v11629_v58 = vadd.f32 %v5460_v25, %v5348_v12  ;;  %v5497_v51 = vpop.f32.mrf.mxu0 }
 0x313   :  { %v2106_v45 = vld [vmem:[#allocation7 + $0xd98] sm:$0xff]  ;;  %v5498_v40 = vadd.f32 %v5497_v51, %v11502_v61  ;;  %v5610_v31 = vpop.f32.mrf.mxu1  ;;  %6367 = vmatprep.subr.bf16.mxu0 %v9117_v55  ;;  %v9109_v19 = vcombine.high %v1978_v29, %v1982_v54  ;;  %v9108_v12 = vcombine.low %v1978_v29, %v1982_v54 }
 0x314   :  { %12899 = vst [vmem:[#allocation27_spill] sm:$0xff] %v11629_v58  ;;  %v2110_v62 = vld [vmem:[#allocation7 + $0xdb8] sm:$0xff]  ;;  %6285 = vmatpush2.bf16.msra.mxu1 %v8996_v60  ;;  %v5499_v49 = vpop.f32.mrf.mxu0  ;;  %v12901_v60 = vld [vmem:[#allocation30_spill] sm:$0xff] }
 0x315   :  { %6480 = vmatprep.subr.bf16.mxu1 %v9245_v32  ;;  %v5611_v7 = vadd.f32 %v5610_v31, %v5498_v40  ;;  %6174 = vmatmul.mubr.bf16.vlgmr.msra.gmra.mxu0 %v10341_v27  ;;  %v5500_v14 = vadd.f32 %v5499_v49, %v11509_v20  ;;  %v5612_v25 = vpop.f32.mrf.mxu1  ;;  %v9237_v18 = vcombine.high %v2106_v45, %v2110_v62  ;;  %v1970_v43 = vld [vmem:[#allocation7 + $0x958] sm:$0xff] }
 0x316   :  { %v1974_v34 = vld [vmem:[#allocation7 + $0x978] sm:$0xff]  ;;  %6183 = vmatprep.mubr.bf16.mxu0 %v12901_v60  ;;  %v5501_v61 = vpop.f32.mrf.mxu0  ;;  %6368 = vmatpush1.bf16.msra.mxu0 %v9116_v53  ;;  %v9236_v20 = vcombine.low %v2106_v45, %v2110_v62 }
 0x317   :  { %v12900_v35 = vld [vmem:[#allocation29_spill] sm:$0xff]  ;;  %v5613_v38 = vadd.f32 %v5612_v25, %v5500_v14  ;;  %v5502_v0 = vadd.f32 %v5501_v61, %v11514_v37  ;;  %v5614_v27 = vpop.f32.mrf.mxu1  ;;  %6369 = vmatprep.subr.bf16.mxu0 %v9109_v19  ;;  %v9101_v51 = vcombine.high %v1970_v43, %v1974_v34  ;;  %v9100_v37 = vcombine.low %v1970_v43, %v1974_v34 }
 0x318   :  { %6287 = vmatmul.mubr.bf16.vlgmr.msra.gmra.mxu1 %v12900_v35  ;;  %v2098_v44 = vld [vmem:[#allocation7 + $0xd58] sm:$0xff]  ;;  %v5503_v32 = vpop.f32.mrf.mxu0  ;;  %v6595_v61 = vmax.f32 %v5611_v7, 0.0 }
 0x319   :  { %v2102_v55 = vld [vmem:[#allocation7 + $0xd78] sm:$0xff]  ;;  %6296 = vmatprep.mubr.bf16.mxu1 %v12902_v41  ;;  %6481 = vmatpush1.bf16.msra.mxu1 %v9244_v10  ;;  %v5615_v31 = vadd.f32 %v5614_v27, %v5502_v0  ;;  %v5504_v49 = vadd.f32 %v5503_v32, %v11517_v11  ;;  %v5616_v35 = vpop.f32.mrf.mxu1  ;;  %v6596_v10 = vmax.f32 %v5613_v38, 0.0 }
 0x31a   :  { %v11638_v40 = vld [vmem:[#allocation7 + $0x918] sm:$0xff]  ;;  %6482 = vmatprep.subr.bf16.mxu1 %v9237_v18  ;;  %v9229_v60 = vcombine.high %v2098_v44, %v2102_v55  ;;  %v5507_v25 = vpop.f32.mrf.mxu0  ;;  %6370 = vmatpush1.bf16.msra.mxu0 %v9108_v12  ;;  %v9228_v19 = vcombine.low %v2098_v44, %v2102_v55 }
 0x31b   :  { %v1966_v41 = vld [vmem:[#allocation7 + $0x938] sm:$0xff]  ;;  %v6603_v29 = vmax.f32 %v5615_v31, 0.0  ;;  %v5617_v54 = vadd.f32 %v5616_v35, %v5504_v49  ;;  %v5508_v45 = vadd.f32 %v5507_v25, %v11520_v1  ;;  %v5620_v62 = vpop.f32.mrf.mxu1  ;;  %6371 = vmatprep.subr.bf16.mxu0 %v9101_v51 }
 0x31c   :  { %v2090_v53 = vld [vmem:[#allocation7 + $0xd18] sm:$0xff]  ;;  %v5509_v18 = vpop.f32.mrf.mxu0  ;;  %v9093_v11 = vcombine.high %v11638_v40, %v1966_v41  ;;  %v9092_v55 = vcombine.low %v11638_v40, %v1966_v41 }
 0x31d   :  { %v2094_v14 = vld [vmem:[#allocation7 + $0xd38] sm:$0xff]  ;;  %6483 = vmatpush1.bf16.msra.mxu1 %v9236_v20  ;;  %v11643_v27 = vpack.c.bf16 %v6603_v29, %v6595_v61  ;;  %v6604_v32 = vmax.f32 %v5617_v54, 0.0  ;;  %v5621_v58 = vadd.f32 %v5620_v62, %v5508_v45  ;;  %6184 = vmatmul.mubr.bf16.gmra.mxu0 %v10403_v26  ;;  %v5510_v7 = vadd.f32 %v5509_v18, %v11527_v21  ;;  %v5622_v43 = vpop.f32.mrf.mxu1 }
 0x31e   :  { %v9221_v0 = vcombine.high %v2090_v53, %v2094_v14  ;;  %6484 = vmatprep.subr.bf16.mxu1 %v9229_v60  ;;  %v1954_v1 = vld [vmem:[#allocation7 + $0x8d8] sm:$0xff]  ;;  %6193 = vmatprep.mubr.bf16.mxu0 %v10455_v8  ;;  %v5511_v44 = vpop.f32.mrf.mxu0  ;;  %v9220_v31 = vcombine.low %v2090_v53, %v2094_v14 }
 0x31f   :  { %v1958_v34 = vld [vmem:[#allocation7 + $0x8f8] sm:$0xff]  ;;  %6372 = vmatpush1.bf16.msra.mxu0 %v9100_v37  ;;  %v5623_v20 = vadd.f32 %v5622_v43, %v5510_v7  ;;  %v5512_v26 = vadd.f32 %v5511_v44, %v11530_v52  ;;  %v5624_v51 = vpop.f32.mrf.mxu1  ;;  %v11652_v21 = vpack.c.bf16 %v6604_v32, %v6596_v10  ;;  %v6611_v29 = vmax.f32 %v5621_v58, 0.0 }
 0x320   :  { %6297 = vmatmul.mubr.bf16.gmra.mxu1 %v10409_v23  ;;  %v2082_v38 = vld [vmem:[#allocation7 + $0xcd8] sm:$0xff]  ;;  %6373 = vmatprep.subr.bf16.mxu0 %v9093_v11  ;;  %v5513_v23 = vpop.f32.mrf.mxu0  ;;  %v9085_v49 = vcombine.high %v1954_v1, %v1958_v34  ;;  %v9084_v61 = vcombine.low %v1954_v1, %v1958_v34 }
 0x321   :  { %v2086_v12 = vld [vmem:[#allocation7 + $0xcf8] sm:$0xff]  ;;  %6306 = vmatprep.mubr.bf16.mxu1 %v10466_v2  ;;  %6485 = vmatpush1.bf16.msra.mxu1 %v9228_v19  ;;  %v5625_v35 = vadd.f32 %v5624_v51, %v5512_v26  ;;  %v5514_v40 = vadd.f32 %v5513_v23, %v11533_v22  ;;  %v5626_v60 = vpop.f32.mrf.mxu1  ;;  %v6612_v62 = vmax.f32 %v5623_v20, 0.0 }
 0x322   :  { %v11654_v8 = vld [vmem:[#allocation7 + $0x898] sm:$0xff]  ;;  %6486 = vmatprep.subr.bf16.mxu1 %v9221_v0  ;;  %v9213_v2 = vcombine.high %v2082_v38, %v2086_v12  ;;  %v5517_v52 = vpop.f32.mrf.mxu0  ;;  %v9212_v10 = vcombine.low %v2082_v38, %v2086_v12 }
 0x323   :  { %v1950_v41 = vld [vmem:[#allocation7 + $0x8b8] sm:$0xff]  ;;  %v6619_v54 = vmax.f32 %v5625_v35, 0.0  ;;  %6374 = vmatpush1.bf16.msra.mxu0 %v9092_v55  ;;  %v5627_v45 = vadd.f32 %v5626_v60, %v5514_v40  ;;  %v5518_v53 = vadd.f32 %v5517_v52, %v11536_v63  ;;  %v5630_v14 = vpop.f32.mrf.mxu1 }
 0x324   :  { %v2074_v25 = vld [vmem:[#allocation7 + $0xc98] sm:$0xff]  ;;  %6375 = vmatprep.subr.bf16.mxu0 %v9085_v49  ;;  %v5519_v19 = vpop.f32.mrf.mxu0  ;;  %v9077_v22 = vcombine.high %v11654_v8, %v1950_v41  ;;  %v9076_v34 = vcombine.low %v11654_v8, %v1950_v41 }
 0x325   :  { %v2078_v37 = vld [vmem:[#allocation7 + $0xcb8] sm:$0xff]  ;;  %6487 = vmatpush1.bf16.msra.mxu1 %v9220_v31  ;;  %v11659_v11 = vpack.c.bf16 %v6619_v54, %v6611_v29  ;;  %v6620_v0 = vmax.f32 %v5627_v45, 0.0  ;;  %v5631_v32 = vadd.f32 %v5630_v14, %v5518_v53  ;;  %6194 = vmatmul.mubr.bf16.gmra.mxu0 %v10464_v30  ;;  %v5520_v58 = vadd.f32 %v5519_v19, %v11543_v59  ;;  %v5632_v7 = vpop.f32.mrf.mxu1 }
 0x326   :  { %v9205_v18 = vcombine.high %v2074_v25, %v2078_v37  ;;  %6488 = vmatprep.subr.bf16.mxu1 %v9213_v2  ;;  %v1938_v63 = vld [vmem:[#allocation7 + $0x858] sm:$0xff]  ;;  %6203 = vmatprep.mubr.bf16.mxu0 %v10519_v4  ;;  %v5521_v1 = vpop.f32.mrf.mxu0  ;;  %v9204_v20 = vcombine.low %v2074_v25, %v2078_v37 }
 0x327   :  { %v1942_v43 = vld [vmem:[#allocation7 + $0x878] sm:$0xff]  ;;  %6376 = vmatpush1.bf16.msra.mxu0 %v9084_v61  ;;  %v5633_v38 = vadd.f32 %v5632_v7, %v5520_v58  ;;  %v5522_v30 = vadd.f32 %v5521_v1, %v11546_v6  ;;  %v5634_v12 = vpop.f32.mrf.mxu1  ;;  %v11668_v59 = vpack.c.bf16 %v6620_v0, %v6612_v62  ;;  %v6627_v60 = vmax.f32 %v5631_v32, 0.0 }
 0x328   :  { %6307 = vmatmul.mubr.bf16.gmra.mxu1 %v10473_v48  ;;  %v2066_v44 = vld [vmem:[#allocation7 + $0xc58] sm:$0xff]  ;;  %6377 = vmatprep.subr.bf16.mxu0 %v9077_v22  ;;  %v5523_v48 = vpop.f32.mrf.mxu0  ;;  %v9069_v26 = vcombine.high %v1938_v63, %v1942_v43  ;;  %v9068_v40 = vcombine.low %v1938_v63, %v1942_v43 }
 0x329   :  { %v2070_v55 = vld [vmem:[#allocation7 + $0xc78] sm:$0xff]  ;;  %6316 = vmatprep.mubr.bf16.mxu1 %v10530_v5  ;;  %6489 = vmatpush1.bf16.msra.mxu1 %v9212_v10  ;;  %v5635_v51 = vadd.f32 %v5634_v12, %v5522_v30  ;;  %v5524_v31 = vadd.f32 %v5523_v48, %v11549_v16  ;;  %v5636_v23 = vpop.f32.mrf.mxu1  ;;  %v6628_v52 = vmax.f32 %v5633_v38, 0.0 }
 0x32a   :  { %v11670_v4 = vld [vmem:[#allocation7 + $0x818] sm:$0xff]  ;;  %6490 = vmatprep.subr.bf16.mxu1 %v9205_v18  ;;  %v9197_v5 = vcombine.high %v2066_v44, %v2070_v55  ;;  %v5527_v6 = vpop.f32.mrf.mxu0  ;;  %v9196_v61 = vcombine.low %v2066_v44, %v2070_v55 }
 0x32b   :  { %v1934_v49 = vld [vmem:[#allocation7 + $0x838] sm:$0xff]  ;;  %v6635_v2 = vmax.f32 %v5635_v51, 0.0  ;;  %6378 = vmatpush1.bf16.msra.mxu0 %v9076_v34  ;;  %v5637_v41 = vadd.f32 %v5636_v23, %v5524_v31  ;;  %v5528_v25 = vadd.f32 %v5527_v6, %v11552_v36  ;;  %v5640_v37 = vpop.f32.mrf.mxu1 }
 0x32c   :  { %v2058_v8 = vld [vmem:[#allocation7 + $0xc18] sm:$0xff]  ;;  %6379 = vmatprep.subr.bf16.mxu0 %v9069_v26  ;;  %v5529_v29 = vpop.f32.mrf.mxu0  ;;  %v9061_v16 = vcombine.high %v11670_v4, %v1934_v49  ;;  %v9060_v18 = vcombine.low %v11670_v4, %v1934_v49 }
 0x32d   :  { %v2062_v35 = vld [vmem:[#allocation7 + $0xc38] sm:$0xff]  ;;  %6491 = vmatpush1.bf16.msra.mxu1 %v9204_v20  ;;  %v11675_v45 = vpack.c.bf16 %v6635_v2, %v6627_v60  ;;  %v6636_v53 = vmax.f32 %v5637_v41, 0.0  ;;  %v5641_v14 = vadd.f32 %v5640_v37, %v5528_v25  ;;  %6204 = vmatmul.mubr.bf16.gmra.mxu0 %v10528_v56  ;;  %v5530_v62 = vadd.f32 %v5529_v29, %v11559_v17  ;;  %v5642_v10 = vpop.f32.mrf.mxu1 }
 0x32e   :  { %v9189_v54 = vcombine.high %v2058_v8, %v2062_v35  ;;  %6492 = vmatprep.subr.bf16.mxu1 %v9197_v5  ;;  %v2050_v36 = vld [vmem:[#allocation7 + $0xbd8] sm:$0xff]  ;;  %6213 = vmatprep.mubr.bf16.mxu0 %v12819_v15  ;;  %v5531_v22 = vpop.f32.mrf.mxu0  ;;  %v9188_v63 = vcombine.low %v2058_v8, %v2062_v35 }
 0x32f   :  { %v2054_v19 = vld [vmem:[#allocation7 + $0xbf8] sm:$0xff]  ;;  %6380 = vmatpush1.bf16.msra.mxu0 %v9068_v40  ;;  %v5643_v58 = vadd.f32 %v5642_v10, %v5530_v62  ;;  %v5532_v56 = vadd.f32 %v5531_v22, %v11562_v33  ;;  %v5644_v7 = vpop.f32.mrf.mxu1  ;;  %v11684_v17 = vpack.c.bf16 %v6636_v53, %v6628_v52  ;;  %v6643_v20 = vmax.f32 %v5641_v14, 0.0  ;;  %v12905_v10 = vld [vmem:[#allocation87_spill] sm:$0xff] }
 0x330   :  { %6317 = vmatmul.mubr.bf16.gmra.mxu1 %v12818_v9  ;;  %v2178_v0 = vld [vmem:[#allocation7 + $0xfd8] sm:$0xff]  ;;  %6381 = vmatprep.subr.bf16.mxu0 %v9061_v16  ;;  %v5533_v9 = vpop.f32.mrf.mxu0  ;;  %v9181_v43 = vcombine.high %v2050_v36, %v2054_v19  ;;  %v9180_v12 = vcombine.low %v2050_v36, %v2054_v19 }
 0x331   :  { %v2182_v32 = vld [vmem:[#allocation7 + $0xff8] sm:$0xff]  ;;  %6326 = vmatprep.mubr.bf16.mxu1 %v12821_v39  ;;  %6493 = vmatpush1.bf16.msra.mxu1 %v9196_v61  ;;  %v5645_v1 = vadd.f32 %v5644_v7, %v5532_v56  ;;  %v5534_v34 = vadd.f32 %v5533_v9, %v11565_v47  ;;  %v5646_v44 = vpop.f32.mrf.mxu1  ;;  %v6644_v31 = vmax.f32 %v5643_v58, 0.0  ;;  %v12903_v61 = vld [vmem:[#allocation39_spill] sm:$0xff] }
 0x332   :  { %v11686_v15 = vld [vmem:[#allocation7 + $0xb98] sm:$0xff]  ;;  %6494 = vmatprep.subr.bf16.mxu1 %v9189_v54  ;;  %v9309_v39 = vcombine.high %v2178_v0, %v2182_v32  ;;  %v5537_v33 = vpop.f32.mrf.mxu0  ;;  %v9308_v23 = vcombine.low %v2178_v0, %v2182_v32 }
 0x333   :  { %v2046_v55 = vld [vmem:[#allocation7 + $0xbb8] sm:$0xff]  ;;  %v6651_v48 = vmax.f32 %v5645_v1, 0.0  ;;  %6382 = vmatpush1.bf16.msra.mxu0 %v9060_v18  ;;  %v5647_v26 = vadd.f32 %v5646_v44, %v5534_v34  ;;  %v5538_v4 = vadd.f32 %v5537_v33, %v11568_v42  ;;  %v5650_v51 = vpop.f32.mrf.mxu1 }
 0x334   :  { %v2170_v38 = vld [vmem:[#allocation7 + $0xf98] sm:$0xff]  ;;  %6383 = vmatprep.subr.bf16.mxu0 %v9181_v43  ;;  %v5539_v5 = vpop.f32.mrf.mxu0  ;;  %v9173_v47 = vcombine.high %v11686_v15, %v2046_v55  ;;  %v9172_v25 = vcombine.low %v11686_v15, %v2046_v55 }
 0x335   :  { %v2174_v30 = vld [vmem:[#allocation7 + $0xfb8] sm:$0xff]  ;;  %6495 = vmatpush1.bf16.msra.mxu1 %v9188_v63  ;;  %v11691_v8 = vpack.c.bf16 %v6651_v48, %v6643_v20  ;;  %v6652_v35 = vmax.f32 %v5647_v26, 0.0  ;;  %v5651_v6 = vadd.f32 %v5650_v51, %v5538_v4  ;;  %6214 = vmatmul.mubr.bf16.gmra.mxu0 %v12826_v50  ;;  %v5540_v40 = vadd.f32 %v5539_v5, %v11575_v28  ;;  %v5652_v60 = vpop.f32.mrf.mxu1  ;;  %v12904_v50 = vld [vmem:[#allocation86_spill] sm:$0xff] }
 0x336   :  { %v9301_v49 = vcombine.high %v2170_v38, %v2174_v30  ;;  %6496 = vmatprep.subr.bf16.mxu1 %v9309_v39  ;;  %v2034_v42 = vld [vmem:[#allocation7 + $0xb58] sm:$0xff]  ;;  %6223 = vmatprep.mubr.bf16.mxu0 %v12829_v3  ;;  %v5541_v41 = vpop.f32.mrf.mxu0  ;;  %v9300_v53 = vcombine.low %v2170_v38, %v2174_v30  ;;  %v12907_v20 = vld [vmem:[#allocation38_spill] sm:$0xff] }
 0x337   :  { %v2038_v2 = vld [vmem:[#allocation7 + $0xb78] sm:$0xff]  ;;  %6384 = vmatpush2.bf16.msra.mxu0 %v9180_v12  ;;  %v5653_v29 = vadd.f32 %v5652_v60, %v5540_v40  ;;  %v5542_v16 = vadd.f32 %v5541_v41, %v12904_v50  ;;  %v5654_v54 = vpop.f32.mrf.mxu1  ;;  %v11700_v28 = vpack.c.bf16 %v6652_v35, %v6644_v31  ;;  %v6659_v7 = vmax.f32 %v5651_v6, 0.0  ;;  %v12908_v48 = vld [vmem:[#allocation94_spill] sm:$0xff]  ;;  %v12911_v40 = vld [vmem:[#allocation43_spill] sm:$0xff] }
 0x338   :  { %6327 = vmatmul.mubr.bf16.gmra.mxu1 %v12828_v13  ;;  %v2162_v37 = vld [vmem:[#allocation7 + $0xf58] sm:$0xff]  ;;  %6385 = vmatprep.subr.bf16.mxu0 %v9173_v47  ;;  %v5543_v13 = vpop.f32.mrf.mxu0  ;;  %v9165_v14 = vcombine.high %v2034_v42, %v2038_v2  ;;  %v9164_v56 = vcombine.low %v2034_v42, %v2038_v2  ;;  %v12912_v42 = vld [vmem:[#allocation95_spill] sm:$0xff] }
 0x339   :  { %v2166_v52 = vld [vmem:[#allocation7 + $0xf78] sm:$0xff]  ;;  %6336 = vmatprep.mubr.bf16.mxu1 %v12903_v61  ;;  %6497 = vmatpush2.bf16.msra.mxu1 %v9308_v23  ;;  %v5655_v62 = vadd.f32 %v5654_v54, %v5542_v16  ;;  %v5544_v36 = vadd.f32 %v5543_v13, %v12905_v10  ;;  %v5656_v19 = vpop.f32.mrf.mxu1  ;;  %v6660_v34 = vmax.f32 %v5653_v29, 0.0  ;;  %v12909_v23 = vld [vmem:[#allocation40_spill] sm:$0xff] }
 0x33a   :  { %v11702_v3 = vld [vmem:[#allocation7 + $0xb18] sm:$0xff]  ;;  %6498 = vmatprep.subr.bf16.mxu1 %v9301_v49  ;;  %v9293_v22 = vcombine.high %v2162_v37, %v2166_v52  ;;  %v5547_v58 = vpop.f32.mrf.mxu0  ;;  %v9292_v44 = vcombine.low %v2162_v37, %v2166_v52  ;;  %v12913_v16 = vld [vmem:[#allocation96_spill] sm:$0xff] }
 0x33b   :  { %v2030_v18 = vld [vmem:[#allocation7 + $0xb38] sm:$0xff]  ;;  %v6667_v63 = vmax.f32 %v5655_v62, 0.0  ;;  %6386 = vmatpush2.bf16.msra.mxu0 %v9172_v25  ;;  %v5657_v9 = vadd.f32 %v5656_v19, %v5544_v36  ;;  %v5660_v1 = vpop.f32.mrf.mxu1 }
 0x33c   :  { %v2154_v0 = vld [vmem:[#allocation7 + $0xf18] sm:$0xff]  ;;  %6387 = vmatprep.subr.bf16.mxu0 %v9165_v14  ;;  %v5549_v39 = vpop.f32.mrf.mxu0  ;;  %v9157_v55 = vcombine.high %v11702_v3, %v2030_v18  ;;  %v9156_v49 = vcombine.low %v11702_v3, %v2030_v18 }
 0x33d   :  { %v2158_v32 = vld [vmem:[#allocation7 + $0xf38] sm:$0xff]  ;;  %6499 = vmatpush2.bf16.msra.mxu1 %v9300_v53  ;;  %v11707_v30 = vpack.c.bf16 %v6667_v63, %v6659_v7  ;;  %v6668_v33 = vmax.f32 %v5657_v9, 0.0  ;;  %6224 = vmatmul.mubr.bf16.gmra.mxu0 %v12907_v20  ;;  %v5550_v26 = vadd.f32 %v5549_v39, %v12908_v48  ;;  %v5662_v4 = vpop.f32.mrf.mxu1  ;;  %v12916_v39 = vld [vmem:[#allocation98_spill] sm:$0xff]  ;;  %v12917_v20 = vld [vmem:[#allocation44_spill] sm:$0xff] }
 0x33e   :  { %v12906_v43 = vld [vmem:[#allocation93_spill] sm:$0xff]  ;;  %v9285_v38 = vcombine.high %v2154_v0, %v2158_v32  ;;  %6500 = vmatprep.subr.bf16.mxu1 %v9293_v22  ;;  %v5551_v47 = vpop.f32.mrf.mxu0  ;;  %v9284_v37 = vcombine.low %v2154_v0, %v2158_v32 }
 0x33f   :  { %v5548_v15 = vadd.f32 %v5547_v58, %v12906_v43  ;;  %v2018_v51 = vld [vmem:[#allocation7 + $0xad8] sm:$0xff]  ;;  %6388 = vmatpush2.bf16.msra.mxu0 %v9164_v56  ;;  %v5663_v60 = vadd.f32 %v5662_v4, %v5550_v26  ;;  %v5552_v2 = vadd.f32 %v5551_v47, %v12912_v42  ;;  %v5664_v41 = vpop.f32.mrf.mxu1  ;;  %v11716_v25 = vpack.c.bf16 %v6668_v33, %v6660_v34 }
 0x340   :  { %v2022_v31 = vld [vmem:[#allocation7 + $0xaf8] sm:$0xff]  ;;  %6337 = vmatmul.mubr.bf16.gmra.mxu1 %v12909_v23  ;;  %6389 = vmatprep.subr.bf16.mxu0 %v9157_v55  ;;  %v5553_v52 = vpop.f32.mrf.mxu0  ;;  %v12919_v23 = vld [vmem:[#allocation47_spill] sm:$0xff] }
 0x341   :  { %v5661_v12 = vadd.f32 %v5660_v1, %v5548_v15  ;;  %v12910_v5 = vld [vmem:[#allocation41_spill] sm:$0xff]  ;;  %6346 = vmatprep.mubr.bf16.mxu1 %v12911_v40  ;;  %6501 = vmatpush2.bf16.msra.mxu1 %v9292_v44  ;;  %v9149_v61 = vcombine.high %v2018_v51, %v2022_v31  ;;  %v5665_v50 = vadd.f32 %v5664_v41, %v5552_v2  ;;  %v5666_v53 = vpop.f32.mrf.mxu1  ;;  %v6676_v56 = vmax.f32 %v5663_v60, 0.0  ;;  %v12915_v44 = vld [vmem:[#allocation42_spill] sm:$0xff]  ;;  %v12920_v41 = vld [vmem:[#allocation99_spill] sm:$0xff] }
 0x342   :  { %6233 = vmatprep.mubr.bf16.mxu0 %v12910_v5  ;;  %v2146_v35 = vld [vmem:[#allocation7 + $0xed8] sm:$0xff]  ;;  %6502 = vmatprep.subr.bf16.mxu1 %v9285_v38  ;;  %v5554_v54 = vadd.f32 %v5553_v52, %v12913_v16  ;;  %v5557_v10 = vpop.f32.mrf.mxu0  ;;  %v9148_v36 = vcombine.low %v2018_v51, %v2022_v31 }
 0x343   :  { %v2150_v6 = vld [vmem:[#allocation7 + $0xef8] sm:$0xff]  ;;  %v6675_v19 = vmax.f32 %v5661_v12, 0.0  ;;  %v6683_v22 = vmax.f32 %v5665_v50, 0.0  ;;  %6390 = vmatpush2.bf16.msra.mxu0 %v9156_v49  ;;  %v5670_v58 = vpop.f32.mrf.mxu1 }
 0x344   :  { %v11718_v29 = vld [vmem:[#allocation7 + $0xa98] sm:$0xff]  ;;  %v9277_v13 = vcombine.high %v2146_v35, %v2150_v6  ;;  %v5667_v18 = vadd.f32 %v5666_v53, %v5554_v54  ;;  %6391 = vmatprep.subr.bf16.mxu0 %v9149_v61  ;;  %v9276_v7 = vcombine.low %v2146_v35, %v2150_v6  ;;  %v5559_v63 = vpop.f32.mrf.mxu0 }
 0x345   :  { %v2014_v14 = vld [vmem:[#allocation7 + $0xab8] sm:$0xff]  ;;  %6503 = vmatpush2.bf16.msra.mxu1 %v9284_v37  ;;  %v11723_v15 = vpack.c.bf16 %v6683_v22, %v6675_v19  ;;  %6234 = vmatmul.mubr.bf16.gmra.mxu0 %v12915_v44  ;;  %v5560_v55 = vadd.f32 %v5559_v63, %v12916_v39  ;;  %v5672_v38 = vpop.f32.mrf.mxu1  ;;  %v12925_v39 = vld [vmem:[#allocation51_spill] sm:$0xff] }
 0x346   :  { %v2138_v3 = vld [vmem:[#allocation7 + $0xe98] sm:$0xff]  ;;  %v9141_v9 = vcombine.high %v11718_v29, %v2014_v14  ;;  %v6684_v1 = vmax.f32 %v5667_v18, 0.0  ;;  %6504 = vmatprep.subr.bf16.mxu1 %v9277_v13  ;;  %v5561_v26 = vpop.f32.mrf.mxu0  ;;  %v9140_v4 = vcombine.low %v11718_v29, %v2014_v14 }
 0x347   :  { %v2142_v62 = vld [vmem:[#allocation7 + $0xeb8] sm:$0xff]  ;;  %6392 = vmatpush2.bf16.msra.mxu0 %v9148_v36  ;;  %v5673_v5 = vadd.f32 %v5672_v38, %v5560_v55  ;;  %v5562_v47 = vadd.f32 %v5561_v26, %v11610_v46  ;;  %v5674_v49 = vpop.f32.mrf.mxu1  ;;  %v12926_v26 = vld [vmem:[#allocation24_spill] sm:$0xff] }
 0x348   :  { %v12914_v0 = vld [vmem:[#allocation97_spill] sm:$0xff]  ;;  %v9269_v43 = vcombine.high %v2138_v3, %v2142_v62  ;;  %6347 = vmatmul.mubr.bf16.gmra.mxu1 %v12917_v20  ;;  %v11732_v35 = vpack.c.bf16 %v6684_v1, %v6676_v56  ;;  %6393 = vmatprep.subr.bf16.mxu0 %v9141_v9  ;;  %v9268_v6 = vcombine.low %v2138_v3, %v2142_v62  ;;  %v5563_v40 = vpop.f32.mrf.mxu0 }
 0x349   :  { %v5558_v32 = vadd.f32 %v5557_v10, %v12914_v0  ;;  %v2002_v33 = vld [vmem:[#allocation7 + $0xa58] sm:$0xff]  ;;  %6356 = vmatprep.mubr.bf16.mxu1 %v12919_v23  ;;  %6505 = vmatpush2.bf16.msra.mxu1 %v9276_v7  ;;  %v5675_v2 = vadd.f32 %v5674_v49, %v5562_v47  ;;  %v5564_v37 = vadd.f32 %v5563_v40, %v12920_v41  ;;  %v5676_v52 = vpop.f32.mrf.mxu1  ;;  %v12921_v10 = vld [vmem:[#allocation100_spill] sm:$0xff]  ;;  %v6692_v36 = vmax.f32 %v5673_v5, 0.0  ;;  %v12922_v7 = vld [vmem:[#allocation46_spill] sm:$0xff] }
 0x34a   :  { %v2006_v12 = vld [vmem:[#allocation7 + $0xa78] sm:$0xff]  ;;  %6506 = vmatprep.subr.bf16.mxu1 %v9269_v43  ;;  %v5567_v54 = vpop.f32.mrf.mxu0  ;;  %v12923_v43 = vld [vmem:[#allocation48_spill] sm:$0xff]  ;;  %v12928_v5 = vld [vmem:[#allocation27_spill] sm:$0xff] }
 0x34b   :  { %v5671_v34 = vadd.f32 %v5670_v58, %v5558_v32  ;;  %v12918_v48 = vld [vmem:[#allocation45_spill] sm:$0xff]  ;;  %v9133_v60 = vcombine.high %v2002_v33, %v2006_v12  ;;  %v9132_v46 = vcombine.low %v2002_v33, %v2006_v12  ;;  %v6699_v13 = vmax.f32 %v5675_v2, 0.0  ;;  %6394 = vmatpush2.bf16.msra.mxu0 %v9140_v4  ;;  %v5680_v62 = vpop.f32.mrf.mxu1 }
 0x34c   :  { %6243 = vmatprep.mubr.bf16.mxu0 %v12918_v48  ;;  %v2130_v51 = vld [vmem:[#allocation7 + $0xe58] sm:$0xff]  ;;  %v5677_v14 = vadd.f32 %v5676_v52, %v5564_v37  ;;  %v5568_v3 = vadd.f32 %v5567_v54, %v12921_v10  ;;  %v5569_v22 = vpop.f32.mrf.mxu0  ;;  %v9835_v48 = vld [vmem:[#allocation9] sm:$0xff]  ;;  %v12927_v4 = vsub.s32 4, %v12926_v26 }
 0x34d   :  { %v2134_v31 = vld [vmem:[#allocation7 + $0xe78] sm:$0xff]  ;;  %v6691_v53 = vmax.f32 %v5671_v34, 0.0  ;;  %6507 = vmatpush2.bf16.msra.mxu1 %v9268_v6  ;;  %6395 = vmatprep.subr.bf16.mxu0 %v9133_v60  ;;  %v5570_v63 = vadd.f32 %v5569_v22, %v11623_v57  ;;  %v5682_v9 = vpop.f32.mrf.mxu1 }
 0x34e   :  { %v1994_v42 = vld [vmem:[#allocation7 + $0xa18] sm:$0xff]  ;;  %v9261_v61 = vcombine.high %v2130_v51, %v2134_v31  ;;  %v9260_v19 = vcombine.low %v2130_v51, %v2134_v31  ;;  %v6700_v58 = vmax.f32 %v5677_v14, 0.0  ;;  %v5681_v56 = vadd.f32 %v5680_v62, %v5568_v3  ;;  %6244 = vmatmul.mubr.bf16.gmra.mxu0 %v12922_v7  ;;  %v5571_v34 = vpop.f32.mrf.mxu0  ;;  %v12931_v14 = vld [vmem:[#allocation50_spill] sm:$0xff]  ;;  %v9632_v62 = vld [vmem:[#allocation10 + $0x164] ss:$8 sps:$4 sm:$0xff]  }
 0x34f   :  { %v1998_v29 = vld [vmem:[#allocation7 + $0xa38] sm:$0xff]  ;;  %v11736_v32 = vpack.c.bf16 %v6699_v13, %v6691_v53  ;;  %6396 = vmatpush2.bf16.msra.mxu0 %v9132_v46  ;;  %v5683_v55 = vadd.f32 %v5682_v9, %v5570_v63  ;;  %v5572_v38 = vadd.f32 %v5571_v34, %v11626_v24  ;;  %v5684_v33 = vpop.f32.mrf.mxu1  ;;  %v11748_v51 = vrot.slane %v9835_v48, %v12927_v4  ;;  %v9629_v53 = vld [vmem:[#allocation10 + $0x64] ss:$8 sps:$4 sm:$0xff]   ;;  %v9627_v63 = vld [vmem:[#allocation10 + $0x60] ss:$8 sps:$4 sm:$0xff]  }
 0x350   :  { %v2122_v50 = vld [vmem:[#allocation7 + $0xe18] sm:$0xff]  ;;  %v9125_v18 = vcombine.high %v1994_v42, %v1998_v29  ;;  %6508 = vmatprep.subr.bf16.mxu1 %v9261_v61  ;;  %6357 = vmatmul.mubr.bf16.gmra.mxu1 %v12923_v43  ;;  %v9124_v44 = vcombine.low %v1994_v42, %v1998_v29  ;;  %v11744_v12 = vpack.c.bf16 %v6700_v58, %v6692_v36  ;;  %v5573_v57 = vpop.f32.mrf.mxu0  ;;  %v12929_v24 = vsub.s32 5, %v12926_v26  ;;  %v12932_v36 = vld [vmem:[#allocation52_spill] sm:$0xff] }
 0x351   :  { %v2126_v16 = vld [vmem:[#allocation7 + $0xe38] sm:$0xff]  ;;  %6512 = vmatprep.mubr.bf16.mxu1 %v12925_v39  ;;  %6509 = vmatpush2.bf16.msra.mxu1 %v9260_v19  ;;  %v5685_v23 = vadd.f32 %v5684_v33, %v5572_v38  ;;  %v5574_v47 = vadd.f32 %v5573_v57, %v12928_v5  ;;  %v5686_v49 = vpop.f32.mrf.mxu1  ;;  %v6707_v60 = vmax.f32 %v5681_v56, 0.0  ;;  %v6708_v29 = vmax.f32 %v5683_v55, 0.0  ;;  %v9630_v9 = vld [vmem:[#allocation10 + $0x160] ss:$8 sps:$4 sm:$0xff]  }
 0x352   :  { %v9253_v0 = vcombine.high %v2122_v50, %v2126_v16  ;;  %v12924_v1 = vld [vmem:[#allocation49_spill] sm:$0xff]  ;;  %6397 = vmatprep.subr.bf16.mxu0 %v9125_v18  ;;  %v9252_v20 = vcombine.low %v2122_v50, %v2126_v16  ;;  %v11753_v40 = vrot.slane %v9835_v48, %v12929_v24  ;;  %v9644_v24 = vld [vmem:[#allocation10 + $0x144] ss:$8 sps:$4 sm:$0xff]  }
 0x353   :  { %6399 = vmatprep.mubr.bf16.mxu0 %v12924_v1  ;;  %v9623_v31 = vld [vmem:[#allocation10 + $0x74] ss:$8 sps:$4 sm:$0xff]   ;;  %v6715_v42 = vmax.f32 %v5685_v23, 0.0  ;;  %6398 = vmatpush2.bf16.msra.mxu0 %v9124_v44  ;;  %v5687_v2 = vadd.f32 %v5686_v49, %v5574_v47  ;;  %v5723_v41 = vpop.f32.mrf.mxu0  ;;  %v9621_v61 = vld [vmem:[#allocation10 + $0x70] ss:$8 sps:$4 sm:$0xff]  }
 0x354   :  { %6510 = vmatprep.subr.bf16.mxu1 %v9253_v0  ;;  %v9626_v6 = vld [vmem:[#allocation10 + $0x174] ss:$8 sps:$4 sm:$0xff]   ;;  %v5724_v37 = vadd.f32 %v5723_v41, %v11748_v51  ;;  %v5836_v52 = vpop.f32.mrf.mxu1  ;;  %7565 = vmatprep.subr.bf16.mxu0 %v9623_v31  ;;  %v9624_v54 = vld [vmem:[#allocation10 + $0x170] ss:$8 sps:$4 sm:$0xff]   ;;  %v12934_v0 = vld [vmem:[#allocation55_spill] sm:$0xff] }
 0x355   :  { %6511 = vmatpush2.bf16.msra.mxu1 %v9252_v20  ;;  %v11756_v50 = vpack.c.bf16 %v6715_v42, %v6707_v60  ;;  %v6716_v16 = vmax.f32 %v5687_v2, 0.0  ;;  %v5725_v46 = vpop.f32.mrf.mxu0  ;;  %v12933_v19 = vld [vmem:[#allocation53_spill] sm:$0xff]  ;;  %v9641_v23 = vld [vmem:[#allocation10 + $0x44] ss:$8 sps:$4 sm:$0xff]   ;;  %v12935_v47 = vld [vmem:[#allocation54_spill] sm:$0xff] }
 0x356   :  { %7678 = vmatprep.subr.bf16.mxu1 %v9626_v6  ;;  %v11758_v13 = vadd.f32 %v5836_v52, %v5724_v37  ;;  %6400 = vmatmul.mubr.bf16.vlgmr.msra.gmra.mxu0 %v12931_v14  ;;  %v5726_v10 = vadd.f32 %v5725_v46, %v11753_v40  ;;  %v5838_v3 = vpop.f32.mrf.mxu1  ;;  %v9635_v1 = vld [vmem:[#allocation10 + $0x54] ss:$8 sps:$4 sm:$0xff]   ;;  %v9633_v48 = vld [vmem:[#allocation10 + $0x50] ss:$8 sps:$4 sm:$0xff]   ;;  %v12936_v60 = vld [vmem:[#allocation56_spill] sm:$0xff] }
 0x357   :  { %12930 = vst [vmem:[#allocation28_spill] sm:$0xff] %v11756_v50  ;;  %6409 = vmatprep.mubr.bf16.mxu0 %v12933_v19  ;;  %v5727_v22 = vpop.f32.mrf.mxu0  ;;  %v11764_v18 = vpack.c.bf16 %v6716_v16, %v6708_v29  ;;  %7566 = vmatpush1.bf16.msra.mxu0 %v9621_v61  ;;  %v9638_v55 = vld [vmem:[#allocation10 + $0x154] ss:$8 sps:$4 sm:$0xff]   ;;  %v9636_v4 = vld [vmem:[#allocation10 + $0x150] ss:$8 sps:$4 sm:$0xff]   ;;  %v12938_v41 = vld [vmem:[#allocation59_spill] sm:$0xff] }
 0x358   :  { %6513 = vmatmul.mubr.bf16.vlgmr.msra.gmra.mxu1 %v12932_v36  ;;  %v11767_v58 = vadd.f32 %v5838_v3, %v5726_v10  ;;  %v5728_v56 = vadd.f32 %v5727_v22, %v11748_v51  ;;  %v5840_v7 = vpop.f32.mrf.mxu1  ;;  %7567 = vmatprep.subr.bf16.mxu0 %v9629_v53  ;;  %v12937_v42 = vld [vmem:[#allocation57_spill] sm:$0xff]  ;;  %v9639_v29 = vld [vmem:[#allocation10 + $0x40] ss:$8 sps:$4 sm:$0xff]  }
 0x359   :  { %6522 = vmatprep.mubr.bf16.mxu1 %v12934_v0  ;;  %7679 = vmatpush1.bf16.msra.mxu1 %v9624_v54  ;;  %v5729_v43 = vpop.f32.mrf.mxu0  ;;  %v9642_v16 = vld [vmem:[#allocation10 + $0x140] ss:$8 sps:$4 sm:$0xff]   ;;  %v9647_v46 = vld [vmem:[#allocation10 + $0x34] ss:$8 sps:$4 sm:$0xff]   ;;  %v9645_v0 = vld [vmem:[#allocation10 + $0x30] ss:$8 sps:$4 sm:$0xff]  }
 0x35a   :  { %v11770_v34 = vadd.f32 %v5840_v7, %v5728_v56  ;;  %7680 = vmatprep.subr.bf16.mxu1 %v9632_v62  ;;  %v5730_v44 = vadd.f32 %v5729_v43, %v11753_v40  ;;  %v5842_v39 = vpop.f32.mrf.mxu1  ;;  %v9650_v3 = vld [vmem:[#allocation10 + $0x134] ss:$8 sps:$4 sm:$0xff]   ;;  %v9648_v56 = vld [vmem:[#allocation10 + $0x130] ss:$8 sps:$4 sm:$0xff]  }
 0x35b   :  { %v5733_v38 = vpop.f32.mrf.mxu0  ;;  %7568 = vmatpush1.bf16.msra.mxu0 %v9627_v63  ;;  %v9653_v63 = vld [vmem:[#allocation10 + $0x24] ss:$8 sps:$4 sm:$0xff]   ;;  %v12939_v43 = vld [vmem:[#allocation58_spill] sm:$0xff] }
 0x35c   :  { %v11773_v33 = vadd.f32 %v5842_v39, %v5730_v44  ;;  %v5734_v20 = vadd.f32 %v5733_v38, %v11748_v51  ;;  %v5846_v57 = vpop.f32.mrf.mxu1  ;;  %7569 = vmatprep.subr.bf16.mxu0 %v9635_v1  ;;  %v9656_v39 = vld [vmem:[#allocation10 + $0x124] ss:$8 sps:$4 sm:$0xff]   ;;  %v12941_v38 = vld [vmem:[#allocation61_spill] sm:$0xff] }
 0x35d   :  { %7681 = vmatpush1.bf16.msra.mxu1 %v9630_v9  ;;  %v5735_v31 = vpop.f32.mrf.mxu0  ;;  %v9765_v50 = vld [vmem:[#allocation10 + $0x370] ss:$8 sps:$4 sm:$0xff]  }
 0x35e   :  { %v11776_v5 = vadd.f32 %v5846_v57, %v5734_v20  ;;  %6410 = vmatmul.mubr.bf16.gmra.mxu0 %v12935_v47  ;;  %7682 = vmatprep.subr.bf16.mxu1 %v9638_v55  ;;  %v5736_v49 = vadd.f32 %v5735_v31, %v11753_v40  ;;  %v5848_v6 = vpop.f32.mrf.mxu1  ;;  %v12940_v55 = vld [vmem:[#allocation60_spill] sm:$0xff]  ;;  %v12942_v57 = vld [vmem:[#allocation63_spill] sm:$0xff] }
 0x35f   :  { %6419 = vmatprep.mubr.bf16.mxu0 %v12937_v42  ;;  %v5737_v2 = vpop.f32.mrf.mxu0  ;;  %7570 = vmatpush1.bf16.msra.mxu0 %v9633_v48  ;;  %v9654_v47 = vld [vmem:[#allocation10 + $0x120] ss:$8 sps:$4 sm:$0xff]  }
 0x360   :  { %6523 = vmatmul.mubr.bf16.gmra.mxu1 %v12936_v60  ;;  %v11783_v37 = vadd.f32 %v5848_v6, %v5736_v49  ;;  %v5738_v52 = vadd.f32 %v5737_v2, %v11748_v51  ;;  %v5850_v61 = vpop.f32.mrf.mxu1  ;;  %7571 = vmatprep.subr.bf16.mxu0 %v9641_v23  ;;  %v9651_v23 = vld [vmem:[#allocation10 + $0x20] ss:$8 sps:$4 sm:$0xff]   ;;  %v9659_v6 = vld [vmem:[#allocation10 + $0x14] ss:$8 sps:$4 sm:$0xff]  }
 0x361   :  { %6532 = vmatprep.mubr.bf16.mxu1 %v12938_v41  ;;  %7683 = vmatpush1.bf16.msra.mxu1 %v9636_v4  ;;  %v5739_v54 = vpop.f32.mrf.mxu0  ;;  %v9662_v2 = vld [vmem:[#allocation10 + $0x114] ss:$8 sps:$4 sm:$0xff]  }
 0x362   :  { %v11786_v53 = vadd.f32 %v5850_v61, %v5738_v52  ;;  %7684 = vmatprep.subr.bf16.mxu1 %v9644_v24  ;;  %v5740_v14 = vadd.f32 %v5739_v54, %v11753_v40  ;;  %v5852_v10 = vpop.f32.mrf.mxu1  ;;  %v9660_v54 = vld [vmem:[#allocation10 + $0x110] ss:$8 sps:$4 sm:$0xff]  }
 0x363   :  { %v5743_v62 = vpop.f32.mrf.mxu0  ;;  %7572 = vmatpush1.bf16.msra.mxu0 %v9639_v29 }
 0x364   :  { %v11789_v36 = vadd.f32 %v5852_v10, %v5740_v14  ;;  %v5744_v19 = vadd.f32 %v5743_v62, %v11748_v51  ;;  %v5856_v22 = vpop.f32.mrf.mxu1  ;;  %7573 = vmatprep.subr.bf16.mxu0 %v9647_v46  ;;  %v9665_v14 = vld [vmem:[#allocation10 + $0x4] ss:$8 sps:$4 sm:$0xff]  }
 0x365   :  { %7685 = vmatpush1.bf16.msra.mxu1 %v9642_v16  ;;  %v5745_v7 = vpop.f32.mrf.mxu0  ;;  %v9657_v16 = vld [vmem:[#allocation10 + $0x10] ss:$8 sps:$4 sm:$0xff]  }
 0x366   :  { %v11792_v9 = vadd.f32 %v5856_v22, %v5744_v19  ;;  %6420 = vmatmul.mubr.bf16.gmra.mxu0 %v12939_v43  ;;  %7686 = vmatprep.subr.bf16.mxu1 %v9650_v3  ;;  %v5746_v1 = vadd.f32 %v5745_v7, %v11753_v40  ;;  %v5858_v44 = vpop.f32.mrf.mxu1  ;;  %v12943_v3 = vld [vmem:[#allocation62_spill] sm:$0xff]  ;;  %v9668_v22 = vld [vmem:[#allocation10 + $0x104] ss:$8 sps:$4 sm:$0xff]  }
 0x367   :  { %6429 = vmatprep.mubr.bf16.mxu0 %v12941_v38  ;;  %v5747_v20 = vpop.f32.mrf.mxu0  ;;  %7574 = vmatpush1.bf16.msra.mxu0 %v9645_v0  ;;  %v12944_v0 = vld [vmem:[#allocation64_spill] sm:$0xff] }
 0x368   :  { %6533 = vmatmul.mubr.bf16.gmra.mxu1 %v12940_v55  ;;  %v11799_v48 = vadd.f32 %v5858_v44, %v5746_v1  ;;  %v5748_v4 = vadd.f32 %v5747_v20, %v11748_v51  ;;  %v5860_v31 = vpop.f32.mrf.mxu1  ;;  %7575 = vmatprep.subr.bf16.mxu0 %v9653_v63  ;;  %v12946_v63 = vld [vmem:[#allocation67_spill] sm:$0xff]  ;;  %v9671_v20 = vld [vmem:[#allocation10 + $0xf4] ss:$8 sps:$4 sm:$0xff]  }
 0x369   :  { %6542 = vmatprep.mubr.bf16.mxu1 %v12942_v57  ;;  %7687 = vmatpush1.bf16.msra.mxu1 %v9648_v56  ;;  %v5749_v49 = vpop.f32.mrf.mxu0  ;;  %v12945_v56 = vld [vmem:[#allocation65_spill] sm:$0xff]  ;;  %v9666_v55 = vld [vmem:[#allocation10 + $0x100] ss:$8 sps:$4 sm:$0xff]  }
 0x36a   :  { %v11802_v24 = vadd.f32 %v5860_v31, %v5748_v4  ;;  %7688 = vmatprep.subr.bf16.mxu1 %v9656_v39  ;;  %v5750_v60 = vadd.f32 %v5749_v49, %v11753_v40  ;;  %v5862_v42 = vpop.f32.mrf.mxu1  ;;  %v9663_v39 = vld [vmem:[#allocation10] ss:$8 sps:$4 sm:$0xff]  }
 0x36b   :  { %v5753_v41 = vpop.f32.mrf.mxu0  ;;  %7576 = vmatpush1.bf16.msra.mxu0 %v9651_v23  ;;  %v9674_v23 = vld [vmem:[#allocation10 + $0x1f4] ss:$8 sps:$4 sm:$0xff]  }
 0x36c   :  { %v11805_v52 = vadd.f32 %v5862_v42, %v5750_v60  ;;  %v5754_v61 = vadd.f32 %v5753_v41, %v11748_v51  ;;  %v5866_v29 = vpop.f32.mrf.mxu1  ;;  %7577 = vmatprep.subr.bf16.mxu0 %v9659_v6  ;;  %v9669_v42 = vld [vmem:[#allocation10 + $0xf0] ss:$8 sps:$4 sm:$0xff]  }
 0x36d   :  { %7689 = vmatpush1.bf16.msra.mxu1 %v9654_v47  ;;  %v5755_v46 = vpop.f32.mrf.mxu0 }
 0x36e   :  { %v11808_v10 = vadd.f32 %v5866_v29, %v5754_v61  ;;  %6430 = vmatmul.mubr.bf16.gmra.mxu0 %v12943_v3  ;;  %7690 = vmatprep.subr.bf16.mxu1 %v9662_v2  ;;  %v5756_v62 = vadd.f32 %v5755_v46, %v11753_v40  ;;  %v5868_v19 = vpop.f32.mrf.mxu1  ;;  %v9672_v2 = vld [vmem:[#allocation10 + $0x1f0] ss:$8 sps:$4 sm:$0xff]   ;;  %v9677_v61 = vld [vmem:[#allocation10 + $0xe4] ss:$8 sps:$4 sm:$0xff]  }
 0x36f   :  { %6439 = vmatprep.mubr.bf16.mxu0 %v12945_v56  ;;  %v5757_v7 = vpop.f32.mrf.mxu0  ;;  %7578 = vmatpush1.bf16.msra.mxu0 %v9657_v16  ;;  %v12947_v16 = vld [vmem:[#allocation66_spill] sm:$0xff]  ;;  %v12948_v3 = vld [vmem:[#allocation68_spill] sm:$0xff] }
 0x370   :  { %6543 = vmatmul.mubr.bf16.gmra.mxu1 %v12944_v0  ;;  %v11815_v43 = vadd.f32 %v5868_v19, %v5756_v62  ;;  %v5758_v1 = vadd.f32 %v5757_v7, %v11748_v51  ;;  %v5870_v44 = vpop.f32.mrf.mxu1  ;;  %7579 = vmatprep.subr.bf16.mxu0 %v9665_v14  ;;  %v9680_v14 = vld [vmem:[#allocation10 + $0x1e4] ss:$8 sps:$4 sm:$0xff]   ;;  %v12949_v62 = vld [vmem:[#allocation69_spill] sm:$0xff] }
 0x371   :  { %6552 = vmatprep.mubr.bf16.mxu1 %v12946_v63  ;;  %7691 = vmatpush1.bf16.msra.mxu1 %v9660_v54  ;;  %v5759_v38 = vpop.f32.mrf.mxu0  ;;  %v9675_v63 = vld [vmem:[#allocation10 + $0xe0] ss:$8 sps:$4 sm:$0xff]  }
 0x372   :  { %v11818_v57 = vadd.f32 %v5870_v44, %v5758_v1  ;;  %7692 = vmatprep.subr.bf16.mxu1 %v9668_v22  ;;  %v5760_v4 = vadd.f32 %v5759_v38, %v11753_v40  ;;  %v5872_v31 = vpop.f32.mrf.mxu1  ;;  %v12950_v22 = vld [vmem:[#allocation71_spill] sm:$0xff] }
 0x373   :  { %v5763_v47 = vpop.f32.mrf.mxu0  ;;  %7580 = vmatpush1.bf16.msra.mxu0 %v9663_v39  ;;  %v9678_v1 = vld [vmem:[#allocation10 + $0x1e0] ss:$8 sps:$4 sm:$0xff]   ;;  %v9683_v39 = vld [vmem:[#allocation10 + $0xd4] ss:$8 sps:$4 sm:$0xff]  }
 0x374   :  { %v11821_v49 = vadd.f32 %v5872_v31, %v5760_v4  ;;  %v5764_v6 = vadd.f32 %v5763_v47, %v11748_v51  ;;  %v5876_v60 = vpop.f32.mrf.mxu1  ;;  %7581 = vmatprep.subr.bf16.mxu0 %v9671_v20  ;;  %v9686_v4 = vld [vmem:[#allocation10 + $0x1d4] ss:$8 sps:$4 sm:$0xff]  }
 0x375   :  { %7693 = vmatpush1.bf16.msra.mxu1 %v9666_v55  ;;  %v5765_v41 = vpop.f32.mrf.mxu0 }
 0x376   :  { %v11824_v29 = vadd.f32 %v5876_v60, %v5764_v6  ;;  %6440 = vmatmul.mubr.bf16.gmra.mxu0 %v12947_v16  ;;  %7694 = vmatprep.subr.bf16.mxu1 %v9674_v23  ;;  %v5766_v54 = vadd.f32 %v5765_v41, %v11753_v40  ;;  %v5878_v46 = vpop.f32.mrf.mxu1  ;;  %v9681_v60 = vld [vmem:[#allocation10 + $0xd0] ss:$8 sps:$4 sm:$0xff]   ;;  %v9689_v41 = vld [vmem:[#allocation10 + $0xc4] ss:$8 sps:$4 sm:$0xff]  }
 0x377   :  { %6449 = vmatprep.mubr.bf16.mxu0 %v12949_v62  ;;  %v5767_v19 = vpop.f32.mrf.mxu0  ;;  %7582 = vmatpush2.bf16.msra.mxu0 %v9669_v42  ;;  %v9684_v42 = vld [vmem:[#allocation10 + $0x1d0] ss:$8 sps:$4 sm:$0xff]  }
 0x378   :  { %6553 = vmatmul.mubr.bf16.gmra.mxu1 %v12948_v3  ;;  %v11831_v0 = vadd.f32 %v5878_v46, %v5766_v54  ;;  %v5768_v56 = vadd.f32 %v5767_v19, %v11748_v51  ;;  %v5880_v7 = vpop.f32.mrf.mxu1  ;;  %7583 = vmatprep.subr.bf16.mxu0 %v9677_v61  ;;  %v12951_v16 = vld [vmem:[#allocation70_spill] sm:$0xff]  ;;  %v12952_v3 = vld [vmem:[#allocation72_spill] sm:$0xff]  ;;  %v12953_v62 = vld [vmem:[#allocation73_spill] sm:$0xff] }
 0x379   :  { %6562 = vmatprep.mubr.bf16.mxu1 %v12950_v22  ;;  %7695 = vmatpush2.bf16.msra.mxu1 %v9672_v2  ;;  %v5769_v44 = vpop.f32.mrf.mxu0  ;;  %v12954_v22 = vld [vmem:[#allocation75_spill] sm:$0xff] }
 0x37a   :  { %v11834_v55 = vadd.f32 %v5880_v7, %v5768_v56  ;;  %7696 = vmatprep.subr.bf16.mxu1 %v9680_v14  ;;  %v5770_v38 = vadd.f32 %v5769_v44, %v11753_v40  ;;  %v5882_v20 = vpop.f32.mrf.mxu1  ;;  %v9692_v14 = vld [vmem:[#allocation10 + $0x1c4] ss:$8 sps:$4 sm:$0xff]   ;;  %v9690_v44 = vld [vmem:[#allocation10 + $0x1c0] ss:$8 sps:$4 sm:$0xff]  }
 0x37b   :  { %v5773_v31 = vpop.f32.mrf.mxu0  ;;  %7584 = vmatpush2.bf16.msra.mxu0 %v9675_v63 }
 0x37c   :  { %v11837_v23 = vadd.f32 %v5882_v20, %v5770_v38  ;;  %v5774_v47 = vadd.f32 %v5773_v31, %v11748_v51  ;;  %7585 = vmatprep.subr.bf16.mxu0 %v9683_v39  ;;  %v9695_v38 = vld [vmem:[#allocation10 + $0xb4] ss:$8 sps:$4 sm:$0xff]  }
 0x37d   :  { %v5886_v6 = vpop.f32.mrf.mxu1  ;;  %7697 = vmatpush2.bf16.msra.mxu1 %v9678_v1  ;;  %v5775_v2 = vpop.f32.mrf.mxu0  ;;  %v9687_v1 = vld [vmem:[#allocation10 + $0xc0] ss:$8 sps:$4 sm:$0xff]  }
 0x37e   :  { %v11840_v61 = vadd.f32 %v5886_v6, %v5774_v47  ;;  %6450 = vmatmul.mubr.bf16.gmra.mxu0 %v12951_v16  ;;  %7698 = vmatprep.subr.bf16.mxu1 %v9686_v4  ;;  %v5776_v54 = vadd.f32 %v5775_v2, %v11753_v40  ;;  %v9698_v47 = vld [vmem:[#allocation10 + $0x1b4] ss:$8 sps:$4 sm:$0xff]  }
 0x37f   :  { %v5888_v46 = vpop.f32.mrf.mxu1  ;;  %6459 = vmatprep.mubr.bf16.mxu0 %v12953_v62  ;;  %v5777_v19 = vpop.f32.mrf.mxu0  ;;  %7586 = vmatpush2.bf16.msra.mxu0 %v9681_v60 }
 0x380   :  { %6563 = vmatmul.mubr.bf16.gmra.mxu1 %v12952_v3  ;;  %v11847_v56 = vadd.f32 %v5888_v46, %v5776_v54  ;;  %v5778_v7 = vadd.f32 %v5777_v19, %v11748_v51  ;;  %7587 = vmatprep.subr.bf16.mxu0 %v9689_v41  ;;  %v9693_v54 = vld [vmem:[#allocation10 + $0xb0] ss:$8 sps:$4 sm:$0xff]   ;;  %v9701_v46 = vld [vmem:[#allocation10 + $0xa4] ss:$8 sps:$4 sm:$0xff]  }
 0x381   :  { %6572 = vmatprep.mubr.bf16.mxu1 %v12954_v22  ;;  %v5890_v63 = vpop.f32.mrf.mxu1  ;;  %7699 = vmatpush2.bf16.msra.mxu1 %v9684_v42  ;;  %v5779_v39 = vpop.f32.mrf.mxu0  ;;  %v9696_v42 = vld [vmem:[#allocation10 + $0x1b0] ss:$8 sps:$4 sm:$0xff]   ;;  %v9704_v22 = vld [vmem:[#allocation10 + $0x1a4] ss:$8 sps:$4 sm:$0xff]  }
 0x382   :  { %v11850_v20 = vadd.f32 %v5890_v63, %v5778_v7  ;;  %7700 = vmatprep.subr.bf16.mxu1 %v9692_v14  ;;  %v5780_v4 = vadd.f32 %v5779_v39, %v11753_v40  ;;  %v12955_v14 = vld [vmem:[#allocation74_spill] sm:$0xff]  ;;  %v12956_v7 = vld [vmem:[#allocation76_spill] sm:$0xff]  ;;  %v12957_v63 = vld [vmem:[#allocation77_spill] sm:$0xff] }
 0x383   :  { %v5892_v31 = vpop.f32.mrf.mxu1  ;;  %v5783_v6 = vpop.f32.mrf.mxu0  ;;  %7588 = vmatpush2.bf16.msra.mxu0 %v9687_v1  ;;  %v12958_v39 = vld [vmem:[#allocation79_spill] sm:$0xff] }
 0x384   :  { %v11853_v60 = vadd.f32 %v5892_v31, %v5780_v4  ;;  %v5784_v2 = vadd.f32 %v5783_v6, %v11748_v51  ;;  %7589 = vmatprep.subr.bf16.mxu0 %v9695_v38  ;;  %v9699_v31 = vld [vmem:[#allocation10 + $0xa0] ss:$8 sps:$4 sm:$0xff]  }
 0x385   :  { %7701 = vmatpush2.bf16.msra.mxu1 %v9690_v44  ;;  %v5785_v41 = vpop.f32.mrf.mxu0 }
 0x386   :  { %v5896_v16 = vpop.f32.mrf.mxu1  ;;  %6460 = vmatmul.mubr.bf16.gmra.mxu0 %v12955_v14  ;;  %7702 = vmatprep.subr.bf16.mxu1 %v9698_v47  ;;  %v5786_v62 = vadd.f32 %v5785_v41, %v11753_v40  ;;  %v9702_v47 = vld [vmem:[#allocation10 + $0x1a0] ss:$8 sps:$4 sm:$0xff]  }
 0x387   :  { %v11856_v3 = vadd.f32 %v5896_v16, %v5784_v2  ;;  %6469 = vmatprep.mubr.bf16.mxu0 %v12957_v63  ;;  %v5787_v1 = vpop.f32.mrf.mxu0  ;;  %7590 = vmatpush2.bf16.msra.mxu0 %v9693_v54  ;;  %v9707_v2 = vld [vmem:[#allocation10 + $0x94] ss:$8 sps:$4 sm:$0xff]  }
 0x388   :  { %v5898_v19 = vpop.f32.mrf.mxu1  ;;  %6573 = vmatmul.mubr.bf16.gmra.mxu1 %v12956_v7  ;;  %v5788_v38 = vadd.f32 %v5787_v1, %v11748_v51  ;;  %7591 = vmatprep.subr.bf16.mxu0 %v9701_v46  ;;  %v9710_v7 = vld [vmem:[#allocation10 + $0x194] ss:$8 sps:$4 sm:$0xff]   ;;  %v9705_v1 = vld [vmem:[#allocation10 + $0x90] ss:$8 sps:$4 sm:$0xff]  }
 0x389   :  { %6582 = vmatprep.mubr.bf16.mxu1 %v12958_v39  ;;  %v11863_v44 = vadd.f32 %v5898_v19, %v5786_v62  ;;  %7703 = vmatpush2.bf16.msra.mxu1 %v9696_v42  ;;  %v5789_v6 = vpop.f32.mrf.mxu0  ;;  %v9708_v42 = vld [vmem:[#allocation10 + $0x190] ss:$8 sps:$4 sm:$0xff]   ;;  %v9713_v39 = vld [vmem:[#allocation10 + $0x84] ss:$8 sps:$4 sm:$0xff]  }
 0x38a   :  { %v5900_v4 = vpop.f32.mrf.mxu1  ;;  %7704 = vmatprep.subr.bf16.mxu1 %v9704_v22  ;;  %v5790_v41 = vadd.f32 %v5789_v6, %v11753_v40  ;;  %v12959_v22 = vld [vmem:[#allocation78_spill] sm:$0xff] }
 0x38b   :  { %v11866_v16 = vadd.f32 %v5900_v4, %v5788_v38  ;;  %v5793_v63 = vpop.f32.mrf.mxu0  ;;  %7592 = vmatpush2.bf16.msra.mxu0 %v9699_v31  ;;  %v9716_v31 = vld [vmem:[#allocation10 + $0x184] ss:$8 sps:$4 sm:$0xff]  }
 0x38c   :  { %v5902_v14 = vpop.f32.mrf.mxu1  ;;  %v5794_v62 = vadd.f32 %v5793_v63, %v11748_v51  ;;  %7593 = vmatprep.subr.bf16.mxu0 %v9707_v2 }
 0x38d   :  { %v11869_v54 = vadd.f32 %v5902_v14, %v5790_v41  ;;  %7705 = vmatpush2.bf16.msra.mxu1 %v9702_v47  ;;  %v5795_v46 = vpop.f32.mrf.mxu0  ;;  %v12960_v41 = vld [vmem:[#allocation80_spill] sm:$0xff]  ;;  %v12961_v14 = vld [vmem:[#allocation89_spill] sm:$0xff] }
 0x38e   :  { %v5906_v19 = vpop.f32.mrf.mxu1  ;;  %6470 = vmatmul.mubr.bf16.gmra.mxu0 %v12959_v22  ;;  %7706 = vmatprep.subr.bf16.mxu1 %v9710_v7  ;;  %v5796_v4 = vadd.f32 %v5795_v46, %v11753_v40  ;;  %v9714_v7 = vld [vmem:[#allocation10 + $0x180] ss:$8 sps:$4 sm:$0xff]   ;;  %v9719_v22 = vld [vmem:[#allocation10 + $0x274] ss:$8 sps:$4 sm:$0xff]  }
 0x38f   :  { %v11872_v38 = vadd.f32 %v5906_v19, %v5794_v62  ;;  %7597 = vmatprep.mubr.bf16.mxu0 %v12961_v14  ;;  %v5797_v63 = vpop.f32.mrf.mxu0  ;;  %7594 = vmatpush2.bf16.msra.mxu0 %v9705_v1  ;;  %v9711_v19 = vld [vmem:[#allocation10 + $0x80] ss:$8 sps:$4 sm:$0xff]   ;;  %v9767_v1 = vld [vmem:[#allocation10 + $0x374] ss:$8 sps:$4 sm:$0xff]  }
 0x390   :  { %v5908_v6 = vpop.f32.mrf.mxu1  ;;  %6583 = vmatmul.mubr.bf16.gmra.mxu1 %v12960_v41  ;;  %v5798_v2 = vadd.f32 %v5797_v63, %v11748_v51  ;;  %7595 = vmatprep.subr.bf16.mxu0 %v9713_v39  ;;  %v9722_v63 = vld [vmem:[#allocation10 + $0x264] ss:$8 sps:$4 sm:$0xff]  }
 0x391   :  { %7710 = vmatprep.mubr.bf16.mxu1 %v11652_v21  ;;  %v11879_v47 = vadd.f32 %v5908_v6, %v5796_v4  ;;  %7707 = vmatpush2.bf16.msra.mxu1 %v9708_v42  ;;  %v5799_v46 = vpop.f32.mrf.mxu0  ;;  %v9717_v42 = vld [vmem:[#allocation10 + $0x270] ss:$8 sps:$4 sm:$0xff]  }
 0x392   :  { %v5910_v62 = vpop.f32.mrf.mxu1  ;;  %7708 = vmatprep.subr.bf16.mxu1 %v9716_v31  ;;  %v5800_v41 = vadd.f32 %v5799_v46, %v11753_v40 }
 0x393   :  { %v11882_v26 = vadd.f32 %v5910_v62, %v5798_v2  ;;  %7596 = vmatpush2.bf16.msra.mxu0 %v9711_v19  ;;  %v12963_v2 = vld [vmem:[#allocation88_spill] sm:$0xff]  ;;  %v12964_v19 = vld [vmem:[#allocation91_spill] sm:$0xff] }
 0x394   :  { %v5912_v14 = vpop.f32.mrf.mxu1  ;;  %v5949_v4 = vpop.f32.mrf.mxu0  ;;  %7791 = vmatprep.subr.bf16.mxu0 %v9719_v22  ;;  %v9770_v62 = vld [vmem:[#allocation10 + $0x364] ss:$8 sps:$4 sm:$0xff]  }
 0x395   :  { %v11885_v21 = vadd.f32 %v5912_v14, %v5800_v41  ;;  %7709 = vmatpush2.bf16.msra.mxu1 %v9714_v7  ;;  %v5950_v51 = vadd.f32 %v5949_v4, %v11758_v13  ;;  %v9720_v41 = vld [vmem:[#allocation10 + $0x260] ss:$8 sps:$4 sm:$0xff]  }
 0x396   :  { %v6062_v6 = vpop.f32.mrf.mxu1  ;;  %v5951_v39 = vpop.f32.mrf.mxu0  ;;  %7904 = vmatprep.subr.bf16.mxu1 %v9767_v1  ;;  %7598 = vmatmul.mubr.bf16.vlgmr.msra.gmra.mxu0 %v12963_v2  ;;  %v9725_v1 = vld [vmem:[#allocation10 + $0x254] ss:$8 sps:$4 sm:$0xff]  }
 0x397   :  { %12962 = vst [vmem:[#allocation29_spill] sm:$0xff] %v11885_v21  ;;  %v5952_v40 = vadd.f32 %v5951_v39, %v11767_v58  ;;  %7607 = vmatprep.mubr.bf16.mxu0 %v12964_v19  ;;  %v6063_v46 = vadd.f32 %v6062_v6, %v5950_v51  ;;  %7792 = vmatpush1.bf16.msra.mxu0 %v9717_v42  ;;  %v9768_v58 = vld [vmem:[#allocation10 + $0x360] ss:$8 sps:$4 sm:$0xff]   ;;  %v9773_v19 = vld [vmem:[#allocation10 + $0x354] ss:$8 sps:$4 sm:$0xff]  }
 0x398   :  { %v6064_v31 = vpop.f32.mrf.mxu1  ;;  %7711 = vmatmul.mubr.bf16.vlgmr.msra.gmra.mxu1 %v11643_v27  ;;  %v5953_v7 = vpop.f32.mrf.mxu0  ;;  %7793 = vmatprep.subr.bf16.mxu0 %v9722_v63  ;;  %v9723_v63 = vld [vmem:[#allocation10 + $0x250] ss:$8 sps:$4 sm:$0xff]  }
 0x399   :  { %7720 = vmatprep.mubr.bf16.mxu1 %v11668_v59  ;;  %v5954_v13 = vadd.f32 %v5953_v7, %v11770_v34  ;;  %7905 = vmatpush1.bf16.msra.mxu1 %v9765_v50  ;;  %v6065_v4 = vadd.f32 %v6064_v31, %v5952_v40  ;;  %v6597_v6 = vmax.f32 %v6063_v46, 0.0  ;;  %v9728_v50 = vld [vmem:[#allocation10 + $0x244] ss:$8 sps:$4 sm:$0xff]   ;;  %v9771_v40 = vld [vmem:[#allocation10 + $0x350] ss:$8 sps:$4 sm:$0xff]  }
 0x39a   :  { %v6066_v22 = vpop.f32.mrf.mxu1  ;;  %v5955_v14 = vpop.f32.mrf.mxu0  ;;  %7906 = vmatprep.subr.bf16.mxu1 %v9770_v62  ;;  %v12965_v62 = vld [vmem:[#allocation90_spill] sm:$0xff] }
 0x39b   :  { %v6067_v39 = vadd.f32 %v6066_v22, %v5954_v13  ;;  %v5956_v27 = vadd.f32 %v5955_v14, %v11773_v33  ;;  %7794 = vmatpush1.bf16.msra.mxu0 %v9720_v41  ;;  %v6598_v31 = vmax.f32 %v6065_v4, 0.0  ;;  %v9776_v41 = vld [vmem:[#allocation10 + $0x344] ss:$8 sps:$4 sm:$0xff]  }
 0x39c   :  { %v6068_v2 = vpop.f32.mrf.mxu1  ;;  %v5959_v51 = vpop.f32.mrf.mxu0  ;;  %7795 = vmatprep.subr.bf16.mxu0 %v9725_v1 }
 0x39d   :  { %v6605_v59 = vmax.f32 %v6067_v39, 0.0  ;;  %v6069_v42 = vadd.f32 %v6068_v2, %v5956_v27  ;;  %v5960_v34 = vadd.f32 %v5959_v51, %v11776_v5  ;;  %7907 = vmatpush1.bf16.msra.mxu1 %v9768_v58  ;;  %v12966_v5 = vld [vmem:[#allocation32_spill] sm:$0xff] }
 0x39e   :  { %v6072_v7 = vpop.f32.mrf.mxu1  ;;  %v5961_v21 = vpop.f32.mrf.mxu0  ;;  %7608 = vmatmul.mubr.bf16.gmra.mxu0 %v12965_v62  ;;  %7908 = vmatprep.subr.bf16.mxu1 %v9773_v19  ;;  %v9726_v39 = vld [vmem:[#allocation10 + $0x240] ss:$8 sps:$4 sm:$0xff]  }
 0x39f   :  { %v11896_v13 = vpack.c.bf16 %v6605_v59, %v6597_v6  ;;  %v6606_v33 = vmax.f32 %v6069_v42, 0.0  ;;  %v5962_v46 = vadd.f32 %v5961_v21, %v11783_v37  ;;  %7617 = vmatprep.mubr.bf16.mxu0 %v12966_v5  ;;  %v6073_v1 = vadd.f32 %v6072_v7, %v5960_v34  ;;  %7796 = vmatpush1.bf16.msra.mxu0 %v9723_v63  ;;  %v9731_v21 = vld [vmem:[#allocation10 + $0x234] ss:$8 sps:$4 sm:$0xff]   ;;  %v9774_v2 = vld [vmem:[#allocation10 + $0x340] ss:$8 sps:$4 sm:$0xff]  }
 0x3a0   :  { %v6074_v22 = vpop.f32.mrf.mxu1  ;;  %7721 = vmatmul.mubr.bf16.gmra.mxu1 %v11659_v11  ;;  %v5963_v14 = vpop.f32.mrf.mxu0  ;;  %7797 = vmatprep.subr.bf16.mxu0 %v9728_v50  ;;  %v9779_v59 = vld [vmem:[#allocation10 + $0x334] ss:$8 sps:$4 sm:$0xff]   ;;  %v9729_v50 = vld [vmem:[#allocation10 + $0x230] ss:$8 sps:$4 sm:$0xff]  }
 0x3a1   :  { %7730 = vmatprep.mubr.bf16.mxu1 %v11684_v17  ;;  %v5964_v58 = vadd.f32 %v5963_v14, %v11786_v53  ;;  %v11904_v27 = vpack.c.bf16 %v6606_v33, %v6598_v31  ;;  %7909 = vmatpush1.bf16.msra.mxu1 %v9771_v40  ;;  %v6075_v19 = vadd.f32 %v6074_v22, %v5962_v46  ;;  %v6613_v42 = vmax.f32 %v6073_v1, 0.0  ;;  %v9734_v40 = vld [vmem:[#allocation10 + $0x224] ss:$8 sps:$4 sm:$0xff]   ;;  %v9777_v33 = vld [vmem:[#allocation10 + $0x330] ss:$8 sps:$4 sm:$0xff]  }
 0x3a2   :  { %v6076_v4 = vpop.f32.mrf.mxu1  ;;  %v5965_v37 = vpop.f32.mrf.mxu0  ;;  %7910 = vmatprep.subr.bf16.mxu1 %v9776_v41  ;;  %v12967_v22 = vld [vmem:[#allocation92_spill] sm:$0xff] }
 0x3a3   :  { %v6077_v11 = vadd.f32 %v6076_v4, %v5964_v58  ;;  %v5966_v51 = vadd.f32 %v5965_v37, %v11789_v36  ;;  %7798 = vmatpush1.bf16.msra.mxu0 %v9726_v39  ;;  %v6614_v62 = vmax.f32 %v6075_v19, 0.0  ;;  %v9782_v14 = vld [vmem:[#allocation10 + $0x324] ss:$8 sps:$4 sm:$0xff]   ;;  %v9732_v37 = vld [vmem:[#allocation10 + $0x220] ss:$8 sps:$4 sm:$0xff]  }
 0x3a4   :  { %v6078_v6 = vpop.f32.mrf.mxu1  ;;  %v5969_v17 = vpop.f32.mrf.mxu0  ;;  %7799 = vmatprep.subr.bf16.mxu0 %v9731_v21  ;;  %v9780_v19 = vld [vmem:[#allocation10 + $0x320] ss:$8 sps:$4 sm:$0xff]  }
 0x3a5   :  { %v6621_v34 = vmax.f32 %v6077_v11, 0.0  ;;  %v6079_v53 = vadd.f32 %v6078_v6, %v5966_v51  ;;  %v5970_v7 = vadd.f32 %v5969_v17, %v11792_v9  ;;  %7911 = vmatpush1.bf16.msra.mxu1 %v9774_v2  ;;  %v12968_v9 = vld [vmem:[#allocation81_spill] sm:$0xff] }
 0x3a6   :  { %v6082_v63 = vpop.f32.mrf.mxu1  ;;  %v5971_v31 = vpop.f32.mrf.mxu0  ;;  %7618 = vmatmul.mubr.bf16.gmra.mxu0 %v12967_v22  ;;  %7912 = vmatprep.subr.bf16.mxu1 %v9779_v59  ;;  %v9737_v2 = vld [vmem:[#allocation10 + $0x214] ss:$8 sps:$4 sm:$0xff]  }
 0x3a7   :  { %v11908_v46 = vpack.c.bf16 %v6621_v34, %v6613_v42  ;;  %v6622_v36 = vmax.f32 %v6079_v53, 0.0  ;;  %v5972_v41 = vadd.f32 %v5971_v31, %v11799_v48  ;;  %7627 = vmatprep.mubr.bf16.mxu0 %v12968_v9  ;;  %v6083_v58 = vadd.f32 %v6082_v63, %v5970_v7  ;;  %7800 = vmatpush1.bf16.msra.mxu0 %v9729_v50  ;;  %v9785_v59 = vld [vmem:[#allocation10 + $0x314] ss:$8 sps:$4 sm:$0xff]   ;;  %v9735_v7 = vld [vmem:[#allocation10 + $0x210] ss:$8 sps:$4 sm:$0xff]  }
 0x3a8   :  { %v6084_v5 = vpop.f32.mrf.mxu1  ;;  %7731 = vmatmul.mubr.bf16.gmra.mxu1 %v11675_v45  ;;  %v5973_v1 = vpop.f32.mrf.mxu0  ;;  %7801 = vmatprep.subr.bf16.mxu0 %v9734_v40  ;;  %v9740_v50 = vld [vmem:[#allocation10 + $0x204] ss:$8 sps:$4 sm:$0xff]   ;;  %v9783_v31 = vld [vmem:[#allocation10 + $0x310] ss:$8 sps:$4 sm:$0xff]  }
 0x3a9   :  { %7740 = vmatprep.mubr.bf16.mxu1 %v11700_v28  ;;  %v5974_v4 = vadd.f32 %v5973_v1, %v11802_v24  ;;  %v11916_v21 = vpack.c.bf16 %v6622_v36, %v6614_v62  ;;  %7913 = vmatpush1.bf16.msra.mxu1 %v9777_v33  ;;  %v6085_v11 = vadd.f32 %v6084_v5, %v5972_v41  ;;  %v6629_v17 = vmax.f32 %v6083_v58, 0.0  ;;  %v12969_v62 = vld [vmem:[#allocation33_spill] sm:$0xff]  ;;  %v9788_v41 = vld [vmem:[#allocation10 + $0x304] ss:$8 sps:$4 sm:$0xff]   ;;  %v9738_v58 = vld [vmem:[#allocation10 + $0x200] ss:$8 sps:$4 sm:$0xff]  }
 0x3aa   :  { %v6086_v39 = vpop.f32.mrf.mxu1  ;;  %v5975_v48 = vpop.f32.mrf.mxu0  ;;  %7914 = vmatprep.subr.bf16.mxu1 %v9782_v14 }
 0x3ab   :  { %v6087_v45 = vadd.f32 %v6086_v39, %v5974_v4  ;;  %v5976_v51 = vadd.f32 %v5975_v48, %v11805_v52  ;;  %7802 = vmatpush1.bf16.msra.mxu0 %v9732_v37  ;;  %v6630_v40 = vmax.f32 %v6085_v11, 0.0  ;;  %v9743_v39 = vld [vmem:[#allocation10 + $0x2f4] ss:$8 sps:$4 sm:$0xff]   ;;  %v9786_v37 = vld [vmem:[#allocation10 + $0x300] ss:$8 sps:$4 sm:$0xff]  }
 0x3ac   :  { %v6088_v6 = vpop.f32.mrf.mxu1  ;;  %v5979_v28 = vpop.f32.mrf.mxu0  ;;  %7803 = vmatprep.subr.bf16.mxu0 %v9737_v2  ;;  %v9791_v11 = vld [vmem:[#allocation10 + $0x3f4] ss:$8 sps:$4 sm:$0xff]  }
 0x3ad   :  { %v6637_v42 = vmax.f32 %v6087_v45, 0.0  ;;  %v6089_v24 = vadd.f32 %v6088_v6, %v5976_v51  ;;  %v5980_v34 = vadd.f32 %v5979_v28, %v11808_v10  ;;  %7915 = vmatpush1.bf16.msra.mxu1 %v9780_v19  ;;  %v12970_v10 = vld [vmem:[#allocation82_spill] sm:$0xff] }
 0x3ae   :  { %v6092_v53 = vpop.f32.mrf.mxu1  ;;  %v5981_v63 = vpop.f32.mrf.mxu0  ;;  %7628 = vmatmul.mubr.bf16.gmra.mxu0 %v12969_v62  ;;  %7916 = vmatprep.subr.bf16.mxu1 %v9785_v59  ;;  %v9741_v28 = vld [vmem:[#allocation10 + $0x2f0] ss:$8 sps:$4 sm:$0xff]  }
 0x3af   :  { %v11920_v33 = vpack.c.bf16 %v6637_v42, %v6629_v17  ;;  %v6638_v52 = vmax.f32 %v6089_v24, 0.0  ;;  %v5982_v36 = vadd.f32 %v5981_v63, %v11815_v43  ;;  %7637 = vmatprep.mubr.bf16.mxu0 %v12970_v10  ;;  %v6093_v14 = vadd.f32 %v6092_v53, %v5980_v34  ;;  %7804 = vmatpush1.bf16.msra.mxu0 %v9735_v7  ;;  %v9746_v42 = vld [vmem:[#allocation10 + $0x2e4] ss:$8 sps:$4 sm:$0xff]   ;;  %v9789_v24 = vld [vmem:[#allocation10 + $0x3f0] ss:$8 sps:$4 sm:$0xff]  }
 0x3b0   :  { %v6094_v22 = vpop.f32.mrf.mxu1  ;;  %7741 = vmatmul.mubr.bf16.gmra.mxu1 %v11691_v8  ;;  %v5983_v5 = vpop.f32.mrf.mxu0  ;;  %7805 = vmatprep.subr.bf16.mxu0 %v9740_v50  ;;  %v12971_v7 = vld [vmem:[#allocation35_spill] sm:$0xff]  ;;  %v9749_v10 = vld [vmem:[#allocation10 + $0x2d4] ss:$8 sps:$4 sm:$0xff]  }
 0x3b1   :  { %7750 = vmatprep.mubr.bf16.mxu1 %v11716_v25  ;;  %v5984_v9 = vadd.f32 %v5983_v5, %v11818_v57  ;;  %v11928_v4 = vpack.c.bf16 %v6638_v52, %v6630_v40  ;;  %7917 = vmatpush1.bf16.msra.mxu1 %v9783_v31  ;;  %v6095_v48 = vadd.f32 %v6094_v22, %v5982_v36  ;;  %v6645_v45 = vmax.f32 %v6093_v14, 0.0  ;;  %v9794_v31 = vld [vmem:[#allocation10 + $0x3e4] ss:$8 sps:$4 sm:$0xff]   ;;  %v9744_v22 = vld [vmem:[#allocation10 + $0x2e0] ss:$8 sps:$4 sm:$0xff]  }
 0x3b2   :  { %v6096_v1 = vpop.f32.mrf.mxu1  ;;  %v5985_v43 = vpop.f32.mrf.mxu0  ;;  %7918 = vmatprep.subr.bf16.mxu1 %v9788_v41  ;;  %v9792_v5 = vld [vmem:[#allocation10 + $0x3e0] ss:$8 sps:$4 sm:$0xff]  }
 0x3b3   :  { %v6097_v8 = vadd.f32 %v6096_v1, %v5984_v9  ;;  %v5986_v2 = vadd.f32 %v5985_v43, %v11821_v49  ;;  %7806 = vmatpush1.bf16.msra.mxu0 %v9738_v58  ;;  %v6646_v34 = vmax.f32 %v6095_v48, 0.0  ;;  %v9797_v58 = vld [vmem:[#allocation10 + $0x3d4] ss:$8 sps:$4 sm:$0xff]  }
 0x3b4   :  { %v6098_v19 = vpop.f32.mrf.mxu1  ;;  %v5989_v25 = vpop.f32.mrf.mxu0  ;;  %7807 = vmatprep.subr.bf16.mxu0 %v9743_v39 }
 0x3b5   :  { %v6653_v51 = vmax.f32 %v6097_v8, 0.0  ;;  %v6099_v57 = vadd.f32 %v6098_v19, %v5986_v2  ;;  %v5990_v6 = vadd.f32 %v5989_v25, %v11824_v29  ;;  %7919 = vmatpush1.bf16.msra.mxu1 %v9786_v37  ;;  %v12972_v29 = vld [vmem:[#allocation84_spill] sm:$0xff]  ;;  %v9747_v8 = vld [vmem:[#allocation10 + $0x2d0] ss:$8 sps:$4 sm:$0xff]  }
 0x3b6   :  { %v6102_v59 = vpop.f32.mrf.mxu1  ;;  %v5991_v17 = vpop.f32.mrf.mxu0  ;;  %7638 = vmatmul.mubr.bf16.gmra.mxu0 %v12971_v7  ;;  %7920 = vmatprep.subr.bf16.mxu1 %v9791_v11  ;;  %v9752_v19 = vld [vmem:[#allocation10 + $0x2c4] ss:$8 sps:$4 sm:$0xff]   ;;  %v9795_v11 = vld [vmem:[#allocation10 + $0x3d0] ss:$8 sps:$4 sm:$0xff]   ;;  %v9755_v7 = vld [vmem:[#allocation10 + $0x2b4] ss:$8 sps:$4 sm:$0xff]  }
 0x3b7   :  { %v11932_v53 = vpack.c.bf16 %v6653_v51, %v6645_v45  ;;  %v6654_v49 = vmax.f32 %v6099_v57, 0.0  ;;  %v5992_v63 = vadd.f32 %v5991_v17, %v11831_v0  ;;  %7647 = vmatprep.mubr.bf16.mxu0 %v12972_v29  ;;  %v6103_v52 = vadd.f32 %v6102_v59, %v5990_v6  ;;  %7808 = vmatpush2.bf16.msra.mxu0 %v9741_v28  ;;  %v12973_v51 = vld [vmem:[#allocation83_spill] sm:$0xff] }
 0x3b8   :  { %v6104_v50 = vpop.f32.mrf.mxu1  ;;  %7751 = vmatmul.mubr.bf16.gmra.mxu1 %v11707_v30  ;;  %v5993_v40 = vpop.f32.mrf.mxu0  ;;  %7809 = vmatprep.subr.bf16.mxu0 %v9746_v42  ;;  %v9800_v59 = vld [vmem:[#allocation10 + $0x3c4] ss:$8 sps:$4 sm:$0xff]  }
 0x3b9   :  { %7760 = vmatprep.mubr.bf16.mxu1 %v11732_v35  ;;  %v5994_v62 = vadd.f32 %v5993_v40, %v11834_v55  ;;  %v11940_v41 = vpack.c.bf16 %v6654_v49, %v6646_v34  ;;  %7921 = vmatpush2.bf16.msra.mxu1 %v9789_v24  ;;  %v6105_v14 = vadd.f32 %v6104_v50, %v5992_v63  ;;  %v6661_v43 = vmax.f32 %v6103_v52, 0.0  ;;  %v9750_v34 = vld [vmem:[#allocation10 + $0x2c0] ss:$8 sps:$4 sm:$0xff]   ;;  %v9803_v40 = vld [vmem:[#allocation10 + $0x3b4] ss:$8 sps:$4 sm:$0xff]  }
 0x3ba   :  { %v6106_v36 = vpop.f32.mrf.mxu1  ;;  %v5995_v0 = vpop.f32.mrf.mxu0  ;;  %7922 = vmatprep.subr.bf16.mxu1 %v9794_v31  ;;  %v9798_v63 = vld [vmem:[#allocation10 + $0x3c0] ss:$8 sps:$4 sm:$0xff]  }
 0x3bb   :  { %v6107_v30 = vadd.f32 %v6106_v36, %v5994_v62  ;;  %v5996_v9 = vadd.f32 %v5995_v0, %v11837_v23  ;;  %7810 = vmatpush2.bf16.msra.mxu0 %v9744_v22  ;;  %v6662_v25 = vmax.f32 %v6105_v14, 0.0  ;;  %v9753_v0 = vld [vmem:[#allocation10 + $0x2b0] ss:$8 sps:$4 sm:$0xff]  }
 0x3bc   :  { %v6108_v1 = vpop.f32.mrf.mxu1  ;;  %v5999_v35 = vpop.f32.mrf.mxu0  ;;  %7811 = vmatprep.subr.bf16.mxu0 %v9749_v10  ;;  %v9801_v14 = vld [vmem:[#allocation10 + $0x3b0] ss:$8 sps:$4 sm:$0xff]  }
 0x3bd   :  { %v6669_v39 = vmax.f32 %v6107_v30, 0.0  ;;  %v6109_v55 = vadd.f32 %v6108_v1, %v5996_v9  ;;  %v6000_v37 = vadd.f32 %v5999_v35, %v11840_v61  ;;  %7923 = vmatpush2.bf16.msra.mxu1 %v9792_v5  ;;  %v12974_v61 = vld [vmem:[#allocation36_spill] sm:$0xff]  ;;  %v12975_v1 = vld [vmem:[#allocation34_spill] sm:$0xff] }
 0x3be   :  { %v6112_v48 = vpop.f32.mrf.mxu1  ;;  %v6001_v2 = vpop.f32.mrf.mxu0  ;;  %7648 = vmatmul.mubr.bf16.gmra.mxu0 %v12973_v51  ;;  %7924 = vmatprep.subr.bf16.mxu1 %v9797_v58  ;;  %v9758_v5 = vld [vmem:[#allocation10 + $0x2a4] ss:$8 sps:$4 sm:$0xff]  }
 0x3bf   :  { %v11944_v45 = vpack.c.bf16 %v6669_v39, %v6661_v43  ;;  %v6670_v23 = vmax.f32 %v6109_v55, 0.0  ;;  %v6002_v57 = vadd.f32 %v6001_v2, %v11847_v56  ;;  %7657 = vmatprep.mubr.bf16.mxu0 %v12974_v61  ;;  %v6113_v17 = vadd.f32 %v6112_v48, %v6000_v37  ;;  %7812 = vmatpush2.bf16.msra.mxu0 %v9747_v8  ;;  %v9806_v43 = vld [vmem:[#allocation10 + $0x3a4] ss:$8 sps:$4 sm:$0xff]   ;;  %v9756_v8 = vld [vmem:[#allocation10 + $0x2a0] ss:$8 sps:$4 sm:$0xff]  }
 0x3c0   :  { %v6114_v6 = vpop.f32.mrf.mxu1  ;;  %7761 = vmatmul.mubr.bf16.gmra.mxu1 %v11723_v15  ;;  %v6003_v28 = vpop.f32.mrf.mxu0  ;;  %7813 = vmatprep.subr.bf16.mxu0 %v9752_v19  ;;  %v9761_v19 = vld [vmem:[#allocation10 + $0x294] ss:$8 sps:$4 sm:$0xff]  }
 0x3c1   :  { %7770 = vmatprep.mubr.bf16.mxu1 %v11744_v12  ;;  %v6004_v42 = vadd.f32 %v6003_v28, %v11850_v20  ;;  %v11952_v49 = vpack.c.bf16 %v6670_v23, %v6662_v25  ;;  %7925 = vmatpush2.bf16.msra.mxu1 %v9795_v11  ;;  %v6115_v50 = vadd.f32 %v6114_v6, %v6002_v57  ;;  %v6677_v52 = vmax.f32 %v6113_v17, 0.0  ;;  %v9804_v11 = vld [vmem:[#allocation10 + $0x3a0] ss:$8 sps:$4 sm:$0xff]   ;;  %v9809_v57 = vld [vmem:[#allocation10 + $0x394] ss:$8 sps:$4 sm:$0xff]  }
 0x3c2   :  { %v6116_v24 = vpop.f32.mrf.mxu1  ;;  %v6005_v56 = vpop.f32.mrf.mxu0  ;;  %7926 = vmatprep.subr.bf16.mxu1 %v9800_v59  ;;  %v9759_v17 = vld [vmem:[#allocation10 + $0x290] ss:$8 sps:$4 sm:$0xff]  }
 0x3c3   :  { %v6117_v15 = vadd.f32 %v6116_v24, %v6004_v42  ;;  %v6006_v31 = vadd.f32 %v6005_v56, %v11853_v60  ;;  %7814 = vmatpush2.bf16.msra.mxu0 %v9750_v34  ;;  %v6678_v30 = vmax.f32 %v6115_v50, 0.0  ;;  %v9764_v24 = vld [vmem:[#allocation10 + $0x284] ss:$8 sps:$4 sm:$0xff]   ;;  %v9807_v34 = vld [vmem:[#allocation10 + $0x390] ss:$8 sps:$4 sm:$0xff]  }
 0x3c4   :  { %v6118_v29 = vpop.f32.mrf.mxu1  ;;  %v6009_v12 = vpop.f32.mrf.mxu0  ;;  %7815 = vmatprep.subr.bf16.mxu0 %v9755_v7 }
 0x3c5   :  { %v6685_v62 = vmax.f32 %v6117_v15, 0.0  ;;  %v6119_v20 = vadd.f32 %v6118_v29, %v6006_v31  ;;  %v6010_v36 = vadd.f32 %v6009_v12, %v11856_v3  ;;  %7927 = vmatpush2.bf16.msra.mxu1 %v9798_v63  ;;  %v12976_v3 = vld [vmem:[#allocation85_spill] sm:$0xff]  ;;  %v9812_v31 = vld [vmem:[#allocation10 + $0x384] ss:$8 sps:$4 sm:$0xff]  }
 0x3c6   :  { %v6122_v22 = vpop.f32.mrf.mxu1  ;;  %v6011_v10 = vpop.f32.mrf.mxu0  ;;  %7658 = vmatmul.mubr.bf16.gmra.mxu0 %v12975_v1  ;;  %7928 = vmatprep.subr.bf16.mxu1 %v9803_v40  ;;  %v12977_v63 = vld [vmem:[#allocation37_spill] sm:$0xff]  ;;  %v12978_v29 = vld [vmem:[#allocation28_spill] sm:$0xff] }
 0x3c7   :  { %v11956_v9 = vpack.c.bf16 %v6685_v62, %v6677_v52  ;;  %v6686_v60 = vmax.f32 %v6119_v20, 0.0  ;;  %v6012_v58 = vadd.f32 %v6011_v10, %v11863_v44  ;;  %7667 = vmatprep.mubr.bf16.mxu0 %v12976_v3  ;;  %v6123_v55 = vadd.f32 %v6122_v22, %v6010_v36  ;;  %7816 = vmatpush2.bf16.msra.mxu0 %v9753_v0  ;;  %v9762_v62 = vld [vmem:[#allocation10 + $0x280] ss:$8 sps:$4 sm:$0xff]   ;;  %v9836_v22 = vld [vmem:[#allocation9] sm:$0xff] }
 0x3c8   :  { %v6124_v35 = vpop.f32.mrf.mxu1  ;;  %7771 = vmatmul.mubr.bf16.gmra.mxu1 %v11736_v32  ;;  %v6013_v39 = vpop.f32.mrf.mxu0  ;;  %7817 = vmatprep.subr.bf16.mxu0 %v9758_v5  ;;  %v9810_v5 = vld [vmem:[#allocation10 + $0x380] ss:$8 sps:$4 sm:$0xff]  }
 0x3c9   :  { %7780 = vmatprep.mubr.bf16.mxu1 %v11764_v18  ;;  %v6014_v37 = vadd.f32 %v6013_v39, %v11866_v16  ;;  %v11964_v2 = vpack.c.bf16 %v6686_v60, %v6678_v30  ;;  %7929 = vmatpush2.bf16.msra.mxu1 %v9801_v14  ;;  %v6125_v25 = vadd.f32 %v6124_v35, %v6012_v58  ;;  %v6693_v6 = vmax.f32 %v6123_v55, 0.0  ;;  %v12981_v30 = vld [vmem:[#allocation29_spill] sm:$0xff] }
 0x3ca   :  { %v6126_v48 = vpop.f32.mrf.mxu1  ;;  %v6015_v44 = vpop.f32.mrf.mxu0  ;;  %7930 = vmatprep.subr.bf16.mxu1 %v9806_v43 }
 0x3cb   :  { %v6127_v32 = vadd.f32 %v6126_v48, %v6014_v37  ;;  %v6016_v23 = vadd.f32 %v6015_v44, %v11869_v54  ;;  %7818 = vmatpush2.bf16.msra.mxu0 %v9756_v8  ;;  %v6694_v56 = vmax.f32 %v6125_v25, 0.0 }
 0x3cc   :  { %v6128_v51 = vpop.f32.mrf.mxu1  ;;  %v6019_v18 = vpop.f32.mrf.mxu0  ;;  %7819 = vmatprep.subr.bf16.mxu0 %v9761_v19 }
 0x3cd   :  { %v6701_v59 = vmax.f32 %v6127_v32, 0.0  ;;  %v6129_v16 = vadd.f32 %v6128_v51, %v6016_v23  ;;  %v6020_v61 = vadd.f32 %v6019_v18, %v11872_v38  ;;  %7931 = vmatpush2.bf16.msra.mxu1 %v9804_v11 }
 0x3ce   :  { %v6132_v28 = vpop.f32.mrf.mxu1  ;;  %v6021_v42 = vpop.f32.mrf.mxu0  ;;  %7668 = vmatmul.mubr.bf16.gmra.mxu0 %v12977_v63  ;;  %7932 = vmatprep.subr.bf16.mxu1 %v9809_v57 }
 0x3cf   :  { %v11968_v7 = vpack.c.bf16 %v6701_v59, %v6693_v6  ;;  %v6702_v54 = vmax.f32 %v6129_v16, 0.0  ;;  %v6022_v50 = vadd.f32 %v6021_v42, %v11879_v47  ;;  %7823 = vmatprep.mubr.bf16.mxu0 %v11904_v27  ;;  %v6133_v40 = vadd.f32 %v6132_v28, %v6020_v61  ;;  %7820 = vmatpush2.bf16.msra.mxu0 %v9759_v17  ;;  %v12979_v47 = vld [vmem:[#allocation24_spill] sm:$0xff] }
 0x3d0   :  { %v6134_v15 = vpop.f32.mrf.mxu1  ;;  %7781 = vmatmul.mubr.bf16.gmra.mxu1 %v12978_v29  ;;  %v6023_v38 = vpop.f32.mrf.mxu0  ;;  %7821 = vmatprep.subr.bf16.mxu0 %v9764_v24  ;;  %v12980_v0 = vsub.s32 6, %v12979_v47 }
 0x3d1   :  { %v6024_v12 = vadd.f32 %v6023_v38, %v11882_v26  ;;  %v11975_v20 = vpack.c.bf16 %v6702_v54, %v6694_v56  ;;  %7933 = vmatpush2.bf16.msra.mxu1 %v9807_v34  ;;  %v6135_v14 = vadd.f32 %v6134_v15, %v6022_v50  ;;  %v12982_v26 = vsub.s32 7, %v12979_v47 }
 0x3d2   :  { %v6136_v52 = vpop.f32.mrf.mxu1  ;;  %v6025_v36 = vpop.f32.mrf.mxu0  ;;  %v11979_v10 = vrot.slane %v9836_v22, %v12980_v0  ;;  %7934 = vmatprep.subr.bf16.mxu1 %v9812_v31  ;;  %v6709_v35 = vmax.f32 %v6133_v40, 0.0 }
 0x3d3   :  { %v6137_v27 = vadd.f32 %v6136_v52, %v6024_v12  ;;  %v6026_v60 = vadd.f32 %v6025_v36, %v12981_v30  ;;  %v11984_v58 = vrot.slane %v9836_v22, %v12982_v26  ;;  %7822 = vmatpush2.bf16.msra.mxu0 %v9762_v62  ;;  %v6710_v48 = vmax.f32 %v6135_v14, 0.0 }
 0x3d4   :  { %v6138_v1 = vpop.f32.mrf.mxu1 }
 0x3d5   :  { %v6717_v43 = vmax.f32 %v6137_v27, 0.0  ;;  %v6139_v3 = vadd.f32 %v6138_v1, %v6026_v60  ;;  %v6175_v39 = vpop.f32.mrf.mxu0  ;;  %7935 = vmatpush2.bf16.msra.mxu1 %v9810_v5 }
 0x3d6   :  { %v6176_v55 = vadd.f32 %v6175_v39, %v11979_v10  ;;  %7824 = vmatmul.mubr.bf16.vlgmr.msra.gmra.mxu0 %v11896_v13 }
 0x3d7   :  { %v11987_v8 = vpack.c.bf16 %v6717_v43, %v6709_v35  ;;  %v6718_v44 = vmax.f32 %v6139_v3, 0.0  ;;  %v6177_v19 = vpop.f32.mrf.mxu0  ;;  %7833 = vmatprep.mubr.bf16.mxu0 %v11916_v21 }
 0x3d8   :  { %v6288_v37 = vpop.f32.mrf.mxu1  ;;  %v6178_v25 = vadd.f32 %v6177_v19, %v11984_v58 }
 0x3d9   :  { %v11989_v11 = vadd.f32 %v6288_v37, %v6176_v55  ;;  %v11994_v23 = vpop.f32.mrf.mxu0  ;;  %v11996_v51 = vpack.c.bf16 %v6718_v44, %v6710_v48 }
 0x3da   :  { %v6290_v32 = vpop.f32.mrf.mxu1 }
 0x3db   :  { %v11998_v57 = vadd.f32 %v6290_v32, %v6178_v25  ;;  %v12002_v6 = vpop.f32.mrf.mxu0 }
 0x3dc   :  { %v12000_v18 = vpop.f32.mrf.mxu1 }
 0x3dd   :  { %v6185_v16 = vpop.f32.mrf.mxu0 }
 0x3de   :  { %v12004_v59 = vpop.f32.mrf.mxu1  ;;  %v6186_v13 = vadd.f32 %v6185_v16, %v11979_v10  ;;  %7834 = vmatmul.mubr.bf16.gmra.mxu0 %v11908_v46 }
 0x3df   :  { %v6187_v28 = vpop.f32.mrf.mxu0  ;;  %7843 = vmatprep.mubr.bf16.mxu0 %v11928_v4 }
 0x3e0   :  { %v6298_v61 = vpop.f32.mrf.mxu1  ;;  %v6188_v21 = vadd.f32 %v6187_v28, %v11984_v58 }
 0x3e1   :  { %v12007_v17 = vadd.f32 %v6298_v61, %v6186_v13  ;;  %v12012_v24 = vpop.f32.mrf.mxu0 }
 0x3e2   :  { %v6300_v42 = vpop.f32.mrf.mxu1 }
 0x3e3   :  { %v12014_v34 = vadd.f32 %v6300_v42, %v6188_v21  ;;  %v12018_v54 = vpop.f32.mrf.mxu0 }
 0x3e4   :  { %v12016_v56 = vpop.f32.mrf.mxu1 }
 0x3e5   :  { %v6195_v50 = vpop.f32.mrf.mxu0 }
 0x3e6   :  { %v12020_v63 = vpop.f32.mrf.mxu1  ;;  %v6196_v15 = vadd.f32 %v6195_v50, %v11979_v10  ;;  %7844 = vmatmul.mubr.bf16.gmra.mxu0 %v11920_v33 }
 0x3e7   :  { %v6197_v46 = vpop.f32.mrf.mxu0  ;;  %7853 = vmatprep.mubr.bf16.mxu0 %v11940_v41 }
 0x3e8   :  { %v6308_v31 = vpop.f32.mrf.mxu1  ;;  %v6198_v4 = vadd.f32 %v6197_v46, %v11984_v58 }
 0x3e9   :  { %v12023_v29 = vadd.f32 %v6308_v31, %v6196_v15  ;;  %v12028_v40 = vpop.f32.mrf.mxu0 }
 0x3ea   :  { %v6310_v38 = vpop.f32.mrf.mxu1 }
 0x3eb   :  { %v12030_v12 = vadd.f32 %v6310_v38, %v6198_v4  ;;  %v12034_v62 = vpop.f32.mrf.mxu0 }
 0x3ec   :  { %v12032_v52 = vpop.f32.mrf.mxu1 }
 0x3ed   :  { %v6205_v22 = vpop.f32.mrf.mxu0 }
 0x3ee   :  { %v12036_v36 = vpop.f32.mrf.mxu1  ;;  %v6206_v47 = vadd.f32 %v6205_v22, %v11979_v10  ;;  %7854 = vmatmul.mubr.bf16.gmra.mxu0 %v11932_v53 }
 0x3ef   :  { %v6207_v33 = vpop.f32.mrf.mxu0  ;;  %7863 = vmatprep.mubr.bf16.mxu0 %v11952_v49 }
 0x3f0   :  { %v6318_v0 = vpop.f32.mrf.mxu1  ;;  %v6208_v41 = vadd.f32 %v6207_v33, %v11984_v58 }
 0x3f1   :  { %v12039_v5 = vadd.f32 %v6318_v0, %v6206_v47  ;;  %v12044_v27 = vpop.f32.mrf.mxu0 }
 0x3f2   :  { %v6320_v14 = vpop.f32.mrf.mxu1 }
 0x3f3   :  { %v12046_v30 = vadd.f32 %v6320_v14, %v6208_v41  ;;  %v12050_v1 = vpop.f32.mrf.mxu0 }
 0x3f4   :  { %v12048_v60 = vpop.f32.mrf.mxu1 }
 0x3f5   :  { %v6215_v35 = vpop.f32.mrf.mxu0 }
 0x3f6   :  { %v12052_v26 = vpop.f32.mrf.mxu1  ;;  %v6216_v43 = vadd.f32 %v6215_v35, %v11979_v10  ;;  %7864 = vmatmul.mubr.bf16.gmra.mxu0 %v11944_v45 }
 0x3f7   :  { %v6217_v53 = vpop.f32.mrf.mxu0  ;;  %7873 = vmatprep.mubr.bf16.mxu0 %v11964_v2 }
 0x3f8   :  { %v6328_v3 = vpop.f32.mrf.mxu1  ;;  %v6218_v49 = vadd.f32 %v6217_v53, %v11984_v58 }
 0x3f9   :  { %v12055_v39 = vadd.f32 %v6328_v3, %v6216_v43  ;;  %v12060_v37 = vpop.f32.mrf.mxu0 }
 0x3fa   :  { %v6330_v55 = vpop.f32.mrf.mxu1 }
 0x3fb   :  { %v12062_v48 = vadd.f32 %v6330_v55, %v6218_v49  ;;  %v12066_v19 = vpop.f32.mrf.mxu0 }
 0x3fc   :  { %v12064_v44 = vpop.f32.mrf.mxu1 }
 0x3fd   :  { %v6225_v32 = vpop.f32.mrf.mxu0 }
 0x3fe   :  { %v12068_v25 = vpop.f32.mrf.mxu1  ;;  %v6226_v16 = vadd.f32 %v6225_v32, %v11979_v10  ;;  %7874 = vmatmul.mubr.bf16.gmra.mxu0 %v11956_v9 }
 0x3ff   :  { %v6227_v45 = vpop.f32.mrf.mxu0  ;;  %7883 = vmatprep.mubr.bf16.mxu0 %v11975_v20 }
 0x400   :  { %v6338_v13 = vpop.f32.mrf.mxu1  ;;  %v6228_v2 = vadd.f32 %v6227_v45, %v11984_v58 }
 0x401   :  { %v12071_v61 = vadd.f32 %v6338_v13, %v6226_v16  ;;  %v12076_v21 = vpop.f32.mrf.mxu0 }
 0x402   :  { %v6340_v28 = vpop.f32.mrf.mxu1 }
 0x403   :  { %v12078_v42 = vadd.f32 %v6340_v28, %v6228_v2  ;;  %v12082_v15 = vpop.f32.mrf.mxu0  ;;  %v6180_v28 = vadd.f32 %v11994_v23, %v11979_v10  ;;  %v6190_v23 = vadd.f32 %v12012_v24, %v11979_v10 }
 0x404   :  { %v12080_v50 = vpop.f32.mrf.mxu1 }
 0x405   :  { %v6235_v46 = vpop.f32.mrf.mxu0 }
 0x406   :  { %v12084_v31 = vpop.f32.mrf.mxu1  ;;  %v6236_v4 = vadd.f32 %v6235_v46, %v11979_v10  ;;  %7884 = vmatmul.mubr.bf16.gmra.mxu0 %v11968_v7 }
 0x407   :  { %v6237_v9 = vpop.f32.mrf.mxu0  ;;  %7893 = vmatprep.mubr.bf16.mxu0 %v11996_v51 }
 0x408   :  { %v6348_v38 = vpop.f32.mrf.mxu1  ;;  %v6238_v20 = vadd.f32 %v6237_v9, %v11984_v58  ;;  %v6293_v9 = vadd.f32 %v12000_v18, %v6180_v28 }
 0x409   :  { %v12087_v22 = vadd.f32 %v6348_v38, %v6236_v4  ;;  %v12092_v0 = vpop.f32.mrf.mxu0 }
 0x40a   :  { %v6350_v47 = vpop.f32.mrf.mxu1 }
 0x40b   :  { %v12094_v33 = vadd.f32 %v6350_v47, %v6238_v20  ;;  %v12098_v14 = vpop.f32.mrf.mxu0 }
 0x40c   :  { %v12096_v41 = vpop.f32.mrf.mxu1 }
 0x40e   :  { %v12100_v35 = vpop.f32.mrf.mxu1  ;;  %v6245_v43 = vpop.f32.mrf.mxu0  ;;  %7894 = vmatmul.mubr.bf16.gmra.mxu0 %v11987_v8  ;;  %v6182_v8 = vadd.f32 %v12002_v6, %v11984_v58 }
 0x40f   :  { %v6246_v3 = vadd.f32 %v6245_v43, %v11979_v10 }
 0x410   :  { %v6358_v53 = vpop.f32.mrf.mxu1  ;;  %v6247_v7 = vpop.f32.mrf.mxu0 }
 0x411   :  { %v12103_v49 = vadd.f32 %v6358_v53, %v6246_v3  ;;  %v6248_v51 = vadd.f32 %v6247_v7, %v11984_v58  ;;  %v6295_v53 = vadd.f32 %v12004_v59, %v6182_v8  ;;  %v6303_v59 = vadd.f32 %v12016_v56, %v6190_v23 }
 0x412   :  { %v6360_v55 = vpop.f32.mrf.mxu1  ;;  %v12107_v32 = vpop.f32.mrf.mxu0 }
 0x413   :  { %12983 = vst [vmem:[#allocation30_spill] sm:$0xff] %v12103_v49  ;;  %v12109_v16 = vadd.f32 %v6360_v55, %v6248_v51 }
 0x414   :  { %v12111_v13 = vpop.f32.mrf.mxu1  ;;  %v12113_v45 = vpop.f32.mrf.mxu0 }
 0x415   :  { %12984 = vst [vmem:[#allocation31_spill] sm:$0xff] %v12109_v16  ;;  %12985 = vst [vmem:[#allocation39_spill] sm:$0xff] %v12111_v13 }
 0x416   :  { %v12115_v2 = vpop.f32.mrf.mxu1  ;;  %v6401_v46 = vpop.f32.mrf.mxu0 }
 0x417   :  { %12986 = vst [vmem:[#allocation86_spill] sm:$0xff] %v12115_v2  ;;  %v6402_v43 = vadd.f32 %v6401_v46, %v11989_v11 }
 0x418   :  { %v6514_v4 = vpop.f32.mrf.mxu1  ;;  %v6403_v38 = vpop.f32.mrf.mxu0 }
 0x419   :  { %v6404_v20 = vadd.f32 %v6403_v38, %v11998_v57  ;;  %v6515_v13 = vadd.f32 %v6514_v4, %v6402_v43  ;;  %v6192_v57 = vadd.f32 %v12018_v54, %v11984_v58 }
 0x41a   :  { %v6516_v47 = vpop.f32.mrf.mxu1  ;;  %v6405_v3 = vpop.f32.mrf.mxu0 }
 0x41b   :  { %v6406_v7 = vadd.f32 %v6405_v3, %v6293_v9  ;;  %v6517_v2 = vadd.f32 %v6516_v47, %v6404_v20  ;;  %v6599_v20 = vmax.f32 %v6515_v13, 0.0  ;;  %v6305_v4 = vadd.f32 %v12020_v63, %v6192_v57 }
 0x41c   :  { %v6518_v51 = vpop.f32.mrf.mxu1  ;;  %v6407_v55 = vpop.f32.mrf.mxu0 }
 0x41d   :  { %v6519_v6 = vadd.f32 %v6518_v51, %v6406_v7  ;;  %v6408_v49 = vadd.f32 %v6407_v55, %v6295_v53  ;;  %v6600_v8 = vmax.f32 %v6517_v2, 0.0  ;;  %v6200_v51 = vadd.f32 %v12028_v40, %v11979_v10 }
 0x41e   :  { %v6520_v16 = vpop.f32.mrf.mxu1  ;;  %v6411_v18 = vpop.f32.mrf.mxu0 }
 0x41f   :  { %v6521_v28 = vadd.f32 %v6520_v16, %v6408_v49  ;;  %v6607_v46 = vmax.f32 %v6519_v6, 0.0  ;;  %v6412_v47 = vadd.f32 %v6411_v18, %v12007_v17  ;;  %v6202_v17 = vadd.f32 %v12034_v62, %v11984_v58 }
 0x420   :  { %v6524_v11 = vpop.f32.mrf.mxu1  ;;  %v6413_v38 = vpop.f32.mrf.mxu0 }
 0x421   :  { %v6608_v9 = vmax.f32 %v6521_v28, 0.0  ;;  %v6414_v3 = vadd.f32 %v6413_v38, %v12014_v34  ;;  %v6727_v49 = vpack.c.bf16 %v6607_v46, %v6599_v20  ;;  %v6525_v34 = vadd.f32 %v6524_v11, %v6412_v47 }
 0x422   :  { %v6526_v24 = vpop.f32.mrf.mxu1  ;;  %v6415_v53 = vpop.f32.mrf.mxu0  ;;  %v6313_v28 = vadd.f32 %v12032_v52, %v6200_v51 }
 0x423   :  { %v6416_v43 = vadd.f32 %v6415_v53, %v6303_v59  ;;  %v6728_v54 = vpack.c.bf16 %v6608_v9, %v6600_v8  ;;  %v6527_v56 = vadd.f32 %v6526_v24, %v6414_v3  ;;  %v6615_v8 = vmax.f32 %v6525_v34, 0.0 }
 0x424   :  { %v6528_v7 = vpop.f32.mrf.mxu1  ;;  %v6417_v16 = vpop.f32.mrf.mxu0  ;;  %v6315_v3 = vadd.f32 %v12036_v36, %v6202_v17 }
 0x425   :  { %v6529_v2 = vadd.f32 %v6528_v7, %v6416_v43  ;;  %v6418_v55 = vadd.f32 %v6417_v16, %v6305_v4  ;;  %7936 = vmatprep.mubr.bf16.mxu1 %v6728_v54  ;;  %v6616_v46 = vmax.f32 %v6527_v56, 0.0  ;;  %v6210_v4 = vadd.f32 %v12044_v27, %v11979_v10 }
 0x426   :  { %v6530_v23 = vpop.f32.mrf.mxu1  ;;  %v6421_v13 = vpop.f32.mrf.mxu0  ;;  %7937 = vmatmul.mubr.bf16.vlgmr.msra.gmra.mxu1 %v6727_v49 }
 0x427   :  { %v6531_v63 = vadd.f32 %v6530_v23, %v6418_v55  ;;  %v6623_v18 = vmax.f32 %v6529_v2, 0.0  ;;  %v6422_v9 = vadd.f32 %v6421_v13, %v12023_v29  ;;  %v6212_v29 = vadd.f32 %v12050_v1, %v11984_v58 }
 0x428   :  { %v6534_v6 = vpop.f32.mrf.mxu1  ;;  %v6423_v57 = vpop.f32.mrf.mxu0  ;;  %v6323_v2 = vadd.f32 %v12048_v60, %v6210_v4 }
 0x429   :  { %v6624_v38 = vmax.f32 %v6531_v63, 0.0  ;;  %v6424_v40 = vadd.f32 %v6423_v57, %v12030_v12  ;;  %v6735_v47 = vpack.c.bf16 %v6623_v18, %v6615_v8  ;;  %v6535_v12 = vadd.f32 %v6534_v6, %v6422_v9 }
 0x42a   :  { %v6536_v59 = vpop.f32.mrf.mxu1  ;;  %v6425_v11 = vpop.f32.mrf.mxu0  ;;  %v6325_v6 = vadd.f32 %v12052_v26, %v6212_v29 }
 0x42b   :  { %v6426_v24 = vadd.f32 %v6425_v11, %v6313_v28  ;;  %v6736_v62 = vpack.c.bf16 %v6624_v38, %v6616_v46  ;;  %v6537_v52 = vadd.f32 %v6536_v59, %v6424_v40  ;;  %v6631_v13 = vmax.f32 %v6535_v12, 0.0 }
 0x42c   :  { %v6538_v20 = vpop.f32.mrf.mxu1  ;;  %v6427_v53 = vpop.f32.mrf.mxu0  ;;  %v6220_v38 = vadd.f32 %v12060_v37, %v11979_v10  ;;  %v9814_v37 = vld [vmem:[%s12582_s7 + $0x38] sm:$0xff]  }
 0x42d   :  { %v6539_v43 = vadd.f32 %v6538_v20, %v6426_v24  ;;  %v6428_v7 = vadd.f32 %v6427_v53, %v6315_v3  ;;  %7946 = vmatprep.mubr.bf16.mxu1 %v6736_v62  ;;  %v6632_v55 = vmax.f32 %v6537_v52, 0.0  ;;  %v9813_v3 = vld [vmem:[%s12582_s7 + $0x78] sm:$0xff]  }
 0x42e   :  { %v6540_v54 = vpop.f32.mrf.mxu1  ;;  %v6431_v49 = vpop.f32.mrf.mxu0  ;;  %7947 = vmatmul.mubr.bf16.gmra.mxu1 %v6735_v47  ;;  %v6333_v62 = vadd.f32 %v12064_v44, %v6220_v38  ;;  %9478 = vmatprep.subr.bf16.mxu0 %v9813_v3  ;;  %v6230_v44 = vadd.f32 %v12076_v21, %v11979_v10  ;;  %v9816_v21 = vld [vmem:[%s12582_s7 + $0x30] sm:$0xff]  }
 0x42f   :  { %v6541_v36 = vadd.f32 %v6540_v54, %v6428_v7  ;;  %v6639_v51 = vmax.f32 %v6539_v43, 0.0  ;;  %v6432_v17 = vadd.f32 %v6431_v49, %v12039_v5  ;;  %v6222_v5 = vadd.f32 %v12066_v19, %v11984_v58  ;;  %9479 = vmatpush3.bf16.msra.mxu0 %v9814_v37 }
 0x430   :  { %v6544_v16 = vpop.f32.mrf.mxu1  ;;  %v6433_v56 = vpop.f32.mrf.mxu0 }
 0x431   :  { %v6640_v23 = vmax.f32 %v6541_v36, 0.0  ;;  %v6434_v27 = vadd.f32 %v6433_v56, %v12046_v30  ;;  %v6743_v28 = vpack.c.bf16 %v6639_v51, %v6631_v13  ;;  %v6545_v30 = vadd.f32 %v6544_v16, %v6432_v17 }
 0x432   :  { %v6546_v34 = vpop.f32.mrf.mxu1  ;;  %v6435_v63 = vpop.f32.mrf.mxu0  ;;  %v6335_v54 = vadd.f32 %v12068_v25, %v6222_v5 }
 0x433   :  { %v6436_v18 = vadd.f32 %v6435_v63, %v6323_v2  ;;  %v6744_v1 = vpack.c.bf16 %v6640_v23, %v6632_v55  ;;  %v6547_v60 = vadd.f32 %v6546_v34, %v6434_v27  ;;  %v6647_v19 = vmax.f32 %v6545_v30, 0.0  ;;  %v9815_v34 = vld [vmem:[%s12582_s7 + $0x70] sm:$0xff]  }
 0x434   :  { %v6548_v57 = vpop.f32.mrf.mxu1  ;;  %v6437_v46 = vpop.f32.mrf.mxu0  ;;  %v6343_v63 = vadd.f32 %v12080_v50, %v6230_v44  ;;  %9480 = vmatprep.subr.bf16.mxu0 %v9815_v34  ;;  %v6240_v50 = vadd.f32 %v12092_v0, %v11979_v10  ;;  %v9818_v0 = vld [vmem:[%s12582_s7 + $0x28] sm:$0xff]  }
 0x435   :  { %v6549_v40 = vadd.f32 %v6548_v57, %v6436_v18  ;;  %v6438_v59 = vadd.f32 %v6437_v46, %v6325_v6  ;;  %7956 = vmatprep.mubr.bf16.mxu1 %v6744_v1  ;;  %v6648_v47 = vmax.f32 %v6547_v60, 0.0  ;;  %9481 = vmatpush3.bf16.msra.mxu0 %v9816_v21 }
 0x436   :  { %v6550_v8 = vpop.f32.mrf.mxu1  ;;  %v6441_v9 = vpop.f32.mrf.mxu0  ;;  %7957 = vmatmul.mubr.bf16.gmra.mxu1 %v6743_v28 }
 0x437   :  { %v6551_v26 = vadd.f32 %v6550_v8, %v6438_v59  ;;  %v6655_v24 = vmax.f32 %v6549_v40, 0.0  ;;  %v6442_v43 = vadd.f32 %v6441_v9, %v12055_v39  ;;  %v6232_v39 = vadd.f32 %v12082_v15, %v11984_v58 }
 0x438   :  { %v6554_v11 = vpop.f32.mrf.mxu1  ;;  %v6443_v20 = vpop.f32.mrf.mxu0 }
 0x439   :  { %v6656_v53 = vmax.f32 %v6551_v26, 0.0  ;;  %v6444_v4 = vadd.f32 %v6443_v20, %v12062_v48  ;;  %v6751_v36 = vpack.c.bf16 %v6655_v24, %v6647_v19  ;;  %v6555_v55 = vadd.f32 %v6554_v11, %v6442_v43  ;;  %v9817_v24 = vld [vmem:[%s12582_s7 + $0x68] sm:$0xff]  }
 0x43a   :  { %v6556_v52 = vpop.f32.mrf.mxu1  ;;  %v6445_v7 = vpop.f32.mrf.mxu0  ;;  %v6345_v38 = vadd.f32 %v12084_v31, %v6232_v39  ;;  %9482 = vmatprep.subr.bf16.mxu0 %v9817_v24  ;;  %v9823_v24 = vld [vmem:[%s12582_s7 + $0x50] sm:$0xff]  }
 0x43b   :  { %v6446_v12 = vadd.f32 %v6445_v7, %v6333_v62  ;;  %v6752_v29 = vpack.c.bf16 %v6656_v53, %v6648_v47  ;;  %v6557_v51 = vadd.f32 %v6556_v52, %v6444_v4  ;;  %v6663_v15 = vmax.f32 %v6555_v55, 0.0  ;;  %9483 = vmatpush3.bf16.msra.mxu0 %v9818_v0 }
 0x43c   :  { %v6558_v49 = vpop.f32.mrf.mxu1  ;;  %v6447_v16 = vpop.f32.mrf.mxu0  ;;  %v6353_v47 = vadd.f32 %v12096_v41, %v6240_v50  ;;  %v6250_v41 = vadd.f32 %v12107_v32, %v11979_v10  ;;  %v9820_v10 = vld [vmem:[%s12582_s7 + $0x20] sm:$0xff]  }
 0x43d   :  { %v6559_v56 = vadd.f32 %v6558_v49, %v6446_v12  ;;  %v6448_v48 = vadd.f32 %v6447_v16, %v6335_v54  ;;  %7966 = vmatprep.mubr.bf16.mxu1 %v6752_v29  ;;  %v6664_v6 = vmax.f32 %v6557_v51, 0.0 }
 0x43e   :  { %v6560_v2 = vpop.f32.mrf.mxu1  ;;  %v6451_v23 = vpop.f32.mrf.mxu0  ;;  %7967 = vmatmul.mubr.bf16.gmra.mxu1 %v6751_v36 }
 0x43f   :  { %v6561_v25 = vadd.f32 %v6560_v2, %v6448_v48  ;;  %v6671_v13 = vmax.f32 %v6559_v56, 0.0  ;;  %v6452_v28 = vadd.f32 %v6451_v23, %v12071_v61  ;;  %v6242_v61 = vadd.f32 %v12098_v14, %v11984_v58  ;;  %v9819_v23 = vld [vmem:[%s12582_s7 + $0x60] sm:$0xff]  }
 0x440   :  { %v6564_v27 = vpop.f32.mrf.mxu1  ;;  %v6453_v17 = vpop.f32.mrf.mxu0  ;;  %9484 = vmatprep.subr.bf16.mxu0 %v9819_v23 }
 0x441   :  { %v6672_v18 = vmax.f32 %v6561_v25, 0.0  ;;  %v6454_v57 = vadd.f32 %v6453_v17, %v12078_v42  ;;  %v6759_v8 = vpack.c.bf16 %v6671_v13, %v6663_v15  ;;  %v6565_v11 = vadd.f32 %v6564_v27, %v6452_v28  ;;  %v12987_v25 = vld [vmem:[#allocation39_spill] sm:$0xff]  ;;  %9485 = vmatpush3.bf16.msra.mxu0 %v9820_v10 }
 0x442   :  { %v6566_v1 = vpop.f32.mrf.mxu1  ;;  %v6455_v46 = vpop.f32.mrf.mxu0  ;;  %v6355_v54 = vadd.f32 %v12100_v35, %v6242_v61  ;;  %v6363_v27 = vadd.f32 %v12987_v25, %v6250_v41  ;;  %v12988_v13 = vld [vmem:[#allocation31_spill] sm:$0xff] }
 0x443   :  { %v6760_v60 = vpack.c.bf16 %v6672_v18, %v6664_v6  ;;  %v6456_v40 = vadd.f32 %v6455_v46, %v6343_v63  ;;  %v6567_v9 = vadd.f32 %v6566_v1, %v6454_v57  ;;  %v6679_v14 = vmax.f32 %v6565_v11, 0.0  ;;  %v12989_v6 = vld [vmem:[#allocation30_spill] sm:$0xff] }
 0x444   :  { %v6568_v59 = vpop.f32.mrf.mxu1  ;;  %v6457_v30 = vpop.f32.mrf.mxu0  ;;  %v12990_v1 = vld [vmem:[#allocation86_spill] sm:$0xff] }
 0x445   :  { %v6569_v5 = vadd.f32 %v6568_v59, %v6456_v40  ;;  %v6458_v42 = vadd.f32 %v6457_v30, %v6345_v38  ;;  %7976 = vmatprep.mubr.bf16.mxu1 %v6760_v60  ;;  %v6680_v53 = vmax.f32 %v6567_v9, 0.0  ;;  %v12991_v59 = vld [vmem:[#allocation26_spill] sm:$0xff] }
 0x446   :  { %v6570_v26 = vpop.f32.mrf.mxu1  ;;  %v6461_v3 = vpop.f32.mrf.mxu0  ;;  %7977 = vmatmul.mubr.bf16.gmra.mxu1 %v6759_v8 }
 0x447   :  { %v6571_v31 = vadd.f32 %v6570_v26, %v6458_v42  ;;  %v6687_v20 = vmax.f32 %v6569_v5, 0.0  ;;  %v6462_v43 = vadd.f32 %v6461_v3, %v12087_v22  ;;  %v6252_v22 = vadd.f32 %v12113_v45, %v11984_v58  ;;  %v6913_v58 = vld [vmem:[#allocation12] sm:$0x3]  ;;  %v12992_v26 = vld [vmem:[#allocation25_spill] sm:$0xff] }
 0x448   :  { %v6574_v37 = vpop.f32.mrf.mxu1  ;;  %v6463_v62 = vpop.f32.mrf.mxu0  ;;  %v12206_v8 = vrot.slane %v6913_v58, %v12991_v59  ;;  %v12209_v11 = vrot.slane %v6913_v58, %v12992_v26 }
 0x449   :  { %v6688_v4 = vmax.f32 %v6571_v31, 0.0  ;;  %v6464_v52 = vadd.f32 %v6463_v62, %v12094_v33  ;;  %v6767_v36 = vpack.c.bf16 %v6687_v20, %v6679_v14  ;;  %v6575_v48 = vadd.f32 %v6574_v37, %v6462_v43  ;;  %v9821_v31 = vld [vmem:[%s12582_s7 + $0x58] sm:$0xff]  }
 0x44a   :  { %v6576_v19 = vpop.f32.mrf.mxu1  ;;  %v6465_v7 = vpop.f32.mrf.mxu0  ;;  %v6365_v15 = vadd.f32 %v12990_v1, %v6252_v22  ;;  %v9822_v37 = vld [vmem:[%s12582_s7 + $0x18] sm:$0xff]   ;;  %9486 = vmatprep.subr.bf16.mxu0 %v9821_v31 }
 0x44b   :  { %v6768_v12 = vpack.c.bf16 %v6688_v4, %v6680_v53  ;;  %v6466_v49 = vadd.f32 %v6465_v7, %v6353_v47  ;;  %v6577_v44 = vadd.f32 %v6576_v19, %v6464_v52  ;;  %v6695_v45 = vmax.f32 %v6575_v48, 0.0  ;;  %9487 = vmatpush3.bf16.msra.mxu0 %v9822_v37  ;;  %v9824_v7 = vld [vmem:[%s12582_s7 + $0x10] sm:$0xff]  }
 0x44c   :  { %v6578_v29 = vpop.f32.mrf.mxu1  ;;  %v6467_v16 = vpop.f32.mrf.mxu0  ;;  %9488 = vmatprep.subr.bf16.mxu0 %v9823_v24 }
 0x44d   :  { %v6579_v51 = vadd.f32 %v6578_v29, %v6466_v49  ;;  %v6468_v33 = vadd.f32 %v6467_v16, %v6355_v54  ;;  %7986 = vmatprep.mubr.bf16.mxu1 %v6768_v12  ;;  %v6696_v34 = vmax.f32 %v6577_v44, 0.0  ;;  %v9825_v49 = vld [vmem:[%s12582_s7 + $0x48] sm:$0xff]  }
 0x44e   :  { %v6580_v56 = vpop.f32.mrf.mxu1  ;;  %v6471_v2 = vpop.f32.mrf.mxu0  ;;  %7987 = vmatmul.mubr.bf16.gmra.mxu1 %v6767_v36 }
 0x44f   :  { %v6581_v35 = vadd.f32 %v6580_v56, %v6468_v33  ;;  %v6703_v32 = vmax.f32 %v6579_v51, 0.0  ;;  %v6472_v18 = vadd.f32 %v6471_v2, %v12989_v6  ;;  %9489 = vmatpush3.bf16.msra.mxu0 %v9824_v7  ;;  %v9826_v51 = vld [vmem:[%s12582_s7 + $0x8] sm:$0xff]  }
 0x450   :  { %v6584_v55 = vpop.f32.mrf.mxu1  ;;  %v6473_v39 = vpop.f32.mrf.mxu0  ;;  %9490 = vmatprep.subr.bf16.mxu0 %v9825_v49 }
 0x451   :  { %v6704_v21 = vmax.f32 %v6581_v35, 0.0  ;;  %v6474_v17 = vadd.f32 %v6473_v39, %v12988_v13  ;;  %v6775_v60 = vpack.c.bf16 %v6703_v32, %v6695_v45  ;;  %v6585_v42 = vadd.f32 %v6584_v55, %v6472_v18 }
 0x452   :  { %v6586_v63 = vpop.f32.mrf.mxu1  ;;  %v6475_v57 = vpop.f32.mrf.mxu0 }
 0x453   :  { %v6776_v28 = vpack.c.bf16 %v6704_v21, %v6696_v34  ;;  %v6476_v46 = vadd.f32 %v6475_v57, %v6363_v27  ;;  %v6587_v30 = vadd.f32 %v6586_v63, %v6474_v17  ;;  %v6711_v52 = vmax.f32 %v6585_v42, 0.0  ;;  %9491 = vmatpush3.bf16.msra.mxu0 %v9826_v51 }
 0x454   :  { %v6588_v38 = vpop.f32.mrf.mxu1  ;;  %v6477_v40 = vpop.f32.mrf.mxu0 }
 0x455   :  { %v6589_v50 = vadd.f32 %v6588_v38, %v6476_v46  ;;  %v6478_v9 = vadd.f32 %v6477_v40, %v6365_v15  ;;  %7996 = vmatprep.mubr.bf16.mxu1 %v6776_v28  ;;  %v6712_v47 = vmax.f32 %v6587_v30, 0.0  ;;  %v9827_v38 = vld [vmem:[%s12582_s7 + $0x40] sm:$0xff]  }
 0x456   :  { %v6590_v5 = vpop.f32.mrf.mxu1  ;;  %7997 = vmatmul.mubr.bf16.gmra.mxu1 %v6775_v60  ;;  %v7599_v61 = vpop.f32.mrf.mxu0  ;;  %v9828_v40 = vld [vmem:[%s12582_s7] sm:$0xff]   ;;  %9492 = vmatprep.subr.bf16.mxu0 %v9827_v38 }
 0x457   :  { %v6591_v3 = vadd.f32 %v6590_v5, %v6478_v9  ;;  %v6719_v0 = vmax.f32 %v6589_v50, 0.0  ;;  %v7600_v20 = vadd.f32 %v7599_v61, %v12206_v8  ;;  %9493 = vmatpush3.bf16.msra.mxu0 %v9828_v40 }
 0x458   :  { %v7712_v62 = vpop.f32.mrf.mxu1  ;;  %v7601_v4 = vpop.f32.mrf.mxu0 }
 0x459   :  { %v6720_v53 = vmax.f32 %v6591_v3, 0.0  ;;  %v12221_v19 = vadd.f32 %v7712_v62, %v7600_v20  ;;  %v7602_v14 = vadd.f32 %v7601_v4, %v12209_v11  ;;  %v6783_v29 = vpack.c.bf16 %v6719_v0, %v6711_v52 }
 0x45a   :  { %v7714_v43 = vpop.f32.mrf.mxu1  ;;  %v12227_v12 = vpop.f32.mrf.mxu0 }
 0x45b   :  { %v6784_v54 = vpack.c.bf16 %v6720_v53, %v6712_v47  ;;  %v12232_v36 = vadd.f32 %v7714_v43, %v7602_v14 }
 0x45c   :  { %v12234_v16 = vpop.f32.mrf.mxu1  ;;  %v12236_v41 = vpop.f32.mrf.mxu0 }
 0x45d   :  { %8006 = vmatprep.mubr.bf16.mxu1 %v6784_v54 }
 0x45e   :  { %v12238_v44 = vpop.f32.mrf.mxu1  ;;  %8007 = vmatmul.mubr.bf16.gmra.mxu1 %v6783_v29  ;;  %v7609_v33 = vpop.f32.mrf.mxu0 }
 0x45f   :  { %v7610_v56 = vadd.f32 %v7609_v33, %v12206_v8 }
 0x460   :  { %v7722_v48 = vpop.f32.mrf.mxu1  ;;  %v7611_v2 = vpop.f32.mrf.mxu0 }
 0x461   :  { %v12244_v22 = vadd.f32 %v7722_v48, %v7610_v56  ;;  %v7612_v35 = vadd.f32 %v7611_v2, %v12209_v11 }
 0x462   :  { %v7724_v55 = vpop.f32.mrf.mxu1  ;;  %v12247_v23 = vpop.f32.mrf.mxu0 }
 0x463   :  { %v12249_v10 = vadd.f32 %v7724_v55, %v7612_v35 }
 0x464   :  { %v12251_v32 = vpop.f32.mrf.mxu1  ;;  %v12253_v39 = vpop.f32.mrf.mxu0 }
 0x466   :  { %v12255_v25 = vpop.f32.mrf.mxu1  ;;  %v7619_v27 = vpop.f32.mrf.mxu0 }
 0x467   :  { %v7620_v34 = vadd.f32 %v7619_v27, %v12206_v8 }
 0x468   :  { %v7732_v21 = vpop.f32.mrf.mxu1  ;;  %v7621_v13 = vpop.f32.mrf.mxu0 }
 0x469   :  { %v12258_v17 = vadd.f32 %v7732_v21, %v7620_v34  ;;  %v7622_v63 = vadd.f32 %v7621_v13, %v12209_v11 }
 0x46a   :  { %v7734_v58 = vpop.f32.mrf.mxu1  ;;  %v12261_v45 = vpop.f32.mrf.mxu0 }
 0x46b   :  { %v12263_v6 = vadd.f32 %v7734_v58, %v7622_v63 }
 0x46c   :  { %v12265_v18 = vpop.f32.mrf.mxu1  ;;  %v12267_v57 = vpop.f32.mrf.mxu0 }
 0x46e   :  { %v12269_v1 = vpop.f32.mrf.mxu1  ;;  %v7629_v15 = vpop.f32.mrf.mxu0 }
 0x46f   :  { %v7630_v28 = vadd.f32 %v7629_v15, %v12206_v8 }
 0x470   :  { %v7742_v46 = vpop.f32.mrf.mxu1  ;;  %v7631_v60 = vpop.f32.mrf.mxu0 }
 0x471   :  { %v12278_v59 = vadd.f32 %v7742_v46, %v7630_v28  ;;  %v7632_v30 = vadd.f32 %v7631_v60, %v12209_v11 }
 0x472   :  { %v7744_v50 = vpop.f32.mrf.mxu1  ;;  %v12281_v9 = vpop.f32.mrf.mxu0 }
 0x473   :  { %v12283_v5 = vadd.f32 %v7744_v50, %v7632_v30 }
 0x474   :  { %v12285_v42 = vpop.f32.mrf.mxu1  ;;  %v12287_v26 = vpop.f32.mrf.mxu0 }
 0x476   :  { %v12289_v3 = vpop.f32.mrf.mxu1  ;;  %v7639_v61 = vpop.f32.mrf.mxu0 }
 0x477   :  { %v7640_v31 = vadd.f32 %v7639_v61, %v12206_v8 }
 0x478   :  { %v7752_v37 = vpop.f32.mrf.mxu1  ;;  %v7641_v24 = vpop.f32.mrf.mxu0 }
 0x479   :  { %v12292_v0 = vadd.f32 %v7752_v37, %v7640_v31  ;;  %v7642_v20 = vadd.f32 %v7641_v24, %v12209_v11 }
 0x47a   :  { %v7754_v62 = vpop.f32.mrf.mxu1  ;;  %v12295_v47 = vpop.f32.mrf.mxu0 }
 0x47b   :  { %v12297_v53 = vadd.f32 %v7754_v62, %v7642_v20 }
 0x47c   :  { %v12299_v4 = vpop.f32.mrf.mxu1  ;;  %v12301_v52 = vpop.f32.mrf.mxu0 }
 0x47e   :  { %v12303_v14 = vpop.f32.mrf.mxu1  ;;  %v7649_v43 = vpop.f32.mrf.mxu0 }
 0x47f   :  { %v7650_v7 = vadd.f32 %v7649_v43, %v12206_v8 }
 0x480   :  { %v7762_v54 = vpop.f32.mrf.mxu1  ;;  %v7651_v49 = vpop.f32.mrf.mxu0 }
 0x481   :  { %v12306_v29 = vadd.f32 %v7762_v54, %v7650_v7  ;;  %v7652_v51 = vadd.f32 %v7651_v49, %v12209_v11 }
 0x482   :  { %v7764_v33 = vpop.f32.mrf.mxu1  ;;  %v12309_v56 = vpop.f32.mrf.mxu0 }
 0x483   :  { %12993 = vst [vmem:[#allocation87_spill] sm:$0xff] %v12306_v29  ;;  %12994 = vst [vmem:[#allocation93_spill] sm:$0xff] %v12309_v56  ;;  %v12311_v48 = vadd.f32 %v7764_v33, %v7652_v51  ;;  %v9829_v33 = vld [vmem:[%s12584_s9 + $0x18] sm:$0xff]   ;;  %v7616_v56 = vadd.f32 %v12253_v39, %v12209_v11 }
 0x484   :  { %v12313_v2 = vpop.f32.mrf.mxu1  ;;  %v12315_v35 = vpop.f32.mrf.mxu0  ;;  %9563 = vmatprep.subr.bf16.mxu1 %v9829_v33 }
 0x485   :  { %12995 = vst [vmem:[#allocation38_spill] sm:$0xff] %v12311_v48  ;;  %12996 = vst [vmem:[#allocation94_spill] sm:$0xff] %v12313_v2  ;;  %9564 = vmatpush3.bf16.msra.mxu1 %v9829_v33 }
 0x486   :  { %12997 = vst [vmem:[#allocation40_spill] sm:$0xff] %v12315_v35  ;;  %v12317_v55 = vpop.f32.mrf.mxu1  ;;  %v7659_v27 = vpop.f32.mrf.mxu0 }
 0x487   :  { %12998 = vst [vmem:[#allocation41_spill] sm:$0xff] %v12317_v55  ;;  %v7660_v34 = vadd.f32 %v7659_v27, %v12206_v8  ;;  %v9830_v27 = vld [vmem:[%s12584_s9 + $0x10] sm:$0xff]  }
 0x488   :  { %v7772_v21 = vpop.f32.mrf.mxu1  ;;  %v7661_v13 = vpop.f32.mrf.mxu0  ;;  %9565 = vmatprep.subr.bf16.mxu1 %v9830_v27 }
 0x489   :  { %v12320_v63 = vadd.f32 %v7772_v21, %v7660_v34  ;;  %v7662_v58 = vadd.f32 %v7661_v13, %v12209_v11  ;;  %9566 = vmatpush3.bf16.msra.mxu1 %v9830_v27 }
 0x48a   :  { %v7774_v15 = vpop.f32.mrf.mxu1  ;;  %v12323_v28 = vpop.f32.mrf.mxu0 }
 0x48b   :  { %12999 = vst [vmem:[#allocation43_spill] sm:$0xff] %v12320_v63  ;;  %13000 = vst [vmem:[#allocation95_spill] sm:$0xff] %v12323_v28  ;;  %v12325_v46 = vadd.f32 %v7774_v15, %v7662_v58  ;;  %v7606_v63 = vadd.f32 %v12236_v41, %v12209_v11 }
 0x48c   :  { %v12327_v38 = vpop.f32.mrf.mxu1  ;;  %v12329_v60 = vpop.f32.mrf.mxu0 }
 0x48d   :  { %13001 = vst [vmem:[#allocation96_spill] sm:$0xff] %v12325_v46  ;;  %13002 = vst [vmem:[#allocation97_spill] sm:$0xff] %v12327_v38 }
 0x48e   :  { %13003 = vst [vmem:[#allocation42_spill] sm:$0xff] %v12329_v60  ;;  %v12331_v40 = vpop.f32.mrf.mxu1  ;;  %v7669_v30 = vpop.f32.mrf.mxu0 }
 0x48f   :  { %13004 = vst [vmem:[#allocation98_spill] sm:$0xff] %v12331_v40  ;;  %v7670_v50 = vadd.f32 %v7669_v30, %v12206_v8 }
 0x490   :  { %v7782_v61 = vpop.f32.mrf.mxu1  ;;  %v7671_v31 = vpop.f32.mrf.mxu0 }
 0x491   :  { %v12334_v37 = vadd.f32 %v7782_v61, %v7670_v50  ;;  %v7672_v24 = vadd.f32 %v7671_v31, %v12209_v11 }
 0x492   :  { %v7784_v20 = vpop.f32.mrf.mxu1  ;;  %v12339_v43 = vpop.f32.mrf.mxu0 }
 0x493   :  { %13005 = vst [vmem:[#allocation44_spill] sm:$0xff] %v12334_v37  ;;  %v12337_v62 = vadd.f32 %v7784_v20, %v7672_v24  ;;  %13007 = vst [vmem:[#allocation47_spill] sm:$0xff] %v12339_v43 }
 0x494   :  { %v12341_v7 = vpop.f32.mrf.mxu0  ;;  %v12363_v37 = vpop.f32.mrf.mxu1 }
 0x495   :  { %13006 = vst [vmem:[#allocation45_spill] sm:$0xff] %v12337_v62  ;;  %13008 = vst [vmem:[#allocation99_spill] sm:$0xff] %v12341_v7  ;;  %v7604_v62 = vadd.f32 %v12227_v12, %v12206_v8 }
 0x496   :  { %v7825_v54 = vpop.f32.mrf.mxu0  ;;  %13009 = vst [vmem:[#allocation100_spill] sm:$0xff] %v12363_v37  ;;  %v12369_v7 = vpop.f32.mrf.mxu1  ;;  %v7719_v37 = vadd.f32 %v12238_v44, %v7606_v63 }
 0x497   :  { %13010 = vst [vmem:[#allocation46_spill] sm:$0xff] %v12369_v7  ;;  %v7717_v40 = vadd.f32 %v12234_v16, %v7604_v62  ;;  %v7826_v12 = vadd.f32 %v7825_v54, %v12221_v19  ;;  %v7614_v7 = vadd.f32 %v12247_v23, %v12206_v8 }
 0x498   :  { %v7827_v49 = vpop.f32.mrf.mxu0 }
 0x499   :  { %v7828_v28 = vadd.f32 %v7827_v49, %v12232_v36 }
 0x49a   :  { %v7829_v51 = vpop.f32.mrf.mxu0 }
 0x49b   :  { %v7830_v29 = vadd.f32 %v7829_v51, %v7717_v40  ;;  %v7727_v40 = vadd.f32 %v12251_v32, %v7614_v7  ;;  %v7624_v51 = vadd.f32 %v12261_v45, %v12206_v8 }
 0x49c   :  { %v7831_v34 = vpop.f32.mrf.mxu0 }
 0x49d   :  { %v7832_v55 = vadd.f32 %v7831_v34, %v7719_v37 }
 0x49e   :  { %v7835_v21 = vpop.f32.mrf.mxu0 }
 0x4a0   :  { %v7837_v13 = vpop.f32.mrf.mxu0 }
 0x4a2   :  { %v7839_v58 = vpop.f32.mrf.mxu0 }
 0x4a4   :  { %v7841_v15 = vpop.f32.mrf.mxu0 }
 0x4a6   :  { %v12349_v30 = vpop.f32.mrf.mxu0 }
 0x4a8   :  { %v12351_v50 = vpop.f32.mrf.mxu0 }
 0x4aa   :  { %v12353_v61 = vpop.f32.mrf.mxu0 }
 0x4ac   :  { %v12355_v31 = vpop.f32.mrf.mxu0 }
 0x4ae   :  { %v12357_v24 = vpop.f32.mrf.mxu0 }
 0x4b0   :  { %v12359_v20 = vpop.f32.mrf.mxu0 }
 0x4b2   :  { %v12361_v33 = vpop.f32.mrf.mxu0 }
 0x4b4   :  { %v12365_v27 = vpop.f32.mrf.mxu0 }
 0x4b6   :  { %v12371_v43 = vpop.f32.mrf.mxu0 }
 0x4b8   :  { %v12376_v38 = vpop.f32.mrf.mxu0 }
 0x4ba   :  { %v12383_v35 = vpop.f32.mrf.mxu0 }
 0x4bc   :  { %v12388_v49 = vpop.f32.mrf.mxu0 }
 0x4be   :  { %v12395_v34 = vpop.f32.mrf.mxu0 }
 0x4c0   :  { %v12400_v45 = vpop.f32.mrf.mxu0 }
 0x4e6   :  { %v7938_v46 = vpop.f32.mrf.mxu1 }
 0x4e7   :  { %v7939_v16 = vadd.f32 %v7938_v46, %v7826_v12 }
 0x4e8   :  { %v7940_v60 = vpop.f32.mrf.mxu1 }
 0x4e9   :  { %v7941_v2 = vadd.f32 %v7940_v60, %v7828_v28  ;;  %v8017_v23 = vmax.f32 %v7939_v16, 0.0  ;;  %v7840_v28 = vadd.f32 %v7839_v58, %v7727_v40  ;;  %v7836_v60 = vadd.f32 %v7835_v21, %v12244_v22 }
 0x4ea   :  { %v7942_v48 = vpop.f32.mrf.mxu1  ;;  %v7737_v21 = vadd.f32 %v12265_v18, %v7624_v51  ;;  %v7634_v18 = vadd.f32 %v12281_v9, %v12206_v8 }
 0x4eb   :  { %v7943_v41 = vadd.f32 %v7942_v48, %v7830_v29  ;;  %v8018_v19 = vmax.f32 %v7941_v2, 0.0  ;;  %v7729_v29 = vadd.f32 %v12255_v25, %v7616_v56  ;;  %v7838_v48 = vadd.f32 %v7837_v13, %v12249_v10 }
 0x4ec   :  { %v7944_v62 = vpop.f32.mrf.mxu1  ;;  %v7626_v10 = vadd.f32 %v12267_v57, %v12209_v11  ;;  %v7846_v57 = vadd.f32 %v12349_v30, %v12258_v17 }
 0x4ed   :  { %v7945_v44 = vadd.f32 %v7944_v62, %v7832_v55  ;;  %v8019_v63 = vmax.f32 %v7943_v41, 0.0  ;;  %v7842_v32 = vadd.f32 %v7841_v15, %v7729_v29 }
 0x4ee   :  { %v7948_v36 = vpop.f32.mrf.mxu1  ;;  %v7739_v62 = vadd.f32 %v12269_v1, %v7626_v10  ;;  %v12411_v1 = vpop.f32.mrf.mxu0 }
 0x4ef   :  { %v8020_v54 = vmax.f32 %v7945_v44, 0.0  ;;  %v8049_v39 = vpack.c.bf16 %v8019_v63, %v8017_v23  ;;  %v7949_v12 = vadd.f32 %v7948_v36, %v7836_v60  ;;  %v7848_v44 = vadd.f32 %v12351_v50, %v12263_v6 }
 0x4f0   :  { %v7950_v37 = vpop.f32.mrf.mxu1  ;;  %v7850_v63 = vadd.f32 %v12353_v61, %v7737_v21  ;;  %v7636_v50 = vadd.f32 %v12287_v26, %v12209_v11  ;;  %v7856_v26 = vadd.f32 %v12357_v24, %v12278_v59 }
 0x4f1   :  { %v8050_v46 = vpack.c.bf16 %v8020_v54, %v8018_v19  ;;  %v7951_v2 = vadd.f32 %v7950_v37, %v7838_v48  ;;  %v8021_v15 = vmax.f32 %v7949_v12, 0.0  ;;  %v7852_v54 = vadd.f32 %v12355_v31, %v7739_v62 }
 0x4f2   :  { %v7952_v55 = vpop.f32.mrf.mxu1  ;;  %v7747_v48 = vadd.f32 %v12285_v42, %v7634_v18  ;;  %v7644_v42 = vadd.f32 %v12295_v47, %v12206_v8 }
 0x4f3   :  { %v7953_v7 = vadd.f32 %v7952_v55, %v7840_v28  ;;  %8232 = vmatprep.mubr.bf16.mxu0 %v8050_v46  ;;  %v8022_v13 = vmax.f32 %v7951_v2, 0.0  ;;  %v12416_v46 = vpop.f32.mrf.mxu0  ;;  %v7858_v55 = vadd.f32 %v12359_v20, %v12283_v5  ;;  %v7646_v20 = vadd.f32 %v12301_v52, %v12209_v11 }
 0x4f4   :  { %v7954_v41 = vpop.f32.mrf.mxu1  ;;  %8233 = vmatmul.mubr.bf16.vlgmr.msra.gmra.mxu0 %v8049_v39  ;;  %v7749_v39 = vadd.f32 %v12289_v3, %v7636_v50  ;;  %v7860_v51 = vadd.f32 %v12361_v33, %v7747_v48  ;;  %v7866_v52 = vadd.f32 %v12371_v43, %v12292_v0  ;;  %v13013_v43 = vld [vmem:[#allocation94_spill] sm:$0xff] }
 0x4f5   :  { %v7955_v25 = vadd.f32 %v7954_v41, %v7842_v32  ;;  %v8023_v56 = vmax.f32 %v7953_v7, 0.0  ;;  %v12427_v3 = vpop.f32.mrf.mxu0  ;;  %v13015_v48 = vld [vmem:[#allocation38_spill] sm:$0xff] }
 0x4f6   :  { %v7958_v22 = vpop.f32.mrf.mxu1  ;;  %v7862_v12 = vadd.f32 %v12365_v27, %v7749_v39 }
 0x4f7   :  { %v8024_v58 = vmax.f32 %v7955_v25, 0.0  ;;  %v8051_v40 = vpack.c.bf16 %v8023_v56, %v8021_v15  ;;  %v7959_v29 = vadd.f32 %v7958_v22, %v7846_v57  ;;  %v7757_v56 = vadd.f32 %v12299_v4, %v7644_v42  ;;  %v7887_v21 = vpop.f32.mrf.mxu0  ;;  %v13011_v4 = vld [vmem:[#allocation93_spill] sm:$0xff] }
 0x4f8   :  { %v7960_v16 = vpop.f32.mrf.mxu1  ;;  %v7868_v15 = vadd.f32 %v12376_v38, %v12297_v53  ;;  %v13012_v53 = vld [vmem:[#allocation40_spill] sm:$0xff] }
 0x4f9   :  { %v8052_v36 = vpack.c.bf16 %v8024_v58, %v8022_v13  ;;  %v7961_v23 = vadd.f32 %v7960_v16, %v7848_v44  ;;  %v8025_v31 = vmax.f32 %v7959_v29, 0.0  ;;  %v7759_v58 = vadd.f32 %v12303_v14, %v7646_v20  ;;  %v7889_v14 = vpop.f32.mrf.mxu0  ;;  %v13019_v20 = vld [vmem:[#allocation97_spill] sm:$0xff] }
 0x4fa   :  { %v7962_v19 = vpop.f32.mrf.mxu1  ;;  %v7870_v16 = vadd.f32 %v12383_v35, %v7757_v56  ;;  %v7656_v35 = vadd.f32 %v13012_v53, %v12209_v11 }
 0x4fb   :  { %v7963_v37 = vadd.f32 %v7962_v19, %v7850_v63  ;;  %8240 = vmatprep.mubr.bf16.mxu0 %v8052_v36  ;;  %v8026_v28 = vmax.f32 %v7961_v23, 0.0  ;;  %v7654_v36 = vadd.f32 %v13011_v4, %v12206_v8  ;;  %v7872_v57 = vadd.f32 %v12388_v49, %v7759_v58  ;;  %v7891_v50 = vpop.f32.mrf.mxu0  ;;  %v13023_v4 = vld [vmem:[#allocation47_spill] sm:$0xff] }
 0x4fc   :  { %v7964_v6 = vpop.f32.mrf.mxu1  ;;  %8241 = vmatmul.mubr.bf16.gmra.mxu0 %v8051_v40 }
 0x4fd   :  { %v7965_v61 = vadd.f32 %v7964_v6, %v7852_v54  ;;  %v8027_v17 = vmax.f32 %v7963_v37, 0.0  ;;  %v7767_v37 = vadd.f32 %v13013_v43, %v7654_v36  ;;  %v7674_v36 = vadd.f32 %v13023_v4, %v12206_v8 }
 0x4fe   :  { %v7968_v30 = vpop.f32.mrf.mxu1 }
 0x4ff   :  { %v8028_v9 = vmax.f32 %v7965_v61, 0.0  ;;  %v8053_v2 = vpack.c.bf16 %v8027_v17, %v8025_v31  ;;  %v7969_v25 = vadd.f32 %v7968_v30, %v7856_v26  ;;  %v13014_v17 = vld [vmem:[#allocation41_spill] sm:$0xff] }
 0x500   :  { %v7970_v60 = vpop.f32.mrf.mxu1  ;;  %v7769_v30 = vadd.f32 %v13014_v17, %v7656_v35 }
 0x501   :  { %v8054_v32 = vpack.c.bf16 %v8028_v9, %v8026_v28  ;;  %v7971_v41 = vadd.f32 %v7970_v60, %v7858_v55  ;;  %v8029_v27 = vmax.f32 %v7969_v25, 0.0  ;;  %v7878_v28 = vadd.f32 %v12400_v45, %v13015_v48  ;;  %v13016_v60 = vld [vmem:[#allocation87_spill] sm:$0xff]  ;;  %v13018_v45 = vld [vmem:[#allocation42_spill] sm:$0xff] }
 0x502   :  { %v7972_v7 = vpop.f32.mrf.mxu1  ;;  %v7880_v9 = vadd.f32 %v12411_v1, %v7767_v37  ;;  %v7876_v39 = vadd.f32 %v12395_v34, %v13016_v60  ;;  %v7666_v1 = vadd.f32 %v13018_v45, %v12209_v11 }
 0x503   :  { %v7973_v10 = vadd.f32 %v7972_v7, %v7860_v51  ;;  %8248 = vmatprep.mubr.bf16.mxu0 %v8054_v32  ;;  %v8030_v22 = vmax.f32 %v7971_v41, 0.0  ;;  %v13017_v32 = vld [vmem:[#allocation95_spill] sm:$0xff] }
 0x504   :  { %v7974_v5 = vpop.f32.mrf.mxu1  ;;  %8249 = vmatmul.mubr.bf16.gmra.mxu0 %v8053_v2  ;;  %v7664_v26 = vadd.f32 %v13017_v32, %v12206_v8  ;;  %v7882_v2 = vadd.f32 %v12416_v46, %v7769_v30 }
 0x505   :  { %v7975_v33 = vadd.f32 %v7974_v5, %v7862_v12  ;;  %v8031_v59 = vmax.f32 %v7973_v10, 0.0  ;;  %v7895_v12 = vpop.f32.mrf.mxu0 }
 0x506   :  { %v7978_v24 = vpop.f32.mrf.mxu1 }
 0x507   :  { %v8032_v47 = vmax.f32 %v7975_v33, 0.0  ;;  %v8055_v44 = vpack.c.bf16 %v8031_v59, %v8029_v27  ;;  %v7979_v18 = vadd.f32 %v7978_v24, %v7866_v52  ;;  %v7777_v33 = vadd.f32 %v13019_v20, %v7664_v26  ;;  %v7897_v56 = vpop.f32.mrf.mxu0  ;;  %v12474_v20 = vld [vmem:[#allocation13] ss:$0 sm:$0xff] }
 0x508   :  { %v7980_v13 = vpop.f32.mrf.mxu1 }
 0x509   :  { %v8056_v62 = vpack.c.bf16 %v8032_v47, %v8030_v22  ;;  %v7981_v40 = vadd.f32 %v7980_v13, %v7868_v15  ;;  %v8033_v61 = vmax.f32 %v7979_v18, 0.0  ;;  %v13020_v47 = vld [vmem:[#allocation98_spill] sm:$0xff]  ;;  %v13021_v13 = vld [vmem:[#allocation96_spill] sm:$0xff]  ;;  %v7890_v15 = vadd.f32 %v7889_v14, %v7777_v33  ;;  %v7899_v18 = vpop.f32.mrf.mxu0 }
 0x50a   :  { %v7982_v63 = vpop.f32.mrf.mxu1  ;;  %v7779_v27 = vadd.f32 %v13020_v47, %v7666_v1  ;;  %v7888_v58 = vadd.f32 %v7887_v21, %v13021_v13  ;;  %v13024_v21 = vld [vmem:[#allocation99_spill] sm:$0xff]  ;;  %v9832_v1 = vld [vmem:[%s12584_s9] sm:$0xff]  }
 0x50b   :  { %v7983_v19 = vadd.f32 %v7982_v63, %v7870_v16  ;;  %8256 = vmatprep.mubr.bf16.mxu0 %v8056_v62  ;;  %v8034_v29 = vmax.f32 %v7981_v40, 0.0  ;;  %v13022_v62 = vld [vmem:[#allocation43_spill] sm:$0xff]  ;;  %v7676_v14 = vadd.f32 %v13024_v21, %v12209_v11 }
 0x50c   :  { %v7984_v54 = vpop.f32.mrf.mxu1  ;;  %8257 = vmatmul.mubr.bf16.gmra.mxu0 %v8055_v44  ;;  %v7886_v52 = vadd.f32 %v12427_v3, %v13022_v62  ;;  %v13025_v3 = vld [vmem:[#allocation100_spill] sm:$0xff] }
 0x50d   :  { %v7985_v38 = vadd.f32 %v7984_v54, %v7872_v57  ;;  %v8035_v23 = vmax.f32 %v7983_v19, 0.0  ;;  %v7892_v57 = vadd.f32 %v7891_v50, %v7779_v27  ;;  %v13026_v50 = vld [vmem:[#allocation46_spill] sm:$0xff] }
 0x50e   :  { %v7988_v0 = vpop.f32.mrf.mxu1 }
 0x50f   :  { %v8036_v6 = vmax.f32 %v7985_v38, 0.0  ;;  %v8057_v55 = vpack.c.bf16 %v8035_v23, %v8033_v61  ;;  %v7989_v41 = vadd.f32 %v7988_v0, %v7876_v39  ;;  %v7787_v0 = vadd.f32 %v13025_v3, %v7674_v36 }
 0x510   :  { %v7990_v49 = vpop.f32.mrf.mxu1  ;;  %v7789_v61 = vadd.f32 %v13026_v50, %v7676_v14 }
 0x511   :  { %v8058_v31 = vpack.c.bf16 %v8036_v6, %v8034_v29  ;;  %v7991_v7 = vadd.f32 %v7990_v49, %v7878_v28  ;;  %v8037_v22 = vmax.f32 %v7989_v41, 0.0  ;;  %v7901_v29 = vpop.f32.mrf.mxu0  ;;  %v13027_v49 = vld [vmem:[#allocation45_spill] sm:$0xff]  ;;  %v7900_v30 = vadd.f32 %v7899_v18, %v7787_v0  ;;  %v13028_v28 = vld [vmem:[#allocation44_spill] sm:$0xff] }
 0x512   :  { %v7992_v51 = vpop.f32.mrf.mxu1  ;;  %v7898_v17 = vadd.f32 %v7897_v56, %v13027_v49  ;;  %v7902_v60 = vadd.f32 %v7901_v29, %v7789_v61 }
 0x513   :  { %v7993_v42 = vadd.f32 %v7992_v51, %v7880_v9  ;;  %8264 = vmatprep.mubr.bf16.mxu0 %v8058_v31  ;;  %v8038_v59 = vmax.f32 %v7991_v7, 0.0  ;;  %v7896_v9 = vadd.f32 %v7895_v12, %v13028_v28  ;;  %v9831_v12 = vld [vmem:[%s12584_s9 + $0x8] sm:$0xff]  }
 0x514   :  { %v7994_v10 = vpop.f32.mrf.mxu1  ;;  %8265 = vmatmul.mubr.bf16.gmra.mxu0 %v8057_v55  ;;  %9567 = vmatprep.subr.bf16.mxu1 %v9831_v12 }
 0x515   :  { %v7995_v25 = vadd.f32 %v7994_v10, %v7882_v2  ;;  %v8039_v5 = vmax.f32 %v7993_v42, 0.0  ;;  %9568 = vmatpush3.bf16.msra.mxu1 %v9831_v12 }
 0x516   :  { %v7998_v34 = vpop.f32.mrf.mxu1  ;;  %9569 = vmatprep.subr.bf16.mxu1 %v9832_v1 }
 0x517   :  { %v8040_v24 = vmax.f32 %v7995_v25, 0.0  ;;  %v8059_v44 = vpack.c.bf16 %v8039_v5, %v8037_v22  ;;  %v7999_v54 = vadd.f32 %v7998_v34, %v7886_v52 }
 0x518   :  { %v8000_v46 = vpop.f32.mrf.mxu1 }
 0x519   :  { %v8060_v16 = vpack.c.bf16 %v8040_v24, %v8038_v59  ;;  %v8001_v40 = vadd.f32 %v8000_v46, %v7888_v58  ;;  %v8041_v8 = vmax.f32 %v7999_v54, 0.0  ;;  %9570 = vmatpush3.bf16.msra.mxu1 %v9832_v1 }
 0x51a   :  { %v8002_v63 = vpop.f32.mrf.mxu1 }
 0x51b   :  { %v8003_v19 = vadd.f32 %v8002_v63, %v7890_v15  ;;  %8272 = vmatprep.mubr.bf16.mxu0 %v8060_v16  ;;  %v8042_v43 = vmax.f32 %v8001_v40, 0.0 }
 0x51c   :  { %v8004_v53 = vpop.f32.mrf.mxu1  ;;  %8273 = vmatmul.mubr.bf16.gmra.mxu0 %v8059_v44 }
 0x51d   :  { %v8005_v35 = vadd.f32 %v8004_v53, %v7892_v57  ;;  %v8043_v38 = vmax.f32 %v8003_v19, 0.0 }
 0x51e   :  { %v8008_v23 = vpop.f32.mrf.mxu1 }
 0x51f   :  { %v8044_v37 = vmax.f32 %v8005_v35, 0.0  ;;  %v8061_v31 = vpack.c.bf16 %v8043_v38, %v8041_v8  ;;  %v8009_v51 = vadd.f32 %v8008_v23, %v7896_v9 }
 0x520   :  { %v8010_v6 = vpop.f32.mrf.mxu1 }
 0x521   :  { %v8062_v48 = vpack.c.bf16 %v8044_v37, %v8042_v43  ;;  %v8011_v39 = vadd.f32 %v8010_v6, %v7898_v17  ;;  %v8045_v41 = vmax.f32 %v8009_v51, 0.0 }
 0x522   :  { %v8012_v11 = vpop.f32.mrf.mxu1 }
 0x523   :  { %v8013_v55 = vadd.f32 %v8012_v11, %v7900_v30  ;;  %8280 = vmatprep.mubr.bf16.mxu0 %v8062_v48  ;;  %v8046_v7 = vmax.f32 %v8011_v39, 0.0 }
 0x524   :  { %v8014_v32 = vpop.f32.mrf.mxu1  ;;  %8281 = vmatmul.mubr.bf16.gmra.mxu0 %v8061_v31 }
 0x525   :  { %v8015_v26 = vadd.f32 %v8014_v32, %v7902_v60  ;;  %v8047_v2 = vmax.f32 %v8013_v55, 0.0 }
 0x527   :  { %v8048_v42 = vmax.f32 %v8015_v26, 0.0  ;;  %v8063_v45 = vpack.c.bf16 %v8047_v2, %v8045_v41 }
 0x529   :  { %v8064_v10 = vpack.c.bf16 %v8048_v42, %v8046_v7 }
 0x52b   :  { %8288 = vmatprep.mubr.bf16.mxu0 %v8064_v10 }
 0x52c   :  { %8289 = vmatmul.mubr.bf16.gmra.mxu0 %v8063_v45 }
 0x5b4   :  { %v9494_v25 = vpop.f32.mrf.mxu0 }
 0x5b6   :  { %v9495_v5 = vpop.f32.mrf.mxu0 }
 0x5b7   :  { %v9496_v34 = vadd.f32 %v9495_v5, %v9494_v25 }
 0x5b8   :  { %v9497_v33 = vpop.f32.mrf.mxu0 }
 0x5b9   :  { %v8235_v24 = vadd.f32 %v9496_v34, %v12474_v20 }
 0x5ba   :  { %v9498_v59 = vpop.f32.mrf.mxu0 }
 0x5bb   :  { %v9499_v56 = vadd.f32 %v9498_v59, %v9497_v33  ;;  %v8297_v27 = vmax.f32 %v8235_v24, 0.0 }
 0x5bc   :  { %v9500_v22 = vpop.f32.mrf.mxu0 }
 0x5bd   :  { %v8238_v46 = vadd.f32 %v9499_v56, %v12474_v20 }
 0x5be   :  { %v9501_v47 = vpop.f32.mrf.mxu0 }
 0x5bf   :  { %v8298_v13 = vmax.f32 %v8238_v46, 0.0  ;;  %v9502_v58 = vadd.f32 %v9501_v47, %v9500_v22 }
 0x5c0   :  { %v9503_v15 = vpop.f32.mrf.mxu0 }
 0x5c1   :  { %v8313_v16 = vpack.c.bf16 %v8298_v13, %v8297_v27  ;;  %v8243_v52 = vadd.f32 %v9502_v58, %v12474_v20 }
 0x5c2   :  { %v9504_v62 = vpop.f32.mrf.mxu0 }
 0x5c3   :  { %v9505_v44 = vadd.f32 %v9504_v62, %v9503_v15  ;;  %9571 = vmatprep.mubr.msk.bf16.mxu1 %vm8360_vm0, %v8313_v16  ;;  %v8299_v57 = vmax.f32 %v8243_v52, 0.0 }
 0x5c4   :  { %v9506_v63 = vpop.f32.mrf.mxu0 }
 0x5c5   :  { %v8246_v4 = vadd.f32 %v9505_v44, %v12474_v20 }
 0x5c6   :  { %v9507_v36 = vpop.f32.mrf.mxu0 }
 0x5c7   :  { %v8300_v40 = vmax.f32 %v8246_v4, 0.0  ;;  %v9508_v19 = vadd.f32 %v9507_v36, %v9506_v63 }
 0x5c8   :  { %v9509_v18 = vpop.f32.mrf.mxu0 }
 0x5c9   :  { %v8314_v54 = vpack.c.bf16 %v8300_v40, %v8299_v57  ;;  %v8251_v21 = vadd.f32 %v9508_v19, %v12474_v20 }
 0x5ca   :  { %v9510_v53 = vpop.f32.mrf.mxu0 }
 0x5cb   :  { %v9511_v14 = vadd.f32 %v9510_v53, %v9509_v18  ;;  %9572 = vmatmul.mubr.msk.bf16.vlgmr.msra.gmra.mxu1 %vm8360_vm0, %v8314_v54  ;;  %v8301_v3 = vmax.f32 %v8251_v21, 0.0  ;;  %v9833_v54 = vld [vmem:[%s12586_s11] sm:$0xff]  }
 0x5cc   :  { %v9512_v35 = vpop.f32.mrf.mxu0  ;;  %9587 = vmatprep.subr.bf16.mxu1 %v9833_v54 }
 0x5cd   :  { %v8254_v38 = vadd.f32 %v9511_v14, %v12474_v20  ;;  %9588 = vmatpush3.bf16.msra.mxu1 %v9833_v54  ;;  %v9455_v14 = vld [vmem:[#allocation15] ss:$0 sm:$0xff] }
 0x5ce   :  { %v9513_v23 = vpop.f32.mrf.mxu0 }
 0x5cf   :  { %v8302_v0 = vmax.f32 %v8254_v38, 0.0  ;;  %v9514_v43 = vadd.f32 %v9513_v23, %v9512_v35 }
 0x5d0   :  { %v9515_v37 = vpop.f32.mrf.mxu0 }
 0x5d1   :  { %v8315_v29 = vpack.c.bf16 %v8302_v0, %v8301_v3  ;;  %v8259_v6 = vadd.f32 %v9514_v43, %v12474_v20 }
 0x5d2   :  { %v9516_v8 = vpop.f32.mrf.mxu0 }
 0x5d3   :  { %v9517_v50 = vadd.f32 %v9516_v8, %v9515_v37  ;;  %9575 = vmatprep.mubr.msk.bf16.mxu1 %vm8360_vm0, %v8315_v29  ;;  %v8303_v30 = vmax.f32 %v8259_v6, 0.0 }
 0x5d4   :  { %v9518_v61 = vpop.f32.mrf.mxu0 }
 0x5d5   :  { %v8262_v49 = vadd.f32 %v9517_v50, %v12474_v20 }
 0x5d6   :  { %v9519_v17 = vpop.f32.mrf.mxu0 }
 0x5d7   :  { %v8304_v48 = vmax.f32 %v8262_v49, 0.0  ;;  %v9520_v28 = vadd.f32 %v9519_v17, %v9518_v61 }
 0x5d8   :  { %v9521_v9 = vpop.f32.mrf.mxu0 }
 0x5d9   :  { %v8316_v31 = vpack.c.bf16 %v8304_v48, %v8303_v30  ;;  %v8267_v60 = vadd.f32 %v9520_v28, %v12474_v20 }
 0x5da   :  { %v9522_v11 = vpop.f32.mrf.mxu0 }
 0x5db   :  { %v9523_v39 = vadd.f32 %v9522_v11, %v9521_v9  ;;  %9576 = vmatmul.mubr.msk.bf16.gmra.mxu1 %vm8360_vm0, %v8316_v31  ;;  %v8305_v26 = vmax.f32 %v8267_v60, 0.0 }
 0x5dc   :  { %v9524_v55 = vpop.f32.mrf.mxu0 }
 0x5dd   :  { %v8270_v51 = vadd.f32 %v9523_v39, %v12474_v20 }
 0x5de   :  { %v9525_v32 = vpop.f32.mrf.mxu0 }
 0x5df   :  { %v8306_v2 = vmax.f32 %v8270_v51, 0.0  ;;  %v9526_v7 = vadd.f32 %v9525_v32, %v9524_v55 }
 0x5e0   :  { %v9527_v42 = vpop.f32.mrf.mxu0 }
 0x5e1   :  { %v8317_v41 = vpack.c.bf16 %v8306_v2, %v8305_v26  ;;  %v8275_v45 = vadd.f32 %v9526_v7, %v12474_v20 }
 0x5e2   :  { %v9528_v10 = vpop.f32.mrf.mxu0 }
 0x5e3   :  { %v9529_v12 = vadd.f32 %v9528_v10, %v9527_v42  ;;  %9579 = vmatprep.mubr.msk.bf16.mxu1 %vm8360_vm0, %v8317_v41  ;;  %v8307_v34 = vmax.f32 %v8275_v45, 0.0 }
 0x5e4   :  { %v9530_v1 = vpop.f32.mrf.mxu0 }
 0x5e5   :  { %v8278_v25 = vadd.f32 %v9529_v12, %v12474_v20 }
 0x5e6   :  { %v9531_v5 = vpop.f32.mrf.mxu0 }
 0x5e7   :  { %v8308_v33 = vmax.f32 %v8278_v25, 0.0  ;;  %v9532_v59 = vadd.f32 %v9531_v5, %v9530_v1 }
 0x5e8   :  { %v9533_v24 = vpop.f32.mrf.mxu0 }
 0x5e9   :  { %v8318_v56 = vpack.c.bf16 %v8308_v33, %v8307_v34  ;;  %v8283_v46 = vadd.f32 %v9532_v59, %v12474_v20 }
 0x5ea   :  { %v9534_v22 = vpop.f32.mrf.mxu0 }
 0x5eb   :  { %v9535_v47 = vadd.f32 %v9534_v22, %v9533_v24  ;;  %9580 = vmatmul.mubr.msk.bf16.gmra.mxu1 %vm8360_vm0, %v8318_v56  ;;  %v8309_v15 = vmax.f32 %v8283_v46, 0.0 }
 0x5ec   :  { %v9536_v27 = vpop.f32.mrf.mxu0 }
 0x5ed   :  { %v8286_v13 = vadd.f32 %v9535_v47, %v12474_v20 }
 0x5ee   :  { %v9537_v58 = vpop.f32.mrf.mxu0 }
 0x5ef   :  { %v8310_v16 = vmax.f32 %v8286_v13, 0.0  ;;  %v9538_v62 = vadd.f32 %v9537_v58, %v9536_v27 }
 0x5f0   :  { %v9539_v52 = vpop.f32.mrf.mxu0 }
 0x5f1   :  { %v8319_v44 = vpack.c.bf16 %v8310_v16, %v8309_v15  ;;  %v8291_v4 = vadd.f32 %v9538_v62, %v12474_v20 }
 0x5f2   :  { %v9540_v63 = vpop.f32.mrf.mxu0 }
 0x5f3   :  { %v9541_v36 = vadd.f32 %v9540_v63, %v9539_v52  ;;  %9583 = vmatprep.mubr.msk.bf16.mxu1 %vm8360_vm0, %v8319_v44  ;;  %v8311_v40 = vmax.f32 %v8291_v4, 0.0  ;;  %v9468_v4 = vld [vmem:[#allocation16] ss:$0 sm:$0xff] }
 0x5f5   :  { %v8294_v57 = vadd.f32 %v9541_v36, %v12474_v20 }
 0x5f7   :  { %v8312_v19 = vmax.f32 %v8294_v57, 0.0 }
 0x5f9   :  { %v8320_v18 = vpack.c.bf16 %v8312_v19, %v8311_v40 }
 0x5fb   :  { %9584 = vmatmul.mubr.msk.bf16.gmra.mxu1 %vm8360_vm0, %v8320_v18 }
 0x68b   :  { %v9573_v53 = vpop.f32.mrf.mxu1 }
 0x68c   :  { %v8428_v3 = vadd.f32 %v9573_v53, %v9455_v14 }
 0x68d   :  { %v8419_v21 = vpop.f32.mrf.mxu1 }
 0x68e   :  { %v8420_v38 = vadd.f32 %v9455_v14, %v8419_v21  ;;  %v8484_v8 = vmax.f32 %v8428_v3, 0.0 }
 0x68f   :  { %v9574_v35 = vpop.f32.mrf.mxu1 }
 0x690   :  { %v8431_v23 = vadd.f32 %v9574_v35, %v9455_v14  ;;  %v8482_v37 = vmax.f32 %v8420_v38, 0.0 }
 0x691   :  { %v8422_v0 = vpop.f32.mrf.mxu1 }
 0x692   :  { %v8423_v20 = vadd.f32 %v9455_v14, %v8422_v0  ;;  %v8485_v43 = vmax.f32 %v8431_v23, 0.0 }
 0x694   :  { %v8483_v29 = vmax.f32 %v8423_v20, 0.0  ;;  %v8499_v50 = vpack.c.bf16 %v8485_v43, %v8484_v8 }
 0x696   :  { %v8498_v6 = vpack.c.bf16 %v8483_v29, %v8482_v37 }
 0x698   :  { %9589 = vmatprep.mubr.msk.bf16.mxu1 %vm8521_vm1, %v8498_v6 }
 0x699   :  { %9590 = vmatmul.mubr.msk.bf16.vlgmr.msra.gmra.mxu1 %vm8521_vm1, %v8499_v50 }
 0x69b   :  { %v9577_v61 = vpop.f32.mrf.mxu1 }
 0x69c   :  { %v8444_v28 = vadd.f32 %v9577_v61, %v9455_v14 }
 0x69d   :  { %v8435_v49 = vpop.f32.mrf.mxu1 }
 0x69e   :  { %v8436_v30 = vadd.f32 %v9455_v14, %v8435_v49  ;;  %v8488_v55 = vmax.f32 %v8444_v28, 0.0 }
 0x69f   :  { %v9578_v17 = vpop.f32.mrf.mxu1 }
 0x6a0   :  { %v8447_v48 = vadd.f32 %v9578_v17, %v9455_v14  ;;  %v8486_v60 = vmax.f32 %v8436_v30, 0.0 }
 0x6a1   :  { %v8438_v9 = vpop.f32.mrf.mxu1 }
 0x6a2   :  { %v8439_v31 = vadd.f32 %v9455_v14, %v8438_v9  ;;  %v8489_v11 = vmax.f32 %v8447_v48, 0.0 }
 0x6a4   :  { %v8487_v39 = vmax.f32 %v8439_v31, 0.0  ;;  %v8501_v32 = vpack.c.bf16 %v8489_v11, %v8488_v55 }
 0x6a6   :  { %v8500_v51 = vpack.c.bf16 %v8487_v39, %v8486_v60 }
 0x6a8   :  { %9593 = vmatprep.mubr.msk.bf16.mxu1 %vm8521_vm1, %v8500_v51 }
 0x6a9   :  { %9594 = vmatmul.mubr.msk.bf16.gmra.mxu1 %vm8521_vm1, %v8501_v32 }
 0x6ab   :  { %v9581_v26 = vpop.f32.mrf.mxu1 }
 0x6ac   :  { %v8460_v10 = vadd.f32 %v9581_v26, %v9455_v14 }
 0x6ad   :  { %v8451_v2 = vpop.f32.mrf.mxu1 }
 0x6ae   :  { %v8452_v42 = vadd.f32 %v9455_v14, %v8451_v2  ;;  %v8492_v34 = vmax.f32 %v8460_v10, 0.0 }
 0x6af   :  { %v9582_v7 = vpop.f32.mrf.mxu1 }
 0x6b0   :  { %v8463_v41 = vadd.f32 %v9582_v7, %v9455_v14  ;;  %v8490_v25 = vmax.f32 %v8452_v42, 0.0 }
 0x6b1   :  { %v8454_v45 = vpop.f32.mrf.mxu1 }
 0x6b2   :  { %v8455_v12 = vadd.f32 %v9455_v14, %v8454_v45  ;;  %v8493_v1 = vmax.f32 %v8463_v41, 0.0 }
 0x6b4   :  { %v8491_v5 = vmax.f32 %v8455_v12, 0.0  ;;  %v8503_v59 = vpack.c.bf16 %v8493_v1, %v8492_v34 }
 0x6b6   :  { %v8502_v33 = vpack.c.bf16 %v8491_v5, %v8490_v25 }
 0x6b8   :  { %9597 = vmatprep.mubr.msk.bf16.mxu1 %vm8521_vm1, %v8502_v33 }
 0x6b9   :  { %9598 = vmatmul.mubr.msk.bf16.gmra.mxu1 %vm8521_vm1, %v8503_v59 }
 0x6bb   :  { %v9585_v24 = vpop.f32.mrf.mxu1 }
 0x6bc   :  { %v8476_v27 = vadd.f32 %v9585_v24, %v9455_v14 }
 0x6bd   :  { %v8467_v56 = vpop.f32.mrf.mxu1 }
 0x6be   :  { %v8468_v46 = vadd.f32 %v9455_v14, %v8467_v56  ;;  %v8496_v52 = vmax.f32 %v8476_v27, 0.0 }
 0x6bf   :  { %v9586_v22 = vpop.f32.mrf.mxu1 }
 0x6c0   :  { %v8479_v47 = vadd.f32 %v9586_v22, %v9455_v14  ;;  %v8494_v16 = vmax.f32 %v8468_v46, 0.0 }
 0x6c1   :  { %v8470_v13 = vpop.f32.mrf.mxu1 }
 0x6c2   :  { %v8471_v58 = vadd.f32 %v9455_v14, %v8470_v13  ;;  %v8497_v15 = vmax.f32 %v8479_v47, 0.0 }
 0x6c4   :  { %v8495_v62 = vmax.f32 %v8471_v58, 0.0  ;;  %v8505_v63 = vpack.c.bf16 %v8497_v15, %v8496_v52 }
 0x6c6   :  { %v8504_v44 = vpack.c.bf16 %v8495_v62, %v8494_v16 }
 0x6c8   :  { %9601 = vmatprep.mubr.msk.bf16.mxu1 %vm8521_vm1, %v8504_v44 }
 0x6c9   :  { %9602 = vmatmul.mubr.msk.bf16.gmra.mxu1 %vm8521_vm1, %v8505_v63 }
 0x759   :  { %v9591_v36 = vpop.f32.mrf.mxu1 }
 0x75a   :  { %v8589_v57 = vadd.f32 %v9591_v36, %v9468_v4 }
 0x75b   :  { %v8580_v40 = vpop.f32.mrf.mxu1 }
 0x75c   :  { %8646 = vst.msk [vmem:[%s12588_s13 + $0x10] sm:$0xff] %vm8643_vm2, %v8589_v57  ;;  %v8581_v19 = vadd.f32 %v9468_v4, %v8580_v40 }
 0x75d   :  { %v9592_v18 = vpop.f32.mrf.mxu1 }
 0x75e   :  { %8644 = vst.msk [vmem:[%s12588_s13] sm:$0xff] %vm8643_vm2, %v8581_v19  ;;  %v8592_v54 = vadd.f32 %v9592_v18, %v9468_v4 }
 0x75f   :  { %v8583_v53 = vpop.f32.mrf.mxu1 }
 0x760   :  { %8647 = vst.msk [vmem:[%s12588_s13 + $0x18] sm:$0xff] %vm8643_vm2, %v8592_v54  ;;  %v8584_v21 = vadd.f32 %v9468_v4, %v8583_v53 }
 0x762   :  { %8645 = vst.msk [vmem:[%s12588_s13 + $0x8] sm:$0xff] %vm8643_vm2, %v8584_v21 }
 0x769   :  { %v9595_v14 = vpop.f32.mrf.mxu1 }
 0x76a   :  { %v8605_v35 = vadd.f32 %v9595_v14, %v9468_v4 }
 0x76b   :  { %v8596_v38 = vpop.f32.mrf.mxu1 }
 0x76c   :  { %8650 = vst.msk [vmem:[%s12588_s13 + $0x30] sm:$0xff] %vm8643_vm2, %v8605_v35  ;;  %v8597_v23 = vadd.f32 %v9468_v4, %v8596_v38 }
 0x76d   :  { %v9596_v3 = vpop.f32.mrf.mxu1 }
 0x76e   :  { %8648 = vst.msk [vmem:[%s12588_s13 + $0x20] sm:$0xff] %vm8643_vm2, %v8597_v23  ;;  %v8608_v0 = vadd.f32 %v9596_v3, %v9468_v4 }
 0x76f   :  { %v8599_v20 = vpop.f32.mrf.mxu1 }
 0x770   :  { %8651 = vst.msk [vmem:[%s12588_s13 + $0x38] sm:$0xff] %vm8643_vm2, %v8608_v0  ;;  %v8600_v43 = vadd.f32 %v9468_v4, %v8599_v20 }
 0x772   :  { %8649 = vst.msk [vmem:[%s12588_s13 + $0x28] sm:$0xff] %vm8643_vm2, %v8600_v43 }
 0x779   :  { %v9599_v37 = vpop.f32.mrf.mxu1 }
 0x77a   :  { %v8621_v29 = vadd.f32 %v9599_v37, %v9468_v4 }
 0x77b   :  { %v8612_v8 = vpop.f32.mrf.mxu1 }
 0x77c   :  { %8654 = vst.msk [vmem:[%s12588_s13 + $0x50] sm:$0xff] %vm8643_vm2, %v8621_v29  ;;  %v8613_v6 = vadd.f32 %v9468_v4, %v8612_v8 }
 0x77d   :  { %v9600_v50 = vpop.f32.mrf.mxu1 }
 0x77e   :  { %8652 = vst.msk [vmem:[%s12588_s13 + $0x40] sm:$0xff] %vm8643_vm2, %v8613_v6  ;;  %v8624_v61 = vadd.f32 %v9600_v50, %v9468_v4 }
 0x77f   :  { %v8615_v49 = vpop.f32.mrf.mxu1 }
 0x780   :  { %8655 = vst.msk [vmem:[%s12588_s13 + $0x58] sm:$0xff] %vm8643_vm2, %v8624_v61  ;;  %v8616_v17 = vadd.f32 %v9468_v4, %v8615_v49 }
 0x782   :  { %8653 = vst.msk [vmem:[%s12588_s13 + $0x48] sm:$0xff] %vm8643_vm2, %v8616_v17 }
 0x789   :  { %v9603_v30 = vpop.f32.mrf.mxu1 }
 0x78a   :  { %v8637_v48 = vadd.f32 %v9603_v30, %v9468_v4 }
 0x78b   :  { %v8628_v28 = vpop.f32.mrf.mxu1 }
 0x78c   :  { %8658 = vst.msk [vmem:[%s12588_s13 + $0x70] sm:$0xff] %vm8643_vm2, %v8637_v48  ;;  %v8629_v9 = vadd.f32 %v9468_v4, %v8628_v28 }
 0x78d   :  { %v9604_v31 = vpop.f32.mrf.mxu1 }
 0x78e   :  { %8656 = vst.msk [vmem:[%s12588_s13 + $0x60] sm:$0xff] %vm8643_vm2, %v8629_v9  ;;  %v8640_v11 = vadd.f32 %v9604_v31, %v9468_v4 }
 0x78f   :  { %v8631_v60 = vpop.f32.mrf.mxu1 }
 0x790   :  { %8659 = vst.msk [vmem:[%s12588_s13 + $0x78] sm:$0xff] %vm8643_vm2, %v8640_v11  ;;  %v8632_v39 = vadd.f32 %v9468_v4, %v8631_v60 }
 0x792   :  { %8657 = vst.msk [vmem:[%s12588_s13 + $0x68] sm:$0xff] %vm8643_vm2, %v8632_v39 }
 0x793   :  { %8664 = vsyncpa [#allocation3], 1 }
 0x794   :  { %8665 = vsyncpa [#allocation5], 1 }
 0x795   :  { %8666 = vsyncpa [#allocation8], 1 }
 0x796   :  { %8667 = vsyncpa [#allocation11], 1 }
 0x797   :  { %8668 = vsyncpa [#allocation14], 1 }
 0x798   :  { %8669 = vsyncpa [#allocation17], 1 }

</bundles_post_ra>
